<compile_context>
chip_gen: v5e
topology: v5e:2x2
jax: 0.10.0
libtpu: 0.0.40
codegen_flags: <defaults>
</compile_context>

<pallas_src>
import functools

import jax
import jax.numpy as jnp
from jax import lax
from jax.experimental import pallas as pl
from jax.experimental.pallas import tpu as pltpu


# ----------------------------------------------------------------------------
# Pallas kernel
# ----------------------------------------------------------------------------
def inrb_kernel(x_ref, w01_ref, w1b_ref, w2b_ref, w2c_ref,
                wr0_ref, wr1_ref, wr2_ref, o_ref, taps_ref, *, H, W):
    """One batch chunk.

    x_ref/o_ref: (nb, C, HW) block of the (N, C, HW) activation tensor.
    w01:  (96, C)    bf16  stacked 1x1 weights for the three branch stems
    w1b:  (32, 288)  bf16  fused 3x3 weights, K ordered (kh, kw, cin)
    w2b:  (48, 288)  bf16
    w2c:  (64, 432)  bf16
    wr0/1/2: (C, 32)/(C, 32)/(C, 64) bf16  residual 1x1 split per branch
    taps_ref: (432, L) bf16 VMEM scratch reused by all three 3x3 convs.
    """
    nb = x_ref.shape[0]
    HW = H * W
    L = nb * HW

    # ---- in-kernel batch->lane packing: (nb, C, HW) -> (C, L) f32.
    if nb == 1:
        x = x_ref[0].astype(jnp.float32)
    else:
        x = jnp.concatenate([x_ref[i].astype(jnp.float32) for i in range(nb)],
                            axis=1)                                   # (C, L)

    # ---- hoisted boundary masks (f32, built once, applied with a multiply).
    p = lax.broadcasted_iota(jnp.int32, (1, L), 1)
    q = (p & (HW - 1)) if (HW & (HW - 1)) == 0 else (p % HW)
    if (W & (W - 1)) == 0:
        sh = W.bit_length() - 1
        hh = q >> sh
        ww = q & (W - 1)
    else:
        hh = q // W
        ww = q % W
    masks = {}
    for kh in range(3):
        for kw in range(3):
            dh, dw = kh - 1, kw - 1
            if dh == 0 and dw == 0:
                continue
            m = ((hh + dh >= 0) & (hh + dh < H) &
                 (ww + dw >= 0) & (ww + dw < W))
            masks[(dh, dw)] = m.astype(jnp.float32)                   # (1, L)

    def mm(a, b):
        return jnp.dot(a, b, preferred_element_type=jnp.float32)

    def conv3x3(y, w_ref):
        # y: (Cin, L) f32.  Write the 9 rolled+masked taps (cast to bf16) into
        # the shared scratch, then one deep-K bf16 matmul.
        cin = y.shape[0]
        t = 0
        for kh in range(3):
            for kw in range(3):
                dh, dw = kh - 1, kw - 1
                s = dh * W + dw
                ys = y if s == 0 else pltpu.roll(y, shift=(-s) % L, axis=1)
                if not (dh == 0 and dw == 0):
                    ys = ys * masks[(dh, dw)]       # roll/mask in f32 (v5e safe)
                taps_ref[pl.ds(t * cin, cin), :] = ys.astype(jnp.bfloat16)
                t += 1
        return mm(w_ref[...], taps_ref[pl.ds(0, 9 * cin), :])        # (Cout, L)

    # ---- three branch 1x1 stems fused into one (96, C) @ (C, L) bf16 matmul.
    y01 = mm(w01_ref[...], x.astype(jnp.bfloat16))                    # (96, L) f32
    b0 = y01[0:32]
    b1 = conv3x3(y01[32:64], w1b_ref)                                 # (32, L)
    b2 = conv3x3(conv3x3(y01[64:96], w2b_ref), w2c_ref)               # (64, L)

    # ---- residual 1x1 split per branch (no 128xL concat buffer).
    res = (mm(wr0_ref[...], b0.astype(jnp.bfloat16)) +
           mm(wr1_ref[...], b1.astype(jnp.bfloat16)) +
           mm(wr2_ref[...], b2.astype(jnp.bfloat16)))                 # (C, L) f32

    out = jnp.maximum(res + x, 0.0)                                   # f32 add/ReLU

    # ---- in-kernel lane->batch unpacking.
    for i in range(nb):
        o_ref[i] = out[:, i * HW:(i + 1) * HW].astype(o_ref.dtype)


# ----------------------------------------------------------------------------
# Wrapper
# ----------------------------------------------------------------------------
def _tpu_generation():
    try:
        kind = jax.devices()[0].device_kind.lower()
    except Exception:
        return "unknown"
    if "v7" in kind:
        return "v7x"
    if "v6" in kind:
        return "v6e"
    if "v5" in kind:
        return "v5e"
    return "other"


def _pick_tiling(N, C, HW, gen):
    """Choose nb (batch elems packed per grid step) and the VMEM limit."""
    if gen in ("v5e", "v6e"):
        lane_target = 16384            # 128 MiB physical VMEM
        vmem_budget = 88 << 20
        vmem_limit = 100 << 20
    else:                              # v7x / unknown: only 64 MiB per TC
        lane_target = 8192
        vmem_budget = 40 << 20
        vmem_limit = 56 << 20

    # Conservative per-lane live-set estimate (f32 blocks double-buffered,
    # f32 y01/branches, bf16 tap scratch, masks, temporaries).
    bytes_per_lane = 32 * C + 3072
    lane_cap = min(lane_target, max(128, vmem_budget // bytes_per_lane))
    nb_cap = max(1, lane_cap // HW)

    divisors = [d for d in range(1, N + 1) if N % d == 0 and d <= nb_cap]
    if gen == "v7x" and N >= 2:
        # Keep >=2 grid steps (prefer an even count) so both TCs get work.
        even = [d for d in divisors if (N // d) >= 2 and (N // d) % 2 == 0]
        multi = [d for d in divisors if (N // d) >= 2]
        divisors = even or multi or divisors
    # TODO(synk): when N == 1 on v7x, split the spatial axis (with halo) so the
    # second TensorCore is not idle.
    aligned = [d for d in divisors if (d * HW) % 128 == 0]
    nb = max(aligned or divisors)
    return nb, vmem_limit


def inrb_forward(x_nchw, params):
    N, C, H, W = x_nchw.shape
    HW = H * W
    gen = _tpu_generation()
    nb, vmem_limit = _pick_tiling(N, C, HW, gen)
    num_chunks = N // nb
    L = nb * HW

    # Free relayout: NCHW -> (N, C, HW).  No host transposes.
    x3 = x_nchw.reshape(N, C, HW)

    def fuse3x3(w):
        # OIHW (O, I, 3, 3) -> (O, 9*I), K ordered (kh, kw, i) to match the
        # tap order in the kernel.
        O, I = w.shape[0], w.shape[1]
        return w.transpose(0, 2, 3, 1).reshape(O, 9 * I)

    bf16 = jnp.bfloat16
    wres = params["wres"]                                            # (C, 128)
    weights = [
        jnp.concatenate([params["w0"], params["w1a"], params["w2a"]], 0).astype(bf16),
        fuse3x3(params["w1b"]).astype(bf16),                         # (32, 288)
        fuse3x3(params["w2b"]).astype(bf16),                         # (48, 288)
        fuse3x3(params["w2c"]).astype(bf16),                         # (64, 432)
        wres[:, 0:32].astype(bf16),                                  # (C, 32)  -> b0
        wres[:, 32:64].astype(bf16),                                 # (C, 32)  -> b1
        wres[:, 64:128].astype(bf16),                                # (C, 64)  -> b2
    ]

    in_specs = [pl.BlockSpec((nb, C, HW), lambda n: (n, 0, 0))]
    in_specs += [pl.BlockSpec(tuple(w.shape), lambda n: (0, 0)) for w in weights]

    out = pl.pallas_call(
        functools.partial(inrb_kernel, H=H, W=W),
        out_shape=jax.ShapeDtypeStruct((N, C, HW), x_nchw.dtype),
        grid_spec=pltpu.PrefetchScalarGridSpec(
            num_scalar_prefetch=0,
            grid=(num_chunks,),
            in_specs=in_specs,
            out_specs=pl.BlockSpec((nb, C, HW), lambda n: (n, 0, 0)),
            scratch_shapes=[pltpu.VMEM((432, L), jnp.bfloat16)],
        ),
        compiler_params=pltpu.CompilerParams(
            dimension_semantics=("parallel",),
            vmem_limit_bytes=vmem_limit),
    )(x3, *weights)

    return out.reshape(N, C, H, W)


# ----------------------------------------------------------------------------
# Pure-JAX reference (mirrors the PyTorch module, NCHW / OIHW)
# ----------------------------------------------------------------------------
def inrb_reference(x, p):
    def c1(x, wmat):
        return lax.conv_general_dilated(
            x, wmat[:, :, None, None], (1, 1), "VALID",
            dimension_numbers=("NCHW", "OIHW", "NCHW"))

    def c3(x, w):
        return lax.conv_general_dilated(
            x, w, (1, 1), ((1, 1), (1, 1)),
            dimension_numbers=("NCHW", "OIHW", "NCHW"))

    b0 = c1(x, p["w0"])
    b1 = c3(c1(x, p["w1a"]), p["w1b"])
    b2 = c3(c3(c1(x, p["w2a"]), p["w2b"]), p["w2c"])
    cat = jnp.concatenate([b0, b1, b2], axis=1)
    out = c1(cat, p["wres"]) + x
    return jnp.maximum(out, 0.0)


# ----------------------------------------------------------------------------
# Deterministic parameter init (synthetic; shapes from INRB.__init__)
# ----------------------------------------------------------------------------
def init_params(key, in_channels):
    shapes = {
        "w0":   (32, in_channels),        # 1x1 conv, stored as (O, I)
        "w1a":  (32, in_channels),
        "w1b":  (32, 32, 3, 3),           # OIHW
        "w2a":  (32, in_channels),
        "w2b":  (48, 32, 3, 3),
        "w2c":  (64, 48, 3, 3),
        "wres": (in_channels, 128),       # 1x1 conv, (O, I)
    }
    params = {}
    for name, shape in shapes.items():
        key, sub = jax.random.split(key)
        fan_in = shape[1] * (shape[2] * shape[3] if len(shape) == 4 else 1)
        params[name] = (jax.random.normal(sub, shape, jnp.float32)
                        / jnp.sqrt(float(fan_in)))
    return params


if __name__ == "__main__":
    key = jax.random.PRNGKey(0)
    k_x, k_w = jax.random.split(key)

    N, C, H, W = 2, 4, 16, 16
    x = jax.random.normal(k_x, (N, C, H, W), jnp.float32)
    params = init_params(k_w, C)

    out_kernel = inrb_forward(x, params)
    jax.block_until_ready(out_kernel)

    out_ref = inrb_reference(x, params)
    max_err = float(jnp.max(jnp.abs(out_kernel - out_ref)))
    assert out_kernel.shape == (N, C, H, W)
    assert max_err < 3e-2, f"mismatch vs reference: {max_err}"

    print("KERNEL_OK")
</pallas_src>

<mosaic_0001>
module attributes {stable_mosaic.version = 11 : i64} {
  func.func @inrb_kernel(%arg0: i32, %arg1: memref<2x4x256xf32, #tpu.memory_space<vmem>>, %arg2: memref<96x4xbf16, #tpu.memory_space<vmem>>, %arg3: memref<32x288xbf16, #tpu.memory_space<vmem>>, %arg4: memref<48x288xbf16, #tpu.memory_space<vmem>>, %arg5: memref<64x432xbf16, #tpu.memory_space<vmem>>, %arg6: memref<4x32xbf16, #tpu.memory_space<vmem>>, %arg7: memref<4x32xbf16, #tpu.memory_space<vmem>>, %arg8: memref<4x64xbf16, #tpu.memory_space<vmem>>, %arg9: memref<2x4x256xf32, #tpu.memory_space<vmem>>, %arg10: memref<432x512xbf16, #tpu.memory_space<vmem>>) attributes {dimension_semantics = [#tpu.dimension_semantics<parallel>], iteration_bounds = array<i64: 1>, scalar_prefetch = 0 : i64, scratch_operands = 1 : i64, tpu.core_type = #tpu.core_type<tc>, window_params = [{transform_indices = @transform_0, window_bounds = array<i64: 2, 4, 256>}, {pipeline_mode = #tpu.pipeline_mode<synchronous>, transform_indices = @transform_1, window_bounds = array<i64: 96, 4>}, {pipeline_mode = #tpu.pipeline_mode<synchronous>, transform_indices = @transform_2, window_bounds = array<i64: 32, 288>}, {pipeline_mode = #tpu.pipeline_mode<synchronous>, transform_indices = @transform_3, window_bounds = array<i64: 48, 288>}, {pipeline_mode = #tpu.pipeline_mode<synchronous>, transform_indices = @transform_4, window_bounds = array<i64: 64, 432>}, {pipeline_mode = #tpu.pipeline_mode<synchronous>, transform_indices = @transform_5, window_bounds = array<i64: 4, 32>}, {pipeline_mode = #tpu.pipeline_mode<synchronous>, transform_indices = @transform_6, window_bounds = array<i64: 4, 32>}, {pipeline_mode = #tpu.pipeline_mode<synchronous>, transform_indices = @transform_7, window_bounds = array<i64: 4, 64>}, {transform_indices = @transform_8, window_bounds = array<i64: 2, 4, 256>}]} {
    %c0 = arith.constant 0 : index
    %c0_0 = arith.constant 0 : index
    %c0_1 = arith.constant 0 : index
    %0 = vector.load %arg1[%c0, %c0_0, %c0_1] : memref<2x4x256xf32, #tpu.memory_space<vmem>>, vector<1x4x256xf32>
    %1 = vector.shape_cast %0 : vector<1x4x256xf32> to vector<4x256xf32>
    %c1 = arith.constant 1 : index
    %c0_2 = arith.constant 0 : index
    %c0_3 = arith.constant 0 : index
    %2 = vector.load %arg1[%c1, %c0_2, %c0_3] : memref<2x4x256xf32, #tpu.memory_space<vmem>>, vector<1x4x256xf32>
    %3 = vector.shape_cast %2 : vector<1x4x256xf32> to vector<4x256xf32>
    %4 = tpu.concatenate %1, %3 in 1 : vector<4x256xf32>, vector<4x256xf32> -> vector<4x512xf32>
    %5 = tpu.iota {dimensions = array<i32: 1>} : vector<1x512xi32>
    %c255_i32 = arith.constant 255 : i32
    %6 = vector.broadcast %c255_i32 : i32 to vector<1x512xi32>
    %7 = arith.andi %5, %6 : vector<1x512xi32>
    %c4_i32 = arith.constant 4 : i32
    %8 = vector.broadcast %c4_i32 : i32 to vector<1x512xi32>
    %9 = arith.shrsi %7, %8 : vector<1x512xi32>
    %c15_i32 = arith.constant 15 : i32
    %10 = vector.broadcast %c15_i32 : i32 to vector<1x512xi32>
    %11 = arith.andi %7, %10 : vector<1x512xi32>
    %c-1_i32 = arith.constant -1 : i32
    %12 = vector.broadcast %c-1_i32 : i32 to vector<1x512xi32>
    %13 = arith.addi %9, %12 : vector<1x512xi32>
    %c0_i32 = arith.constant 0 : i32
    %14 = vector.broadcast %c0_i32 : i32 to vector<1x512xi32>
    %15 = arith.cmpi sge, %13, %14 : vector<1x512xi32>
    %c-1_i32_4 = arith.constant -1 : i32
    %16 = vector.broadcast %c-1_i32_4 : i32 to vector<1x512xi32>
    %17 = arith.addi %9, %16 : vector<1x512xi32>
    %c16_i32 = arith.constant 16 : i32
    %18 = vector.broadcast %c16_i32 : i32 to vector<1x512xi32>
    %19 = arith.cmpi slt, %17, %18 : vector<1x512xi32>
    %20 = arith.andi %15, %19 : vector<1x512xi1>
    %c-1_i32_5 = arith.constant -1 : i32
    %21 = vector.broadcast %c-1_i32_5 : i32 to vector<1x512xi32>
    %22 = arith.addi %11, %21 : vector<1x512xi32>
    %c0_i32_6 = arith.constant 0 : i32
    %23 = vector.broadcast %c0_i32_6 : i32 to vector<1x512xi32>
    %24 = arith.cmpi sge, %22, %23 : vector<1x512xi32>
    %25 = arith.andi %20, %24 : vector<1x512xi1>
    %c-1_i32_7 = arith.constant -1 : i32
    %26 = vector.broadcast %c-1_i32_7 : i32 to vector<1x512xi32>
    %27 = arith.addi %11, %26 : vector<1x512xi32>
    %c16_i32_8 = arith.constant 16 : i32
    %28 = vector.broadcast %c16_i32_8 : i32 to vector<1x512xi32>
    %29 = arith.cmpi slt, %27, %28 : vector<1x512xi32>
    %30 = arith.andi %25, %29 : vector<1x512xi1>
    %31 = arith.extui %30 : vector<1x512xi1> to vector<1x512xi32>
    %32 = arith.sitofp %31 : vector<1x512xi32> to vector<1x512xf32>
    %c-1_i32_9 = arith.constant -1 : i32
    %33 = vector.broadcast %c-1_i32_9 : i32 to vector<1x512xi32>
    %34 = arith.addi %9, %33 : vector<1x512xi32>
    %c0_i32_10 = arith.constant 0 : i32
    %35 = vector.broadcast %c0_i32_10 : i32 to vector<1x512xi32>
    %36 = arith.cmpi sge, %34, %35 : vector<1x512xi32>
    %c-1_i32_11 = arith.constant -1 : i32
    %37 = vector.broadcast %c-1_i32_11 : i32 to vector<1x512xi32>
    %38 = arith.addi %9, %37 : vector<1x512xi32>
    %c16_i32_12 = arith.constant 16 : i32
    %39 = vector.broadcast %c16_i32_12 : i32 to vector<1x512xi32>
    %40 = arith.cmpi slt, %38, %39 : vector<1x512xi32>
    %41 = arith.andi %36, %40 : vector<1x512xi1>
    %c0_i32_13 = arith.constant 0 : i32
    %42 = vector.broadcast %c0_i32_13 : i32 to vector<1x512xi32>
    %43 = arith.addi %11, %42 : vector<1x512xi32>
    %c0_i32_14 = arith.constant 0 : i32
    %44 = vector.broadcast %c0_i32_14 : i32 to vector<1x512xi32>
    %45 = arith.cmpi sge, %43, %44 : vector<1x512xi32>
    %46 = arith.andi %41, %45 : vector<1x512xi1>
    %c0_i32_15 = arith.constant 0 : i32
    %47 = vector.broadcast %c0_i32_15 : i32 to vector<1x512xi32>
    %48 = arith.addi %11, %47 : vector<1x512xi32>
    %c16_i32_16 = arith.constant 16 : i32
    %49 = vector.broadcast %c16_i32_16 : i32 to vector<1x512xi32>
    %50 = arith.cmpi slt, %48, %49 : vector<1x512xi32>
    %51 = arith.andi %46, %50 : vector<1x512xi1>
    %52 = arith.extui %51 : vector<1x512xi1> to vector<1x512xi32>
    %53 = arith.sitofp %52 : vector<1x512xi32> to vector<1x512xf32>
    %c-1_i32_17 = arith.constant -1 : i32
    %54 = vector.broadcast %c-1_i32_17 : i32 to vector<1x512xi32>
    %55 = arith.addi %9, %54 : vector<1x512xi32>
    %c0_i32_18 = arith.constant 0 : i32
    %56 = vector.broadcast %c0_i32_18 : i32 to vector<1x512xi32>
    %57 = arith.cmpi sge, %55, %56 : vector<1x512xi32>
    %c-1_i32_19 = arith.constant -1 : i32
    %58 = vector.broadcast %c-1_i32_19 : i32 to vector<1x512xi32>
    %59 = arith.addi %9, %58 : vector<1x512xi32>
    %c16_i32_20 = arith.constant 16 : i32
    %60 = vector.broadcast %c16_i32_20 : i32 to vector<1x512xi32>
    %61 = arith.cmpi slt, %59, %60 : vector<1x512xi32>
    %62 = arith.andi %57, %61 : vector<1x512xi1>
    %c1_i32 = arith.constant 1 : i32
    %63 = vector.broadcast %c1_i32 : i32 to vector<1x512xi32>
    %64 = arith.addi %11, %63 : vector<1x512xi32>
    %c0_i32_21 = arith.constant 0 : i32
    %65 = vector.broadcast %c0_i32_21 : i32 to vector<1x512xi32>
    %66 = arith.cmpi sge, %64, %65 : vector<1x512xi32>
    %67 = arith.andi %62, %66 : vector<1x512xi1>
    %c1_i32_22 = arith.constant 1 : i32
    %68 = vector.broadcast %c1_i32_22 : i32 to vector<1x512xi32>
    %69 = arith.addi %11, %68 : vector<1x512xi32>
    %c16_i32_23 = arith.constant 16 : i32
    %70 = vector.broadcast %c16_i32_23 : i32 to vector<1x512xi32>
    %71 = arith.cmpi slt, %69, %70 : vector<1x512xi32>
    %72 = arith.andi %67, %71 : vector<1x512xi1>
    %73 = arith.extui %72 : vector<1x512xi1> to vector<1x512xi32>
    %74 = arith.sitofp %73 : vector<1x512xi32> to vector<1x512xf32>
    %c0_i32_24 = arith.constant 0 : i32
    %75 = vector.broadcast %c0_i32_24 : i32 to vector<1x512xi32>
    %76 = arith.addi %9, %75 : vector<1x512xi32>
    %c0_i32_25 = arith.constant 0 : i32
    %77 = vector.broadcast %c0_i32_25 : i32 to vector<1x512xi32>
    %78 = arith.cmpi sge, %76, %77 : vector<1x512xi32>
    %c0_i32_26 = arith.constant 0 : i32
    %79 = vector.broadcast %c0_i32_26 : i32 to vector<1x512xi32>
    %80 = arith.addi %9, %79 : vector<1x512xi32>
    %c16_i32_27 = arith.constant 16 : i32
    %81 = vector.broadcast %c16_i32_27 : i32 to vector<1x512xi32>
    %82 = arith.cmpi slt, %80, %81 : vector<1x512xi32>
    %83 = arith.andi %78, %82 : vector<1x512xi1>
    %c-1_i32_28 = arith.constant -1 : i32
    %84 = vector.broadcast %c-1_i32_28 : i32 to vector<1x512xi32>
    %85 = arith.addi %11, %84 : vector<1x512xi32>
    %c0_i32_29 = arith.constant 0 : i32
    %86 = vector.broadcast %c0_i32_29 : i32 to vector<1x512xi32>
    %87 = arith.cmpi sge, %85, %86 : vector<1x512xi32>
    %88 = arith.andi %83, %87 : vector<1x512xi1>
    %c-1_i32_30 = arith.constant -1 : i32
    %89 = vector.broadcast %c-1_i32_30 : i32 to vector<1x512xi32>
    %90 = arith.addi %11, %89 : vector<1x512xi32>
    %c16_i32_31 = arith.constant 16 : i32
    %91 = vector.broadcast %c16_i32_31 : i32 to vector<1x512xi32>
    %92 = arith.cmpi slt, %90, %91 : vector<1x512xi32>
    %93 = arith.andi %88, %92 : vector<1x512xi1>
    %94 = arith.extui %93 : vector<1x512xi1> to vector<1x512xi32>
    %95 = arith.sitofp %94 : vector<1x512xi32> to vector<1x512xf32>
    %c0_i32_32 = arith.constant 0 : i32
    %96 = vector.broadcast %c0_i32_32 : i32 to vector<1x512xi32>
    %97 = arith.addi %9, %96 : vector<1x512xi32>
    %c0_i32_33 = arith.constant 0 : i32
    %98 = vector.broadcast %c0_i32_33 : i32 to vector<1x512xi32>
    %99 = arith.cmpi sge, %97, %98 : vector<1x512xi32>
    %c0_i32_34 = arith.constant 0 : i32
    %100 = vector.broadcast %c0_i32_34 : i32 to vector<1x512xi32>
    %101 = arith.addi %9, %100 : vector<1x512xi32>
    %c16_i32_35 = arith.constant 16 : i32
    %102 = vector.broadcast %c16_i32_35 : i32 to vector<1x512xi32>
    %103 = arith.cmpi slt, %101, %102 : vector<1x512xi32>
    %104 = arith.andi %99, %103 : vector<1x512xi1>
    %c1_i32_36 = arith.constant 1 : i32
    %105 = vector.broadcast %c1_i32_36 : i32 to vector<1x512xi32>
    %106 = arith.addi %11, %105 : vector<1x512xi32>
    %c0_i32_37 = arith.constant 0 : i32
    %107 = vector.broadcast %c0_i32_37 : i32 to vector<1x512xi32>
    %108 = arith.cmpi sge, %106, %107 : vector<1x512xi32>
    %109 = arith.andi %104, %108 : vector<1x512xi1>
    %c1_i32_38 = arith.constant 1 : i32
    %110 = vector.broadcast %c1_i32_38 : i32 to vector<1x512xi32>
    %111 = arith.addi %11, %110 : vector<1x512xi32>
    %c16_i32_39 = arith.constant 16 : i32
    %112 = vector.broadcast %c16_i32_39 : i32 to vector<1x512xi32>
    %113 = arith.cmpi slt, %111, %112 : vector<1x512xi32>
    %114 = arith.andi %109, %113 : vector<1x512xi1>
    %115 = arith.extui %114 : vector<1x512xi1> to vector<1x512xi32>
    %116 = arith.sitofp %115 : vector<1x512xi32> to vector<1x512xf32>
    %c1_i32_40 = arith.constant 1 : i32
    %117 = vector.broadcast %c1_i32_40 : i32 to vector<1x512xi32>
    %118 = arith.addi %9, %117 : vector<1x512xi32>
    %c0_i32_41 = arith.constant 0 : i32
    %119 = vector.broadcast %c0_i32_41 : i32 to vector<1x512xi32>
    %120 = arith.cmpi sge, %118, %119 : vector<1x512xi32>
    %c1_i32_42 = arith.constant 1 : i32
    %121 = vector.broadcast %c1_i32_42 : i32 to vector<1x512xi32>
    %122 = arith.addi %9, %121 : vector<1x512xi32>
    %c16_i32_43 = arith.constant 16 : i32
    %123 = vector.broadcast %c16_i32_43 : i32 to vector<1x512xi32>
    %124 = arith.cmpi slt, %122, %123 : vector<1x512xi32>
    %125 = arith.andi %120, %124 : vector<1x512xi1>
    %c-1_i32_44 = arith.constant -1 : i32
    %126 = vector.broadcast %c-1_i32_44 : i32 to vector<1x512xi32>
    %127 = arith.addi %11, %126 : vector<1x512xi32>
    %c0_i32_45 = arith.constant 0 : i32
    %128 = vector.broadcast %c0_i32_45 : i32 to vector<1x512xi32>
    %129 = arith.cmpi sge, %127, %128 : vector<1x512xi32>
    %130 = arith.andi %125, %129 : vector<1x512xi1>
    %c-1_i32_46 = arith.constant -1 : i32
    %131 = vector.broadcast %c-1_i32_46 : i32 to vector<1x512xi32>
    %132 = arith.addi %11, %131 : vector<1x512xi32>
    %c16_i32_47 = arith.constant 16 : i32
    %133 = vector.broadcast %c16_i32_47 : i32 to vector<1x512xi32>
    %134 = arith.cmpi slt, %132, %133 : vector<1x512xi32>
    %135 = arith.andi %130, %134 : vector<1x512xi1>
    %136 = arith.extui %135 : vector<1x512xi1> to vector<1x512xi32>
    %137 = arith.sitofp %136 : vector<1x512xi32> to vector<1x512xf32>
    %c1_i32_48 = arith.constant 1 : i32
    %138 = vector.broadcast %c1_i32_48 : i32 to vector<1x512xi32>
    %139 = arith.addi %9, %138 : vector<1x512xi32>
    %c0_i32_49 = arith.constant 0 : i32
    %140 = vector.broadcast %c0_i32_49 : i32 to vector<1x512xi32>
    %141 = arith.cmpi sge, %139, %140 : vector<1x512xi32>
    %c1_i32_50 = arith.constant 1 : i32
    %142 = vector.broadcast %c1_i32_50 : i32 to vector<1x512xi32>
    %143 = arith.addi %9, %142 : vector<1x512xi32>
    %c16_i32_51 = arith.constant 16 : i32
    %144 = vector.broadcast %c16_i32_51 : i32 to vector<1x512xi32>
    %145 = arith.cmpi slt, %143, %144 : vector<1x512xi32>
    %146 = arith.andi %141, %145 : vector<1x512xi1>
    %c0_i32_52 = arith.constant 0 : i32
    %147 = vector.broadcast %c0_i32_52 : i32 to vector<1x512xi32>
    %148 = arith.addi %11, %147 : vector<1x512xi32>
    %c0_i32_53 = arith.constant 0 : i32
    %149 = vector.broadcast %c0_i32_53 : i32 to vector<1x512xi32>
    %150 = arith.cmpi sge, %148, %149 : vector<1x512xi32>
    %151 = arith.andi %146, %150 : vector<1x512xi1>
    %c0_i32_54 = arith.constant 0 : i32
    %152 = vector.broadcast %c0_i32_54 : i32 to vector<1x512xi32>
    %153 = arith.addi %11, %152 : vector<1x512xi32>
    %c16_i32_55 = arith.constant 16 : i32
    %154 = vector.broadcast %c16_i32_55 : i32 to vector<1x512xi32>
    %155 = arith.cmpi slt, %153, %154 : vector<1x512xi32>
    %156 = arith.andi %151, %155 : vector<1x512xi1>
    %157 = arith.extui %156 : vector<1x512xi1> to vector<1x512xi32>
    %158 = arith.sitofp %157 : vector<1x512xi32> to vector<1x512xf32>
    %c1_i32_56 = arith.constant 1 : i32
    %159 = vector.broadcast %c1_i32_56 : i32 to vector<1x512xi32>
    %160 = arith.addi %9, %159 : vector<1x512xi32>
    %c0_i32_57 = arith.constant 0 : i32
    %161 = vector.broadcast %c0_i32_57 : i32 to vector<1x512xi32>
    %162 = arith.cmpi sge, %160, %161 : vector<1x512xi32>
    %c1_i32_58 = arith.constant 1 : i32
    %163 = vector.broadcast %c1_i32_58 : i32 to vector<1x512xi32>
    %164 = arith.addi %9, %163 : vector<1x512xi32>
    %c16_i32_59 = arith.constant 16 : i32
    %165 = vector.broadcast %c16_i32_59 : i32 to vector<1x512xi32>
    %166 = arith.cmpi slt, %164, %165 : vector<1x512xi32>
    %167 = arith.andi %162, %166 : vector<1x512xi1>
    %c1_i32_60 = arith.constant 1 : i32
    %168 = vector.broadcast %c1_i32_60 : i32 to vector<1x512xi32>
    %169 = arith.addi %11, %168 : vector<1x512xi32>
    %c0_i32_61 = arith.constant 0 : i32
    %170 = vector.broadcast %c0_i32_61 : i32 to vector<1x512xi32>
    %171 = arith.cmpi sge, %169, %170 : vector<1x512xi32>
    %172 = arith.andi %167, %171 : vector<1x512xi1>
    %c1_i32_62 = arith.constant 1 : i32
    %173 = vector.broadcast %c1_i32_62 : i32 to vector<1x512xi32>
    %174 = arith.addi %11, %173 : vector<1x512xi32>
    %c16_i32_63 = arith.constant 16 : i32
    %175 = vector.broadcast %c16_i32_63 : i32 to vector<1x512xi32>
    %176 = arith.cmpi slt, %174, %175 : vector<1x512xi32>
    %177 = arith.andi %172, %176 : vector<1x512xi1>
    %178 = arith.extui %177 : vector<1x512xi1> to vector<1x512xi32>
    %179 = arith.sitofp %178 : vector<1x512xi32> to vector<1x512xf32>
    %c0_64 = arith.constant 0 : index
    %c0_65 = arith.constant 0 : index
    %180 = vector.load %arg2[%c0_64, %c0_65] : memref<96x4xbf16, #tpu.memory_space<vmem>>, vector<96x4xbf16>
    %181 = arith.truncf %4 : vector<4x512xf32> to vector<4x512xbf16>
    %cst = arith.constant dense<0.000000e+00> : vector<96x512xf32>
    %182 = tpu.matmul %180, %181, %cst {dimension_numbers = #tpu.dot_dimension_numbers<[1], [0], [0], [1], [0, 0, 1, 1], [], []>} : vector<96x4xbf16>, vector<4x512xbf16>, vector<96x512xf32> -> vector<96x512xf32>
    %183 = vector.extract_strided_slice %182 {offsets = [0, 0], sizes = [32, 512], strides = [1, 1]} : vector<96x512xf32> to vector<32x512xf32>
    %184 = vector.extract_strided_slice %182 {offsets = [32, 0], sizes = [32, 512], strides = [1, 1]} : vector<96x512xf32> to vector<32x512xf32>
    %c17_i32 = arith.constant 17 : i32
    %185 = tpu.dynamic_rotate %184 by %c17_i32 dim 1 : vector<32x512xf32>, i32 -> vector<32x512xf32>
    %186 = vector.broadcast %32 : vector<1x512xf32> to vector<32x512xf32>
    %187 = arith.mulf %185, %186 : vector<32x512xf32>
    %188 = arith.truncf %187 : vector<32x512xf32> to vector<32x512xbf16>
    %c0_66 = arith.constant 0 : index
    %c0_67 = arith.constant 0 : index
    %189 = vector.load %arg10[%c0_66, %c0_67] : memref<432x512xbf16, #tpu.memory_space<vmem>>, vector<32x512xbf16>
    tpu.vector_store %arg10[%c0_66, %c0_67], %188 {strides = array<i32>} : memref<432x512xbf16, #tpu.memory_space<vmem>>, vector<32x512xbf16>,
    %c16_i32_68 = arith.constant 16 : i32
    %190 = tpu.dynamic_rotate %184 by %c16_i32_68 dim 1 : vector<32x512xf32>, i32 -> vector<32x512xf32>
    %191 = vector.broadcast %53 : vector<1x512xf32> to vector<32x512xf32>
    %192 = arith.mulf %190, %191 : vector<32x512xf32>
    %193 = arith.truncf %192 : vector<32x512xf32> to vector<32x512xbf16>
    %c32 = arith.constant 32 : index
    %c0_69 = arith.constant 0 : index
    %194 = vector.load %arg10[%c32, %c0_69] : memref<432x512xbf16, #tpu.memory_space<vmem>>, vector<32x512xbf16>
    tpu.vector_store %arg10[%c32, %c0_69], %193 {strides = array<i32>} : memref<432x512xbf16, #tpu.memory_space<vmem>>, vector<32x512xbf16>,
    %c15_i32_70 = arith.constant 15 : i32
    %195 = tpu.dynamic_rotate %184 by %c15_i32_70 dim 1 : vector<32x512xf32>, i32 -> vector<32x512xf32>
    %196 = vector.broadcast %74 : vector<1x512xf32> to vector<32x512xf32>
    %197 = arith.mulf %195, %196 : vector<32x512xf32>
    %198 = arith.truncf %197 : vector<32x512xf32> to vector<32x512xbf16>
    %c64 = arith.constant 64 : index
    %c0_71 = arith.constant 0 : index
    %199 = vector.load %arg10[%c64, %c0_71] : memref<432x512xbf16, #tpu.memory_space<vmem>>, vector<32x512xbf16>
    tpu.vector_store %arg10[%c64, %c0_71], %198 {strides = array<i32>} : memref<432x512xbf16, #tpu.memory_space<vmem>>, vector<32x512xbf16>,
    %c1_i32_72 = arith.constant 1 : i32
    %200 = tpu.dynamic_rotate %184 by %c1_i32_72 dim 1 : vector<32x512xf32>, i32 -> vector<32x512xf32>
    %201 = vector.broadcast %95 : vector<1x512xf32> to vector<32x512xf32>
    %202 = arith.mulf %200, %201 : vector<32x512xf32>
    %203 = arith.truncf %202 : vector<32x512xf32> to vector<32x512xbf16>
    %c96 = arith.constant 96 : index
    %c0_73 = arith.constant 0 : index
    %204 = vector.load %arg10[%c96, %c0_73] : memref<432x512xbf16, #tpu.memory_space<vmem>>, vector<32x512xbf16>
    tpu.vector_store %arg10[%c96, %c0_73], %203 {strides = array<i32>} : memref<432x512xbf16, #tpu.memory_space<vmem>>, vector<32x512xbf16>,
    %205 = arith.truncf %184 : vector<32x512xf32> to vector<32x512xbf16>
    %c128 = arith.constant 128 : index
    %c0_74 = arith.constant 0 : index
    %206 = vector.load %arg10[%c128, %c0_74] : memref<432x512xbf16, #tpu.memory_space<vmem>>, vector<32x512xbf16>
    tpu.vector_store %arg10[%c128, %c0_74], %205 {strides = array<i32>} : memref<432x512xbf16, #tpu.memory_space<vmem>>, vector<32x512xbf16>,
    %c511_i32 = arith.constant 511 : i32
    %207 = tpu.dynamic_rotate %184 by %c511_i32 dim 1 : vector<32x512xf32>, i32 -> vector<32x512xf32>
    %208 = vector.broadcast %116 : vector<1x512xf32> to vector<32x512xf32>
    %209 = arith.mulf %207, %208 : vector<32x512xf32>
    %210 = arith.truncf %209 : vector<32x512xf32> to vector<32x512xbf16>
    %c160 = arith.constant 160 : index
    %c0_75 = arith.constant 0 : index
    %211 = vector.load %arg10[%c160, %c0_75] : memref<432x512xbf16, #tpu.memory_space<vmem>>, vector<32x512xbf16>
    tpu.vector_store %arg10[%c160, %c0_75], %210 {strides = array<i32>} : memref<432x512xbf16, #tpu.memory_space<vmem>>, vector<32x512xbf16>,
    %c497_i32 = arith.constant 497 : i32
    %212 = tpu.dynamic_rotate %184 by %c497_i32 dim 1 : vector<32x512xf32>, i32 -> vector<32x512xf32>
    %213 = vector.broadcast %137 : vector<1x512xf32> to vector<32x512xf32>
    %214 = arith.mulf %212, %213 : vector<32x512xf32>
    %215 = arith.truncf %214 : vector<32x512xf32> to vector<32x512xbf16>
    %c192 = arith.constant 192 : index
    %c0_76 = arith.constant 0 : index
    %216 = vector.load %arg10[%c192, %c0_76] : memref<432x512xbf16, #tpu.memory_space<vmem>>, vector<32x512xbf16>
    tpu.vector_store %arg10[%c192, %c0_76], %215 {strides = array<i32>} : memref<432x512xbf16, #tpu.memory_space<vmem>>, vector<32x512xbf16>,
    %c496_i32 = arith.constant 496 : i32
    %217 = tpu.dynamic_rotate %184 by %c496_i32 dim 1 : vector<32x512xf32>, i32 -> vector<32x512xf32>
    %218 = vector.broadcast %158 : vector<1x512xf32> to vector<32x512xf32>
    %219 = arith.mulf %217, %218 : vector<32x512xf32>
    %220 = arith.truncf %219 : vector<32x512xf32> to vector<32x512xbf16>
    %c224 = arith.constant 224 : index
    %c0_77 = arith.constant 0 : index
    %221 = vector.load %arg10[%c224, %c0_77] : memref<432x512xbf16, #tpu.memory_space<vmem>>, vector<32x512xbf16>
    tpu.vector_store %arg10[%c224, %c0_77], %220 {strides = array<i32>} : memref<432x512xbf16, #tpu.memory_space<vmem>>, vector<32x512xbf16>,
    %c495_i32 = arith.constant 495 : i32
    %222 = tpu.dynamic_rotate %184 by %c495_i32 dim 1 : vector<32x512xf32>, i32 -> vector<32x512xf32>
    %223 = vector.broadcast %179 : vector<1x512xf32> to vector<32x512xf32>
    %224 = arith.mulf %222, %223 : vector<32x512xf32>
    %225 = arith.truncf %224 : vector<32x512xf32> to vector<32x512xbf16>
    %c256 = arith.constant 256 : index
    %c0_78 = arith.constant 0 : index
    %226 = vector.load %arg10[%c256, %c0_78] : memref<432x512xbf16, #tpu.memory_space<vmem>>, vector<32x512xbf16>
    tpu.vector_store %arg10[%c256, %c0_78], %225 {strides = array<i32>} : memref<432x512xbf16, #tpu.memory_space<vmem>>, vector<32x512xbf16>,
    %c0_79 = arith.constant 0 : index
    %c0_80 = arith.constant 0 : index
    %227 = vector.load %arg3[%c0_79, %c0_80] : memref<32x288xbf16, #tpu.memory_space<vmem>>, vector<32x288xbf16>
    %c0_81 = arith.constant 0 : index
    %c0_82 = arith.constant 0 : index
    %228 = vector.load %arg10[%c0_81, %c0_82] : memref<432x512xbf16, #tpu.memory_space<vmem>>, vector<288x512xbf16>
    %cst_83 = arith.constant dense<0.000000e+00> : vector<32x512xf32>
    %229 = tpu.matmul %227, %228, %cst_83 {dimension_numbers = #tpu.dot_dimension_numbers<[1], [0], [0], [1], [0, 0, 1, 1], [], []>} : vector<32x288xbf16>, vector<288x512xbf16>, vector<32x512xf32> -> vector<32x512xf32>
    %230 = vector.extract_strided_slice %182 {offsets = [64, 0], sizes = [32, 512], strides = [1, 1]} : vector<96x512xf32> to vector<32x512xf32>
    %c17_i32_84 = arith.constant 17 : i32
    %231 = tpu.dynamic_rotate %230 by %c17_i32_84 dim 1 : vector<32x512xf32>, i32 -> vector<32x512xf32>
    %232 = vector.broadcast %32 : vector<1x512xf32> to vector<32x512xf32>
    %233 = arith.mulf %231, %232 : vector<32x512xf32>
    %234 = arith.truncf %233 : vector<32x512xf32> to vector<32x512xbf16>
    %c0_85 = arith.constant 0 : index
    %c0_86 = arith.constant 0 : index
    %235 = vector.load %arg10[%c0_85, %c0_86] : memref<432x512xbf16, #tpu.memory_space<vmem>>, vector<32x512xbf16>
    tpu.vector_store %arg10[%c0_85, %c0_86], %234 {strides = array<i32>} : memref<432x512xbf16, #tpu.memory_space<vmem>>, vector<32x512xbf16>,
    %c16_i32_87 = arith.constant 16 : i32
    %236 = tpu.dynamic_rotate %230 by %c16_i32_87 dim 1 : vector<32x512xf32>, i32 -> vector<32x512xf32>
    %237 = vector.broadcast %53 : vector<1x512xf32> to vector<32x512xf32>
    %238 = arith.mulf %236, %237 : vector<32x512xf32>
    %239 = arith.truncf %238 : vector<32x512xf32> to vector<32x512xbf16>
    %c32_88 = arith.constant 32 : index
    %c0_89 = arith.constant 0 : index
    %240 = vector.load %arg10[%c32_88, %c0_89] : memref<432x512xbf16, #tpu.memory_space<vmem>>, vector<32x512xbf16>
    tpu.vector_store %arg10[%c32_88, %c0_89], %239 {strides = array<i32>} : memref<432x512xbf16, #tpu.memory_space<vmem>>, vector<32x512xbf16>,
    %c15_i32_90 = arith.constant 15 : i32
    %241 = tpu.dynamic_rotate %230 by %c15_i32_90 dim 1 : vector<32x512xf32>, i32 -> vector<32x512xf32>
    %242 = vector.broadcast %74 : vector<1x512xf32> to vector<32x512xf32>
    %243 = arith.mulf %241, %242 : vector<32x512xf32>
    %244 = arith.truncf %243 : vector<32x512xf32> to vector<32x512xbf16>
    %c64_91 = arith.constant 64 : index
    %c0_92 = arith.constant 0 : index
    %245 = vector.load %arg10[%c64_91, %c0_92] : memref<432x512xbf16, #tpu.memory_space<vmem>>, vector<32x512xbf16>
    tpu.vector_store %arg10[%c64_91, %c0_92], %244 {strides = array<i32>} : memref<432x512xbf16, #tpu.memory_space<vmem>>, vector<32x512xbf16>,
    %c1_i32_93 = arith.constant 1 : i32
    %246 = tpu.dynamic_rotate %230 by %c1_i32_93 dim 1 : vector<32x512xf32>, i32 -> vector<32x512xf32>
    %247 = vector.broadcast %95 : vector<1x512xf32> to vector<32x512xf32>
    %248 = arith.mulf %246, %247 : vector<32x512xf32>
    %249 = arith.truncf %248 : vector<32x512xf32> to vector<32x512xbf16>
    %c96_94 = arith.constant 96 : index
    %c0_95 = arith.constant 0 : index
    %250 = vector.load %arg10[%c96_94, %c0_95] : memref<432x512xbf16, #tpu.memory_space<vmem>>, vector<32x512xbf16>
    tpu.vector_store %arg10[%c96_94, %c0_95], %249 {strides = array<i32>} : memref<432x512xbf16, #tpu.memory_space<vmem>>, vector<32x512xbf16>,
    %251 = arith.truncf %230 : vector<32x512xf32> to vector<32x512xbf16>
    %c128_96 = arith.constant 128 : index
    %c0_97 = arith.constant 0 : index
    %252 = vector.load %arg10[%c128_96, %c0_97] : memref<432x512xbf16, #tpu.memory_space<vmem>>, vector<32x512xbf16>
    tpu.vector_store %arg10[%c128_96, %c0_97], %251 {strides = array<i32>} : memref<432x512xbf16, #tpu.memory_space<vmem>>, vector<32x512xbf16>,
    %c511_i32_98 = arith.constant 511 : i32
    %253 = tpu.dynamic_rotate %230 by %c511_i32_98 dim 1 : vector<32x512xf32>, i32 -> vector<32x512xf32>
    %254 = vector.broadcast %116 : vector<1x512xf32> to vector<32x512xf32>
    %255 = arith.mulf %253, %254 : vector<32x512xf32>
    %256 = arith.truncf %255 : vector<32x512xf32> to vector<32x512xbf16>
    %c160_99 = arith.constant 160 : index
    %c0_100 = arith.constant 0 : index
    %257 = vector.load %arg10[%c160_99, %c0_100] : memref<432x512xbf16, #tpu.memory_space<vmem>>, vector<32x512xbf16>
    tpu.vector_store %arg10[%c160_99, %c0_100], %256 {strides = array<i32>} : memref<432x512xbf16, #tpu.memory_space<vmem>>, vector<32x512xbf16>,
    %c497_i32_101 = arith.constant 497 : i32
    %258 = tpu.dynamic_rotate %230 by %c497_i32_101 dim 1 : vector<32x512xf32>, i32 -> vector<32x512xf32>
    %259 = vector.broadcast %137 : vector<1x512xf32> to vector<32x512xf32>
    %260 = arith.mulf %258, %259 : vector<32x512xf32>
    %261 = arith.truncf %260 : vector<32x512xf32> to vector<32x512xbf16>
    %c192_102 = arith.constant 192 : index
    %c0_103 = arith.constant 0 : index
    %262 = vector.load %arg10[%c192_102, %c0_103] : memref<432x512xbf16, #tpu.memory_space<vmem>>, vector<32x512xbf16>
    tpu.vector_store %arg10[%c192_102, %c0_103], %261 {strides = array<i32>} : memref<432x512xbf16, #tpu.memory_space<vmem>>, vector<32x512xbf16>,
    %c496_i32_104 = arith.constant 496 : i32
    %263 = tpu.dynamic_rotate %230 by %c496_i32_104 dim 1 : vector<32x512xf32>, i32 -> vector<32x512xf32>
    %264 = vector.broadcast %158 : vector<1x512xf32> to vector<32x512xf32>
    %265 = arith.mulf %263, %264 : vector<32x512xf32>
    %266 = arith.truncf %265 : vector<32x512xf32> to vector<32x512xbf16>
    %c224_105 = arith.constant 224 : index
    %c0_106 = arith.constant 0 : index
    %267 = vector.load %arg10[%c224_105, %c0_106] : memref<432x512xbf16, #tpu.memory_space<vmem>>, vector<32x512xbf16>
    tpu.vector_store %arg10[%c224_105, %c0_106], %266 {strides = array<i32>} : memref<432x512xbf16, #tpu.memory_space<vmem>>, vector<32x512xbf16>,
    %c495_i32_107 = arith.constant 495 : i32
    %268 = tpu.dynamic_rotate %230 by %c495_i32_107 dim 1 : vector<32x512xf32>, i32 -> vector<32x512xf32>
    %269 = vector.broadcast %179 : vector<1x512xf32> to vector<32x512xf32>
    %270 = arith.mulf %268, %269 : vector<32x512xf32>
    %271 = arith.truncf %270 : vector<32x512xf32> to vector<32x512xbf16>
    %c256_108 = arith.constant 256 : index
    %c0_109 = arith.constant 0 : index
    %272 = vector.load %arg10[%c256_108, %c0_109] : memref<432x512xbf16, #tpu.memory_space<vmem>>, vector<32x512xbf16>
    tpu.vector_store %arg10[%c256_108, %c0_109], %271 {strides = array<i32>} : memref<432x512xbf16, #tpu.memory_space<vmem>>, vector<32x512xbf16>,
    %c0_110 = arith.constant 0 : index
    %c0_111 = arith.constant 0 : index
    %273 = vector.load %arg4[%c0_110, %c0_111] : memref<48x288xbf16, #tpu.memory_space<vmem>>, vector<48x288xbf16>
    %c0_112 = arith.constant 0 : index
    %c0_113 = arith.constant 0 : index
    %274 = vector.load %arg10[%c0_112, %c0_113] : memref<432x512xbf16, #tpu.memory_space<vmem>>, vector<288x512xbf16>
    %cst_114 = arith.constant dense<0.000000e+00> : vector<48x512xf32>
    %275 = tpu.matmul %273, %274, %cst_114 {dimension_numbers = #tpu.dot_dimension_numbers<[1], [0], [0], [1], [0, 0, 1, 1], [], []>} : vector<48x288xbf16>, vector<288x512xbf16>, vector<48x512xf32> -> vector<48x512xf32>
    %c17_i32_115 = arith.constant 17 : i32
    %276 = tpu.dynamic_rotate %275 by %c17_i32_115 dim 1 : vector<48x512xf32>, i32 -> vector<48x512xf32>
    %277 = vector.broadcast %32 : vector<1x512xf32> to vector<48x512xf32>
    %278 = arith.mulf %276, %277 : vector<48x512xf32>
    %279 = arith.truncf %278 : vector<48x512xf32> to vector<48x512xbf16>
    %c0_116 = arith.constant 0 : index
    %c0_117 = arith.constant 0 : index
    %280 = vector.load %arg10[%c0_116, %c0_117] : memref<432x512xbf16, #tpu.memory_space<vmem>>, vector<48x512xbf16>
    tpu.vector_store %arg10[%c0_116, %c0_117], %279 {strides = array<i32>} : memref<432x512xbf16, #tpu.memory_space<vmem>>, vector<48x512xbf16>,
    %c16_i32_118 = arith.constant 16 : i32
    %281 = tpu.dynamic_rotate %275 by %c16_i32_118 dim 1 : vector<48x512xf32>, i32 -> vector<48x512xf32>
    %282 = vector.broadcast %53 : vector<1x512xf32> to vector<48x512xf32>
    %283 = arith.mulf %281, %282 : vector<48x512xf32>
    %284 = arith.truncf %283 : vector<48x512xf32> to vector<48x512xbf16>
    %c48 = arith.constant 48 : index
    %c0_119 = arith.constant 0 : index
    %285 = vector.load %arg10[%c48, %c0_119] : memref<432x512xbf16, #tpu.memory_space<vmem>>, vector<48x512xbf16>
    tpu.vector_store %arg10[%c48, %c0_119], %284 {strides = array<i32>} : memref<432x512xbf16, #tpu.memory_space<vmem>>, vector<48x512xbf16>,
    %c15_i32_120 = arith.constant 15 : i32
    %286 = tpu.dynamic_rotate %275 by %c15_i32_120 dim 1 : vector<48x512xf32>, i32 -> vector<48x512xf32>
    %287 = vector.broadcast %74 : vector<1x512xf32> to vector<48x512xf32>
    %288 = arith.mulf %286, %287 : vector<48x512xf32>
    %289 = arith.truncf %288 : vector<48x512xf32> to vector<48x512xbf16>
    %c96_121 = arith.constant 96 : index
    %c0_122 = arith.constant 0 : index
    %290 = vector.load %arg10[%c96_121, %c0_122] : memref<432x512xbf16, #tpu.memory_space<vmem>>, vector<48x512xbf16>
    tpu.vector_store %arg10[%c96_121, %c0_122], %289 {strides = array<i32>} : memref<432x512xbf16, #tpu.memory_space<vmem>>, vector<48x512xbf16>,
    %c1_i32_123 = arith.constant 1 : i32
    %291 = tpu.dynamic_rotate %275 by %c1_i32_123 dim 1 : vector<48x512xf32>, i32 -> vector<48x512xf32>
    %292 = vector.broadcast %95 : vector<1x512xf32> to vector<48x512xf32>
    %293 = arith.mulf %291, %292 : vector<48x512xf32>
    %294 = arith.truncf %293 : vector<48x512xf32> to vector<48x512xbf16>
    %c144 = arith.constant 144 : index
    %c0_124 = arith.constant 0 : index
    %295 = vector.load %arg10[%c144, %c0_124] : memref<432x512xbf16, #tpu.memory_space<vmem>>, vector<48x512xbf16>
    tpu.vector_store %arg10[%c144, %c0_124], %294 {strides = array<i32>} : memref<432x512xbf16, #tpu.memory_space<vmem>>, vector<48x512xbf16>,
    %296 = arith.truncf %275 : vector<48x512xf32> to vector<48x512xbf16>
    %c192_125 = arith.constant 192 : index
    %c0_126 = arith.constant 0 : index
    %297 = vector.load %arg10[%c192_125, %c0_126] : memref<432x512xbf16, #tpu.memory_space<vmem>>, vector<48x512xbf16>
    tpu.vector_store %arg10[%c192_125, %c0_126], %296 {strides = array<i32>} : memref<432x512xbf16, #tpu.memory_space<vmem>>, vector<48x512xbf16>,
    %c511_i32_127 = arith.constant 511 : i32
    %298 = tpu.dynamic_rotate %275 by %c511_i32_127 dim 1 : vector<48x512xf32>, i32 -> vector<48x512xf32>
    %299 = vector.broadcast %116 : vector<1x512xf32> to vector<48x512xf32>
    %300 = arith.mulf %298, %299 : vector<48x512xf32>
    %301 = arith.truncf %300 : vector<48x512xf32> to vector<48x512xbf16>
    %c240 = arith.constant 240 : index
    %c0_128 = arith.constant 0 : index
    %302 = vector.load %arg10[%c240, %c0_128] : memref<432x512xbf16, #tpu.memory_space<vmem>>, vector<48x512xbf16>
    tpu.vector_store %arg10[%c240, %c0_128], %301 {strides = array<i32>} : memref<432x512xbf16, #tpu.memory_space<vmem>>, vector<48x512xbf16>,
    %c497_i32_129 = arith.constant 497 : i32
    %303 = tpu.dynamic_rotate %275 by %c497_i32_129 dim 1 : vector<48x512xf32>, i32 -> vector<48x512xf32>
    %304 = vector.broadcast %137 : vector<1x512xf32> to vector<48x512xf32>
    %305 = arith.mulf %303, %304 : vector<48x512xf32>
    %306 = arith.truncf %305 : vector<48x512xf32> to vector<48x512xbf16>
    %c288 = arith.constant 288 : index
    %c0_130 = arith.constant 0 : index
    %307 = vector.load %arg10[%c288, %c0_130] : memref<432x512xbf16, #tpu.memory_space<vmem>>, vector<48x512xbf16>
    tpu.vector_store %arg10[%c288, %c0_130], %306 {strides = array<i32>} : memref<432x512xbf16, #tpu.memory_space<vmem>>, vector<48x512xbf16>,
    %c496_i32_131 = arith.constant 496 : i32
    %308 = tpu.dynamic_rotate %275 by %c496_i32_131 dim 1 : vector<48x512xf32>, i32 -> vector<48x512xf32>
    %309 = vector.broadcast %158 : vector<1x512xf32> to vector<48x512xf32>
    %310 = arith.mulf %308, %309 : vector<48x512xf32>
    %311 = arith.truncf %310 : vector<48x512xf32> to vector<48x512xbf16>
    %c336 = arith.constant 336 : index
    %c0_132 = arith.constant 0 : index
    %312 = vector.load %arg10[%c336, %c0_132] : memref<432x512xbf16, #tpu.memory_space<vmem>>, vector<48x512xbf16>
    tpu.vector_store %arg10[%c336, %c0_132], %311 {strides = array<i32>} : memref<432x512xbf16, #tpu.memory_space<vmem>>, vector<48x512xbf16>,
    %c495_i32_133 = arith.constant 495 : i32
    %313 = tpu.dynamic_rotate %275 by %c495_i32_133 dim 1 : vector<48x512xf32>, i32 -> vector<48x512xf32>
    %314 = vector.broadcast %179 : vector<1x512xf32> to vector<48x512xf32>
    %315 = arith.mulf %313, %314 : vector<48x512xf32>
    %316 = arith.truncf %315 : vector<48x512xf32> to vector<48x512xbf16>
    %c384 = arith.constant 384 : index
    %c0_134 = arith.constant 0 : index
    %317 = vector.load %arg10[%c384, %c0_134] : memref<432x512xbf16, #tpu.memory_space<vmem>>, vector<48x512xbf16>
    tpu.vector_store %arg10[%c384, %c0_134], %316 {strides = array<i32>} : memref<432x512xbf16, #tpu.memory_space<vmem>>, vector<48x512xbf16>,
    %c0_135 = arith.constant 0 : index
    %c0_136 = arith.constant 0 : index
    %318 = vector.load %arg5[%c0_135, %c0_136] : memref<64x432xbf16, #tpu.memory_space<vmem>>, vector<64x432xbf16>
    %c0_137 = arith.constant 0 : index
    %c0_138 = arith.constant 0 : index
    %319 = vector.load %arg10[%c0_137, %c0_138] : memref<432x512xbf16, #tpu.memory_space<vmem>>, vector<432x512xbf16>
    %cst_139 = arith.constant dense<0.000000e+00> : vector<64x512xf32>
    %320 = tpu.matmul %318, %319, %cst_139 {dimension_numbers = #tpu.dot_dimension_numbers<[1], [0], [0], [1], [0, 0, 1, 1], [], []>} : vector<64x432xbf16>, vector<432x512xbf16>, vector<64x512xf32> -> vector<64x512xf32>
    %c0_140 = arith.constant 0 : index
    %c0_141 = arith.constant 0 : index
    %321 = vector.load %arg6[%c0_140, %c0_141] : memref<4x32xbf16, #tpu.memory_space<vmem>>, vector<4x32xbf16>
    %322 = arith.truncf %183 : vector<32x512xf32> to vector<32x512xbf16>
    %cst_142 = arith.constant dense<0.000000e+00> : vector<4x512xf32>
    %323 = tpu.matmul %321, %322, %cst_142 {dimension_numbers = #tpu.dot_dimension_numbers<[1], [0], [0], [1], [0, 0, 1, 1], [], []>} : vector<4x32xbf16>, vector<32x512xbf16>, vector<4x512xf32> -> vector<4x512xf32>
    %c0_143 = arith.constant 0 : index
    %c0_144 = arith.constant 0 : index
    %324 = vector.load %arg7[%c0_143, %c0_144] : memref<4x32xbf16, #tpu.memory_space<vmem>>, vector<4x32xbf16>
    %325 = arith.truncf %229 : vector<32x512xf32> to vector<32x512xbf16>
    %cst_145 = arith.constant dense<0.000000e+00> : vector<4x512xf32>
    %326 = tpu.matmul %324, %325, %cst_145 {dimension_numbers = #tpu.dot_dimension_numbers<[1], [0], [0], [1], [0, 0, 1, 1], [], []>} : vector<4x32xbf16>, vector<32x512xbf16>, vector<4x512xf32> -> vector<4x512xf32>
    %327 = arith.addf %323, %326 : vector<4x512xf32>
    %c0_146 = arith.constant 0 : index
    %c0_147 = arith.constant 0 : index
    %328 = vector.load %arg8[%c0_146, %c0_147] : memref<4x64xbf16, #tpu.memory_space<vmem>>, vector<4x64xbf16>
    %329 = arith.truncf %320 : vector<64x512xf32> to vector<64x512xbf16>
    %cst_148 = arith.constant dense<0.000000e+00> : vector<4x512xf32>
    %330 = tpu.matmul %328, %329, %cst_148 {dimension_numbers = #tpu.dot_dimension_numbers<[1], [0], [0], [1], [0, 0, 1, 1], [], []>} : vector<4x64xbf16>, vector<64x512xbf16>, vector<4x512xf32> -> vector<4x512xf32>
    %331 = arith.addf %327, %330 : vector<4x512xf32>
    %332 = arith.addf %331, %4 : vector<4x512xf32>
    %cst_149 = arith.constant 0.000000e+00 : f32
    %333 = vector.broadcast %cst_149 : f32 to vector<4x512xf32>
    %334 = arith.maximumf %332, %333 : vector<4x512xf32>
    %335 = vector.extract_strided_slice %334 {offsets = [0, 0], sizes = [4, 256], strides = [1, 1]} : vector<4x512xf32> to vector<4x256xf32>
    %c0_150 = arith.constant 0 : index
    %c0_151 = arith.constant 0 : index
    %c0_152 = arith.constant 0 : index
    %336 = vector.load %arg9[%c0_150, %c0_151, %c0_152] : memref<2x4x256xf32, #tpu.memory_space<vmem>>, vector<1x4x256xf32>
    %337 = vector.shape_cast %336 : vector<1x4x256xf32> to vector<4x256xf32>
    %338 = vector.shape_cast %335 : vector<4x256xf32> to vector<1x4x256xf32>
    tpu.vector_store %arg9[%c0_150, %c0_151, %c0_152], %338 {strides = array<i32>} : memref<2x4x256xf32, #tpu.memory_space<vmem>>, vector<1x4x256xf32>,
    %339 = vector.extract_strided_slice %334 {offsets = [0, 256], sizes = [4, 256], strides = [1, 1]} : vector<4x512xf32> to vector<4x256xf32>
    %c1_153 = arith.constant 1 : index
    %c0_154 = arith.constant 0 : index
    %c0_155 = arith.constant 0 : index
    %340 = vector.load %arg9[%c1_153, %c0_154, %c0_155] : memref<2x4x256xf32, #tpu.memory_space<vmem>>, vector<1x4x256xf32>
    %341 = vector.shape_cast %340 : vector<1x4x256xf32> to vector<4x256xf32>
    %342 = vector.shape_cast %339 : vector<4x256xf32> to vector<1x4x256xf32>
    tpu.vector_store %arg9[%c1_153, %c0_154, %c0_155], %342 {strides = array<i32>} : memref<2x4x256xf32, #tpu.memory_space<vmem>>, vector<1x4x256xf32>,
    return
  }
  func.func @transform_0(%arg0: i32) -> (i32, i32, i32) {
    %c0_i32 = arith.constant 0 : i32
    %c0_i32_0 = arith.constant 0 : i32
    %c0_i32_1 = arith.constant 0 : i32
    return %arg0, %c0_i32, %c0_i32_0 : i32, i32, i32
  }
  func.func @transform_1(%arg0: i32) -> (i32, i32) {
    %c0_i32 = arith.constant 0 : i32
    %c0_i32_0 = arith.constant 0 : i32
    %c0_i32_1 = arith.constant 0 : i32
    return %c0_i32, %c0_i32_0 : i32, i32
  }
  func.func @transform_2(%arg0: i32) -> (i32, i32) {
    %c0_i32 = arith.constant 0 : i32
    %c0_i32_0 = arith.constant 0 : i32
    %c0_i32_1 = arith.constant 0 : i32
    return %c0_i32, %c0_i32_0 : i32, i32
  }
  func.func @transform_3(%arg0: i32) -> (i32, i32) {
    %c0_i32 = arith.constant 0 : i32
    %c0_i32_0 = arith.constant 0 : i32
    %c0_i32_1 = arith.constant 0 : i32
    return %c0_i32, %c0_i32_0 : i32, i32
  }
  func.func @transform_4(%arg0: i32) -> (i32, i32) {
    %c0_i32 = arith.constant 0 : i32
    %c0_i32_0 = arith.constant 0 : i32
    %c0_i32_1 = arith.constant 0 : i32
    return %c0_i32, %c0_i32_0 : i32, i32
  }
  func.func @transform_5(%arg0: i32) -> (i32, i32) {
    %c0_i32 = arith.constant 0 : i32
    %c0_i32_0 = arith.constant 0 : i32
    %c0_i32_1 = arith.constant 0 : i32
    return %c0_i32, %c0_i32_0 : i32, i32
  }
  func.func @transform_6(%arg0: i32) -> (i32, i32) {
    %c0_i32 = arith.constant 0 : i32
    %c0_i32_0 = arith.constant 0 : i32
    %c0_i32_1 = arith.constant 0 : i32
    return %c0_i32, %c0_i32_0 : i32, i32
  }
  func.func @transform_7(%arg0: i32) -> (i32, i32) {
    %c0_i32 = arith.constant 0 : i32
    %c0_i32_0 = arith.constant 0 : i32
    %c0_i32_1 = arith.constant 0 : i32
    return %c0_i32, %c0_i32_0 : i32, i32
  }
  func.func @transform_8(%arg0: i32) -> (i32, i32, i32) {
    %c0_i32 = arith.constant 0 : i32
    %c0_i32_0 = arith.constant 0 : i32
    %c0_i32_1 = arith.constant 0 : i32
    return %arg0, %c0_i32, %c0_i32_0 : i32, i32, i32
  }
}

</mosaic_0001>

<bundles_post_ra>
// kernel: tpu_custom_call.1
= control target key start
LH: loop header
LB: loop body
LE: loop exit
PB: predicated region body
PF: predicated region fallthrough
CT: control target
= control target key end

     0   :  { %13 = vsyncpa [#allocation4], 0  ;;  %s12197_s0 = inlined_call_operand.hbm [shape: f32[2,4,256], index: 0, kind: input, shape index: {}]   ;;  %s12198_s1 = inlined_call_operand.vmem [shape: bf16[96,4], index: 1, kind: input, shape index: {}]   ;;  %s12199_s2 = inlined_call_operand.vmem [shape: bf16[32,288], index: 2, kind: input, shape index: {}]   ;;  %s12200_s3 = inlined_call_operand.hbm [shape: bf16[48,288], index: 3, kind: input, shape index: {}]   ;;  %s12201_s4 = inlined_call_operand.hbm [shape: bf16[64,432], index: 4, kind: input, shape index: {}]   ;;  %s12202_s5 = inlined_call_operand.vmem [shape: bf16[4,32], index: 5, kind: input, shape index: {}]   ;;  %s12203_s6 = inlined_call_operand.vmem [shape: bf16[4,32], index: 6, kind: input, shape index: {}]   ;;  %s12204_s7 = inlined_call_operand.vmem [shape: bf16[4,64], index: 7, kind: input, shape index: {}]   ;;  %s12205_s8 = inlined_call_operand.hbm [shape: f32[2,4,256], index: 8, kind: output, shape index: {}]  }
   0x1   :  { %14 = vsyncpa [#allocation7], 0  ;;  %s37_s29 = sshll.u32 %s12200_s3, 4  ;;  %s38_s29 = int_to_ptr.hbm [resolvable:$true] %s37_s29 }
   0x2   :  { %15 = vsyncpa [#allocation5], 0  ;;  %s7478_s30 = smov [#allocation6]   ;;  %s20_s12 = sshll.u32 %s12197_s0, 4  ;;  %s21_s12 = int_to_ptr.hbm [resolvable:$true] %s20_s12 }
   0x3   :  { %s39_s9 = sshll.u32 %s7478_s30, 4  ;;  %s7479_s13 = smov 192   ;;  %s40_s9 = int_to_ptr.vmem [resolvable:$true] %s39_s9 }
   0x4   :  { %s7480_s14 = smov 12   ;;  %s7481_s15 = smov [#allocation3]  }
   0x5   :  { %45 = dma.hbm_to_vmem [thread:$0]  %s38_s29, 1152, %s40_s9, [#allocation7], %s7479_s13, %s7479_s13, %s7480_s14  }
   0x6   :  { %s22_s16 = sshll.u32 %s7481_s15, 4  ;;  %s7482_s17 = smov 128   ;;  %s23_s16 = int_to_ptr.vmem [resolvable:$true] %s22_s16 }
   0x7   :  { %s7483_s18 = smov 8   ;;  %s50_s20 = sshll.u32 %s12201_s4, 4  ;;  %s51_s20 = int_to_ptr.hbm [resolvable:$true] %s50_s20 }
   0x8   :  { %28 = dma.hbm_to_vmem [thread:$0]  %s21_s12, 256, %s23_s16, [#allocation4], %s7482_s17, %s7482_s17, %s7483_s18  }
   0x9   :  { %s7484_s21 = smov [#allocation8]   ;;  %s7485_s22 = smov 256  }
   0xa   :  { %s52_s0 = sshll.u32 %s7484_s21, 4  ;;  %s7486_s23 = smov 16   ;;  %s53_s0 = int_to_ptr.vmem [resolvable:$true] %s52_s0 }
   0xb   :  { %58 = dma.hbm_to_vmem [thread:$0]  %s51_s20, 2048, %s53_s0, [#allocation7], %s7485_s22, %s7485_s22, %s7486_s23  }
   0xc   :  { %7472 = dma.done.wait [#allocation4], 256  }
   0xd   :  { %7473 = vsyncadd [#allocation4], 4294967040 }
   0xe   :  { %7474 = dma.done.wait [#allocation7], 3200  }
   0xf   :  { %7475 = vsyncadd [#allocation7], 4294964096  ;;  %v78_v0 = vld [vmem:[#allocation3] sm:$0xff]  ;;  %v80_v1 = vld [vmem:[#allocation3 + $0x8] sm:$0xff]  ;;  %vm379_vm0 = vcmask 1041408   ;;  %vm12214_vm1 = vcmask 31744   ;;  %v93_v61 = vlaneseq }
  0x10   :  { %82 = vst [vmem:[#allocation1] ss:$2 sm:$0xff] %v78_v0  ;;  %v7067_v8 = vld [vmem:[%s12198_s1] sm:$0xff]  ;;  %v7068_v15 = vld [vmem:[%s12198_s1 + $0x8] sm:$0xff]  ;;  %v7069_v16 = vld [vmem:[%s12198_s1 + $0x10] sm:$0xff]  ;;  %s7487_s9 = smov 17  }
  0x11   :  { %v7070_v17 = vld [vmem:[%s12198_s1 + $0x18] sm:$0xff]  ;;  %s7488_s10 = smov 1   ;;  %s7489_s11 = smov 15   ;;  %v7784_v0 = vand.u32 127, %v93_v61 }
  0x12   :  { %s7490_s12 = smov 127   ;;  %s7491_s13 = smov 113  }
  0x13   :  { %vm12213_vm6 = vcmp.lt.s32.totalorder %v7784_v0, 16  ;;  %s7494_s19 = smov 111  }
  0x17   :  { %v7554_v2 = vld.sshfl [vmem:[#allocation1] sm:$0xff pattern:$0x75316420]  ;;  %v7556_v3 = vld.sshfl [vmem:[#allocation1 + $0x8] sm:$0xff pattern:$0x75316420] }
  0x18   :  { %12458 = vst [vmem:[#allocation13_spill] sm:$0xff] %v7554_v2  ;;  %v326_v4 = vpack.c.bf16 %v7554_v2, %v7554_v2  ;;  %v327_v5 = vpack.c.bf16 %v7556_v3, %v7556_v3 }
  0x19   :  { %12459 = vst [vmem:[#allocation14_spill] sm:$0xff] %v7556_v3 }
  0x1a   :  { %88 = vst [vmem:[#allocation1] ss:$2 sm:$0xff] %v80_v1  ;;  %v381_v6 = vsel %vm379_vm0, %v326_v4, 0  ;;  %v384_v7 = vsel %vm379_vm0, %v327_v5, 0 }
  0x1b   :  { %399 = vmatpush.bf16.msra.mxu0 %v381_v6  ;;  %438 = vmatpush.bf16.msra.mxu1 %v384_v7  ;;  %v95_v7 = vadd.s32 128, %v7784_v0 }
  0x1e   :  { %5863 = vmatmul.msk.bf16.vlgmr.msra.gmra.mxu0 %vm12214_vm1, %v7067_v8  ;;  %5869 = vmatmul.msk.bf16.vlgmr.msra.gmra.mxu1 %vm12214_vm1, %v7067_v8 }
  0x21   :  { %v89_v9 = vld.sshfl [vmem:[#allocation1] sm:$0xff pattern:$0x75316420]  ;;  %v90_v10 = vld.sshfl [vmem:[#allocation1 + $0x8] sm:$0xff pattern:$0x75316420] }
  0x22   :  { %v328_v11 = vpack.c.bf16 %v89_v9, %v89_v9  ;;  %v329_v12 = vpack.c.bf16 %v90_v10, %v90_v10  ;;  %v99_v10 = vand.u32 255, %v95_v7 }
  0x24   :  { %v387_v13 = vsel %vm379_vm0, %v328_v11, 0  ;;  %v390_v14 = vsel %vm379_vm0, %v329_v12, 0  ;;  %v98_v11 = vand.u32 255, %v7784_v0 }
  0x25   :  { %477 = vmatpush.bf16.msra.mxu2 %v387_v13  ;;  %516 = vmatpush.bf16.msra.mxu3 %v390_v14 }
  0x28   :  { %5875 = vmatmul.msk.bf16.vlgmr.msra.gmra.mxu2 %vm12214_vm1, %v7067_v8  ;;  %5881 = vmatmul.msk.bf16.vlgmr.msra.gmra.mxu3 %vm12214_vm1, %v7067_v8 }
  0x2e   :  { %5864 = vmatmul.msk.bf16.gmra.mxu0 %vm12214_vm1, %v7068_v15  ;;  %5870 = vmatmul.msk.bf16.gmra.mxu1 %vm12214_vm1, %v7068_v15 }
  0x38   :  { %5876 = vmatmul.msk.bf16.gmra.mxu2 %vm12214_vm1, %v7068_v15  ;;  %5882 = vmatmul.msk.bf16.gmra.mxu3 %vm12214_vm1, %v7068_v15 }
  0x3e   :  { %5865 = vmatmul.msk.bf16.gmra.mxu0 %vm12214_vm1, %v7069_v16  ;;  %5871 = vmatmul.msk.bf16.gmra.mxu1 %vm12214_vm1, %v7069_v16 }
  0x48   :  { %5877 = vmatmul.msk.bf16.gmra.mxu2 %vm12214_vm1, %v7069_v16  ;;  %5883 = vmatmul.msk.bf16.gmra.mxu3 %vm12214_vm1, %v7069_v16  ;;  %v96_v16 = vadd.s32 256, %v7784_v0 }
  0x4e   :  { %5866 = vmatmul.msk.bf16.gmra.mxu0 %vm12214_vm1, %v7070_v17  ;;  %5872 = vmatmul.msk.bf16.gmra.mxu1 %vm12214_vm1, %v7070_v17 }
  0x58   :  { %5878 = vmatmul.msk.bf16.gmra.mxu2 %vm12214_vm1, %v7070_v17  ;;  %5884 = vmatmul.msk.bf16.gmra.mxu3 %vm12214_vm1, %v7070_v17  ;;  %v7817_v17 = vshra.s32 %v99_v10, 4 }
  0x5a   :  { %12484 = vst [vmem:[#allocation39_spill] sm:$0xff] %v7817_v17 }
  0x9b   :  { %v7594_v18 = vpop.f32.mrf.mxu0  ;;  %v7596_v19 = vpop.f32.mrf.mxu1 }
  0x9c   :  { %12460 = vst [vmem:[#allocation15_spill] sm:$0xff] %v7594_v18 }
  0x9d   :  { %12461 = vst [vmem:[#allocation16_spill] sm:$0xff] %v7596_v19 }
  0xa3   :  { %v7598_v20 = vpop.f32.mrf.mxu0  ;;  %v7600_v21 = vpop.f32.mrf.mxu1 }
  0xa4   :  { %12462 = vst [vmem:[#allocation17_spill] sm:$0xff] %v7598_v20 }
  0xa5   :  { %12463 = vst [vmem:[#allocation18_spill] sm:$0xff] %v7600_v21 }
  0xab   :  { %v7602_v22 = vpop.f32.mrf.mxu2  ;;  %v7604_v23 = vpop.f32.mrf.mxu3 }
  0xac   :  { %12464 = vst [vmem:[#allocation19_spill] sm:$0xff] %v7602_v22  ;;  %v7606_v24 = vpop.f32.mrf.mxu0  ;;  %v7608_v25 = vpop.f32.mrf.mxu1 }
  0xad   :  { %12465 = vst [vmem:[#allocation20_spill] sm:$0xff] %v7604_v23 }
  0xae   :  { %12466 = vst [vmem:[#allocation21_spill] sm:$0xff] %v7606_v24  ;;  %v7071_v24 = vld [vmem:[%s12198_s1 + $0x20] sm:$0xff] }
  0xaf   :  { %12467 = vst [vmem:[#allocation22_spill] sm:$0xff] %v7608_v25  ;;  %5867 = vmatmul.msk.bf16.gmra.mxu0 %vm12214_vm1, %v7071_v24  ;;  %5873 = vmatmul.msk.bf16.gmra.mxu1 %vm12214_vm1, %v7071_v24 }
  0xb0   :  { %5879 = vmatmul.msk.bf16.gmra.mxu2 %vm12214_vm1, %v7071_v24  ;;  %5885 = vmatmul.msk.bf16.gmra.mxu3 %vm12214_vm1, %v7071_v24 }
  0xb3   :  { %v7610_v26 = vpop.f32.mrf.mxu2  ;;  %v7612_v27 = vpop.f32.mrf.mxu3 }
  0xb4   :  { %12468 = vst [vmem:[#allocation23_spill] sm:$0xff] %v7610_v26  ;;  %v7614_v28 = vpop.f32.mrf.mxu0  ;;  %v7616_v29 = vpop.f32.mrf.mxu1 }
  0xb5   :  { %12469 = vst [vmem:[#allocation24_spill] sm:$0xff] %v7612_v27 }
  0xb6   :  { %12470 = vst [vmem:[#allocation25_spill] sm:$0xff] %v7614_v28 }
  0xb7   :  { %12471 = vst [vmem:[#allocation26_spill] sm:$0xff] %v7616_v29 }
  0xbb   :  { %v7618_v30 = vpop.f32.mrf.mxu2  ;;  %v7620_v31 = vpop.f32.mrf.mxu3 }
  0xbc   :  { %12472 = vst [vmem:[#allocation27_spill] sm:$0xff] %v7618_v30  ;;  %v7622_v32 = vpop.f32.mrf.mxu0  ;;  %v7624_v33 = vpop.f32.mrf.mxu1 }
  0xbd   :  { %12473 = vst [vmem:[#allocation28_spill] sm:$0xff] %v7620_v31  ;;  %v872_v34 = vpack.c.bf16 %v7624_v33, %v7622_v32  ;;  %556 = vrot.lane.b32.xlu2 %v7624_v33, %s7487_s9  ;;  %629 = vrot.lane.b32.xlu1 %v7622_v32, %s7486_s23 }
  0xbe   :  { %12474 = vst [vmem:[#allocation29_spill] sm:$0xff] %v7622_v32  ;;  %548 = vrot.lane.b32.xlu0 %v7622_v32, %s7487_s9 }
  0xbf   :  { %880 = vst [vmem:[#allocation2 + $0x100] sm:$0xff] %v872_v34  ;;  %v7819_v34 = vshra.s32 %v98_v11, 4 }
  0xc1   :  { %12485 = vst [vmem:[#allocation40_spill] sm:$0xff] %v7819_v34 }
  0xc3   :  { %v7634_v35 = vpop.f32.mrf.mxu2  ;;  %v7636_v36 = vpop.f32.mrf.mxu3 }
  0xc4   :  { %12475 = vst [vmem:[#allocation30_spill] sm:$0xff] %v7634_v35  ;;  %v7638_v37 = vpop.f32.mrf.mxu0  ;;  %v7640_v38 = vpop.f32.mrf.mxu1  ;;  %v106_v35 = vand.u32 15, %v98_v11 }
  0xc5   :  { %12476 = vst [vmem:[#allocation31_spill] sm:$0xff] %v7636_v36  ;;  %v874_v39 = vpack.c.bf16 %v7640_v38, %v7638_v37  ;;  %637 = vrot.lane.b32.xlu2 %v7624_v33, %s7486_s23  ;;  %799 = vrot.lane.b32.xlu1 %v7624_v33, %s7488_s10  ;;  %v12513_v36 = vmov 0.0  }
  0xc6   :  { %12477 = vst [vmem:[#allocation32_spill] sm:$0xff] %v7638_v37  ;;  %718 = vrot.lane.b32.xlu0 %v7624_v33, %s7489_s11 }
  0xc7   :  { %882 = vst [vmem:[#allocation2 + $0x110] sm:$0xff] %v874_v39  ;;  %v97_v39 = vadd.s32 384, %v7784_v0 }
  0xcb   :  { %v7650_v40 = vpop.f32.mrf.mxu2  ;;  %v7652_v41 = vpop.f32.mrf.mxu3 }
  0xcc   :  { %12478 = vst [vmem:[#allocation33_spill] sm:$0xff] %v7652_v41  ;;  %v873_v42 = vpack.c.bf16 %v7652_v41, %v7650_v40  ;;  %v7674_v46 = vpop.f32.mrf.mxu0  ;;  %v7676_v47 = vpop.f32.mrf.mxu1 }
  0xcd   :  { %710 = vrot.lane.b32.xlu2 %v7622_v32, %s7489_s11  ;;  %888 = vrot.lane.b32.xlu1 %v7622_v32, %s7490_s12  ;;  %12480 = vst [vmem:[#allocation35_spill] sm:$0xff] %v7674_v46  ;;  %v876_v48 = vpack.c.bf16 %v7676_v47, %v7674_v46 }
  0xce   :  { %881 = vst [vmem:[#allocation2 + $0x108] sm:$0xff] %v873_v42  ;;  %791 = vrot.lane.b32.xlu0 %v7622_v32, %s7488_s10  ;;  %v110_v42 = vadd.s32 4294967295, %v7819_v34 }
  0xcf   :  { %884 = vst [vmem:[#allocation2 + $0x120] sm:$0xff] %v876_v48  ;;  %v111_v48 = vadd.s32 4294967295, %v7817_v17 }
  0xd0   :  { %vm114_vm2 = vcmp.ge.s32.totalorder %v110_v42, 0  ;;  %vm118_vm3 = vcmp.lt.s32.totalorder %v110_v42, 16 }
  0xd1   :  { %vm115_vm4 = vcmp.ge.s32.totalorder %v111_v48, 0  ;;  %vm119_vm5 = vcmp.lt.s32.totalorder %v111_v48, 16  ;;  %vm7841_vm7 = vmand %vm114_vm2, %vm118_vm3  ;;  %v12208_v48 = vmov 0.0  }
  0xd2   :  { %vm7848_vm8 = vmand %vm115_vm4, %vm119_vm5  ;;  %v7870_v25 = vsel %vm7841_vm7, 1.0, %v12208_v48 }
  0xd3   :  { %v7662_v43 = vpop.f32.mrf.mxu2  ;;  %v7664_v44 = vpop.f32.mrf.mxu3  ;;  %12494 = vst [vmem:[#allocation45_spill] sm:$0xff] %v7870_v25 }
  0xd4   :  { %12479 = vst [vmem:[#allocation34_spill] sm:$0xff] %v7664_v44  ;;  %v875_v45 = vpack.c.bf16 %v7664_v44, %v7662_v43  ;;  %v7686_v49 = vpop.f32.mrf.mxu0  ;;  %v7688_v50 = vpop.f32.mrf.mxu1 }
  0xd5   :  { %896 = vrot.lane.b32.xlu2 %v7624_v33, %s7490_s12  ;;  %720 = vrot.lane.b32.xlu1 %v7640_v38, %s7489_s11  ;;  %12481 = vst [vmem:[#allocation36_spill] sm:$0xff] %v7686_v49  ;;  %v878_v51 = vpack.c.bf16 %v7688_v50, %v7686_v49 }
  0xd6   :  { %883 = vst [vmem:[#allocation2 + $0x118] sm:$0xff] %v875_v45  ;;  %550 = vrot.lane.b32.xlu0 %v7638_v37, %s7487_s9  ;;  %v100_v45 = vand.u32 255, %v96_v16  ;;  %v107_v16 = vand.u32 15, %v99_v10 }
  0xd7   :  { %886 = vst [vmem:[#allocation2 + $0x130] sm:$0xff] %v878_v51  ;;  %v101_v51 = vand.u32 255, %v97_v39 }
  0xd8   :  { %v108_v39 = vand.u32 15, %v100_v45  ;;  %v7845_v21 = vadd.s32 1, %v107_v16  ;;  %v7918_v24 = vadd.s32 4294967295, %v107_v16 }
  0xd9   :  { %v7838_v2 = vshra.s32 %v101_v51, 4  ;;  %v109_v10 = vand.u32 15, %v101_v51 }
  0xda   :  { %12490 = vst [vmem:[#allocation43_spill] sm:$0xff] %v7845_v21  ;;  %v7877_v28 = vadd.s32 1, %v108_v39  ;;  %vm12212_vm9 = vcmp.ge.s32.totalorder %v7845_v21, 0  ;;  %vm12211_vm2 = vcmp.lt.s32.totalorder %v7845_v21, 16 }
  0xdb   :  { %v7780_v62 = vpop.f32.mrf.mxu2  ;;  %v7782_v63 = vpop.f32.mrf.mxu3  ;;  %12487 = vst [vmem:[#allocation42_spill] sm:$0xff] %v7838_v2  ;;  %v113_v51 = vadd.s32 4294967295, %v7838_v2  ;;  %v7891_v27 = vadd.s32 1, %v109_v10  ;;  %vm187_vm0 = vmand %vm7848_vm8, %vm12212_vm9  ;;  %vm12236_vm9 = vcmp.lt.s32.totalorder %v7784_v0, 15 }
  0xdc   :  { %v877_v1 = vpack.c.bf16 %v7782_v63, %v7780_v62  ;;  %12496 = vst [vmem:[#allocation47_spill] sm:$0xff] %v7877_v28  ;;  %vm12210_vm15 = vcmp.ge.s32.totalorder %v7877_v28, 0 }
  0xdd   :  { %969 = vrot.lane.b32.xlu2 %v7622_v32, %s7491_s13  ;;  %793 = vrot.lane.b32.xlu1 %v7638_v37, %s7488_s10  ;;  %12498 = vst [vmem:[#allocation49_spill] sm:$0xff] %v7891_v27  ;;  %vm117_vm12 = vcmp.ge.s32.totalorder %v113_v51, 0  ;;  %vm121_vm13 = vcmp.lt.s32.totalorder %v113_v51, 16  ;;  %vm12215_vm3 = vcmp.ge.s32.totalorder %v7891_v27, 0  ;;  %v7937_v51 = vadd.s32 4294967295, %v108_v39 }
  0xde   :  { %639 = vrot.lane.b32.xlu0 %v7640_v38, %s7486_s23  ;;  %885 = vst [vmem:[#allocation2 + $0x128] sm:$0xff] %v877_v1  ;;  %vm7914_vm4 = vmand %vm117_vm12, %vm121_vm13  ;;  %vm12234_vm12 = vcmp.lt.s32.totalorder %v7891_v27, 16  ;;  %v7953_v39 = vadd.s32 4294967295, %v109_v10 }
  0xdf   :  { %12504 = vst [vmem:[#allocation51_spill] sm:$0xff] %v7918_v24  ;;  %vm189_vm13 = vmand %vm7914_vm4, %vm12215_vm3  ;;  %vm12237_vm3 = vcmp.ge.s32.totalorder %v7937_v51, 0 }
  0xe0   :  { %12508 = vst [vmem:[#allocation53_spill] sm:$0xff] %v7937_v51  ;;  %vm197_vm1 = vmand %vm189_vm13, %vm12234_vm12  ;;  %vm12240_vm13 = vcmp.lt.s32.totalorder %v7937_v51, 16  ;;  %vm12523_vm12 = vcmask 31744  }
  0xe1   :  { %12509 = vst [vmem:[#allocation54_spill] sm:$0xff] %v7953_v39 }
  0xe3   :  { %v7801_v8 = vpop.f32.mrf.mxu2  ;;  %v7803_v9 = vpop.f32.mrf.mxu3 }
  0xe4   :  { %v879_v12 = vpack.c.bf16 %v7803_v9, %v7801_v8 }
  0xe5   :  { %558 = vrot.lane.b32.xlu2 %v7640_v38, %s7487_s9  ;;  %653 = vrot.lane.b32.xlu1 %v7652_v41, %s7486_s23 }
  0xe6   :  { %712 = vrot.lane.b32.xlu0 %v7638_v37, %s7489_s11  ;;  %887 = vst [vmem:[#allocation2 + $0x138] sm:$0xff] %v879_v12  ;;  %v7836_v12 = vshra.s32 %v100_v45, 4  ;;  %v7859_v45 = vsel %vm7848_vm8, 1.0, %v12208_v48 }
  0xe7   :  { %12493 = vst [vmem:[#allocation44_spill] sm:$0xff] %v7859_v45 }
  0xe8   :  { %12486 = vst [vmem:[#allocation41_spill] sm:$0xff] %v7836_v12  ;;  %v112_v19 = vadd.s32 4294967295, %v7836_v12 }
  0xea   :  { %vm116_vm10 = vcmp.ge.s32.totalorder %v112_v19, 0  ;;  %vm120_vm11 = vcmp.lt.s32.totalorder %v112_v19, 16 }
  0xeb   :  { %vm7897_vm14 = vmand %vm116_vm10, %vm120_vm11  ;;  %vm12216_vm10 = vcmp.lt.s32.totalorder %v7877_v28, 16 }
  0xec   :  { %vm188_vm5 = vmand %vm7897_vm14, %vm12210_vm15 }
  0xed   :  { %631 = vrot.lane.b32.xlu2 %v7638_v37, %s7486_s23  ;;  %726 = vrot.lane.b32.xlu1 %v7650_v40, %s7489_s11  ;;  %vm7929_vm11 = vmand %vm187_vm0, %vm12211_vm2  ;;  %vm12242_vm2 = vcmp.ge.s32.totalorder %v7918_v24, 0 }
  0xee   :  { %898 = vrot.lane.b32.xlu0 %v7640_v38, %s7490_s12  ;;  %vm196_vm0 = vmand %vm188_vm5, %vm12216_vm10  ;;  %vm12238_vm10 = vcmp.lt.s32.totalorder %v7918_v24, 16  ;;  %v7972_v10 = vsel %vm7929_vm11, 1.0, %v12513_v36 }
  0xef   :  { %vm7964_vm5 = vmand %vm7848_vm8, %vm12242_vm2  ;;  %12514 = vst [vmem:[#allocation56_spill] sm:$0xff] %v7972_v10  ;;  %v7979_v31 = vsel %vm196_vm0, 1.0, %v12513_v36  ;;  %vm12239_vm8 = vcmp.ge.s32.totalorder %v7953_v39, 0 }
  0xf0   :  { %12515 = vst [vmem:[#allocation57_spill] sm:$0xff] %v7979_v31  ;;  %vm8001_vm11 = vmand %vm7897_vm14, %vm12237_vm3 }
  0xf1   :  { %vm137_vm0 = vmand %vm7914_vm4, %vm12239_vm8  ;;  %vm580_vm8 = vcmp.lt.s32.totalorder %v7784_v0, 17 }
  0xf2   :  { %vm12527_vm3 = vmmov %vm12523_vm12 }
  0xf5   :  { %801 = vrot.lane.b32.xlu2 %v7640_v38, %s7488_s10  ;;  %912 = vrot.lane.b32.xlu1 %v7652_v41, %s7490_s12 }
  0xf6   :  { %971 = vrot.lane.b32.xlu0 %v7638_v37, %s7491_s13 }
  0xfd   :  { %890 = vrot.lane.b32.xlu2 %v7638_v37, %s7490_s12  ;;  %552 = vrot.lane.b32.xlu1 %v7674_v46, %s7487_s9 }
  0xfe   :  { %572 = vrot.lane.b32.xlu0 %v7652_v41, %s7487_s9 }
 0x105   :  { %641 = vrot.lane.b32.xlu1 %v7676_v47, %s7486_s23  ;;  %564 = vrot.lane.b32.xlu2 %v7650_v40, %s7487_s9 }
 0x106   :  { %645 = vrot.lane.b32.xlu0 %v7650_v40, %s7486_s23 }
 0x10d   :  { %714 = vrot.lane.b32.xlu1 %v7674_v46, %s7489_s11  ;;  %734 = vrot.lane.b32.xlu2 %v7652_v41, %s7489_s11 }
 0x10e   :  { %815 = vrot.lane.b32.xlu0 %v7652_v41, %s7488_s10 }
 0x115   :  { %900 = vrot.lane.b32.xlu1 %v7676_v47, %s7490_s12  ;;  %807 = vrot.lane.b32.xlu2 %v7650_v40, %s7488_s10 }
 0x116   :  { %904 = vrot.lane.b32.xlu0 %v7650_v40, %s7490_s12 }
 0x117   :  { %v7734_v52 = vpop.permute.xlu2 %556 }
 0x11d   :  { %973 = vrot.lane.b32.xlu1 %v7674_v46, %s7491_s13  ;;  %722 = vrot.lane.b32.xlu2 %v7676_v47, %s7489_s11 }
 0x11e   :  { %560 = vrot.lane.b32.xlu0 %v7676_v47, %s7487_s9 }
 0x11f   :  { %v7742_v53 = vpop.permute.xlu2 %637 }
 0x125   :  { %574 = vrot.lane.b32.xlu1 %v7664_v44, %s7487_s9  ;;  %795 = vrot.lane.b32.xlu2 %v7674_v46, %s7488_s10 }
 0x126   :  { %633 = vrot.lane.b32.xlu0 %v7674_v46, %s7486_s23 }
 0x127   :  { %v7750_v54 = vpop.permute.xlu2 %710 }
 0x12d   :  { %655 = vrot.lane.b32.xlu2 %v7664_v44, %s7486_s23  ;;  %647 = vrot.lane.b32.xlu1 %v7662_v43, %s7486_s23 }
 0x12e   :  { %803 = vrot.lane.b32.xlu0 %v7676_v47, %s7488_s10 }
 0x12f   :  { %v7758_v55 = vpop.permute.xlu2 %896  ;;  %v7760_v56 = vpop.permute.xlu1 %629 }
 0x130   :  { %v7762_v57 = vpop.permute.xlu0 %548  ;;  %v670_v29 = vsel %vm12213_vm6, %v7760_v56, %v7742_v53 }
 0x131   :  { %v679_v22 = vmul.f32 %v7859_v45, %v670_v29  ;;  %v7907_v29 = vadd.s32 1, %v106_v35  ;;  %v589_v3 = vsel %vm580_vm8, %v7762_v57, %v7734_v52 }
 0x133   :  { %12501 = vst [vmem:[#allocation50_spill] sm:$0xff] %v7907_v29  ;;  %vm12235_vm15 = vcmp.lt.s32.totalorder %v7907_v29, 16 }
 0x135   :  { %728 = vrot.lane.b32.xlu2 %v7662_v43, %s7489_s11  ;;  %817 = vrot.lane.b32.xlu1 %v7664_v44, %s7488_s10 }
 0x136   :  { %892 = vrot.lane.b32.xlu0 %v7674_v46, %s7490_s12 }
 0x137   :  { %v7770_v58 = vpop.permute.xlu2 %969  ;;  %v7772_v59 = vpop.permute.xlu1 %799 }
 0x138   :  { %12482 = vst [vmem:[#allocation37_spill] sm:$0xff] %v7770_v58  ;;  %v7774_v60 = vpop.permute.xlu0 %718  ;;  %v7994_v58 = vsel %vm197_vm1, 1.0, %v12513_v36  ;;  %vm8015_vm1 = vmand %vm7964_vm5, %vm12238_vm10  ;;  %vm141_vm5 = vcmp.lt.s32.totalorder %v7953_v39, 16 }
 0x139   :  { %12517 = vst [vmem:[#allocation59_spill] sm:$0xff] %v7994_v58  ;;  %vm12528_vm10 = vmmov %vm12527_vm3 }
 0x13d   :  { %914 = vrot.lane.b32.xlu2 %v7664_v44, %s7490_s12  ;;  %906 = vrot.lane.b32.xlu1 %v7662_v43, %s7490_s12 }
 0x13e   :  { %566 = vrot.lane.b32.xlu0 %v7662_v43, %s7487_s9 }
 0x13f   :  { %v7790_v4 = vpop.permute.xlu2 %558  ;;  %v7792_v5 = vpop.permute.xlu1 %888 }
 0x140   :  { %v7794_v6 = vpop.permute.xlu0 %791 }
 0x145   :  { %643 = vrot.lane.b32.xlu2 %v7688_v50, %s7486_s23  ;;  %554 = vrot.lane.b32.xlu1 %v7686_v49, %s7487_s9 }
 0x146   :  { %736 = vrot.lane.b32.xlu0 %v7664_v44, %s7489_s11 }
 0x147   :  { %v7810_v13 = vpop.permute.xlu1 %720  ;;  %v7812_v14 = vpop.permute.xlu2 %631 }
 0x148   :  { %12483 = vst [vmem:[#allocation38_spill] sm:$0xff] %v7810_v13  ;;  %v7814_v15 = vpop.permute.xlu0 %550 }
 0x14d   :  { %716 = vrot.lane.b32.xlu2 %v7686_v49, %s7489_s11  ;;  %562 = vrot.lane.b32.xlu1 %v7688_v50, %s7487_s9 }
 0x14e   :  { %809 = vrot.lane.b32.xlu0 %v7662_v43, %s7488_s10 }
 0x14f   :  { %v7830_v61 = vpop.permute.xlu1 %793  ;;  %v7832_v1 = vpop.permute.xlu2 %801 }
 0x150   :  { %v7834_v7 = vpop.permute.xlu0 %639 }
 0x155   :  { %902 = vrot.lane.b32.xlu2 %v7688_v50, %s7490_s12  ;;  %635 = vrot.lane.b32.xlu1 %v7686_v49, %s7486_s23 }
 0x156   :  { %724 = vrot.lane.b32.xlu0 %v7688_v50, %s7489_s11 }
 0x157   :  { %v7873_v20 = vpop.permute.xlu2 %890  ;;  %v7875_v18 = vpop.permute.xlu1 %653 }
 0x158   :  { %12495 = vst [vmem:[#allocation46_spill] sm:$0xff] %v7873_v20  ;;  %v7883_v26 = vpop.permute.xlu0 %712  ;;  %v674_v48 = vsel %vm12213_vm6, %v7875_v18, %v7760_v56  ;;  %vm194_vm6 = vmand %vm7841_vm7, %vm12235_vm15 }
 0x159   :  { %12497 = vst [vmem:[#allocation48_spill] sm:$0xff] %v7883_v26  ;;  %v678_v30 = vmul.f32 %v7870_v25, %v674_v48  ;;  %v7072_v26 = vld [vmem:[%s12198_s1 + $0x28] sm:$0xff]  ;;  %vm12524_vm15 = vmmov %vm12523_vm12  ;;  %s7493_s1 = smov 112  }
 0x15a   :  { %5868 = vmatmul.msk.bf16.gmra.mxu0 %vm12523_vm12, %v7072_v26  ;;  %5874 = vmatmul.msk.bf16.gmra.mxu1 %vm12524_vm15, %v7072_v26  ;;  %vm145_vm12 = vmand %vm137_vm0, %vm141_vm5 }
 0x15b   :  { %v694_v56 = vpack.c.bf16 %v679_v22, %v678_v30  ;;  %v7991_v30 = vsel %vm194_vm6, 1.0, %v12513_v36  ;;  %5880 = vmatmul.msk.bf16.gmra.mxu2 %vm12527_vm3, %v7072_v26  ;;  %5886 = vmatmul.msk.bf16.gmra.mxu3 %vm12528_vm10, %v7072_v26  ;;  %vm210_vm3 = vcmp.lt.s32.totalorder %v7819_v34, 16  ;;  %vm208_vm10 = vcmp.ge.s32.totalorder %v7836_v12, 0 }
 0x15c   :  { %12516 = vst [vmem:[#allocation58_spill] sm:$0xff] %v7991_v30 }
 0x15d   :  { %702 = vst [vmem:[#allocation2 + $0x40] sm:$0xff] %v694_v56  ;;  %975 = vrot.lane.b32.xlu2 %v7686_v49, %s7491_s13  ;;  %805 = vrot.lane.b32.xlu1 %v7688_v50, %s7488_s10  ;;  %v7958_v56 = vadd.s32 4294967295, %v106_v35  ;;  %v751_v35 = vsel %vm12236_vm9, %v7750_v54, %v7774_v60 }
 0x15e   :  { %797 = vrot.lane.b32.xlu0 %v7686_v49, %s7488_s10  ;;  %v760_v44 = vmul.f32 %v7972_v10, %v751_v35 }
 0x15f   :  { %v727_v11 = vpop.permute.xlu1 %726  ;;  %v7933_v48 = vpop.permute.xlu2 %564  ;;  %12510 = vst [vmem:[#allocation55_spill] sm:$0xff] %v7958_v56  ;;  %vm130_vm6 = vcmp.ge.s32.totalorder %v7958_v56, 0 }
 0x160   :  { %v7935_v16 = vpop.permute.xlu0 %898  ;;  %v747_v42 = vsel %vm12236_vm9, %v7774_v60, %v727_v11  ;;  %vm134_vm15 = vmand %vm7841_vm7, %vm130_vm6  ;;  %v585_v37 = vsel %vm580_vm8, %v7734_v52, %v7933_v48  ;;  %vm206_vm7 = vcmp.ge.s32.totalorder %v7819_v34, 0 }
 0x161   :  { %12507 = vst [vmem:[#allocation52_spill] sm:$0xff] %v7935_v16  ;;  %v761_v20 = vmul.f32 %v7979_v31, %v747_v42 }
 0x165   :  { %576 = vrot.lane.b32.xlu2 %v7782_v63, %s7487_s9  ;;  %894 = vrot.lane.b32.xlu1 %v7686_v49, %s7490_s12 }
 0x166   :  { %657 = vrot.lane.b32.xlu0 %v7782_v63, %s7486_s23 }
 0x167   :  { %v8006_v60 = vpop.permute.xlu1 %912  ;;  %v735_v32 = vpop.permute.xlu2 %734 }
 0x168   :  { %v8020_v49 = vpop.permute.xlu0 %971  ;;  %v743_v46 = vsel %vm12236_vm9, %v727_v11, %v735_v32  ;;  %v755_v41 = vsel %vm12236_vm9, %v735_v32, %v7750_v54  ;;  %vm8042_vm9 = vmand %vm8001_vm11, %vm12240_vm13  ;;  %vm207_vm11 = vcmp.ge.s32.totalorder %v7817_v17, 0  ;;  %vm211_vm13 = vcmp.lt.s32.totalorder %v7817_v17, 16 }
 0x169   :  { %12522 = vst [vmem:[#allocation60_spill] sm:$0xff] %v8020_v49  ;;  %v759_v23 = vmul.f32 %v7991_v30, %v755_v41  ;;  %v762_v16 = vmul.f32 %v7994_v58, %v743_v46  ;;  %v8075_v26 = vsel %vm8042_vm9, 1.0, %v12513_v36  ;;  %v8085_v54 = vsel %vm145_vm12, 1.0, %v12513_v36  ;;  %vm8095_vm9 = vmand %vm207_vm11, %vm211_vm13 }
 0x16a   :  { %12530 = vst [vmem:[#allocation62_spill] sm:$0xff] %v8075_v26  ;;  %v599_v32 = vmul.f32 %v8075_v26, %v585_v37  ;;  %vm219_vm13 = vmand %vm8095_vm9, %vm12242_vm2  ;;  %vm209_vm12 = vcmp.ge.s32.totalorder %v7838_v2, 0  ;;  %vm213_vm11 = vcmp.lt.s32.totalorder %v7838_v2, 16  ;;  %vm12550_vm2 = vcmp.lt.s32.totalorder %v7937_v51, 16 }
 0x16b   :  { %v775_v41 = vpack.c.bf16 %v760_v44, %v759_v23  ;;  %v776_v46 = vpack.c.bf16 %v762_v16, %v761_v20  ;;  %v8064_v20 = vsel %vm8015_vm1, 1.0, %v12513_v36  ;;  %v8082_v44 = vsel %vm134_vm15, 1.0, %v12513_v36  ;;  %12532 = vst [vmem:[#allocation64_spill] sm:$0xff] %v8085_v54  ;;  %vm8123_vm15 = vmand %vm206_vm7, %vm210_vm3 }
 0x16c   :  { %12529 = vst [vmem:[#allocation61_spill] sm:$0xff] %v8064_v20  ;;  %vm212_vm1 = vcmp.lt.s32.totalorder %v7836_v12, 16  ;;  %v598_v23 = vmul.f32 %v8064_v20, %v589_v3  ;;  %vm12542_vm7 = vcmp.ge.s32.totalorder %v7937_v51, 0 }
 0x16d   :  { %783 = vst [vmem:[#allocation2 + $0x80] sm:$0xff] %v775_v41  ;;  %649 = vrot.lane.b32.xlu2 %v7780_v62, %s7486_s23  ;;  %568 = vrot.lane.b32.xlu1 %v7780_v62, %s7487_s9  ;;  %vm8115_vm0 = vmand %vm208_vm10, %vm212_vm1  ;;  %vm12539_vm10 = vcmp.lt.s32.totalorder %v7918_v24, 16 }
 0x16e   :  { %784 = vst [vmem:[#allocation2 + $0x88] sm:$0xff] %v776_v46  ;;  %730 = vrot.lane.b32.xlu0 %v7780_v62, %s7489_s11  ;;  %vm8135_vm1 = vmand %vm219_vm13, %vm12539_vm10  ;;  %vm12547_vm10 = vcmp.lt.s32.totalorder %v7784_v0, 16 }
 0x16f   :  { %12531 = vst [vmem:[#allocation63_spill] sm:$0xff] %v8082_v44  ;;  %v8087_v13 = vpop.permute.xlu1 %552  ;;  %v808_v11 = vpop.permute.xlu2 %807  ;;  %vm220_vm3 = vmand %vm8115_vm0, %vm12542_vm7  ;;  %vm12549_vm7 = vcmp.ge.s32.totalorder %v7953_v39, 0 }
 0x170   :  { %v573_v52 = vpop.permute.xlu0 %572  ;;  %vm8159_vm13 = vmand %vm209_vm12, %vm213_vm11  ;;  %vm823_vm11 = vcmp.lt.s32.totalorder %v7784_v0, 1 }
 0x171   :  { %v581_v35 = vsel %vm580_vm8, %v7933_v48, %v573_v52  ;;  %v593_v42 = vsel %vm580_vm8, %v573_v52, %v7762_v57  ;;  %vm8175_vm12 = vmand %vm220_vm3, %vm12550_vm2  ;;  %vm12553_vm2 = vcmp.lt.s32.totalorder %v7907_v29, 16  ;;  %v828_v37 = vsel %vm823_vm11, %v7772_v59, %v808_v11 }
 0x172   :  { %v597_v41 = vmul.f32 %v8082_v44, %v593_v42  ;;  %v600_v46 = vmul.f32 %v8085_v54, %v581_v35  ;;  %v8150_v35 = vsel %vm7897_vm14, 1.0, %v12513_v36  ;;  %v8155_v42 = vsel %vm7914_vm4, 1.0, %v12513_v36  ;;  %vm12548_vm14 = vmmov %vm12547_vm10 }
 0x173   :  { %12543 = vst [vmem:[#allocation65_spill] sm:$0xff] %v8150_v35  ;;  %vm221_vm4 = vmand %vm8159_vm13, %vm12549_vm7  ;;  %vm12557_vm7 = vcmp.ge.s32.totalorder %v7891_v27, 0  ;;  %v8218_v3 = vsel %vm8175_vm12, 1.0, %v12513_v36 }
 0x174   :  { %v613_v48 = vpack.c.bf16 %v598_v23, %v597_v41  ;;  %v614_v49 = vpack.c.bf16 %v600_v46, %v599_v32  ;;  %12544 = vst [vmem:[#allocation66_spill] sm:$0xff] %v8155_v42  ;;  %vm8196_vm3 = vmand %vm8123_vm15, %vm12553_vm2  ;;  %v842_v16 = vmul.f32 %v8218_v3, %v828_v37  ;;  %vm12566_vm2 = vcmp.lt.s32.totalorder %v7845_v21, 16 }
 0x175   :  { %819 = vrot.lane.b32.xlu2 %v7782_v63, %s7488_s10  ;;  %738 = vrot.lane.b32.xlu1 %v7782_v63, %s7489_s11  ;;  %12558 = vst [vmem:[#allocation68_spill] sm:$0xff] %v8218_v3 }
 0x176   :  { %621 = vst [vmem:[#allocation2] sm:$0xff] %v613_v48  ;;  %916 = vrot.lane.b32.xlu0 %v7782_v63, %s7490_s12 }
 0x177   :  { %622 = vst [vmem:[#allocation2 + $0x8] sm:$0xff] %v614_v49  ;;  %v8145_v52 = vpop.permute.xlu1 %641  ;;  %v8157_v23 = vpop.permute.xlu2 %722 }
 0x178   :  { %v646_v32 = vpop.permute.xlu0 %645 }
 0x179   :  { %v662_v41 = vsel %vm12547_vm10, %v646_v32, %v7875_v18  ;;  %v666_v19 = vsel %vm12548_vm14, %v7742_v53, %v646_v32  ;;  %vm218_vm10 = vmand %vm8123_vm15, %vm130_vm6  ;;  %v8203_v32 = vsel %vm8135_vm1, 1.0, %v12513_v36  ;;  %vm12561_vm1 = vcmp.ge.s32.totalorder %v7845_v21, 0 }
 0x17a   :  { %v680_v46 = vmul.f32 %v8150_v35, %v666_v19  ;;  %v681_v48 = vmul.f32 %v8155_v42, %v662_v41  ;;  %vm225_vm14 = vmand %vm221_vm4, %vm141_vm5  ;;  %12556 = vst [vmem:[#allocation67_spill] sm:$0xff] %v8203_v32  ;;  %v832_v41 = vsel %vm823_vm11, %v7794_v6, %v7772_v59  ;;  %vm12562_vm4 = vcmp.ge.s32.totalorder %v7877_v28, 0 }
 0x17b   :  { %vm237_vm15 = vmand %vm8159_vm13, %vm12557_vm7  ;;  %v841_v29 = vmul.f32 %v8203_v32, %v832_v41  ;;  %v8268_v41 = vsel %vm8196_vm3, 1.0, %v12513_v36 }
 0x17c   :  { %v695_v18 = vpack.c.bf16 %v681_v48, %v680_v46  ;;  %v8226_v46 = vsel %vm218_vm10, 1.0, %v12513_v36  ;;  %v8229_v48 = vsel %vm225_vm14, 1.0, %v12513_v36  ;;  %vm235_vm13 = vmand %vm8095_vm9, %vm12561_vm1  ;;  %vm12563_vm10 = vcmp.lt.s32.totalorder %v7891_v27, 16  ;;  %12568 = vst [vmem:[#allocation71_spill] sm:$0xff] %v8268_v41 }
 0x17d   :  { %908 = vrot.lane.b32.xlu2 %v7780_v62, %s7490_s12  ;;  %811 = vrot.lane.b32.xlu1 %v7780_v62, %s7488_s10  ;;  %12559 = vst [vmem:[#allocation69_spill] sm:$0xff] %v8226_v46  ;;  %vm236_vm12 = vmand %vm8115_vm0, %vm12562_vm4  ;;  %vm920_vm9 = vcmp.lt.s32.totalorder %v7784_v0, 127  ;;  %vm12567_vm0 = vcmp.lt.s32.totalorder %v7877_v28, 16 }
 0x17e   :  { %703 = vst [vmem:[#allocation2 + $0x48] sm:$0xff] %v695_v18  ;;  %578 = vrot.lane.b32.xlu0 %v7803_v9, %s7487_s9  ;;  %vm8249_vm14 = vmand %vm237_vm15, %vm12563_vm10  ;;  %vm12569_vm15 = vcmp.lt.s32.totalorder %v7784_v0, 16  ;;  %v933_v37 = vsel %vm920_vm9, %v8006_v60, %v7792_v5 }
 0x17f   :  { %v8223_v19 = vpop.permute.xlu1 %714  ;;  %12560 = vst [vmem:[#allocation70_spill] sm:$0xff] %v8229_v48  ;;  %v8231_v18 = vpop.permute.xlu2 %795  ;;  %vm239_vm7 = vmand %vm235_vm13, %vm12566_vm2  ;;  %v8283_v53 = vsel %vm8249_vm14, 1.0, %v12513_v36 }
 0x180   :  { %v816_v49 = vpop.permute.xlu0 %815  ;;  %vm240_vm1 = vmand %vm236_vm12, %vm12567_vm0  ;;  %12570 = vst [vmem:[#allocation72_spill] sm:$0xff] %v8283_v53  ;;  %v940_v21 = vmul.f32 %v8283_v53, %v933_v37  ;;  %vm12586_vm12 = vcmp.lt.s32.totalorder %v7784_v0, 15 }
 0x181   :  { %v824_v22 = vsel %vm823_vm11, %v808_v11, %v816_v49  ;;  %v836_v59 = vsel %vm823_vm11, %v816_v49, %v7794_v6  ;;  %vm12573_vm3 = vmmov %vm12569_vm15 }
 0x182   :  { %v840_v11 = vmul.f32 %v8226_v46, %v836_v59  ;;  %v843_v39 = vmul.f32 %v8229_v48, %v824_v22  ;;  %v8292_v22 = vsel %vm239_vm7, 1.0, %v12513_v36  ;;  %v8295_v59 = vsel %vm240_vm1, 1.0, %v12513_v36  ;;  %vm12575_vm13 = vmmov %vm12573_vm3 }
 0x183   :  { %12571 = vst [vmem:[#allocation73_spill] sm:$0xff] %v8292_v22  ;;  %vm12576_vm4 = vmmov %vm12573_vm3 }
 0x184   :  { %v856_v6 = vpack.c.bf16 %v841_v29, %v840_v11  ;;  %v857_v57 = vpack.c.bf16 %v843_v39, %v842_v16  ;;  %v929_v29 = vsel %vm920_vm9, %v7792_v5, %v7758_v55  ;;  %v671_v39 = vsel %vm12569_vm15, %v7812_v14, %v7834_v7  ;;  %12572 = vst [vmem:[#allocation74_spill] sm:$0xff] %v8295_v59  ;;  %vm12587_vm10 = vmmov %vm12586_vm12 }
 0x185   :  { %659 = vrot.lane.b32.xlu1 %v7803_v9, %s7486_s23  ;;  %570 = vrot.lane.b32.xlu2 %v7801_v8, %s7487_s9  ;;  %v937_v28 = vmul.f32 %v8268_v41, %v929_v29  ;;  %vm12589_vm14 = vmmov %vm12587_vm10 }
 0x186   :  { %864 = vst [vmem:[#allocation2 + $0xc0] sm:$0xff] %v856_v6  ;;  %651 = vrot.lane.b32.xlu0 %v7801_v8, %s7486_s23  ;;  %v683_v6 = vmul.f32 %v7859_v45, %v671_v39  ;;  %vm12590_vm2 = vmmov %vm12587_vm10 }
 0x187   :  { %865 = vst [vmem:[#allocation2 + $0xc8] sm:$0xff] %v857_v57  ;;  %v8289_v49 = vpop.permute.xlu1 %900  ;;  %v656_v16 = vpop.permute.xlu2 %655  ;;  %vm12594_vm7 = vmmov %vm12573_vm3 }
 0x188   :  { %v905_v11 = vpop.permute.xlu0 %904  ;;  %v675_v51 = vsel %vm12573_vm3, %v656_v16, %v7812_v14  ;;  %vm12595_vm0 = vmmov %vm12573_vm3 }
 0x189   :  { %v921_v5 = vsel %vm920_vm9, %v905_v11, %v8006_v60  ;;  %v925_v57 = vsel %vm920_vm9, %v7758_v55, %v905_v11  ;;  %v682_v27 = vmul.f32 %v7870_v25, %v675_v51  ;;  %vm12597_vm1 = vmmov %vm12595_vm0 }
 0x18a   :  { %v938_v36 = vmul.f32 %v8292_v22, %v925_v57  ;;  %v939_v14 = vmul.f32 %v8295_v59, %v921_v5  ;;  %vm12598_vm15 = vmmov %vm12595_vm0 }
 0x18b   :  { %v696_v56 = vpack.c.bf16 %v683_v6, %v682_v27  ;;  %vm12600_vm3 = vmmov %vm12590_vm2 }
 0x18c   :  { %v953_v39 = vpack.c.bf16 %v938_v36, %v937_v28  ;;  %v954_v24 = vpack.c.bf16 %v940_v21, %v939_v14  ;;  %v590_v21 = vsel %vm580_vm8, %v7814_v15, %v7790_v4 }
 0x18d   :  { %704 = vst [vmem:[#allocation2 + $0x50] sm:$0xff] %v696_v56  ;;  %732 = vrot.lane.b32.xlu1 %v7801_v8, %s7489_s11  ;;  %740 = vrot.lane.b32.xlu2 %v7803_v9, %s7489_s11  ;;  %v602_v56 = vmul.f32 %v8064_v20, %v590_v21 }
 0x18e   :  { %961 = vst [vmem:[#allocation2 + $0x140] sm:$0xff] %v953_v39  ;;  %821 = vrot.lane.b32.xlu0 %v7803_v9, %s7488_s10 }
 0x18f   :  { %962 = vst [vmem:[#allocation2 + $0x148] sm:$0xff] %v954_v24  ;;  %v8318_v55 = vpop.permute.xlu1 %973  ;;  %v8320_v60 = vpop.permute.xlu2 %728 }
 0x190   :  { %12574 = vst [vmem:[#allocation75_spill] sm:$0xff] %v8318_v55  ;;  %v8322_v29 = vpop.permute.xlu0 %560 }
 0x195   :  { %918 = vrot.lane.b32.xlu1 %v7803_v9, %s7490_s12  ;;  %813 = vrot.lane.b32.xlu2 %v7801_v8, %s7488_s10 }
 0x196   :  { %910 = vrot.lane.b32.xlu0 %v7801_v8, %s7490_s12 }
 0x197   :  { %v575_v27 = vpop.permute.xlu1 %574  ;;  %v915_v28 = vpop.permute.xlu2 %914 }
 0x198   :  { %v594_v36 = vsel %vm580_vm8, %v575_v27, %v7814_v15  ;;  %v8337_v24 = vpop.permute.xlu0 %633 }
 0x199   :  { %v601_v37 = vmul.f32 %v8082_v44, %v594_v36 }
 0x19b   :  { %v615_v11 = vpack.c.bf16 %v602_v56, %v601_v37 }
 0x19d   :  { %623 = vst [vmem:[#allocation2 + $0x10] sm:$0xff] %v615_v11  ;;  %979 = vrot.lane.b32.xlu1 %v7640_v38, %s7491_s13  ;;  %981 = vrot.lane.b32.xlu2 %v7676_v47, %s7491_s13 }
 0x19e   :  { %977 = vrot.lane.b32.xlu0 %v7624_v33, %s7491_s13 }
 0x19f   :  { %v8347_v51 = vpop.permute.xlu2 %643  ;;  %v648_v15 = vpop.permute.xlu1 %647 }
 0x1a0   :  { %v8349_v6 = vpop.permute.xlu0 %803  ;;  %v663_v5 = vsel %vm12575_vm13, %v648_v15, %v656_v16  ;;  %v667_v57 = vsel %vm12576_vm4, %v7834_v7, %v648_v15  ;;  %v833_v16 = vsel %vm823_vm11, %v7830_v61, %v7832_v1  ;;  %vm12601_vm13 = vmmov %vm12590_vm2 }
 0x1a1   :  { %v684_v14 = vmul.f32 %v8150_v35, %v667_v57  ;;  %v685_v39 = vmul.f32 %v8155_v42, %v663_v5  ;;  %v845_v11 = vmul.f32 %v8203_v32, %v833_v16  ;;  %v12577_v57 = vld [vmem:[#allocation52_spill] sm:$0xff]  ;;  %vm12602_vm4 = vmmov %vm12590_vm2 }
 0x1a3   :  { %v697_v21 = vpack.c.bf16 %v685_v39, %v684_v14  ;;  %v12578_v14 = vld [vmem:[#allocation46_spill] sm:$0xff] }
 0x1a4   :  { %v930_v39 = vsel %vm920_vm9, %v12578_v14, %v12577_v57 }
 0x1a5   :  { %705 = vst [vmem:[#allocation2 + $0x58] sm:$0xff] %v697_v21  ;;  %985 = vrot.lane.b32.xlu1 %v7650_v40, %s7491_s13  ;;  %987 = vrot.lane.b32.xlu2 %v7662_v43, %s7491_s13  ;;  %v934_v21 = vsel %vm920_vm9, %v915_v28, %v12578_v14 }
 0x1a6   :  { %983 = vrot.lane.b32.xlu0 %v7688_v50, %s7491_s13 }
 0x1a7   :  { %v8368_v7 = vpop.permute.xlu2 %716  ;;  %v818_v36 = vpop.permute.xlu1 %817 }
 0x1a8   :  { %v8370_v56 = vpop.permute.xlu0 %892  ;;  %v837_v37 = vsel %vm823_vm11, %v818_v36, %v7830_v61  ;;  %v12579_v61 = vld [vmem:[#allocation33_spill] sm:$0xff] }
 0x1a9   :  { %v844_v15 = vmul.f32 %v8226_v46, %v837_v37 }
 0x1ab   :  { %v858_v5 = vpack.c.bf16 %v845_v11, %v844_v15  ;;  %v941_v11 = vmul.f32 %v8268_v41, %v930_v39  ;;  %v944_v15 = vmul.f32 %v8283_v53, %v934_v21 }
 0x1ad   :  { %866 = vst [vmem:[#allocation2 + $0xd0] sm:$0xff] %v858_v5  ;;  %991 = vrot.lane.b32.xlu1 %v7801_v8, %s7491_s13  ;;  %993 = vrot.lane.b32.xlu2 %v12579_v61, %s7491_s13 }
 0x1ae   :  { %989 = vrot.lane.b32.xlu0 %v7780_v62, %s7491_s13 }
 0x1af   :  { %v8390_v16 = vpop.permute.xlu2 %902  ;;  %v907_v37 = vpop.permute.xlu1 %906 }
 0x1b0   :  { %12580 = vst [vmem:[#allocation52_spill] sm:$0xff] %v8390_v16  ;;  %v922_v14 = vsel %vm920_vm9, %v907_v37, %v915_v28  ;;  %v926_v5 = vsel %vm920_vm9, %v12577_v57, %v907_v37  ;;  %v567_v55 = vpop.permute.xlu0 %566  ;;  %v12581_v57 = vld [vmem:[#allocation35_spill] sm:$0xff]  ;;  %v12582_v37 = vld [vmem:[#allocation36_spill] sm:$0xff] }
 0x1b1   :  { %v942_v12 = vmul.f32 %v8292_v22, %v926_v5  ;;  %v943_v2 = vmul.f32 %v8295_v59, %v922_v14  ;;  %v582_v16 = vsel %vm580_vm8, %v567_v55, %v575_v27  ;;  %v586_v39 = vsel %vm580_vm8, %v7790_v4, %v567_v55  ;;  %v12583_v27 = vld [vmem:[#allocation34_spill] sm:$0xff]  ;;  %v12585_v55 = vld [vmem:[#allocation48_spill] sm:$0xff] }
 0x1b2   :  { %v603_v21 = vmul.f32 %v8075_v26, %v586_v39  ;;  %v604_v28 = vmul.f32 %v8085_v54, %v582_v16  ;;  %v12584_v4 = vld [vmem:[#allocation38_spill] sm:$0xff] }
 0x1b3   :  { %v955_v34 = vpack.c.bf16 %v942_v12, %v941_v11  ;;  %v956_v61 = vpack.c.bf16 %v944_v15, %v943_v2  ;;  %v752_v16 = vsel %vm12586_vm12, %v12585_v55, %v12584_v4  ;;  %v748_v2 = vsel %vm12587_vm10, %v12584_v4, %v8320_v60  ;;  %vm12603_vm12 = vmmov %vm12590_vm2 }
 0x1b4   :  { %v616_v17 = vpack.c.bf16 %v604_v28, %v603_v21  ;;  %v764_v14 = vmul.f32 %v7972_v10, %v752_v16  ;;  %v765_v5 = vmul.f32 %v7979_v31, %v748_v2  ;;  %vm12604_vm10 = vmmov %vm12590_vm2 }
 0x1b5   :  { %963 = vst [vmem:[#allocation2 + $0x150] sm:$0xff] %v955_v34  ;;  %1054 = vrot.lane.b32.xlu1 %v12581_v57, %s7493_s1  ;;  %1056 = vrot.lane.b32.xlu2 %v12582_v37, %s7493_s1 }
 0x1b6   :  { %964 = vst [vmem:[#allocation2 + $0x158] sm:$0xff] %v956_v61  ;;  %995 = vrot.lane.b32.xlu0 %v12583_v27, %s7491_s13  ;;  %v8537_v27 = vld [vmem:[#allocation2 + $0x100] sm:$0xf] }
 0x1b7   :  { %624 = vst [vmem:[#allocation2 + $0x18] sm:$0xff] %v616_v17  ;;  %v8422_v34 = vpop.permute.xlu2 %975  ;;  %v8424_v12 = vpop.permute.xlu1 %554 }
 0x1b8   :  { %12588 = vst [vmem:[#allocation46_spill] sm:$0xff] %v8422_v34  ;;  %v737_v11 = vpop.permute.xlu0 %736 }
 0x1b9   :  { %v744_v61 = vsel %vm12589_vm14, %v8320_v60, %v737_v11  ;;  %v756_v15 = vsel %vm12590_vm2, %v737_v11, %v12585_v55  ;;  %v591_v60 = vsel %vm580_vm8, %v8087_v13, %v8322_v29  ;;  %vm12605_vm14 = vmmov %vm12590_vm2 }
 0x1ba   :  { %v763_v39 = vmul.f32 %v7991_v30, %v756_v15  ;;  %v766_v17 = vmul.f32 %v7994_v58, %v744_v61  ;;  %v606_v11 = vmul.f32 %v8064_v20, %v591_v60  ;;  %vm12611_vm2 = vmmov %vm12595_vm0 }
 0x1bc   :  { %v777_v21 = vpack.c.bf16 %v764_v14, %v763_v39  ;;  %v778_v28 = vpack.c.bf16 %v766_v17, %v765_v5 }
 0x1bd   :  { %1064 = vrot.lane.b32.xlu1 %v7688_v50, %s7493_s1  ;;  %1070 = vrot.lane.b32.xlu2 %v7780_v62, %s7493_s1 }
 0x1be   :  { %785 = vst [vmem:[#allocation2 + $0x90] sm:$0xff] %v777_v21  ;;  %1062 = vrot.lane.b32.xlu0 %v7676_v47, %s7493_s1 }
 0x1bf   :  { %786 = vst [vmem:[#allocation2 + $0x98] sm:$0xff] %v778_v28  ;;  %v8446_v4 = vpop.permute.xlu2 %576  ;;  %v8448_v55 = vpop.permute.xlu1 %562  ;;  %v12592_v28 = vld [vmem:[#allocation32_spill] sm:$0xff] }
 0x1c0   :  { %v595_v16 = vsel %vm580_vm8, %v8446_v4, %v8087_v13  ;;  %v810_v2 = vpop.permute.xlu0 %809  ;;  %v12591_v13 = vld [vmem:[#allocation29_spill] sm:$0xff] }
 0x1c1   :  { %v605_v61 = vmul.f32 %v8082_v44, %v595_v16  ;;  %v825_v15 = vsel %vm823_vm11, %v810_v2, %v818_v36  ;;  %v829_v14 = vsel %vm823_vm11, %v7832_v1, %v810_v2  ;;  %v834_v16 = vsel %vm823_vm11, %v8231_v18, %v8349_v6 }
 0x1c2   :  { %v846_v5 = vmul.f32 %v8218_v3, %v829_v14  ;;  %v847_v39 = vmul.f32 %v8229_v48, %v825_v15  ;;  %v849_v14 = vmul.f32 %v8203_v32, %v834_v16 }
 0x1c3   :  { %v617_v17 = vpack.c.bf16 %v606_v11, %v605_v61 }
 0x1c4   :  { %v859_v21 = vpack.c.bf16 %v847_v39, %v846_v5 }
 0x1c5   :  { %625 = vst [vmem:[#allocation2 + $0x20] sm:$0xff] %v617_v17  ;;  %1050 = vrot.lane.b32.xlu1 %v12591_v13, %s7493_s1  ;;  %1052 = vrot.lane.b32.xlu2 %v12592_v28, %s7493_s1  ;;  %v672_v17 = vsel %vm12594_vm7, %v8337_v24, %v8145_v52  ;;  %vm12614_vm7 = vmmov %vm12595_vm0 }
 0x1c6   :  { %867 = vst [vmem:[#allocation2 + $0xd8] sm:$0xff] %v859_v21  ;;  %1072 = vrot.lane.b32.xlu0 %v7801_v8, %s7493_s1 }
 0x1c7   :  { %v8469_v36 = vpop.permute.xlu1 %635  ;;  %v650_v1 = vpop.permute.xlu2 %649 }
 0x1c8   :  { %v8471_v60 = vpop.permute.xlu0 %724  ;;  %v668_v21 = vsel %vm12595_vm0, %v8145_v52, %v650_v1 }
 0x1cd   :  { %1060 = vrot.lane.b32.xlu1 %v7640_v38, %s7493_s1  ;;  %1066 = vrot.lane.b32.xlu2 %v7650_v40, %s7493_s1 }
 0x1ce   :  { %1058 = vrot.lane.b32.xlu0 %v7624_v33, %s7493_s1 }
 0x1cf   :  { %v8483_v2 = vpop.permute.xlu1 %805  ;;  %v8485_v11 = vpop.permute.xlu2 %819 }
 0x1d0   :  { %v8487_v61 = vpop.permute.xlu0 %797  ;;  %v838_v15 = vsel %vm823_vm11, %v8485_v11, %v8231_v18  ;;  %v931_v18 = vsel %vm920_vm9, %v8370_v56, %v8289_v49 }
 0x1d1   :  { %12593 = vst [vmem:[#allocation35_spill] sm:$0xff] %v8487_v61  ;;  %v848_v5 = vmul.f32 %v8226_v46, %v838_v15  ;;  %v688_v46 = vmul.f32 %v8150_v35, %v668_v21 }
 0x1d3   :  { %v860_v39 = vpack.c.bf16 %v849_v14, %v848_v5  ;;  %v8521_v5 = vpop.f32.mrf.mxu0 }
 0x1d5   :  { %868 = vst [vmem:[#allocation2 + $0xe0] sm:$0xff] %v860_v39  ;;  %1135 = vrot.lane.b32.xlu1 %v12581_v57, %s7494_s19  ;;  %1137 = vrot.lane.b32.xlu2 %v12582_v37, %s7494_s19  ;;  %v687_v57 = vmul.f32 %v7859_v45, %v672_v17  ;;  %v945_v39 = vmul.f32 %v8268_v41, %v931_v18  ;;  %v8530_v17 = vpop.f32.mrf.mxu1 }
 0x1d6   :  { %1068 = vrot.lane.b32.xlu0 %v7662_v43, %s7493_s1  ;;  %v2237_v18 = vpack.c.bf16 %v8530_v17, %v8521_v5 }
 0x1d7   :  { %v8512_v16 = vpop.permute.xlu1 %894  ;;  %v8514_v15 = vpop.permute.xlu2 %908 }
 0x1d8   :  { %12596 = vst [vmem:[#allocation36_spill] sm:$0xff] %v8512_v16  ;;  %v658_v14 = vpop.permute.xlu0 %657  ;;  %v927_v37 = vsel %vm920_vm9, %v8289_v49, %v8514_v15 }
 0x1d9   :  { %v664_v34 = vsel %vm12597_vm1, %v650_v1, %v658_v14  ;;  %v676_v52 = vsel %vm12598_vm15, %v658_v14, %v8337_v24  ;;  %v946_v16 = vmul.f32 %v8292_v22, %v927_v37  ;;  %v8539_v1 = vld [vmem:[#allocation2 + $0x104] sm:$0xf]  ;;  %v8563_v14 = vpop.f32.mrf.mxu2  ;;  %v8565_v37 = vpop.f32.mrf.mxu3  ;;  %vm12615_vm1 = vmmov %vm12595_vm0 }
 0x1da   :  { %v686_v32 = vmul.f32 %v7870_v25, %v676_v52  ;;  %v689_v49 = vmul.f32 %v8155_v42, %v664_v34  ;;  %12599 = vst [vmem:[#allocation38_spill] sm:$0xff] %v8539_v1  ;;  %v754_v52 = vsel %vm12601_vm13, %v8368_v7, %v8471_v60  ;;  %vm12626_vm15 = vmmov %vm12600_vm3 }
 0x1db   :  { %v957_v41 = vpack.c.bf16 %v946_v16, %v945_v39  ;;  %2245 = vst [vmem:[#allocation2 + $0x100] sm:$0xff] %v2237_v18  ;;  %v8569_v39 = vld [vmem:[#allocation2 + $0x110] sm:$0xf0] }
 0x1dc   :  { %v698_v61 = vpack.c.bf16 %v687_v57, %v686_v32  ;;  %v699_v24 = vpack.c.bf16 %v689_v49, %v688_v46  ;;  %v8555_v46 = vpop.f32.mrf.mxu0 }
 0x1dd   :  { %965 = vst [vmem:[#allocation2 + $0x160] sm:$0xff] %v957_v41  ;;  %1145 = vrot.lane.b32.xlu1 %v7688_v50, %s7494_s19  ;;  %1151 = vrot.lane.b32.xlu2 %v7780_v62, %s7494_s19 }
 0x1de   :  { %706 = vst [vmem:[#allocation2 + $0x60] sm:$0xff] %v698_v61  ;;  %1143 = vrot.lane.b32.xlu0 %v7676_v47, %s7494_s19  ;;  %v8559_v47 = vpop.f32.mrf.mxu1 }
 0x1df   :  { %707 = vst [vmem:[#allocation2 + $0x68] sm:$0xff] %v699_v24  ;;  %v569_v34 = vpop.permute.xlu1 %568  ;;  %v8547_v21 = vpop.permute.xlu2 %570  ;;  %v2239_v61 = vpack.c.bf16 %v8559_v47, %v8555_v46  ;;  %v772_v24 = vmul.f32 %v7972_v10, %v754_v52 }
 0x1e0   :  { %v731_v16 = vpop.permute.xlu0 %730  ;;  %v583_v32 = vsel %vm580_vm8, %v569_v34, %v8446_v4  ;;  %v587_v50 = vsel %vm580_vm8, %v8322_v29, %v569_v34  ;;  %v8567_v4 = vld [vmem:[#allocation2 + $0x10c] sm:$0xf0]  ;;  %v753_v29 = vsel %vm12600_vm3, %v8223_v19, %v8157_v23 }
 0x1e1   :  { %v607_v62 = vmul.f32 %v8075_v26, %v587_v50  ;;  %v608_v41 = vmul.f32 %v8085_v54, %v583_v32  ;;  %2247 = vst [vmem:[#allocation2 + $0x110] sm:$0xff] %v2239_v61  ;;  %v749_v49 = vsel %vm12602_vm4, %v8157_v23, %v731_v16  ;;  %v768_v18 = vmul.f32 %v7972_v10, %v753_v29  ;;  %v8606_v61 = vld [vmem:[#allocation2 + $0x108] sm:$0xf]  ;;  %v8625_v1 = vpop.f32.mrf.mxu2 }
 0x1e2   :  { %v2238_v23 = vpack.c.bf16 %v8565_v37, %v8563_v14  ;;  %v769_v50 = vmul.f32 %v7979_v31, %v749_v49  ;;  %12606 = vst [vmem:[#allocation48_spill] sm:$0xff] %v8606_v61 }
 0x1e3   :  { %v618_v57 = vpack.c.bf16 %v608_v41, %v607_v62 }
 0x1e4   :  { %v8604_v41 = vpop.f32.mrf.mxu0 }
 0x1e5   :  { %626 = vst [vmem:[#allocation2 + $0x28] sm:$0xff] %v618_v57  ;;  %1131 = vrot.lane.b32.xlu1 %v12591_v13, %s7494_s19  ;;  %1133 = vrot.lane.b32.xlu2 %v12592_v28, %s7494_s19  ;;  %v8608_v57 = vld [vmem:[#allocation2 + $0x10c] sm:$0xf] }
 0x1e6   :  { %1153 = vrot.lane.b32.xlu0 %v7801_v8, %s7494_s19  ;;  %12607 = vst [vmem:[#allocation29_spill] sm:$0xff] %v8608_v57  ;;  %v8618_v49 = vpop.f32.mrf.mxu1 }
 0x1e7   :  { %v739_v34 = vpop.permute.xlu1 %738  ;;  %v8590_v32 = vpop.permute.xlu2 %740  ;;  %2246 = vst [vmem:[#allocation2 + $0x108] sm:$0xff] %v2238_v23 }
 0x1e8   :  { %v917_v62 = vpop.permute.xlu0 %916  ;;  %v745_v13 = vsel %vm12603_vm12, %v731_v16, %v739_v34  ;;  %v757_v8 = vsel %vm12604_vm10, %v739_v34, %v8223_v19  ;;  %v758_v28 = vsel %vm12605_vm14, %v8590_v32, %v8368_v7 }
 0x1e9   :  { %v923_v29 = vsel %vm920_vm9, %v8514_v15, %v917_v62  ;;  %v935_v16 = vsel %vm920_vm9, %v917_v62, %v8370_v56  ;;  %v767_v19 = vmul.f32 %v7991_v30, %v757_v8  ;;  %v770_v52 = vmul.f32 %v7994_v58, %v745_v13  ;;  %v8627_v56 = vpop.f32.mrf.mxu3  ;;  %v8629_v62 = vld [vmem:[#allocation2 + $0x120] sm:$0xf]  ;;  %v8631_v13 = vld [vmem:[#allocation2 + $0x124] sm:$0xf] }
 0x1ea   :  { %v947_v7 = vmul.f32 %v8295_v59, %v923_v29  ;;  %v948_v34 = vmul.f32 %v8283_v53, %v935_v16  ;;  %v771_v10 = vmul.f32 %v7991_v30, %v758_v28  ;;  %v2241_v15 = vpack.c.bf16 %v8618_v49, %v8604_v41  ;;  %v8660_v16 = vld [vmem:[#allocation2 + $0x114] sm:$0xf0] }
 0x1eb   :  { %v779_v57 = vpack.c.bf16 %v768_v18, %v767_v19  ;;  %v780_v61 = vpack.c.bf16 %v770_v52, %v769_v50  ;;  %v592_v28 = vsel %vm580_vm8, %v8424_v12, %v8448_v55  ;;  %v588_v18 = vsel %vm580_vm8, %v8448_v55, %v8547_v21  ;;  %12608 = vst [vmem:[#allocation32_spill] sm:$0xff] %v8660_v16  ;;  %v8662_v55 = vld [vmem:[#allocation2 + $0x118] sm:$0xf0] }
 0x1ec   :  { %v958_v23 = vpack.c.bf16 %v948_v34, %v947_v7  ;;  %v781_v8 = vpack.c.bf16 %v772_v24, %v771_v10  ;;  %2249 = vst [vmem:[#allocation2 + $0x120] sm:$0xff] %v2241_v15  ;;  %v2240_v10 = vpack.c.bf16 %v8627_v56, %v8625_v1  ;;  %v8658_v29 = vpop.f32.mrf.mxu0 }
 0x1ed   :  { %787 = vst [vmem:[#allocation2 + $0xa0] sm:$0xff] %v779_v57  ;;  %1141 = vrot.lane.b32.xlu1 %v7640_v38, %s7494_s19  ;;  %1147 = vrot.lane.b32.xlu2 %v7650_v40, %s7494_s19  ;;  %v610_v38 = vmul.f32 %v8064_v20, %v592_v28  ;;  %v8683_v28 = vld [vmem:[#allocation2 + $0x12c] sm:$0xf0] }
 0x1ee   :  { %966 = vst [vmem:[#allocation2 + $0x168] sm:$0xff] %v958_v23  ;;  %1139 = vrot.lane.b32.xlu0 %v7624_v33, %s7494_s19  ;;  %v8672_v7 = vpop.f32.mrf.mxu1 }
 0x1ef   :  { %788 = vst [vmem:[#allocation2 + $0xa8] sm:$0xff] %v780_v61  ;;  %v812_v24 = vpop.permute.xlu1 %811  ;;  %v8649_v50 = vpop.permute.xlu2 %813 }
 0x1f0   :  { %789 = vst [vmem:[#allocation2 + $0xb0] sm:$0xff] %v781_v8  ;;  %v579_v40 = vpop.permute.xlu0 %578  ;;  %v826_v33 = vsel %vm823_vm11, %v812_v24, %v8485_v11  ;;  %v830_v57 = vsel %vm823_vm11, %v8349_v6, %v812_v24  ;;  %v611_v6 = vmul.f32 %v8075_v26, %v588_v18  ;;  %v8679_v8 = vpop.f32.mrf.mxu2  ;;  %v8685_v24 = vld [vmem:[#allocation2 + $0x130] sm:$0xf0] }
 0x1f1   :  { %12609 = vst [vmem:[#allocation76_spill] sm:$0xff] %v8662_v55  ;;  %v584_v61 = vsel %vm580_vm8, %v8547_v21, %v579_v40  ;;  %v596_v19 = vsel %vm580_vm8, %v579_v40, %v8424_v12  ;;  %v850_v11 = vmul.f32 %v8218_v3, %v830_v57  ;;  %v851_v52 = vmul.f32 %v8229_v48, %v826_v33  ;;  %v8681_v12 = vpop.f32.mrf.mxu3 }
 0x1f2   :  { %2248 = vst [vmem:[#allocation2 + $0x118] sm:$0xff] %v2240_v10  ;;  %v609_v34 = vmul.f32 %v8082_v44, %v596_v19  ;;  %v612_v15 = vmul.f32 %v8085_v54, %v584_v61  ;;  %v2243_v21 = vpack.c.bf16 %v8672_v7, %v8658_v29  ;;  %v2242_v18 = vpack.c.bf16 %v8681_v12, %v8679_v8  ;;  %v8701_v61 = vld [vmem:[#allocation2 + $0x128] sm:$0xf]  ;;  %v8703_v19 = vld [vmem:[#allocation2 + $0x12c] sm:$0xf] }
 0x1f3   :  { %v861_v23 = vpack.c.bf16 %v851_v52, %v850_v11  ;;  %12610 = vst [vmem:[#allocation77_spill] sm:$0xff] %v8679_v8  ;;  %v673_v33 = vsel %vm12611_vm2, %v8469_v36, %v8347_v51 }
 0x1f4   :  { %v619_v40 = vpack.c.bf16 %v610_v38, %v609_v34  ;;  %v620_v10 = vpack.c.bf16 %v612_v15, %v611_v6  ;;  %2251 = vst [vmem:[#allocation2 + $0x130] sm:$0xff] %v2243_v21  ;;  %v691_v6 = vmul.f32 %v7859_v45, %v673_v33 }
 0x1f5   :  { %869 = vst [vmem:[#allocation2 + $0xe8] sm:$0xff] %v861_v23  ;;  %1078 = vrot.lane.b32.xlu1 %v7782_v63, %s7493_s1  ;;  %1080 = vrot.lane.b32.xlu2 %v7803_v9, %s7493_s1 }
 0x1f6   :  { %627 = vst [vmem:[#allocation2 + $0x30] sm:$0xff] %v619_v40  ;;  %1149 = vrot.lane.b32.xlu0 %v7662_v43, %s7494_s19 }
 0x1f7   :  { %628 = vst [vmem:[#allocation2 + $0x38] sm:$0xff] %v620_v10  ;;  %v660_v38 = vpop.permute.xlu1 %659  ;;  %v8699_v57 = vpop.permute.xlu2 %981 }
 0x1f8   :  { %12612 = vst [vmem:[#allocation78_spill] sm:$0xff] %v8701_v61  ;;  %v677_v11 = vsel %vm12614_vm7, %v660_v38, %v8469_v36  ;;  %v652_v52 = vpop.permute.xlu0 %651  ;;  %v12616_v36 = vld [vmem:[#allocation39_spill] sm:$0xff] }
 0x1f9   :  { %12613 = vst [vmem:[#allocation79_spill] sm:$0xff] %v8703_v19  ;;  %v690_v34 = vmul.f32 %v7870_v25, %v677_v11  ;;  %v665_v43 = vsel %vm12595_vm0, %v652_v52, %v660_v38  ;;  %v669_v15 = vsel %vm12615_vm1, %v8347_v51, %v652_v52  ;;  %v251_v54 = vadd.s32 1, %v12616_v36  ;;  %v12618_v38 = vld [vmem:[#allocation34_spill] sm:$0xff]  ;;  %v8726_v51 = vpop.f32.mrf.mxu2  ;;  %v8728_v11 = vpop.f32.mrf.mxu3  ;;  %v12621_v52 = vld [vmem:[#allocation33_spill] sm:$0xff]  ;;  %v8743_v36 = vld [vmem:[#allocation2 + $0x138] sm:$0xf0] }
 0x1fa   :  { %2250 = vst [vmem:[#allocation2 + $0x128] sm:$0xff] %v2242_v18  ;;  %v692_v21 = vmul.f32 %v8150_v35, %v669_v15  ;;  %v693_v23 = vmul.f32 %v8155_v42, %v665_v43  ;;  %v12617_v18 = vld [vmem:[#allocation35_spill] sm:$0xff]  ;;  %v12622_v43 = vld [vmem:[#allocation40_spill] sm:$0xff]  ;;  %v12627_v25 = vld [vmem:[#allocation69_spill] sm:$0xff] }
 0x1fb   :  { %v700_v40 = vpack.c.bf16 %v691_v6, %v690_v34  ;;  %v835_v33 = vsel %vm823_vm11, %v12617_v18, %v8483_v2  ;;  %12619 = vst [vmem:[#allocation39_spill] sm:$0xff] %v8726_v51  ;;  %v2244_v6 = vpack.c.bf16 %v8728_v11, %v8726_v51  ;;  %v831_v34 = vsel %vm823_vm11, %v8483_v2, %v8649_v50 }
 0x1fc   :  { %v701_v10 = vpack.c.bf16 %v693_v23, %v692_v21  ;;  %12620 = vst [vmem:[#allocation35_spill] sm:$0xff] %v8728_v11  ;;  %v250_v15 = vadd.s32 1, %v12622_v43  ;;  %vm255_vm13 = vcmp.ge.s32.totalorder %v251_v54, 0  ;;  %vm259_vm4 = vcmp.lt.s32.totalorder %v251_v54, 16 }
 0x1fd   :  { %708 = vst [vmem:[#allocation2 + $0x70] sm:$0xff] %v700_v40  ;;  %1076 = vrot.lane.b32.xlu1 %v12618_v38, %s7493_s1  ;;  %997 = vrot.lane.b32.xlu2 %v7782_v63, %s7491_s13  ;;  %v8741_v40 = vld [vmem:[#allocation2 + $0x134] sm:$0xf0]  ;;  %vm8773_vm14 = vmand %vm255_vm13, %vm259_vm4 }
 0x1fe   :  { %709 = vst [vmem:[#allocation2 + $0x78] sm:$0xff] %v701_v10  ;;  %1074 = vrot.lane.b32.xlu0 %v12621_v52, %s7493_s1  ;;  %v12625_v10 = vld [vmem:[#allocation67_spill] sm:$0xff]  ;;  %vm254_vm12 = vcmp.ge.s32.totalorder %v250_v15, 0  ;;  %vm258_vm10 = vcmp.lt.s32.totalorder %v250_v15, 16 }
 0x1ff   :  { %v733_v21 = vpop.permute.xlu1 %732  ;;  %v8739_v23 = vpop.permute.xlu2 %987  ;;  %12623 = vst [vmem:[#allocation34_spill] sm:$0xff] %v8741_v40  ;;  %v853_v26 = vmul.f32 %v12625_v10, %v835_v33  ;;  %vm8780_vm2 = vmand %vm254_vm12, %vm258_vm10 }
 0x200   :  { %12624 = vst [vmem:[#allocation33_spill] sm:$0xff] %v8743_v36  ;;  %v746_v42 = vsel %vm12626_vm15, %v733_v21, %v8590_v32  ;;  %v750_v35 = vsel %vm12600_vm3, %v8471_v60, %v733_v21  ;;  %v822_v2 = vpop.permute.xlu0 %821  ;;  %v854_v32 = vmul.f32 %v8218_v3, %v831_v34  ;;  %v12628_v21 = vld [vmem:[#allocation42_spill] sm:$0xff]  ;;  %v12636_v34 = vld [vmem:[#allocation71_spill] sm:$0xff]  ;;  %vm8804_vm3 = vmand %vm8780_vm2, %vm130_vm6 }
 0x201   :  { %2252 = vst [vmem:[#allocation2 + $0x138] sm:$0xff] %v2244_v6  ;;  %v773_v43 = vmul.f32 %v7979_v31, %v750_v35  ;;  %v774_v44 = vmul.f32 %v7994_v58, %v746_v42  ;;  %v827_v20 = vsel %vm823_vm11, %v8649_v50, %v822_v2  ;;  %v839_v33 = vsel %vm823_vm11, %v822_v2, %v12617_v18  ;;  %v12629_v31 = vld [vmem:[#allocation52_spill] sm:$0xff] }
 0x202   :  { %v852_v45 = vmul.f32 %v12627_v25, %v839_v33  ;;  %v855_v60 = vmul.f32 %v8229_v48, %v827_v20  ;;  %v253_v58 = vadd.s32 1, %v12628_v21  ;;  %v12630_v50 = vld [vmem:[#allocation36_spill] sm:$0xff] }
 0x203   :  { %v782_v6 = vpack.c.bf16 %v774_v44, %v773_v43  ;;  %v932_v30 = vsel %vm920_vm9, %v12630_v50, %v12629_v31  ;;  %v12637_v43 = vld [vmem:[#allocation51_spill] sm:$0xff]  ;;  %v6025_v21 = vld [vmem:[#allocation2 + $0xe0] sm:$0xf]  ;;  %v7099_v3 = vld [vmem:[#allocation2 + $0xa4] sm:$0xf] }
 0x204   :  { %v862_v35 = vpack.c.bf16 %v853_v26, %v852_v45  ;;  %v863_v42 = vpack.c.bf16 %v855_v60, %v854_v32  ;;  %v12633_v45 = vld [vmem:[#allocation41_spill] sm:$0xff]  ;;  %v949_v54 = vmul.f32 %v12636_v34, %v932_v30  ;;  %vm257_vm7 = vcmp.ge.s32.totalorder %v253_v58, 0  ;;  %v6011_v32 = vld [vmem:[#allocation2 + $0xd0] sm:$0xf0]  ;;  %v7095_v34 = vld [vmem:[#allocation2 + $0x84] sm:$0xf] }
 0x205   :  { %790 = vst [vmem:[#allocation2 + $0xb8] sm:$0xff] %v782_v6  ;;  %1159 = vrot.lane.b32.xlu1 %v7782_v63, %s7494_s19  ;;  %1161 = vrot.lane.b32.xlu2 %v7803_v9, %s7494_s19  ;;  %v252_v26 = vadd.s32 1, %v12633_v45  ;;  %vm12638_vm0 = vcmp.ge.s32.totalorder %v12637_v43, 0  ;;  %vm261_vm15 = vcmp.lt.s32.totalorder %v253_v58, 16  ;;  %vm12642_vm12 = vcmp.lt.s32.totalorder %v12637_v43, 16 }
 0x206   :  { %870 = vst [vmem:[#allocation2 + $0xf0] sm:$0xff] %v862_v35  ;;  %999 = vrot.lane.b32.xlu0 %v7803_v9, %s7491_s13  ;;  %vm267_vm1 = vmand %vm8773_vm14, %vm12638_vm0  ;;  %v7093_v16 = vld [vmem:[#allocation2 + $0x6c] sm:$0xf0]  ;;  %v5963_v40 = vld [vmem:[#allocation2 + $0x70] sm:$0xf0] }
 0x207   :  { %871 = vst [vmem:[#allocation2 + $0xf8] sm:$0xff] %v863_v42  ;;  %v919_v63 = vpop.permute.xlu1 %918  ;;  %v8784_v18 = vpop.permute.xlu2 %993  ;;  %vm256_vm13 = vcmp.ge.s32.totalorder %v252_v26, 0  ;;  %vm260_vm4 = vcmp.lt.s32.totalorder %v252_v26, 16  ;;  %vm271_vm10 = vmand %vm267_vm1, %vm12642_vm12 }
 0x208   :  { %v936_v15 = vsel %vm920_vm9, %v919_v63, %v12630_v50  ;;  %v911_v2 = vpop.permute.xlu0 %910  ;;  %vm8812_vm0 = vmand %vm257_vm7, %vm261_vm15  ;;  %v7107_v50 = vld [vmem:[#allocation2 + $0xe4] sm:$0xf]  ;;  %vm1001_vm7 = vcmp.lt.s32.totalorder %v7784_v0, 113 }
 0x209   :  { %v952_v9 = vmul.f32 %v8283_v53, %v936_v15  ;;  %v924_v33 = vsel %vm920_vm9, %v911_v2, %v919_v63  ;;  %v928_v30 = vsel %vm920_vm9, %v12629_v31, %v911_v2  ;;  %vm8820_vm6 = vmand %vm256_vm13, %vm260_vm4  ;;  %v7103_v53 = vld [vmem:[#allocation2 + $0xc4] sm:$0xf] }
 0x20a   :  { %v950_v6 = vmul.f32 %v8292_v22, %v928_v30  ;;  %v951_v35 = vmul.f32 %v8295_v59, %v924_v33  ;;  %v7101_v59 = vld [vmem:[#allocation2 + $0xac] sm:$0xf0]  ;;  %v5995_v22 = vld [vmem:[#allocation2 + $0xb0] sm:$0xf0] }
 0x20c   :  { %v959_v42 = vpack.c.bf16 %v950_v6, %v949_v54  ;;  %v960_v31 = vpack.c.bf16 %v952_v9, %v951_v35  ;;  %v12647_v54 = vmov 0.0  }
 0x20d   :  { %1157 = vrot.lane.b32.xlu1 %v12618_v38, %s7494_s19  ;;  %2161 = vrot.lane.b32.xlu2 %v8604_v41, %s7488_s10  ;;  %v7109_v45 = vld [vmem:[#allocation2 + $0xec] sm:$0xf0]  ;;  %v6027_v63 = vld [vmem:[#allocation2 + $0xf0] sm:$0xf0]  ;;  %v8827_v15 = vsel %vm271_vm10, 1.0, %v12647_v54  ;;  %v8843_v6 = vsel %vm8804_vm3, 1.0, %v12647_v54 }
 0x20e   :  { %967 = vst [vmem:[#allocation2 + $0x170] sm:$0xff] %v959_v42  ;;  %1155 = vrot.lane.b32.xlu0 %v12621_v52, %s7494_s19  ;;  %v6026_v2 = vor.u32 %v7109_v45, %v6025_v21  ;;  %v6030_v43 = vor.u32 %v7107_v50, %v6027_v63  ;;  %v12649_v38 = vld [vmem:[#allocation54_spill] sm:$0xff]  ;;  %v12654_v42 = vld [vmem:[#allocation60_spill] sm:$0xff]  ;;  %v12655_v50 = vld [vmem:[#allocation53_spill] sm:$0xff]  ;;  %v9041_v20 = vsel %vm8820_vm6, 1.0, %v12647_v54 }
 0x20f   :  { %12648 = vst [vmem:[#allocation40_spill] sm:$0xff] %v8827_v15  ;;  %vm12650_vm1 = vcmp.ge.s32.totalorder %v12649_v38, 0  ;;  %v980_v33 = vpop.permute.xlu1 %979  ;;  %v8838_v30 = vpop.permute.xlu2 %1056  ;;  %v7105_v52 = vld [vmem:[#allocation2 + $0xcc] sm:$0xf0]  ;;  %vm12656_vm13 = vcmp.ge.s32.totalorder %v12655_v50, 0  ;;  %vm12657_vm12 = vcmp.lt.s32.totalorder %v12655_v50, 16 }
 0x210   :  { %968 = vst [vmem:[#allocation2 + $0x178] sm:$0xff] %v960_v31  ;;  %vm8834_vm15 = vmand %vm8812_vm0, %vm12650_vm1  ;;  %v1007_v35 = vsel %vm1001_vm7, %v980_v33, %v8739_v23  ;;  %v1011_v31 = vsel %vm1001_vm7, %v12654_v42, %v980_v33  ;;  %1689 = vmatpush.bf16.msrb.mxu0 %v6026_v2  ;;  %1746 = vmatpush.bf16.msrb.mxu3 %v6030_v43  ;;  %v978_v21 = vpop.permute.xlu0 %977  ;;  %v6009_v63 = vld [vmem:[#allocation2 + $0xc0] sm:$0xf]  ;;  %v12659_v38 = vld [vmem:[#allocation37_spill] sm:$0xff] }
 0x211   :  { %12653 = vst [vmem:[#allocation42_spill] sm:$0xff] %v8843_v6  ;;  %vm268_vm4 = vmand %vm8820_vm6, %vm12656_vm13  ;;  %v1022_v60 = vmul.f32 %v8843_v6, %v1011_v31  ;;  %v1023_v45 = vmul.f32 %v8827_v15, %v1007_v35  ;;  %v6010_v33 = vor.u32 %v7105_v52, %v6009_v63  ;;  %v6014_v2 = vor.u32 %v7103_v53, %v6011_v32  ;;  %v5993_v43 = vld [vmem:[#allocation2 + $0xa0] sm:$0xf] }
 0x212   :  { %vm273_vm3 = vmand %vm8834_vm15, %vm141_vm5  ;;  %v5994_v53 = vor.u32 %v7101_v59, %v5993_v43  ;;  %v1014_v9 = vsel %vm1001_vm7, %v8784_v18, %v12659_v38  ;;  %v1010_v52 = vsel %vm1001_vm7, %v12659_v38, %v978_v21  ;;  %v5998_v32 = vor.u32 %v7099_v3, %v5995_v22  ;;  %v7097_v59 = vld [vmem:[#allocation2 + $0x8c] sm:$0xf0]  ;;  %v5977_v38 = vld [vmem:[#allocation2 + $0x80] sm:$0xf] }
 0x213   :  { %v1036_v48 = vpack.c.bf16 %v1023_v45, %v1022_v60  ;;  %vm272_vm10 = vmand %vm268_vm4, %vm12657_vm12  ;;  %v8864_v35 = vsel %vm273_vm3, 1.0, %v12647_v54  ;;  %v5979_v60 = vld [vmem:[#allocation2 + $0x90] sm:$0xf0]  ;;  %v1018_v43 = vmul.f32 %v8843_v6, %v1010_v52  ;;  %v5978_v55 = vor.u32 %v7097_v59, %v5977_v38  ;;  %v7089_v59 = vld [vmem:[#allocation2 + $0x4c] sm:$0xf0] }
 0x214   :  { %1690 = vmatpush.bf16.msrb.mxu0 %v6010_v33  ;;  %1747 = vmatpush.bf16.msrb.mxu3 %v6014_v2  ;;  %12658 = vst [vmem:[#allocation52_spill] sm:$0xff] %v8864_v35  ;;  %v1021_v2 = vmul.f32 %v8864_v35, %v1014_v9  ;;  %v5982_v19 = vor.u32 %v7095_v34, %v5979_v60  ;;  %v12661_v9 = vld [vmem:[#allocation46_spill] sm:$0xff]  ;;  %vm1082_vm5 = vcmp.lt.s32.totalorder %v7784_v0, 112 }
 0x215   :  { %1044 = vst [vmem:[#allocation2 + $0x190] sm:$0xff] %v1036_v48  ;;  %2169 = vrot.lane.b32.xlu1 %v8618_v49, %s7488_s10  ;;  %2171 = vrot.lane.b32.xlu2 %v8672_v7, %s7488_s10  ;;  %v8880_v48 = vsel %vm272_vm10, 1.0, %v12647_v54  ;;  %v5947_v60 = vld [vmem:[#allocation2 + $0x50] sm:$0xf0]  ;;  %v7125_v58 = vld [vmem:[#allocation2 + $0x16c] sm:$0xf0] }
 0x216   :  { %2163 = vrot.lane.b32.xlu0 %v8658_v29, %s7488_s10  ;;  %12660 = vst [vmem:[#allocation36_spill] sm:$0xff] %v8880_v48 }
 0x217   :  { %v986_v31 = vpop.permute.xlu1 %985  ;;  %v8882_v50 = vpop.permute.xlu2 %1070 }
 0x218   :  { %v1002_v45 = vsel %vm1001_vm7, %v986_v31, %v8784_v18  ;;  %v1006_v63 = vsel %vm1001_vm7, %v978_v21, %v986_v31  ;;  %v984_v33 = vpop.permute.xlu0 %983  ;;  %1691 = vmatpush.bf16.msrb.mxu0 %v5994_v53  ;;  %1748 = vmatpush.bf16.msrb.mxu3 %v5998_v32  ;;  %v5961_v21 = vld [vmem:[#allocation2 + $0x60] sm:$0xf]  ;;  %v7091_v53 = vld [vmem:[#allocation2 + $0x64] sm:$0xf] }
 0x219   :  { %v1019_v3 = vmul.f32 %v8827_v15, %v1006_v63  ;;  %v1020_v22 = vmul.f32 %v8880_v48, %v1002_v45  ;;  %v1013_v34 = vsel %vm1001_vm7, %v12661_v9, %v984_v33  ;;  %v5962_v52 = vor.u32 %v7093_v16, %v5961_v21 }
 0x21a   :  { %v1030_v16 = vmul.f32 %v8843_v6, %v1013_v34  ;;  %v7083_v34 = vld [vmem:[#allocation2 + $0x24] sm:$0xf] }
 0x21b   :  { %v1034_v36 = vpack.c.bf16 %v1019_v3, %v1018_v43  ;;  %v1035_v18 = vpack.c.bf16 %v1021_v2, %v1020_v22  ;;  %v5945_v43 = vld [vmem:[#allocation2 + $0x40] sm:$0xf]  ;;  %v7087_v3 = vld [vmem:[#allocation2 + $0x44] sm:$0xf] }
 0x21c   :  { %1692 = vmatpush.bf16.msrb.mxu0 %v5978_v55  ;;  %1749 = vmatpush.bf16.msrb.mxu3 %v5982_v19  ;;  %v5966_v55 = vor.u32 %v7091_v53, %v5963_v40  ;;  %v12662_v19 = vld [vmem:[#allocation75_spill] sm:$0xff]  ;;  %v7085_v53 = vld [vmem:[#allocation2 + $0x2c] sm:$0xf0] }
 0x21d   :  { %1042 = vst [vmem:[#allocation2 + $0x180] sm:$0xff] %v1034_v36  ;;  %2187 = vrot.lane.b32.xlu1 %v8728_v11, %s7488_s10  ;;  %2157 = vrot.lane.b32.xlu2 %v8521_v5, %s7488_s10  ;;  %v1012_v36 = vsel %vm1001_vm7, %v12662_v19, %v8699_v57 }
 0x21e   :  { %1043 = vst [vmem:[#allocation2 + $0x188] sm:$0xff] %v1035_v18  ;;  %2185 = vrot.lane.b32.xlu0 %v8681_v12, %s7488_s10  ;;  %v1026_v22 = vmul.f32 %v8843_v6, %v1012_v36  ;;  %v5950_v18 = vor.u32 %v7087_v3, %v5947_v60 }
 0x21f   :  { %v8906_v32 = vpop.permute.xlu1 %991  ;;  %v8908_v31 = vpop.permute.xlu2 %1052 }
 0x220   :  { %v1009_v45 = vsel %vm1001_vm7, %v984_v33, %v8906_v32  ;;  %v8913_v63 = vpop.permute.xlu0 %989  ;;  %1693 = vmatpush.bf16.msrb.mxu0 %v5962_v52  ;;  %1750 = vmatpush.bf16.msrb.mxu3 %v5966_v55  ;;  %v5946_v33 = vor.u32 %v7089_v59, %v5945_v43  ;;  %v5931_v52 = vld [vmem:[#allocation2 + $0x30] sm:$0xf0] }
 0x221   :  { %v1031_v40 = vmul.f32 %v8827_v15, %v1009_v45  ;;  %v1008_v2 = vsel %vm1001_vm7, %v8699_v57, %v8913_v63  ;;  %v5929_v57 = vld [vmem:[#allocation2 + $0x20] sm:$0xf]  ;;  %v5934_v59 = vor.u32 %v7083_v34, %v5931_v52 }
 0x222   :  { %v1027_v38 = vmul.f32 %v8827_v15, %v1008_v2  ;;  %v5930_v36 = vor.u32 %v7085_v53, %v5929_v57  ;;  %v12665_v15 = vld [vmem:[#allocation43_spill] sm:$0xff] }
 0x223   :  { %v1040_v21 = vpack.c.bf16 %v1031_v40, %v1030_v16  ;;  %v7081_v16 = vld [vmem:[#allocation2 + $0xc] sm:$0xf0]  ;;  %v5915_v40 = vld [vmem:[#allocation2 + $0x10] sm:$0xf0]  ;;  %vm12666_vm1 = vcmp.ge.s32.totalorder %v12665_v15, 0  ;;  %vm12669_vm3 = vcmp.lt.s32.totalorder %v12665_v15, 16 }
 0x224   :  { %v1038_v55 = vpack.c.bf16 %v1027_v38, %v1026_v22  ;;  %1694 = vmatpush.bf16.msrb.mxu0 %v5946_v33  ;;  %1751 = vmatpush.bf16.msrb.mxu3 %v5950_v18  ;;  %v5913_v22 = vld [vmem:[#allocation2] sm:$0xf]  ;;  %v7079_v38 = vld [vmem:[#allocation2 + $0x4] sm:$0xf]  ;;  %vm299_vm15 = vmand %vm8773_vm14, %vm12666_vm1 }
 0x225   :  { %1048 = vst [vmem:[#allocation2 + $0x1b0] sm:$0xff] %v1040_v21  ;;  %2165 = vrot.lane.b32.xlu1 %v8530_v17, %s7488_s10  ;;  %2167 = vrot.lane.b32.xlu2 %v8559_v47, %s7488_s10  ;;  %v5914_v21 = vor.u32 %v7081_v16, %v5913_v22  ;;  %v5918_v53 = vor.u32 %v7079_v38, %v5915_v40  ;;  %vm303_vm12 = vmand %vm299_vm15, %vm12669_vm3 }
 0x226   :  { %1046 = vst [vmem:[#allocation2 + $0x1a0] sm:$0xff] %v1038_v55  ;;  %2159 = vrot.lane.b32.xlu0 %v8555_v46, %s7488_s10  ;;  %v8956_v55 = vsel %vm8773_vm14, 1.0, %v12647_v54  ;;  %vm1163_vm14 = vcmp.lt.s32.totalorder %v7784_v0, 111 }
 0x227   :  { %v8929_v60 = vpop.permute.xlu1 %1054  ;;  %v8931_v45 = vpop.permute.xlu2 %1066  ;;  %12664 = vst [vmem:[#allocation51_spill] sm:$0xff] %v8956_v55 }
 0x228   :  { %v996_v2 = vpop.permute.xlu0 %995  ;;  %1695 = vmatpush.bf16.msrb.mxu0 %v5930_v36  ;;  %1752 = vmatpush.bf16.msrb.mxu3 %v5934_v59 }
 0x229   :  { %v1003_v43 = vsel %vm1001_vm7, %v8739_v23, %v996_v2  ;;  %v1015_v3 = vsel %vm1001_vm7, %v996_v2, %v12654_v42  ;;  %v8951_v23 = vsel %vm8780_vm2, 1.0, %v12647_v54 }
 0x22a   :  { %v1024_v33 = vmul.f32 %v8880_v48, %v1003_v43  ;;  %v1025_v18 = vmul.f32 %v8864_v35, %v1015_v3  ;;  %12663 = vst [vmem:[#allocation41_spill] sm:$0xff] %v8951_v23 }
 0x22c   :  { %v1037_v52 = vpack.c.bf16 %v1025_v18, %v1024_v33  ;;  %1696 = vmatpush.bf16.msrb.mxu0 %v5914_v21  ;;  %1753 = vmatpush.bf16.msrb.mxu3 %v5918_v53 }
 0x22d   :  { %2183 = vrot.lane.b32.xlu1 %v8627_v56, %s7488_s10  ;;  %2081 = vrot.lane.b32.xlu2 %v8604_v41, %s7489_s11  ;;  %v7131_v10 = vld [vmem:[#allocation2 + $0x1a4] sm:$0xf] }
 0x22e   :  { %1045 = vst [vmem:[#allocation2 + $0x198] sm:$0xff] %v1037_v52  ;;  %2181 = vrot.lane.b32.xlu0 %v8565_v37, %s7488_s10 }
 0x22f   :  { %v1065_v42 = vpop.permute.xlu1 %1064  ;;  %v8958_v57 = vpop.permute.xlu2 %1137 }
 0x230   :  { %v1063_v34 = vpop.permute.xlu0 %1062  ;;  %v1094_v43 = vsel %vm1082_vm5, %v8838_v30, %v1065_v42 }
 0x231   :  { %v1089_v36 = vsel %vm1082_vm5, %v1063_v34, %v8882_v50  ;;  %v1093_v59 = vsel %vm1082_vm5, %v8929_v60, %v1063_v34  ;;  %v1111_v18 = vmul.f32 %v8951_v23, %v1094_v43 }
 0x232   :  { %v1107_v16 = vmul.f32 %v8951_v23, %v1093_v59  ;;  %v1108_v40 = vmul.f32 %v8956_v55, %v1089_v36 }
 0x234   :  { %v1119_v2 = vpack.c.bf16 %v1108_v40, %v1107_v16 }
 0x235   :  { %2089 = vrot.lane.b32.xlu1 %v8618_v49, %s7489_s11  ;;  %2091 = vrot.lane.b32.xlu2 %v8672_v7, %s7489_s11 }
 0x236   :  { %1127 = vst [vmem:[#allocation2 + $0x1e0] sm:$0xff] %v1119_v2  ;;  %2083 = vrot.lane.b32.xlu0 %v8658_v29, %s7489_s11 }
 0x237   :  { %v8977_v3 = vpop.permute.xlu1 %1050  ;;  %v8979_v22 = vpop.permute.xlu2 %1151 }
 0x238   :  { %v1073_v38 = vpop.permute.xlu0 %1072 }
 0x239   :  { %v1090_v33 = vsel %vm1082_vm5, %v1065_v42, %v1073_v38 }
 0x23a   :  { %v1112_v21 = vmul.f32 %v8956_v55, %v1090_v33 }
 0x23c   :  { %v1121_v53 = vpack.c.bf16 %v1112_v21, %v1111_v18 }
 0x23d   :  { %2107 = vrot.lane.b32.xlu1 %v8728_v11, %s7489_s11  ;;  %2417 = vrot.lane.b32.xlu2 %v8604_v41, %s7493_s1  ;;  %v6153_v43 = vld [vmem:[#allocation2 + $0x1e0] sm:$0xf]  ;;  %v7139_v18 = vld [vmem:[#allocation2 + $0x1e4] sm:$0xf] }
 0x23e   :  { %1129 = vst [vmem:[#allocation2 + $0x1f0] sm:$0xff] %v1121_v53  ;;  %2105 = vrot.lane.b32.xlu0 %v8681_v12, %s7489_s11  ;;  %v7127_v11 = vld [vmem:[#allocation2 + $0x184] sm:$0xf] }
 0x23f   :  { %v1061_v52 = vpop.permute.xlu1 %1060  ;;  %v8991_v34 = vpop.permute.xlu2 %1133 }
 0x240   :  { %v1059_v36 = vpop.permute.xlu0 %1058 }
 0x241   :  { %v1087_v42 = vsel %vm1082_vm5, %v1059_v36, %v8931_v45  ;;  %v1091_v59 = vsel %vm1082_vm5, %v8977_v3, %v1059_v36 }
 0x242   :  { %v1099_v16 = vmul.f32 %v8951_v23, %v1091_v59  ;;  %v1100_v40 = vmul.f32 %v8956_v55, %v1087_v42  ;;  %v1092_v42 = vsel %vm1082_vm5, %v8908_v31, %v1061_v52 }
 0x244   :  { %v1115_v2 = vpack.c.bf16 %v1100_v40, %v1099_v16 }
 0x245   :  { %2425 = vrot.lane.b32.xlu1 %v8618_v49, %s7493_s1  ;;  %2427 = vrot.lane.b32.xlu2 %v8672_v7, %s7493_s1  ;;  %v7141_v33 = vld [vmem:[#allocation2 + $0x1ec] sm:$0xf0]  ;;  %v6155_v21 = vld [vmem:[#allocation2 + $0x1f0] sm:$0xf0] }
 0x246   :  { %1123 = vst [vmem:[#allocation2 + $0x1c0] sm:$0xff] %v1115_v2  ;;  %2419 = vrot.lane.b32.xlu0 %v8658_v29, %s7493_s1  ;;  %v6154_v53 = vor.u32 %v7141_v33, %v6153_v43  ;;  %v6158_v36 = vor.u32 %v7139_v18, %v6155_v21  ;;  %v1103_v43 = vmul.f32 %v8951_v23, %v1092_v42  ;;  %v12667_v18 = vld [vmem:[#allocation50_spill] sm:$0xff] }
 0x247   :  { %v9010_v59 = vpop.permute.xlu1 %1135  ;;  %v9012_v16 = vpop.permute.xlu2 %1147  ;;  %vm12668_vm13 = vcmp.lt.s32.totalorder %v12667_v18, 16 }
 0x248   :  { %v9014_v40 = vpop.permute.xlu0 %1068  ;;  %1708 = vmatpush.bf16.msrb.mxu1 %v6154_v53  ;;  %1765 = vmatpush.bf16.msra.mxu0 %v6158_v36  ;;  %vm302_vm4 = vmand %vm8780_vm2, %vm12668_vm13  ;;  %v9052_v53 = vsel %vm8812_vm0, 1.0, %v12647_v54 }
 0x249   :  { %v1088_v2 = vsel %vm1082_vm5, %v1061_v52, %v9014_v40  ;;  %v9044_v44 = vsel %vm302_vm4, 1.0, %v12647_v54  ;;  %v9047_v52 = vsel %vm303_vm12, 1.0, %v12647_v54  ;;  %vm12692_vm12 = vcmp.lt.s32.totalorder %v7784_v0, 15 }
 0x24a   :  { %v1104_v33 = vmul.f32 %v8956_v55, %v1088_v2 }
 0x24c   :  { %v1117_v21 = vpack.c.bf16 %v1104_v33, %v1103_v43 }
 0x24d   :  { %2077 = vrot.lane.b32.xlu2 %v8521_v5, %s7489_s11  ;;  %2435 = vrot.lane.b32.xlu1 %v8726_v51, %s7493_s1  ;;  %v6137_v25 = vld [vmem:[#allocation2 + $0x1c0] sm:$0xf] }
 0x24e   :  { %1125 = vst [vmem:[#allocation2 + $0x1d0] sm:$0xff] %v1117_v21  ;;  %2433 = vrot.lane.b32.xlu0 %v8679_v8, %s7493_s1  ;;  %v6105_v8 = vld [vmem:[#allocation2 + $0x180] sm:$0xf] }
 0x24f   :  { %v1146_v15 = vpop.permute.xlu1 %1145  ;;  %v1081_v36 = vpop.permute.xlu2 %1080 }
 0x250   :  { %v1144_v42 = vpop.permute.xlu0 %1143  ;;  %v1086_v2 = vsel %vm1082_vm5, %v1073_v38, %v1081_v36  ;;  %v1098_v43 = vsel %vm1082_vm5, %v1081_v36, %v8838_v30  ;;  %v7135_v36 = vld [vmem:[#allocation2 + $0x1c4] sm:$0xf] }
 0x251   :  { %v1170_v33 = vsel %vm1163_vm14, %v1144_v42, %v8979_v22  ;;  %v1174_v18 = vsel %vm1163_vm14, %v9010_v59, %v1144_v42  ;;  %v1113_v21 = vmul.f32 %v9041_v20, %v1086_v2  ;;  %v1114_v38 = vmul.f32 %v9052_v53, %v1098_v43  ;;  %v6123_v43 = vld [vmem:[#allocation2 + $0x1b0] sm:$0xf0] }
 0x252   :  { %v1188_v6 = vmul.f32 %v9044_v44, %v1174_v18  ;;  %v1189_v55 = vmul.f32 %v9047_v52, %v1170_v33  ;;  %v7133_v18 = vld [vmem:[#allocation2 + $0x1ac] sm:$0xf0] }
 0x253   :  { %v1122_v61 = vpack.c.bf16 %v1114_v38, %v1113_v21  ;;  %v6121_v38 = vld [vmem:[#allocation2 + $0x1a0] sm:$0xf] }
 0x254   :  { %v1200_v23 = vpack.c.bf16 %v1189_v55, %v1188_v6  ;;  %v1175_v6 = vsel %vm1163_vm14, %v8958_v57, %v1146_v15 }
 0x255   :  { %2087 = vrot.lane.b32.xlu2 %v8559_v47, %s7489_s11  ;;  %2085 = vrot.lane.b32.xlu1 %v8530_v17, %s7489_s11  ;;  %v7137_v30 = vld [vmem:[#allocation2 + $0x1cc] sm:$0xf0]  ;;  %v6139_v42 = vld [vmem:[#allocation2 + $0x1d0] sm:$0xf0]  ;;  %1130 = vst [vmem:[#allocation2 + $0x1f8] sm:$0xff] %v1122_v61 }
 0x256   :  { %1208 = vst [vmem:[#allocation2 + $0x220] sm:$0xff] %v1200_v23  ;;  %2079 = vrot.lane.b32.xlu0 %v8555_v46, %s7489_s11  ;;  %v6138_v2 = vor.u32 %v7137_v30, %v6137_v25  ;;  %v6142_v33 = vor.u32 %v7135_v36, %v6139_v42  ;;  %v12670_v30 = vld [vmem:[#allocation47_spill] sm:$0xff] }
 0x257   :  { %v9078_v55 = vpop.permute.xlu1 %1131  ;;  %v998_v21 = vpop.permute.xlu2 %997  ;;  %vm12671_vm2 = vcmp.ge.s32.totalorder %v12670_v30, 0 }
 0x258   :  { %v1154_v51 = vpop.permute.xlu0 %1153  ;;  %1709 = vmatpush.bf16.msrb.mxu1 %v6138_v2  ;;  %1766 = vmatpush.bf16.msra.mxu0 %v6142_v33  ;;  %v1004_v25 = vsel %vm1001_vm7, %v8913_v63, %v998_v21  ;;  %v1016_v23 = vsel %vm1001_vm7, %v998_v21, %v12662_v19  ;;  %vm300_vm10 = vmand %vm8820_vm6, %vm12671_vm2  ;;  %v12672_v2 = vld [vmem:[#allocation49_spill] sm:$0xff]  ;;  %v1192_v63 = vmul.f32 %v9044_v44, %v1175_v6  ;;  %vm12674_vm6 = vcmp.lt.s32.totalorder %v12670_v30, 16 }
 0x259   :  { %v1171_v61 = vsel %vm1163_vm14, %v1146_v15, %v1154_v51  ;;  %v1028_v36 = vmul.f32 %v8880_v48, %v1004_v25  ;;  %v1029_v42 = vmul.f32 %v8864_v35, %v1016_v23  ;;  %vm12673_vm1 = vcmp.ge.s32.totalorder %v12672_v2, 0  ;;  %vm304_vm13 = vmand %vm300_vm10, %vm12674_vm6  ;;  %v6091_v25 = vld [vmem:[#allocation2 + $0x170] sm:$0xf0] }
 0x25a   :  { %vm301_vm15 = vmand %vm8812_vm0, %vm12673_vm1  ;;  %v1193_v19 = vmul.f32 %v9047_v52, %v1171_v61  ;;  %v6122_v33 = vor.u32 %v7133_v18, %v6121_v38  ;;  %v6126_v21 = vor.u32 %v7131_v10, %v6123_v43  ;;  %vm12675_vm4 = vcmp.lt.s32.totalorder %v12672_v2, 16  ;;  %v7129_v10 = vld [vmem:[#allocation2 + $0x18c] sm:$0xf0]  ;;  %v6107_v18 = vld [vmem:[#allocation2 + $0x190] sm:$0xf0] }
 0x25b   :  { %v1039_v26 = vpack.c.bf16 %v1029_v42, %v1028_v36  ;;  %vm305_vm3 = vmand %vm301_vm15, %vm12675_vm4  ;;  %v6106_v43 = vor.u32 %v7129_v10, %v6105_v8  ;;  %v6110_v6 = vor.u32 %v7127_v11, %v6107_v18  ;;  %v9111_v38 = vsel %vm304_vm13, 1.0, %v12647_v54  ;;  %v6089_v36 = vld [vmem:[#allocation2 + $0x160] sm:$0xf]  ;;  %v7121_v18 = vld [vmem:[#allocation2 + $0x14c] sm:$0xf0] }
 0x25c   :  { %v1202_v15 = vpack.c.bf16 %v1193_v19, %v1192_v63  ;;  %1710 = vmatpush.bf16.msrb.mxu1 %v6122_v33  ;;  %1767 = vmatpush.bf16.msra.mxu0 %v6126_v21  ;;  %12676 = vst [vmem:[#allocation55_spill] sm:$0xff] %v9111_v38  ;;  %v9114_v30 = vsel %vm305_vm3, 1.0, %v12647_v54  ;;  %v6090_v11 = vor.u32 %v7125_v58, %v6089_v36  ;;  %v7123_v63 = vld [vmem:[#allocation2 + $0x164] sm:$0xf]  ;;  %vm1682_vm0 = vcmask 261120   ;;  %vm12693_vm2 = vmmov %vm12692_vm12 }
 0x25d   :  { %1047 = vst [vmem:[#allocation2 + $0x1a8] sm:$0xff] %v1039_v26  ;;  %2413 = vrot.lane.b32.xlu2 %v8521_v5, %s7493_s1  ;;  %2103 = vrot.lane.b32.xlu1 %v8627_v56, %s7489_s11  ;;  %v6094_v21 = vor.u32 %v7123_v63, %v6091_v25  ;;  %v6075_v25 = vld [vmem:[#allocation2 + $0x150] sm:$0xf0]  ;;  %v6185_v36 = vld [vmem:[#allocation2 + $0x220] sm:$0xf]  ;;  %vm12695_vm10 = vmmov %vm12693_vm2  ;;  %vm12713_vm3 = vcmp.lt.s32.totalorder %v7784_v0, 16 }
 0x25e   :  { %1210 = vst [vmem:[#allocation2 + $0x230] sm:$0xff] %v1202_v15  ;;  %2101 = vrot.lane.b32.xlu0 %v8565_v37, %s7489_s11  ;;  %v7119_v63 = vld [vmem:[#allocation2 + $0x144] sm:$0xf]  ;;  %vm12701_vm1 = vmmov %vm12693_vm2 }
 0x25f   :  { %v1142_v23 = vpop.permute.xlu1 %1141  ;;  %12677 = vst [vmem:[#allocation54_spill] sm:$0xff] %v9114_v30  ;;  %v1162_v61 = vpop.permute.xlu2 %1161  ;;  %vm12704_vm15 = vmmov %vm12701_vm1 }
 0x260   :  { %v1140_v42 = vpop.permute.xlu0 %1139  ;;  %1711 = vmatpush.bf16.msrb.mxu1 %v6106_v43  ;;  %1768 = vmatpush.bf16.msra.mxu0 %v6110_v6  ;;  %v1167_v2 = vsel %vm1163_vm14, %v1154_v51, %v1162_v61  ;;  %v1179_v8 = vsel %vm1163_vm14, %v1162_v61, %v8958_v57  ;;  %v5889_v51 = vld [vmem:[%s12199_s2] sm:$0xf]  ;;  %v7074_v57 = vld [vmem:[%s12199_s2 + $0x8] sm:$0xf0]  ;;  %v6073_v61 = vld [vmem:[#allocation2 + $0x140] sm:$0xf] }
 0x261   :  { %v1168_v19 = vsel %vm1163_vm14, %v1140_v42, %v9012_v16  ;;  %v1172_v54 = vsel %vm1163_vm14, %v9078_v55, %v1140_v42  ;;  %v1194_v33 = vmul.f32 %v9111_v38, %v1167_v2  ;;  %v1195_v58 = vmul.f32 %v9114_v30, %v1179_v8  ;;  %vm12705_vm6 = vmmov %vm12701_vm1 }
 0x262   :  { %v1180_v26 = vmul.f32 %v9044_v44, %v1172_v54  ;;  %v1181_v15 = vmul.f32 %v9047_v52, %v1168_v19  ;;  %v9137_v10 = vor.u32 %v7074_v57, %v5889_v51  ;;  %v6074_v2 = vor.u32 %v7121_v18, %v6073_v61  ;;  %v7073_v61 = vld [vmem:[%s12199_s2 + $0x4] sm:$0xf]  ;;  %vm12708_vm13 = vmmov %vm12701_vm1 }
 0x263   :  { %v1203_v6 = vpack.c.bf16 %v1195_v58, %v1194_v33  ;;  %v6078_v54 = vor.u32 %v7119_v63, %v6075_v25  ;;  %vm12709_vm4 = vmmov %vm12701_vm1 }
 0x264   :  { %v1196_v43 = vpack.c.bf16 %v1181_v15, %v1180_v26  ;;  %1712 = vmatpush.bf16.msrb.mxu1 %v6090_v11  ;;  %1769 = vmatpush.bf16.msra.mxu0 %v6094_v21  ;;  %v1173_v11 = vsel %vm1163_vm14, %v8991_v34, %v1142_v23 }
 0x265   :  { %2423 = vrot.lane.b32.xlu2 %v8559_v47, %s7493_s1  ;;  %2421 = vrot.lane.b32.xlu1 %v8530_v17, %s7493_s1  ;;  %v7149_v42 = vld [vmem:[#allocation2 + $0x22c] sm:$0xf0]  ;;  %1211 = vst [vmem:[#allocation2 + $0x238] sm:$0xff] %v1203_v6  ;;  %v1184_v18 = vmul.f32 %v9044_v44, %v1173_v11  ;;  %v6062_v6 = vor.u32 %v8631_v13, %v8685_v24 }
 0x266   :  { %1204 = vst [vmem:[#allocation2 + $0x200] sm:$0xff] %v1196_v43  ;;  %2415 = vrot.lane.b32.xlu0 %v8555_v46, %s7493_s1  ;;  %v6186_v8 = vor.u32 %v7149_v42, %v6185_v36  ;;  %1697 = vmatmul.bf16.vlgmr.msrb.gmra.mxu0 %v9137_v10  ;;  %v6042_v13 = vor.u32 %v8567_v4, %v8537_v27  ;;  %v12678_v24 = vld [vmem:[#allocation38_spill] sm:$0xff] }
 0x267   :  { %v1079_v19 = vpop.permute.xlu1 %1078  ;;  %v9149_v33 = vpop.permute.xlu2 %2161  ;;  %1754 = vmatmul.bf16.vlgmr.msrb.gmra.mxu3 %v9137_v10  ;;  %v6046_v36 = vor.u32 %v12678_v24, %v8569_v39  ;;  %v5897_v24 = vld [vmem:[%s12199_s2 + $0x8] sm:$0xf] }
 0x268   :  { %v1085_v21 = vsel %vm1082_vm5, %v8882_v50, %v1079_v19  ;;  %v1097_v51 = vsel %vm1082_vm5, %v1079_v19, %v8929_v60  ;;  %v9158_v57 = vpop.permute.xlu0 %1149  ;;  %1713 = vmatpush.bf16.msrb.mxu1 %v6074_v2  ;;  %1733 = vmatpush.bf16.msrb.mxu2 %v6186_v8  ;;  %v6058_v60 = vor.u32 %v8683_v28, %v8629_v62  ;;  %v6187_v62 = vld [vmem:[#allocation2 + $0x230] sm:$0xf0]  ;;  %v7147_v2 = vld [vmem:[#allocation2 + $0x224] sm:$0xf] }
 0x269   :  { %v1109_v26 = vmul.f32 %v9041_v20, %v1085_v21  ;;  %v1110_v15 = vmul.f32 %v9052_v53, %v1097_v51  ;;  %v1169_v58 = vsel %vm1163_vm14, %v1142_v23, %v9158_v57  ;;  %1770 = vmatpush.bf16.msra.mxu0 %v6078_v54  ;;  %v5891_v23 = vld [vmem:[%s12199_s2 + $0xc] sm:$0xf0]  ;;  %v6190_v27 = vor.u32 %v7147_v2, %v6187_v62 }
 0x26a   :  { %v1185_v50 = vmul.f32 %v9047_v52, %v1169_v58  ;;  %v9189_v8 = vor.u32 %v7073_v61, %v5891_v23  ;;  %v7110_v58 = vld [vmem:[#allocation2 + $0xf4] sm:$0xf0] }
 0x26b   :  { %v1120_v43 = vpack.c.bf16 %v1110_v15, %v1109_v26 }
 0x26c   :  { %v1198_v25 = vpack.c.bf16 %v1185_v50, %v1184_v18  ;;  %1714 = vmatpush.bf16.msrb.mxu1 %v6058_v60 }
 0x26d   :  { %1128 = vst [vmem:[#allocation2 + $0x1e8] sm:$0xff] %v1120_v43  ;;  %1771 = vmatpush.bf16.msra.mxu0 %v6062_v6  ;;  %2001 = vrot.lane.b32.xlu2 %v8604_v41, %s7486_s23  ;;  %v6169_v60 = vld [vmem:[#allocation2 + $0x200] sm:$0xf]  ;;  %v7143_v43 = vld [vmem:[#allocation2 + $0x204] sm:$0xf] }
 0x26e   :  { %1206 = vst [vmem:[#allocation2 + $0x210] sm:$0xff] %v1198_v25  ;;  %2429 = vrot.lane.b32.xlu0 %v8563_v14, %s7493_s1  ;;  %2431 = vrot.lane.b32.xlu1 %v8625_v1, %s7493_s1  ;;  %v6033_v25 = vld [vmem:[#allocation2 + $0xe8] sm:$0xf] }
 0x26f   :  { %v1077_v28 = vpop.permute.xlu1 %1076  ;;  %v9187_v42 = vpop.permute.xlu2 %2171 }
 0x270   :  { %v1084_v63 = vsel %vm1082_vm5, %v9014_v40, %v1077_v28  ;;  %v1096_v11 = vsel %vm1082_vm5, %v1077_v28, %v8908_v31  ;;  %v1075_v19 = vpop.permute.xlu0 %1074  ;;  %1715 = vmatpush.bf16.msrb.mxu1 %v6042_v13  ;;  %v5901_v31 = vld [vmem:[%s12199_s2 + $0x18] sm:$0xf]  ;;  %v7077_v40 = vld [vmem:[%s12199_s2 + $0x20] sm:$0xf0] }
 0x271   :  { %v1105_v4 = vmul.f32 %v9041_v20, %v1084_v63  ;;  %v1106_v39 = vmul.f32 %v9052_v53, %v1096_v11  ;;  %v1083_v54 = vsel %vm1082_vm5, %v8931_v45, %v1075_v19  ;;  %v1095_v21 = vsel %vm1082_vm5, %v1075_v19, %v8977_v3  ;;  %1772 = vmatpush.bf16.msra.mxu0 %v6046_v36  ;;  %v7142_v45 = vld [vmem:[#allocation2 + $0x1f4] sm:$0xf0]  ;;  %v6035_v3 = vld [vmem:[#allocation2 + $0xf8] sm:$0xf0]  ;;  %v7075_v36 = vld [vmem:[%s12199_s2 + $0x10] sm:$0xf0] }
 0x272   :  { %v1101_v51 = vmul.f32 %v9041_v20, %v1083_v54  ;;  %v1102_v26 = vmul.f32 %v9052_v53, %v1095_v21  ;;  %v9214_v18 = vor.u32 %v7077_v40, %v5901_v31  ;;  %v6034_v11 = vor.u32 %v7110_v58, %v6033_v25  ;;  %v7108_v19 = vld [vmem:[#allocation2 + $0xec] sm:$0xf]  ;;  %v7106_v31 = vld [vmem:[#allocation2 + $0xd4] sm:$0xf0]  ;;  %v6017_v58 = vld [vmem:[#allocation2 + $0xc8] sm:$0xf] }
 0x273   :  { %v1118_v15 = vpack.c.bf16 %v1106_v39, %v1105_v4  ;;  %1716 = vmatmul.bf16.vlgmr.msrb.gmra.mxu1 %v9189_v8  ;;  %v6038_v21 = vor.u32 %v7108_v19, %v6035_v3 }
 0x274   :  { %1790 = vmatpush.bf16.msra.mxu1 %v6190_v27  ;;  %v1116_v50 = vpack.c.bf16 %v1102_v26, %v1101_v51  ;;  %v6161_v6 = vld [vmem:[#allocation2 + $0x1e8] sm:$0xf]  ;;  %v9231_v27 = vor.u32 %v7075_v36, %v5897_v24 }
 0x275   :  { %1126 = vst [vmem:[#allocation2 + $0x1d8] sm:$0xff] %v1118_v15  ;;  %2011 = vrot.lane.b32.xlu2 %v8672_v7, %s7486_s23  ;;  %v7145_v61 = vld [vmem:[#allocation2 + $0x20c] sm:$0xf0]  ;;  %v6171_v23 = vld [vmem:[#allocation2 + $0x210] sm:$0xf0]  ;;  %v6162_v62 = vor.u32 %v7142_v45, %v6161_v6 }
 0x276   :  { %1124 = vst [vmem:[#allocation2 + $0x1c8] sm:$0xff] %v1116_v50  ;;  %2003 = vrot.lane.b32.xlu0 %v8658_v29, %s7486_s23  ;;  %2009 = vrot.lane.b32.xlu1 %v8618_v49, %s7486_s23  ;;  %v6170_v13 = vor.u32 %v7145_v61, %v6169_v60  ;;  %v6174_v28 = vor.u32 %v7143_v43, %v6171_v23  ;;  %v7104_v60 = vld [vmem:[#allocation2 + $0xcc] sm:$0xf]  ;;  %v6003_v61 = vld [vmem:[#allocation2 + $0xb8] sm:$0xf0] }
 0x277   :  { %v1160_v2 = vpop.permute.xlu1 %1159  ;;  %1822 = vmatpush.bf16.msra.mxu3 %v6162_v62  ;;  %v9228_v63 = vpop.permute.xlu2 %2157  ;;  %1702 = vmatmul.bf16.gmra.mxu0 %v9214_v18  ;;  %v6018_v50 = vor.u32 %v7106_v31, %v6017_v58  ;;  %v6001_v62 = vld [vmem:[#allocation2 + $0xa8] sm:$0xf]  ;;  %v7094_v58 = vld [vmem:[#allocation2 + $0x74] sm:$0xf0] }
 0x278   :  { %v1166_v4 = vsel %vm1163_vm14, %v8979_v22, %v1160_v2  ;;  %v1178_v39 = vsel %vm1163_vm14, %v1160_v2, %v9010_v59  ;;  %v1000_v54 = vpop.permute.xlu0 %999  ;;  %1734 = vmatpush.bf16.msrb.mxu2 %v6170_v13  ;;  %1791 = vmatpush.bf16.msra.mxu1 %v6174_v28  ;;  %v6019_v59 = vld [vmem:[#allocation2 + $0xd8] sm:$0xf0]  ;;  %v7100_v2 = vld [vmem:[#allocation2 + $0xac] sm:$0xf] }
 0x279   :  { %v1190_v40 = vmul.f32 %v9111_v38, %v1166_v4  ;;  %v1191_v51 = vmul.f32 %v9114_v30, %v1178_v39  ;;  %v1005_v26 = vsel %vm1001_vm7, %v8906_v32, %v1000_v54  ;;  %v1017_v22 = vsel %vm1001_vm7, %v1000_v54, %v12661_v9  ;;  %1759 = vmatmul.bf16.gmra.mxu3 %v9214_v18  ;;  %v7102_v9 = vld [vmem:[#allocation2 + $0xb4] sm:$0xf0] }
 0x27a   :  { %v1032_v15 = vmul.f32 %v8880_v48, %v1005_v26  ;;  %v1033_v45 = vmul.f32 %v8864_v35, %v1017_v22  ;;  %v6022_v43 = vor.u32 %v7104_v60, %v6019_v59  ;;  %v12679_v13 = vld [vmem:[#allocation35_spill] sm:$0xff]  ;;  %v6002_v36 = vor.u32 %v7102_v9, %v6001_v62  ;;  %v5985_v22 = vld [vmem:[#allocation2 + $0x88] sm:$0xf] }
 0x27b   :  { %v1201_v3 = vpack.c.bf16 %v1191_v51, %v1190_v40  ;;  %6199 = vmatmul.msk.bf16.vlgmr.msrb.gmra.mxu2 %vm1682_vm0, %v9231_v27  ;;  %v6006_v39 = vor.u32 %v7100_v2, %v6003_v61  ;;  %v7098_v54 = vld [vmem:[#allocation2 + $0x94] sm:$0xf0]  ;;  %v5987_v51 = vld [vmem:[#allocation2 + $0x98] sm:$0xf0] }
 0x27c   :  { %1803 = vmatpush.bf16.msra.mxu2 %v6034_v11  ;;  %1860 = vmatpush.bf16.msrb.mxu1 %v6038_v21  ;;  %v1041_v32 = vpack.c.bf16 %v1033_v45, %v1032_v15  ;;  %v7138_v6 = vld [vmem:[#allocation2 + $0x1d4] sm:$0xf0]  ;;  %v5986_v15 = vor.u32 %v7098_v54, %v5985_v22  ;;  %v7096_v45 = vld [vmem:[#allocation2 + $0x8c] sm:$0xf]  ;;  %v6097_v22 = vld [vmem:[#allocation2 + $0x168] sm:$0xf] }
 0x27d   :  { %1209 = vst [vmem:[#allocation2 + $0x228] sm:$0xff] %v1201_v3  ;;  %2337 = vrot.lane.b32.xlu2 %v8604_v41, %s7491_s13  ;;  %v6145_v25 = vld [vmem:[#allocation2 + $0x1c8] sm:$0xf] }
 0x27e   :  { %1049 = vst [vmem:[#allocation2 + $0x1b8] sm:$0xff] %v1041_v32  ;;  %2025 = vrot.lane.b32.xlu0 %v8681_v12, %s7486_s23  ;;  %v6146_v23 = vor.u32 %v7138_v6, %v6145_v25  ;;  %2027 = vrot.lane.b32.xlu1 %v12679_v13, %s7486_s23  ;;  %v5971_v32 = vld [vmem:[#allocation2 + $0x78] sm:$0xf0]  ;;  %v5969_v25 = vld [vmem:[#allocation2 + $0x68] sm:$0xf] }
 0x27f   :  { %v1158_v28 = vpop.permute.xlu1 %1157  ;;  %v9258_v24 = vpop.permute.xlu2 %2167  ;;  %v5970_v62 = vor.u32 %v7094_v58, %v5969_v25  ;;  %v12681_v58 = vld [vmem:[#allocation77_spill] sm:$0xff]  ;;  %v7122_v25 = vld [vmem:[#allocation2 + $0x154] sm:$0xf0] }
 0x280   :  { %1804 = vmatpush.bf16.msra.mxu2 %v6018_v50  ;;  %1861 = vmatpush.bf16.msrb.mxu1 %v6022_v43  ;;  %12680 = vst [vmem:[#allocation60_spill] sm:$0xff] %v9258_v24  ;;  %v1165_v11 = vsel %vm1163_vm14, %v9158_v57, %v1158_v28  ;;  %v1177_v19 = vsel %vm1163_vm14, %v1158_v28, %v8991_v34  ;;  %v1156_v4 = vpop.permute.xlu0 %1155  ;;  %v7092_v28 = vld [vmem:[#allocation2 + $0x6c] sm:$0xf] }
 0x281   :  { %1823 = vmatpush.bf16.msra.mxu3 %v6146_v23  ;;  %v1186_v21 = vmul.f32 %v9111_v38, %v1165_v11  ;;  %v1187_v31 = vmul.f32 %v9114_v30, %v1177_v19  ;;  %v1164_v40 = vsel %vm1163_vm14, %v9012_v16, %v1156_v4  ;;  %v1176_v57 = vsel %vm1163_vm14, %v1156_v4, %v9078_v55  ;;  %v7150_v16 = vld [vmem:[#allocation2 + $0x234] sm:$0xf0]  ;;  %v6129_v55 = vld [vmem:[#allocation2 + $0x1a8] sm:$0xf] }
 0x282   :  { %v1182_v34 = vmul.f32 %v9111_v38, %v1164_v40  ;;  %v1183_v26 = vmul.f32 %v9114_v30, %v1176_v57  ;;  %v5990_v50 = vor.u32 %v7096_v45, %v5987_v51  ;;  %v5974_v11 = vor.u32 %v7092_v28, %v5971_v32  ;;  %v7090_v19 = vld [vmem:[#allocation2 + $0x54] sm:$0xf0]  ;;  %v6113_v4 = vld [vmem:[#allocation2 + $0x188] sm:$0xf]  ;;  %v7088_v40 = vld [vmem:[#allocation2 + $0x4c] sm:$0xf] }
 0x283   :  { %v1199_v59 = vpack.c.bf16 %v1187_v31, %v1186_v21  ;;  %v5953_v21 = vld [vmem:[#allocation2 + $0x48] sm:$0xf]  ;;  %v7126_v57 = vld [vmem:[#allocation2 + $0x174] sm:$0xf0] }
 0x284   :  { %1805 = vmatpush.bf16.msra.mxu2 %v6002_v36  ;;  %1862 = vmatpush.bf16.msrb.mxu1 %v6006_v39  ;;  %v1197_v3 = vpack.c.bf16 %v1183_v26, %v1182_v34  ;;  %v6193_v60 = vld [vmem:[#allocation2 + $0x228] sm:$0xf]  ;;  %v7130_v36 = vld [vmem:[#allocation2 + $0x194] sm:$0xf0]  ;;  %v5955_v39 = vld [vmem:[#allocation2 + $0x58] sm:$0xf0]  ;;  %v5954_v31 = vor.u32 %v7090_v19, %v5953_v21 }
 0x285   :  { %1207 = vst [vmem:[#allocation2 + $0x218] sm:$0xff] %v1199_v59  ;;  %2347 = vrot.lane.b32.xlu2 %v8672_v7, %s7491_s13  ;;  %v7134_v43 = vld [vmem:[#allocation2 + $0x1b4] sm:$0xf0]  ;;  %v6194_v6 = vor.u32 %v7150_v16, %v6193_v60  ;;  %v6114_v54 = vor.u32 %v7130_v36, %v6113_v4  ;;  %v5958_v51 = vor.u32 %v7088_v40, %v5955_v39  ;;  %v5937_v60 = vld [vmem:[#allocation2 + $0x28] sm:$0xf] }
 0x286   :  { %1205 = vst [vmem:[#allocation2 + $0x208] sm:$0xff] %v1197_v3  ;;  %2339 = vrot.lane.b32.xlu0 %v8658_v29, %s7491_s13  ;;  %v6130_v9 = vor.u32 %v7134_v43, %v6129_v55  ;;  %2345 = vrot.lane.b32.xlu1 %v8618_v49, %s7491_s13  ;;  %v7086_v26 = vld [vmem:[#allocation2 + $0x34] sm:$0xf0]  ;;  %v6098_v3 = vor.u32 %v7126_v57, %v6097_v22  ;;  %v12684_v39 = vld [vmem:[#allocation69_spill] sm:$0xff]  ;;  %v5923_v40 = vld [vmem:[#allocation2 + $0x18] sm:$0xf0] }
 0x287   :  { %v9282_v61 = vpop.permute.xlu1 %2169  ;;  %1847 = vmatpush.bf16.msrb.mxu0 %v6194_v6  ;;  %v9284_v23 = vpop.permute.xlu2 %2081  ;;  %v12682_v32 = vld [vmem:[#allocation39_spill] sm:$0xff]  ;;  %v5938_v6 = vor.u32 %v7086_v26, %v5937_v60  ;;  %v7140_v57 = vld [vmem:[#allocation2 + $0x1ec] sm:$0xf]  ;;  %v5921_v26 = vld [vmem:[#allocation2 + $0x8] sm:$0xf] }
 0x288   :  { %1806 = vmatpush.bf16.msra.mxu2 %v5986_v15  ;;  %1863 = vmatpush.bf16.msrb.mxu1 %v5990_v50  ;;  %v2164_v2 = vpop.permute.xlu0 %2163  ;;  %v5939_v15 = vld [vmem:[#allocation2 + $0x38] sm:$0xf0]  ;;  %v2199_v16 = vsel %vm823_vm11, %v9149_v33, %v9282_v61 }
 0x289   :  { %1824 = vmatpush.bf16.msra.mxu3 %v6130_v9  ;;  %1773 = vmatmul.bf16.vlgmr.msra.gmra.mxu0 %v9189_v8  ;;  %v2200_v45 = vsel %vm823_vm11, %v2164_v2, %v9187_v42  ;;  %v7084_v9 = vld [vmem:[#allocation2 + $0x2c] sm:$0xf]  ;;  %v12683_v19 = vld [vmem:[#allocation67_spill] sm:$0xff] }
 0x28a   :  { %v5942_v36 = vor.u32 %v7084_v9, %v5939_v15  ;;  %v2218_v4 = vmul.f32 %v12683_v19, %v2200_v45  ;;  %v7080_v15 = vld [vmem:[#allocation2 + $0xc] sm:$0xf]  ;;  %v6163_v45 = vld [vmem:[#allocation2 + $0x1f8] sm:$0xf0]  ;;  %v12686_v9 = vld [vmem:[#allocation34_spill] sm:$0xff] }
 0x28b   :  { %v6166_v60 = vor.u32 %v7140_v57, %v6163_v45 }
 0x28c   :  { %1807 = vmatpush.bf16.msra.mxu2 %v5970_v62  ;;  %1864 = vmatpush.bf16.msrb.mxu1 %v5974_v11  ;;  %v7146_v34 = vld [vmem:[#allocation2 + $0x214] sm:$0xf0]  ;;  %v6179_v45 = vld [vmem:[#allocation2 + $0x218] sm:$0xf0] }
 0x28d   :  { %1825 = vmatpush.bf16.msra.mxu3 %v6114_v54  ;;  %1997 = vrot.lane.b32.xlu2 %v8521_v5, %s7486_s23  ;;  %v6177_v59 = vld [vmem:[#allocation2 + $0x208] sm:$0xf]  ;;  %v7082_v11 = vld [vmem:[#allocation2 + $0x14] sm:$0xf0] }
 0x28e   :  { %2353 = vrot.lane.b32.xlu0 %v12681_v58, %s7491_s13  ;;  %v6178_v50 = vor.u32 %v7146_v34, %v6177_v59  ;;  %2355 = vrot.lane.b32.xlu1 %v12682_v32, %s7491_s13  ;;  %v5922_v59 = vor.u32 %v7082_v11, %v5921_v26  ;;  %v6115_v26 = vld [vmem:[#allocation2 + $0x198] sm:$0xf0] }
 0x28f   :  { %v9300_v55 = vpop.permute.xlu1 %2187  ;;  %v9302_v43 = vpop.permute.xlu2 %2091 }
 0x290   :  { %1808 = vmatpush.bf16.msra.mxu2 %v5954_v31  ;;  %1865 = vmatpush.bf16.msrb.mxu1 %v5958_v51  ;;  %v2204_v62 = vsel %vm823_vm11, %v9300_v55, %v2164_v2  ;;  %v9307_v28 = vpop.permute.xlu0 %2185  ;;  %v6081_v31 = vld [vmem:[#allocation2 + $0x148] sm:$0xf]  ;;  %v2214_v2 = vmul.f32 %v12683_v19, %v2199_v16  ;;  %v6147_v16 = vld [vmem:[#allocation2 + $0x1d8] sm:$0xf0] }
 0x291   :  { %1826 = vmatpush.bf16.msra.mxu3 %v6098_v3  ;;  %1848 = vmatpush.bf16.msrb.mxu0 %v6178_v50  ;;  %v2217_v54 = vmul.f32 %v12684_v39, %v2204_v62  ;;  %v2203_v21 = vsel %vm823_vm11, %v9307_v28, %v9149_v33  ;;  %v6082_v34 = vor.u32 %v7122_v25, %v6081_v31  ;;  %v7136_v33 = vld [vmem:[#allocation2 + $0x1cc] sm:$0xf]  ;;  %v12687_v31 = vld [vmem:[#allocation48_spill] sm:$0xff] }
 0x292   :  { %v2213_v51 = vmul.f32 %v12684_v39, %v2203_v21  ;;  %v5926_v50 = vor.u32 %v7080_v15, %v5923_v40  ;;  %v6131_v21 = vld [vmem:[#allocation2 + $0x1b8] sm:$0xf0]  ;;  %v12688_v40 = vld [vmem:[#allocation32_spill] sm:$0xff]  ;;  %v7144_v15 = vld [vmem:[#allocation2 + $0x20c] sm:$0xf] }
 0x293   :  { %v2227_v22 = vpack.c.bf16 %v2218_v4, %v2217_v54  ;;  %v6150_v4 = vor.u32 %v7136_v33, %v6147_v16  ;;  %v7148_v54 = vld [vmem:[#allocation2 + $0x22c] sm:$0xf]  ;;  %v6050_v57 = vor.u32 %v12688_v40, %v12687_v31  ;;  %v7076_v31 = vld [vmem:[%s12199_s2 + $0x1c] sm:$0xf]  ;;  %v5903_v40 = vld [vmem:[%s12199_s2 + $0x24] sm:$0xf0] }
 0x294   :  { %1809 = vmatpush.bf16.msra.mxu2 %v5938_v6  ;;  %1866 = vmatpush.bf16.msrb.mxu1 %v5942_v36  ;;  %v2225_v3 = vpack.c.bf16 %v2214_v2, %v2213_v51  ;;  %v12685_v6 = vld [vmem:[#allocation78_spill] sm:$0xff]  ;;  %v6195_v2 = vld [vmem:[#allocation2 + $0x238] sm:$0xf0] }
 0x295   :  { %1827 = vmatpush.bf16.msra.mxu3 %v6082_v34  ;;  %2235 = vst [vmem:[#allocation2 + $0xf0] sm:$0xff] %v2227_v22  ;;  %2007 = vrot.lane.b32.xlu2 %v8559_v47, %s7486_s23  ;;  %v6066_v25 = vor.u32 %v12686_v9, %v12685_v6  ;;  %v6198_v51 = vor.u32 %v7148_v54, %v6195_v2  ;;  %v7132_v34 = vld [vmem:[#allocation2 + $0x1ac] sm:$0xf] }
 0x296   :  { %2233 = vst [vmem:[#allocation2 + $0xe0] sm:$0xff] %v2225_v3  ;;  %1999 = vrot.lane.b32.xlu0 %v8555_v46, %s7486_s23  ;;  %2005 = vrot.lane.b32.xlu1 %v8530_v17, %s7486_s23  ;;  %v6134_v22 = vor.u32 %v7132_v34, %v6131_v21  ;;  %v7128_v6 = vld [vmem:[#allocation2 + $0x18c] sm:$0xf]  ;;  %v6182_v54 = vor.u32 %v7144_v15, %v6179_v45  ;;  %v6099_v15 = vld [vmem:[#allocation2 + $0x178] sm:$0xf0] }
 0x297   :  { %v9325_v62 = vpop.permute.xlu1 %2165  ;;  %v9327_v36 = vpop.permute.xlu2 %2417  ;;  %v6118_v21 = vor.u32 %v7128_v6, %v6115_v26  ;;  %v9360_v34 = vor.u32 %v7076_v31, %v5903_v40  ;;  %v12690_v31 = vld [vmem:[#allocation33_spill] sm:$0xff]  ;;  %v12691_v40 = vld [vmem:[#allocation79_spill] sm:$0xff] }
 0x298   :  { %1810 = vmatpush.bf16.msra.mxu2 %v5922_v59  ;;  %1867 = vmatpush.bf16.msrb.mxu1 %v5926_v50  ;;  %v2160_v11 = vpop.permute.xlu0 %2159  ;;  %v2197_v9 = vsel %vm823_vm11, %v9228_v63, %v9325_v62 }
 0x299   :  { %1828 = vmatpush.bf16.msra.mxu3 %v6066_v25  ;;  %v2198_v33 = vsel %vm823_vm11, %v2160_v11, %v9258_v24  ;;  %1721 = vmatmul.bf16.gmra.mxu1 %v9360_v34 }
 0x29a   :  { %v2210_v26 = vmul.f32 %v12683_v19, %v2198_v33  ;;  %1778 = vmatmul.bf16.gmra.mxu0 %v9360_v34 }
 0x29c   :  { %1879 = vmatpush.bf16.msrb.mxu2 %v6166_v60  ;;  %v7190_v59 = vld [vmem:[#allocation2 + $0xec] sm:$0xf0]  ;;  %v6359_v60 = vld [vmem:[#allocation2 + $0xf0] sm:$0xf0] }
 0x29d   :  { %1829 = vmatpush.bf16.msra.mxu3 %v6050_v57  ;;  %2333 = vrot.lane.b32.xlu2 %v8521_v5, %s7491_s13  ;;  %v6357_v3 = vld [vmem:[#allocation2 + $0xe0] sm:$0xf]  ;;  %v7188_v50 = vld [vmem:[#allocation2 + $0xe4] sm:$0xf] }
 0x29e   :  { %v6358_v16 = vor.u32 %v7190_v59, %v6357_v3  ;;  %2021 = vrot.lane.b32.xlu0 %v8565_v37, %s7486_s23  ;;  %2023 = vrot.lane.b32.xlu1 %v8627_v56, %s7486_s23 }
 0x29f   :  { %v9344_v25 = vpop.permute.xlu1 %2183 }
 0x2a0   :  { %1880 = vmatpush.bf16.msrb.mxu2 %v6150_v4  ;;  %v9346_v4 = vpop.permute.xlu2 %2427  ;;  %v2202_v57 = vsel %vm823_vm11, %v9344_v25, %v2160_v11  ;;  %v9357_v2 = vpop.permute.xlu0 %2181  ;;  %3071 = vmatpush.bf16.msra.mxu0 %v6358_v16  ;;  %v2206_v11 = vmul.f32 %v12683_v19, %v2197_v9  ;;  %v7120_v9 = vld [vmem:[#allocation2 + $0x14c] sm:$0xf]  ;;  %v12703_v19 = vld [vmem:[#allocation51_spill] sm:$0xff] }
 0x2a1   :  { %1904 = vmatpush.bf16.msrb.mxu3 %v6198_v51  ;;  %v6362_v51 = vor.u32 %v7188_v50, %v6359_v60  ;;  %v2201_v59 = vsel %vm823_vm11, %v9357_v2, %v9228_v63  ;;  %v7124_v50 = vld [vmem:[#allocation2 + $0x16c] sm:$0xf]  ;;  %v6083_v63 = vld [vmem:[#allocation2 + $0x158] sm:$0xf0] }
 0x2a2   :  { %1830 = vmatmul.bf16.vlgmr.msra.gmra.mxu3 %v9189_v8  ;;  %v2205_v45 = vmul.f32 %v12684_v39, %v2201_v59  ;;  %v6102_v33 = vor.u32 %v7124_v50, %v6099_v15 }
 0x2a4   :  { %1881 = vmatpush.bf16.msrb.mxu2 %v6134_v22  ;;  %v2209_v22 = vmul.f32 %v12684_v39, %v2202_v57  ;;  %v2221_v60 = vpack.c.bf16 %v2206_v11, %v2205_v45  ;;  %v6070_v57 = vor.u32 %v12691_v40, %v12690_v31  ;;  %v12699_v40 = vld [vmem:[#allocation56_spill] sm:$0xff] }
 0x2a5   :  { %1905 = vmatpush.bf16.msrb.mxu3 %v6182_v54  ;;  %2343 = vrot.lane.b32.xlu2 %v8559_v47, %s7491_s13 }
 0x2a6   :  { %v2223_v3 = vpack.c.bf16 %v2210_v26, %v2209_v22  ;;  %2229 = vst [vmem:[#allocation2 + $0xc0] sm:$0xff] %v2221_v60  ;;  %2335 = vrot.lane.b32.xlu0 %v8555_v46, %s7491_s13  ;;  %2341 = vrot.lane.b32.xlu1 %v8530_v17, %s7491_s13 }
 0x2a7   :  { %v9378_v16 = vpop.permute.xlu1 %2089 }
 0x2a8   :  { %1882 = vmatpush.bf16.msrb.mxu2 %v6118_v21  ;;  %2231 = vst [vmem:[#allocation2 + $0xd0] sm:$0xff] %v2223_v3  ;;  %v9380_v6 = vpop.permute.xlu2 %2077  ;;  %v2084_v54 = vpop.permute.xlu0 %2083  ;;  %v6086_v21 = vor.u32 %v7120_v9, %v6083_v63  ;;  %v2119_v3 = vsel %vm12693_vm2, %v9284_v23, %v9378_v16  ;;  %v12697_v9 = vld [vmem:[#allocation76_spill] sm:$0xff]  ;;  %vm12717_vm2 = vmmov %vm12713_vm3 }
 0x2a9   :  { %3143 = vmatpush.bf16.msra.mxu3 %v6362_v51  ;;  %12689 = vst [vmem:[#allocation53_spill] sm:$0xff] %v9378_v16  ;;  %v2120_v15 = vsel %vm12692_vm12, %v2084_v54, %v9302_v43  ;;  %6201 = vmatmul.msk.bf16.vlgmr.msra.gmra.mxu1 %vm1682_vm0, %v9231_v27  ;;  %vm12715_vm12 = vmmov %vm12713_vm3 }
 0x2aa   :  { %6203 = vmatmul.msk.bf16.vlgmr.msrb.gmra.mxu0 %vm1682_vm0, %v9231_v27 }
 0x2ac   :  { %1883 = vmatpush.bf16.msrb.mxu2 %v6102_v33 }
 0x2ad   :  { %1921 = vrot.lane.b32.xlu2 %v8604_v41, %s7487_s9  ;;  %v6341_v22 = vld [vmem:[#allocation2 + $0xc0] sm:$0xf]  ;;  %v7184_v59 = vld [vmem:[#allocation2 + $0xc4] sm:$0xf] }
 0x2ae   :  { %2349 = vrot.lane.b32.xlu0 %v8563_v14, %s7491_s13  ;;  %2351 = vrot.lane.b32.xlu1 %v8625_v1, %s7491_s13 }
 0x2af   :  { %v7186_v51 = vld [vmem:[#allocation2 + $0xcc] sm:$0xf0]  ;;  %v6343_v26 = vld [vmem:[#allocation2 + $0xd0] sm:$0xf0]  ;;  %v9397_v50 = vpop.permute.xlu1 %2107 }
 0x2b0   :  { %1884 = vmatpush.bf16.msrb.mxu2 %v6086_v21  ;;  %v6342_v11 = vor.u32 %v7186_v51, %v6341_v22  ;;  %v6346_v45 = vor.u32 %v7184_v59, %v6343_v26  ;;  %v9399_v60 = vpop.permute.xlu2 %2087  ;;  %v2124_v33 = vsel %vm12695_vm10, %v9397_v50, %v2084_v54  ;;  %v9404_v63 = vpop.permute.xlu0 %2105  ;;  %v12698_v21 = vld [vmem:[#allocation29_spill] sm:$0xff]  ;;  %v12700_v51 = vld [vmem:[#allocation58_spill] sm:$0xff]  ;;  %v2134_v54 = vmul.f32 %v12699_v40, %v2119_v3  ;;  %vm12721_vm10 = vmmov %vm12717_vm2 }
 0x2b1   :  { %12694 = vst [vmem:[#allocation37_spill] sm:$0xff] %v9399_v60  ;;  %v6054_v31 = vor.u32 %v12698_v21, %v12697_v9  ;;  %v2137_v26 = vmul.f32 %v12700_v51, %v2124_v33  ;;  %v2123_v22 = vsel %vm12701_vm1, %v9404_v63, %v9284_v23  ;;  %vm12730_vm1 = vmmov %vm12717_vm2 }
 0x2b2   :  { %12696 = vst [vmem:[#allocation46_spill] sm:$0xff] %v9404_v63  ;;  %3072 = vmatpush.bf16.msra.mxu0 %v6342_v11  ;;  %3144 = vmatpush.bf16.msra.mxu3 %v6346_v45  ;;  %v2133_v59 = vmul.f32 %v12700_v51, %v2123_v22 }
 0x2b3   :  { %1835 = vmatmul.bf16.gmra.mxu3 %v9360_v34 }
 0x2b4   :  { %1885 = vmatpush.bf16.msrb.mxu2 %v6070_v57  ;;  %v2138_v57 = vmul.f32 %v12699_v40, %v2120_v15  ;;  %v2145_v15 = vpack.c.bf16 %v2134_v54, %v2133_v59 }
 0x2b5   :  { %1931 = vrot.lane.b32.xlu2 %v8672_v7, %s7487_s9 }
 0x2b6   :  { %v2147_v11 = vpack.c.bf16 %v2138_v57, %v2137_v26  ;;  %2153 = vst [vmem:[#allocation2 + $0xa0] sm:$0xff] %v2145_v15  ;;  %1923 = vrot.lane.b32.xlu0 %v8658_v29, %s7487_s9  ;;  %1929 = vrot.lane.b32.xlu1 %v8618_v49, %s7487_s9 }
 0x2b7   :  { %v2426_v23 = vpop.permute.xlu1 %2425 }
 0x2b8   :  { %1886 = vmatpush.bf16.msrb.mxu2 %v6054_v31  ;;  %2155 = vst [vmem:[#allocation2 + $0xb0] sm:$0xff] %v2147_v11  ;;  %v9427_v45 = vpop.permute.xlu2 %2413  ;;  %v9429_v3 = vpop.permute.xlu0 %2419  ;;  %v2455_v54 = vsel %vm1082_vm5, %v9327_v36, %v2426_v23 }
 0x2b9   :  { %v2456_v57 = vsel %vm1082_vm5, %v9429_v3, %v9346_v4 }
 0x2bd   :  { %2257 = vrot.lane.b32.xlu2 %v8604_v41, %s7490_s12  ;;  %v6325_v21 = vld [vmem:[#allocation2 + $0xa0] sm:$0xf]  ;;  %v7180_v31 = vld [vmem:[#allocation2 + $0xa4] sm:$0xf] }
 0x2be   :  { %1945 = vrot.lane.b32.xlu0 %v8681_v12, %s7487_s9  ;;  %1947 = vrot.lane.b32.xlu1 %v12679_v13, %s7487_s9 }
 0x2bf   :  { %v7182_v33 = vld [vmem:[#allocation2 + $0xac] sm:$0xf0]  ;;  %v6327_v9 = vld [vmem:[#allocation2 + $0xb0] sm:$0xf0]  ;;  %v9446_v11 = vpop.permute.xlu1 %2435 }
 0x2c0   :  { %v6326_v26 = vor.u32 %v7182_v33, %v6325_v21  ;;  %v6330_v22 = vor.u32 %v7180_v31, %v6327_v9  ;;  %v9444_v59 = vpop.permute.xlu2 %2423  ;;  %v9448_v15 = vpop.permute.xlu0 %2433  ;;  %v2452_v33 = vsel %vm1082_vm5, %v9346_v4, %v9446_v11  ;;  %v12702_v9 = vld [vmem:[#allocation41_spill] sm:$0xff] }
 0x2c1   :  { %v2473_v21 = vmul.f32 %v12702_v9, %v2456_v57  ;;  %v2451_v31 = vsel %vm1082_vm5, %v2426_v23, %v9448_v15  ;;  %v2474_v39 = vmul.f32 %v12703_v19, %v2452_v33 }
 0x2c2   :  { %3073 = vmatpush.bf16.msra.mxu0 %v6326_v26  ;;  %3145 = vmatpush.bf16.msra.mxu3 %v6330_v22  ;;  %v2469_v26 = vmul.f32 %v12702_v9, %v2455_v54  ;;  %v2470_v22 = vmul.f32 %v12703_v19, %v2451_v31 }
 0x2c3   :  { %6205 = vmatmul.msk.bf16.vlgmr.msrb.gmra.mxu3 %vm1682_vm0, %v9231_v27  ;;  %v2483_v30 = vpack.c.bf16 %v2474_v39, %v2473_v21 }
 0x2c4   :  { %v2481_v38 = vpack.c.bf16 %v2470_v22, %v2469_v26 }
 0x2c5   :  { %2491 = vst [vmem:[#allocation2 + $0x1f0] sm:$0xff] %v2483_v30  ;;  %2267 = vrot.lane.b32.xlu2 %v8672_v7, %s7490_s12 }
 0x2c6   :  { %2489 = vst [vmem:[#allocation2 + $0x1e0] sm:$0xff] %v2481_v38  ;;  %2259 = vrot.lane.b32.xlu0 %v8658_v29, %s7490_s12  ;;  %2265 = vrot.lane.b32.xlu1 %v8618_v49, %s7490_s12 }
 0x2c7   :  { %v9471_v27 = vpop.permute.xlu1 %2085 }
 0x2c8   :  { %v9469_v4 = vpop.permute.xlu2 %2001  ;;  %v2080_v23 = vpop.permute.xlu0 %2079  ;;  %v2117_v54 = vsel %vm12705_vm6, %v9380_v6, %v9471_v27  ;;  %vm12733_vm6 = vmmov %vm12730_vm1 }
 0x2c9   :  { %v2118_v38 = vsel %vm12704_vm15, %v2080_v23, %v9399_v60  ;;  %v2126_v60 = vmul.f32 %v12699_v40, %v2117_v54  ;;  %vm12731_vm15 = vmmov %vm12730_vm1 }
 0x2ca   :  { %v2130_v22 = vmul.f32 %v12699_v40, %v2118_v38 }
 0x2cc   :  { %v7222_v57 = vld [vmem:[#allocation2 + $0x1ec] sm:$0xf0] }
 0x2cd   :  { %1917 = vrot.lane.b32.xlu2 %v8521_v5, %s7487_s9  ;;  %v6485_v30 = vld [vmem:[#allocation2 + $0x1e0] sm:$0xf] }
 0x2ce   :  { %v6486_v39 = vor.u32 %v7222_v57, %v6485_v30  ;;  %2273 = vrot.lane.b32.xlu0 %v12681_v58, %s7490_s12  ;;  %2275 = vrot.lane.b32.xlu1 %v12682_v32, %s7490_s12 }
 0x2cf   :  { %v9488_v21 = vpop.permute.xlu1 %2103 }
 0x2d0   :  { %v9486_v33 = vpop.permute.xlu2 %2011  ;;  %12707 = vst [vmem:[#allocation43_spill] sm:$0xff] %v9488_v21  ;;  %v9490_v31 = vpop.permute.xlu0 %2101  ;;  %3095 = vmatpush.bf16.msra.mxu1 %v6486_v39  ;;  %v2122_v26 = vsel %vm12708_vm13, %v9488_v21, %v2080_v23  ;;  %vm12734_vm13 = vmmov %vm12730_vm1 }
 0x2d1   :  { %12706 = vst [vmem:[#allocation75_spill] sm:$0xff] %v9486_v33  ;;  %v2121_v57 = vsel %vm12709_vm4, %v9490_v31, %v9380_v6  ;;  %v2129_v30 = vmul.f32 %v12700_v51, %v2122_v26 }
 0x2d2   :  { %v2125_v16 = vmul.f32 %v12700_v51, %v2121_v57 }
 0x2d3   :  { %v2143_v63 = vpack.c.bf16 %v2130_v22, %v2129_v30 }
 0x2d4   :  { %v2141_v24 = vpack.c.bf16 %v2126_v60, %v2125_v16 }
 0x2d5   :  { %2151 = vst [vmem:[#allocation2 + $0x90] sm:$0xff] %v2143_v63  ;;  %1927 = vrot.lane.b32.xlu2 %v8559_v47, %s7487_s9 }
 0x2d6   :  { %2149 = vst [vmem:[#allocation2 + $0x80] sm:$0xff] %v2141_v24  ;;  %1919 = vrot.lane.b32.xlu0 %v8555_v46, %s7487_s9  ;;  %1925 = vrot.lane.b32.xlu1 %v8530_v17, %s7487_s9 }
 0x2d7   :  { %v2422_v23 = vpop.permute.xlu1 %2421 }
 0x2d8   :  { %v9509_v6 = vpop.permute.xlu2 %2337  ;;  %v9511_v38 = vpop.permute.xlu0 %2415  ;;  %v2453_v22 = vsel %vm1082_vm5, %v9427_v45, %v2422_v23 }
 0x2d9   :  { %12710 = vst [vmem:[#allocation50_spill] sm:$0xff] %v9509_v6  ;;  %v2454_v26 = vsel %vm1082_vm5, %v9511_v38, %v9444_v59 }
 0x2da   :  { %12711 = vst [vmem:[#allocation47_spill] sm:$0xff] %v9511_v38 }
 0x2dc   :  { %v7178_v39 = vld [vmem:[#allocation2 + $0x8c] sm:$0xf0]  ;;  %v6311_v54 = vld [vmem:[#allocation2 + $0x90] sm:$0xf0] }
 0x2dd   :  { %2497 = vrot.lane.b32.xlu2 %v8604_v41, %s7494_s19  ;;  %v6309_v16 = vld [vmem:[#allocation2 + $0x80] sm:$0xf]  ;;  %v7176_v60 = vld [vmem:[#allocation2 + $0x84] sm:$0xf] }
 0x2de   :  { %v6310_v63 = vor.u32 %v7178_v39, %v6309_v16  ;;  %v6314_v24 = vor.u32 %v7176_v60, %v6311_v54  ;;  %1941 = vrot.lane.b32.xlu0 %v8565_v37, %s7487_s9  ;;  %1943 = vrot.lane.b32.xlu1 %v8627_v56, %s7487_s9  ;;  %v2465_v16 = vmul.f32 %v12702_v9, %v2454_v26 }
 0x2df   :  { %v2461_v60 = vmul.f32 %v12702_v9, %v2453_v22 }
 0x2e0   :  { %v9526_v41 = vpop.permute.xlu2 %2347  ;;  %v9528_v57 = vpop.permute.xlu0 %2429  ;;  %3074 = vmatpush.bf16.msra.mxu0 %v6310_v63  ;;  %3146 = vmatpush.bf16.msra.mxu3 %v6314_v24 }
 0x2e1   :  { %v9530_v30 = vpop.permute.xlu1 %2431  ;;  %v2449_v39 = vsel %vm1082_vm5, %v2422_v23, %v9528_v57 }
 0x2e2   :  { %v2450_v54 = vsel %vm1082_vm5, %v9444_v59, %v9530_v30  ;;  %v2462_v51 = vmul.f32 %v12703_v19, %v2449_v39 }
 0x2e3   :  { %v2466_v63 = vmul.f32 %v12703_v19, %v2450_v54 }
 0x2e4   :  { %v2477_v24 = vpack.c.bf16 %v2462_v51, %v2461_v60  ;;  %v12719_v60 = vld [vmem:[#allocation44_spill] sm:$0xff] }
 0x2e5   :  { %v2479_v40 = vpack.c.bf16 %v2466_v63, %v2465_v16  ;;  %2507 = vrot.lane.b32.xlu2 %v8672_v7, %s7494_s19 }
 0x2e6   :  { %2485 = vst [vmem:[#allocation2 + $0x1c0] sm:$0xff] %v2477_v24  ;;  %2499 = vrot.lane.b32.xlu0 %v8658_v29, %s7494_s19  ;;  %2505 = vrot.lane.b32.xlu1 %v8618_v49, %s7494_s19  ;;  %v12720_v24 = vld [vmem:[#allocation45_spill] sm:$0xff] }
 0x2e7   :  { %2487 = vst [vmem:[#allocation2 + $0x1d0] sm:$0xff] %v2479_v40 }
 0x2e8   :  { %v9549_v59 = vpop.permute.xlu2 %1997  ;;  %v2004_v23 = vpop.permute.xlu0 %2003 }
 0x2e9   :  { %v9551_v26 = vpop.permute.xlu1 %2009  ;;  %v2040_v40 = vsel %vm12715_vm12, %v2004_v23, %v9486_v33 }
 0x2ea   :  { %12712 = vst [vmem:[#allocation49_spill] sm:$0xff] %v9551_v26  ;;  %v2039_v7 = vsel %vm12713_vm3, %v9469_v4, %v9551_v26  ;;  %vm12754_vm3 = vmmov %vm12709_vm4 }
 0x2eb   :  { %v2054_v63 = vmul.f32 %v12719_v60, %v2039_v7  ;;  %vm12757_vm12 = vmmov %vm12754_vm3 }
 0x2ed   :  { %2253 = vrot.lane.b32.xlu2 %v8521_v5, %s7490_s12  ;;  %v6469_v51 = vld [vmem:[#allocation2 + $0x1c0] sm:$0xf] }
 0x2ee   :  { %v7218_v22 = vld [vmem:[#allocation2 + $0x1cc] sm:$0xf0]  ;;  %2513 = vrot.lane.b32.xlu0 %v12681_v58, %s7494_s19  ;;  %2515 = vrot.lane.b32.xlu1 %v12682_v32, %s7494_s19 }
 0x2ef   :  { %v6470_v29 = vor.u32 %v7218_v22, %v6469_v51  ;;  %v2058_v22 = vmul.f32 %v12719_v60, %v2040_v40 }
 0x2f0   :  { %v9563_v49 = vpop.permute.xlu2 %2007  ;;  %v9568_v39 = vpop.permute.xlu0 %2025 }
 0x2f1   :  { %12714 = vst [vmem:[#allocation38_spill] sm:$0xff] %v9563_v49  ;;  %v2043_v54 = vsel %vm12717_vm2, %v9568_v39, %v9469_v4  ;;  %3096 = vmatpush.bf16.msra.mxu1 %v6470_v29  ;;  %v9574_v16 = vpop.permute.xlu1 %2027  ;;  %vm12758_vm2 = vmmov %vm12754_vm3 }
 0x2f2   :  { %12716 = vst [vmem:[#allocation35_spill] sm:$0xff] %v9568_v39  ;;  %v2053_v19 = vmul.f32 %v12720_v24, %v2043_v54  ;;  %v2044_v51 = vsel %vm12721_vm10, %v9574_v16, %v2004_v23  ;;  %v12726_v39 = vld [vmem:[#allocation42_spill] sm:$0xff]  ;;  %vm12768_vm10 = vmmov %vm12758_vm2 }
 0x2f3   :  { %12718 = vst [vmem:[#allocation77_spill] sm:$0xff] %v9574_v16  ;;  %v2057_v9 = vmul.f32 %v12720_v24, %v2044_v51 }
 0x2f4   :  { %v2065_v33 = vpack.c.bf16 %v2054_v63, %v2053_v19 }
 0x2f5   :  { %v2067_v26 = vpack.c.bf16 %v2058_v22, %v2057_v9  ;;  %2263 = vrot.lane.b32.xlu2 %v8559_v47, %s7490_s12 }
 0x2f6   :  { %2073 = vst [vmem:[#allocation2 + $0x60] sm:$0xff] %v2065_v33  ;;  %2255 = vrot.lane.b32.xlu0 %v8555_v46, %s7490_s12  ;;  %2261 = vrot.lane.b32.xlu1 %v8530_v17, %s7490_s12 }
 0x2f7   :  { %2075 = vst [vmem:[#allocation2 + $0x70] sm:$0xff] %v2067_v26 }
 0x2f8   :  { %v9589_v4 = vpop.permute.xlu2 %2333  ;;  %v9591_v23 = vpop.permute.xlu0 %2339 }
 0x2f9   :  { %12722 = vst [vmem:[#allocation39_spill] sm:$0xff] %v9589_v4  ;;  %v2346_v7 = vpop.permute.xlu1 %2345 }
 0x2fa   :  { %12723 = vst [vmem:[#allocation78_spill] sm:$0xff] %v9591_v23  ;;  %v2375_v33 = vsel %vm1001_vm7, %v9509_v6, %v2346_v7  ;;  %v12727_v6 = vld [vmem:[#allocation40_spill] sm:$0xff] }
 0x2fb   :  { %v2389_v21 = vmul.f32 %v12726_v39, %v2375_v33 }
 0x2fd   :  { %2493 = vrot.lane.b32.xlu2 %v8521_v5, %s7494_s19  ;;  %v6293_v19 = vld [vmem:[#allocation2 + $0x60] sm:$0xf]  ;;  %v7172_v9 = vld [vmem:[#allocation2 + $0x64] sm:$0xf]  ;;  %v2376_v5 = vsel %vm1001_vm7, %v9591_v23, %v9526_v41 }
 0x2fe   :  { %v7174_v29 = vld [vmem:[#allocation2 + $0x6c] sm:$0xf0]  ;;  %v6295_v40 = vld [vmem:[#allocation2 + $0x70] sm:$0xf0]  ;;  %2269 = vrot.lane.b32.xlu0 %v8563_v14, %s7490_s12  ;;  %2271 = vrot.lane.b32.xlu1 %v8625_v1, %s7490_s12 }
 0x2ff   :  { %v6294_v54 = vor.u32 %v7174_v29, %v6293_v19  ;;  %v6298_v63 = vor.u32 %v7172_v9, %v6295_v40  ;;  %v2393_v29 = vmul.f32 %v12726_v39, %v2376_v5 }
 0x300   :  { %v9602_v26 = vpop.permute.xlu2 %2343  ;;  %v9608_v51 = vpop.permute.xlu0 %2353 }
 0x301   :  { %12724 = vst [vmem:[#allocation34_spill] sm:$0xff] %v9608_v51  ;;  %v2371_v22 = vsel %vm1001_vm7, %v2346_v7, %v9608_v51  ;;  %3075 = vmatpush.bf16.msra.mxu0 %v6294_v54  ;;  %3147 = vmatpush.bf16.msra.mxu3 %v6298_v63  ;;  %v9613_v16 = vpop.permute.xlu1 %2355 }
 0x302   :  { %12725 = vst [vmem:[#allocation48_spill] sm:$0xff] %v9613_v16  ;;  %v2390_v19 = vmul.f32 %v12727_v6, %v2371_v22  ;;  %v2372_v9 = vsel %vm1001_vm7, %v9526_v41, %v9613_v16 }
 0x303   :  { %v2394_v40 = vmul.f32 %v12727_v6, %v2372_v9 }
 0x304   :  { %v2401_v23 = vpack.c.bf16 %v2390_v19, %v2389_v21 }
 0x305   :  { %v2403_v38 = vpack.c.bf16 %v2394_v40, %v2393_v29  ;;  %2503 = vrot.lane.b32.xlu2 %v8559_v47, %s7494_s19 }
 0x306   :  { %2409 = vst [vmem:[#allocation2 + $0x1a0] sm:$0xff] %v2401_v23  ;;  %2495 = vrot.lane.b32.xlu0 %v8555_v46, %s7494_s19  ;;  %2501 = vrot.lane.b32.xlu1 %v8530_v17, %s7494_s19 }
 0x307   :  { %2411 = vst [vmem:[#allocation2 + $0x1b0] sm:$0xff] %v2403_v38 }
 0x308   :  { %v9629_v7 = vpop.permute.xlu2 %1921  ;;  %v2000_v41 = vpop.permute.xlu0 %1999 }
 0x309   :  { %v9631_v33 = vpop.permute.xlu1 %2005  ;;  %v2038_v17 = vsel %vm12730_vm1, %v2000_v41, %v9563_v49  ;;  %vm12770_vm1 = vmmov %vm12758_vm2 }
 0x30a   :  { %12728 = vst [vmem:[#allocation32_spill] sm:$0xff] %v9631_v33  ;;  %v2037_v38 = vsel %vm12731_vm15, %v9549_v59, %v9631_v33  ;;  %v2050_v19 = vmul.f32 %v12719_v60, %v2038_v17  ;;  %vm12771_vm15 = vmmov %vm12733_vm6 }
 0x30b   :  { %v2046_v9 = vmul.f32 %v12719_v60, %v2037_v38 }
 0x30d   :  { %2177 = vrot.lane.b32.xlu2 %v12681_v58, %s7488_s10  ;;  %v6453_v21 = vld [vmem:[#allocation2 + $0x1a0] sm:$0xf] }
 0x30e   :  { %v7214_v54 = vld [vmem:[#allocation2 + $0x1ac] sm:$0xf0]  ;;  %2509 = vrot.lane.b32.xlu0 %v8563_v14, %s7494_s19  ;;  %2511 = vrot.lane.b32.xlu1 %v8625_v1, %s7494_s19 }
 0x30f   :  { %v6454_v47 = vor.u32 %v7214_v54, %v6453_v21 }
 0x310   :  { %v9639_v46 = vpop.permute.xlu2 %1931  ;;  %v9648_v23 = vpop.permute.xlu0 %2021 }
 0x311   :  { %12729 = vst [vmem:[#allocation33_spill] sm:$0xff] %v9639_v46  ;;  %3097 = vmatpush.bf16.msra.mxu1 %v6454_v47  ;;  %v9650_v63 = vpop.permute.xlu1 %2023  ;;  %v2041_v5 = vsel %vm12733_vm6, %v9648_v23, %v9549_v59 }
 0x312   :  { %12732 = vst [vmem:[#allocation79_spill] sm:$0xff] %v9648_v23  ;;  %v2042_v22 = vsel %vm12734_vm13, %v9650_v63, %v2000_v41  ;;  %v2045_v29 = vmul.f32 %v12720_v24, %v2041_v5  ;;  %vm12786_vm13 = vmmov %vm12770_vm1 }
 0x313   :  { %v2049_v40 = vmul.f32 %v12720_v24, %v2042_v22 }
 0x314   :  { %v2061_v21 = vpack.c.bf16 %v2046_v9, %v2045_v29 }
 0x315   :  { %v2063_v54 = vpack.c.bf16 %v2050_v19, %v2049_v40  ;;  %2443 = vrot.lane.b32.xlu2 %v12679_v13, %s7493_s1 }
 0x316   :  { %2069 = vst [vmem:[#allocation2 + $0x40] sm:$0xff] %v2061_v21  ;;  %2179 = vrot.lane.b32.xlu0 %v12682_v32, %s7488_s10  ;;  %2441 = vrot.lane.b32.xlu1 %v8681_v12, %s7493_s1 }
 0x317   :  { %2071 = vst [vmem:[#allocation2 + $0x50] sm:$0xff] %v2063_v54 }
 0x318   :  { %v9669_v59 = vpop.permute.xlu2 %2257  ;;  %v9671_v41 = vpop.permute.xlu0 %2335 }
 0x319   :  { %v2342_v47 = vpop.permute.xlu1 %2341  ;;  %v2374_v9 = vsel %vm1001_vm7, %v9671_v41, %v9602_v26 }
 0x31a   :  { %v2373_v29 = vsel %vm1001_vm7, %v9589_v4, %v2342_v47  ;;  %v2385_v23 = vmul.f32 %v12726_v39, %v2374_v9  ;;  %v12740_v4 = vld [vmem:[#allocation63_spill] sm:$0xff] }
 0x31d   :  { %2437 = vrot.lane.b32.xlu2 %v8565_v37, %s7493_s1  ;;  %v6277_v17 = vld [vmem:[#allocation2 + $0x40] sm:$0xf]  ;;  %v7168_v38 = vld [vmem:[#allocation2 + $0x44] sm:$0xf] }
 0x31e   :  { %2173 = vrot.lane.b32.xlu0 %v8563_v14, %s7488_s10  ;;  %2175 = vrot.lane.b32.xlu1 %v8625_v1, %s7488_s10  ;;  %v7170_v22 = vld [vmem:[#allocation2 + $0x4c] sm:$0xf0]  ;;  %v6279_v19 = vld [vmem:[#allocation2 + $0x50] sm:$0xf0] }
 0x31f   :  { %v6278_v40 = vor.u32 %v7170_v22, %v6277_v17  ;;  %v6282_v21 = vor.u32 %v7168_v38, %v6279_v19  ;;  %v2381_v17 = vmul.f32 %v12726_v39, %v2373_v29  ;;  %v5909_v19 = vld [vmem:[%s12199_s2 + $0x20] sm:$0xf] }
 0x320   :  { %v9679_v5 = vpop.permute.xlu2 %2267  ;;  %v9688_v54 = vpop.permute.xlu0 %2349 }
 0x321   :  { %12735 = vst [vmem:[#allocation76_spill] sm:$0xff] %v9688_v54  ;;  %v9690_v60 = vpop.permute.xlu1 %2351  ;;  %v2369_v24 = vsel %vm1001_vm7, %v2342_v47, %v9688_v54  ;;  %3076 = vmatpush.bf16.msra.mxu0 %v6278_v40  ;;  %3148 = vmatpush.bf16.msra.mxu3 %v6282_v21  ;;  %v7078_v47 = vld [vmem:[%s12199_s2 + $0x28] sm:$0xf0] }
 0x322   :  { %v2370_v33 = vsel %vm1001_vm7, %v9602_v26, %v9690_v60  ;;  %v2382_v38 = vmul.f32 %v12727_v6, %v2369_v24  ;;  %v5910_v26 = vor.u32 %v7078_v47, %v5909_v19 }
 0x323   :  { %v2386_v22 = vmul.f32 %v12727_v6, %v2370_v33  ;;  %v12739_v6 = vld [vmem:[#allocation61_spill] sm:$0xff] }
 0x324   :  { %v2397_v40 = vpack.c.bf16 %v2382_v38, %v2381_v17  ;;  %6200 = vmatmul.msk.bf16.gmra.mxu2 %vm1682_vm0, %v5910_v26  ;;  %6202 = vmatmul.msk.bf16.gmra.mxu1 %vm1682_vm0, %v5910_v26 }
 0x325   :  { %v2399_v21 = vpack.c.bf16 %v2386_v22, %v2385_v23  ;;  %2099 = vrot.lane.b32.xlu2 %v12682_v32, %s7489_s11  ;;  %6204 = vmatmul.msk.bf16.gmra.mxu0 %vm1682_vm0, %v5910_v26 }
 0x326   :  { %2405 = vst [vmem:[#allocation2 + $0x180] sm:$0xff] %v2397_v40  ;;  %2439 = vrot.lane.b32.xlu0 %v8627_v56, %s7493_s1  ;;  %2097 = vrot.lane.b32.xlu1 %v12681_v58, %s7489_s11 }
 0x327   :  { %2407 = vst [vmem:[#allocation2 + $0x190] sm:$0xff] %v2399_v21  ;;  %6206 = vmatmul.msk.bf16.gmra.mxu3 %vm1682_vm0, %v5910_v26 }
 0x328   :  { %v9715_v24 = vpop.permute.xlu2 %1917  ;;  %v1924_v33 = vpop.permute.xlu0 %1923 }
 0x329   :  { %v9719_v23 = vpop.permute.xlu1 %1929  ;;  %v1960_v38 = vsel %vm580_vm8, %v1924_v33, %v9639_v46 }
 0x32a   :  { %12736 = vst [vmem:[#allocation29_spill] sm:$0xff] %v9719_v23  ;;  %v1959_v22 = vsel %vm580_vm8, %v9629_v7, %v9719_v23  ;;  %v1978_v39 = vmul.f32 %v12739_v6, %v1960_v38 }
 0x32b   :  { %v1974_v46 = vmul.f32 %v12739_v6, %v1959_v22 }
 0x32d   :  { %2093 = vrot.lane.b32.xlu2 %v8563_v14, %s7489_s11  ;;  %v6437_v9 = vld [vmem:[#allocation2 + $0x180] sm:$0xf] }
 0x32e   :  { %2361 = vrot.lane.b32.xlu0 %v8681_v12, %s7491_s13  ;;  %2363 = vrot.lane.b32.xlu1 %v12679_v13, %s7491_s13  ;;  %v7210_v17 = vld [vmem:[#allocation2 + $0x18c] sm:$0xf0] }
 0x32f   :  { %v6438_v19 = vor.u32 %v7210_v17, %v6437_v9 }
 0x330   :  { %v9729_v29 = vpop.permute.xlu2 %1927  ;;  %v9738_v47 = vpop.permute.xlu0 %1945 }
 0x331   :  { %12737 = vst [vmem:[#allocation80_spill] sm:$0xff] %v9738_v47  ;;  %v9740_v40 = vpop.permute.xlu1 %1947  ;;  %v1963_v21 = vsel %vm580_vm8, %v9738_v47, %v9629_v7  ;;  %3098 = vmatpush.bf16.msra.mxu1 %v6438_v19  ;;  %v12743_v47 = vld [vmem:[#allocation71_spill] sm:$0xff] }
 0x332   :  { %12738 = vst [vmem:[#allocation81_spill] sm:$0xff] %v9740_v40  ;;  %v1964_v26 = vsel %vm580_vm8, %v9740_v40, %v1924_v33  ;;  %v1973_v9 = vmul.f32 %v12740_v4, %v1963_v21 }
 0x333   :  { %v1977_v17 = vmul.f32 %v12740_v4, %v1964_v26 }
 0x334   :  { %v1985_v54 = vpack.c.bf16 %v1974_v46, %v1973_v9  ;;  %1811 = vmatmul.bf16.vlgmr.msra.gmra.mxu2 %v9137_v10  ;;  %1868 = vmatmul.bf16.vlgmr.msrb.gmra.mxu1 %v9137_v10 }
 0x335   :  { %v1987_v23 = vpack.c.bf16 %v1978_v39, %v1977_v17  ;;  %2359 = vrot.lane.b32.xlu2 %v8627_v56, %s7491_s13 }
 0x336   :  { %1993 = vst [vmem:[#allocation2 + $0x20] sm:$0xff] %v1985_v54  ;;  %2095 = vrot.lane.b32.xlu0 %v8625_v1, %s7489_s11  ;;  %2357 = vrot.lane.b32.xlu1 %v8565_v37, %s7491_s13 }
 0x337   :  { %1995 = vst [vmem:[#allocation2 + $0x30] sm:$0xff] %v1987_v23 }
 0x338   :  { %v9759_v7 = vpop.permute.xlu2 %2497  ;;  %v9763_v33 = vpop.permute.xlu0 %2259 }
 0x339   :  { %12741 = vst [vmem:[#allocation82_spill] sm:$0xff] %v9759_v7  ;;  %v2266_v39 = vpop.permute.xlu1 %2265  ;;  %v2296_v10 = vsel %vm920_vm9, %v9763_v33, %v9679_v5 }
 0x33a   :  { %12742 = vst [vmem:[#allocation83_spill] sm:$0xff] %v9763_v33  ;;  %v2295_v19 = vsel %vm920_vm9, %v9669_v59, %v2266_v39  ;;  %v2313_v16 = vmul.f32 %v12743_v47, %v2296_v10 }
 0x33d   :  { %2281 = vrot.lane.b32.xlu2 %v8681_v12, %s7490_s12  ;;  %v6261_v46 = vld [vmem:[#allocation2 + $0x20] sm:$0xf]  ;;  %v7164_v54 = vld [vmem:[#allocation2 + $0x24] sm:$0xf] }
 0x33e   :  { %2017 = vrot.lane.b32.xlu0 %v12681_v58, %s7486_s23  ;;  %2019 = vrot.lane.b32.xlu1 %v12682_v32, %s7486_s23  ;;  %v7166_v23 = vld [vmem:[#allocation2 + $0x2c] sm:$0xf0]  ;;  %v6263_v22 = vld [vmem:[#allocation2 + $0x30] sm:$0xf0] }
 0x33f   :  { %v6262_v21 = vor.u32 %v7166_v23, %v6261_v46  ;;  %v6266_v26 = vor.u32 %v7164_v54, %v6263_v22  ;;  %v2309_v46 = vmul.f32 %v12743_v47, %v2295_v19  ;;  %v12744_v54 = vld [vmem:[#allocation73_spill] sm:$0xff] }
 0x340   :  { %v9771_v38 = vpop.permute.xlu2 %2507  ;;  %v9780_v9 = vpop.permute.xlu0 %2273 }
 0x341   :  { %v9782_v17 = vpop.permute.xlu1 %2275  ;;  %v2291_v40 = vsel %vm920_vm9, %v2266_v39, %v9780_v9  ;;  %3077 = vmatpush.bf16.msra.mxu0 %v6262_v21  ;;  %3149 = vmatpush.bf16.msra.mxu3 %v6266_v26 }
 0x342   :  { %v2292_v33 = vsel %vm920_vm9, %v9679_v5, %v9782_v17  ;;  %v2310_v23 = vmul.f32 %v12744_v54, %v2291_v40 }
 0x343   :  { %v2314_v22 = vmul.f32 %v12744_v54, %v2292_v33 }
 0x344   :  { %v2321_v51 = vpack.c.bf16 %v2310_v23, %v2309_v46  ;;  %1816 = vmatmul.bf16.gmra.mxu2 %v9214_v18  ;;  %1873 = vmatmul.bf16.gmra.mxu1 %v9214_v18 }
 0x345   :  { %v2323_v49 = vpack.c.bf16 %v2314_v22, %v2313_v16  ;;  %2015 = vrot.lane.b32.xlu2 %v8625_v1, %s7486_s23 }
 0x346   :  { %2329 = vst [vmem:[#allocation2 + $0x160] sm:$0xff] %v2321_v51  ;;  %2283 = vrot.lane.b32.xlu0 %v12679_v13, %s7490_s12  ;;  %2013 = vrot.lane.b32.xlu1 %v8563_v14, %s7486_s23 }
 0x347   :  { %2331 = vst [vmem:[#allocation2 + $0x170] sm:$0xff] %v2323_v49 }
 0x348   :  { %v9801_v5 = vpop.permute.xlu2 %2253  ;;  %v1920_v40 = vpop.permute.xlu0 %1919 }
 0x349   :  { %v9805_v33 = vpop.permute.xlu1 %1925  ;;  %v1958_v18 = vsel %vm580_vm8, %v1920_v40, %v9729_v29 }
 0x34a   :  { %12745 = vst [vmem:[#allocation84_spill] sm:$0xff] %v9805_v33  ;;  %v1957_v39 = vsel %vm580_vm8, %v9715_v24, %v9805_v33  ;;  %v1970_v46 = vmul.f32 %v12739_v6, %v1958_v18 }
 0x34b   :  { %v1966_v23 = vmul.f32 %v12739_v6, %v1957_v39  ;;  %v7220_v39 = vld [vmem:[#allocation2 + $0x1e4] sm:$0xf] }
 0x34d   :  { %1937 = vrot.lane.b32.xlu2 %v12681_v58, %s7487_s9  ;;  %v6421_v16 = vld [vmem:[#allocation2 + $0x160] sm:$0xf] }
 0x34e   :  { %2277 = vrot.lane.b32.xlu0 %v8565_v37, %s7490_s12  ;;  %2279 = vrot.lane.b32.xlu1 %v8627_v56, %s7490_s12  ;;  %v7206_v49 = vld [vmem:[#allocation2 + $0x16c] sm:$0xf0] }
 0x34f   :  { %v6422_v58 = vor.u32 %v7206_v49, %v6421_v16 }
 0x350   :  { %v9813_v51 = vpop.permute.xlu2 %2263  ;;  %v9822_v10 = vpop.permute.xlu0 %1941 }
 0x351   :  { %v9824_v19 = vpop.permute.xlu1 %1943  ;;  %v1961_v21 = vsel %vm580_vm8, %v9822_v10, %v9715_v24  ;;  %3099 = vmatpush.bf16.msra.mxu1 %v6422_v58  ;;  %v6209_v58 = vld [vmem:[#allocation6] sm:$0xf] }
 0x352   :  { %v1962_v26 = vsel %vm580_vm8, %v9824_v19, %v1920_v40  ;;  %v1965_v22 = vmul.f32 %v12740_v4, %v1961_v21 }
 0x353   :  { %v1969_v16 = vmul.f32 %v12740_v4, %v1962_v26 }
 0x354   :  { %v1981_v49 = vpack.c.bf16 %v1966_v23, %v1965_v22  ;;  %1887 = vmatmul.bf16.vlgmr.msrb.gmra.mxu2 %v9189_v8 }
 0x355   :  { %v1983_v33 = vpack.c.bf16 %v1970_v46, %v1969_v16  ;;  %1935 = vrot.lane.b32.xlu2 %v8625_v1, %s7487_s9  ;;  %v6487_v1 = vld [vmem:[#allocation2 + $0x1f0] sm:$0xf0] }
 0x356   :  { %1989 = vst [vmem:[#allocation2] sm:$0xff] %v1981_v49  ;;  %1939 = vrot.lane.b32.xlu0 %v12682_v32, %s7487_s9  ;;  %1933 = vrot.lane.b32.xlu1 %v8563_v14, %s7487_s9  ;;  %v7152_v32 = vld [vmem:[#allocation6 + $0x8] sm:$0xf0] }
 0x357   :  { %1991 = vst [vmem:[#allocation2 + $0x10] sm:$0xff] %v1983_v33  ;;  %v9867_v49 = vor.u32 %v7152_v32, %v6209_v58 }
 0x358   :  { %v9843_v24 = vpop.permute.xlu2 %2493  ;;  %v9846_v40 = vpop.permute.xlu0 %2499 }
 0x359   :  { %12746 = vst [vmem:[#allocation85_spill] sm:$0xff] %v9846_v40  ;;  %v2506_v18 = vpop.permute.xlu1 %2505 }
 0x35a   :  { %v2535_v46 = vsel %vm1163_vm14, %v9759_v7, %v2506_v18  ;;  %12749 = vst [vmem:[#allocation88_spill] sm:$0xff] %v9867_v49  ;;  %v7151_v7 = vld [vmem:[#allocation6 + $0x4] sm:$0xf] }
 0x35d   :  { %2517 = vrot.lane.b32.xlu2 %v8565_v37, %s7494_s19  ;;  %v6245_v21 = vld [vmem:[#allocation2] sm:$0xf]  ;;  %v7160_v26 = vld [vmem:[#allocation2 + $0x4] sm:$0xf]  ;;  %v2536_v37 = vsel %vm1163_vm14, %v9846_v40, %v9771_v38 }
 0x35e   :  { %2521 = vrot.lane.b32.xlu0 %v8681_v12, %s7494_s19  ;;  %2523 = vrot.lane.b32.xlu1 %v12679_v13, %s7494_s19  ;;  %v7162_v8 = vld [vmem:[#allocation2 + $0xc] sm:$0xf0]  ;;  %v6247_v33 = vld [vmem:[#allocation2 + $0x10] sm:$0xf0]  ;;  %v6490_v13 = vor.u32 %v7220_v39, %v6487_v1 }
 0x35f   :  { %v6246_v23 = vor.u32 %v7162_v8, %v6245_v21  ;;  %v6250_v22 = vor.u32 %v7160_v26, %v6247_v33  ;;  %v7216_v21 = vld [vmem:[#allocation2 + $0x1c4] sm:$0xf]  ;;  %v6471_v26 = vld [vmem:[#allocation2 + $0x1d0] sm:$0xf0]  ;;  %v2553_v8 = vmul.f32 %v9044_v44, %v2536_v37  ;;  %v2549_v33 = vmul.f32 %v9044_v44, %v2535_v46 }
 0x360   :  { %v9854_v14 = vpop.permute.xlu2 %2503  ;;  %v9863_v16 = vpop.permute.xlu0 %2513  ;;  %v6474_v32 = vor.u32 %v7216_v21, %v6471_v26  ;;  %v12750_v46 = vld [vmem:[#allocation68_spill] sm:$0xff] }
 0x361   :  { %12747 = vst [vmem:[#allocation86_spill] sm:$0xff] %v9863_v16  ;;  %v9865_v12 = vpop.permute.xlu1 %2515  ;;  %v2531_v6 = vsel %vm1163_vm14, %v2506_v18, %v9863_v16  ;;  %3078 = vmatpush.bf16.msra.mxu0 %v6246_v23  ;;  %3150 = vmatpush.bf16.msra.mxu3 %v6250_v22  ;;  %v7212_v23 = vld [vmem:[#allocation2 + $0x1a4] sm:$0xf]  ;;  %v6211_v16 = vld [vmem:[#allocation6 + $0xc] sm:$0xf0] }
 0x362   :  { %12748 = vst [vmem:[#allocation87_spill] sm:$0xff] %v9865_v12  ;;  %v2532_v4 = vsel %vm1163_vm14, %v9771_v38, %v9865_v12  ;;  %v2550_v39 = vmul.f32 %v9047_v52, %v2531_v6  ;;  %v6455_v38 = vld [vmem:[#allocation2 + $0x1b0] sm:$0xf0]  ;;  %v7192_v12 = vld [vmem:[#allocation2 + $0x104] sm:$0xf] }
 0x363   :  { %v2554_v1 = vmul.f32 %v9047_v52, %v2532_v4 }
 0x364   :  { %v2561_v58 = vpack.c.bf16 %v2550_v39, %v2549_v33  ;;  %3079 = vmatmul.bf16.vlgmr.msra.gmra.mxu0 %v9867_v49  ;;  %3151 = vmatmul.bf16.vlgmr.msra.gmra.mxu3 %v9867_v49  ;;  %v7208_v33 = vld [vmem:[#allocation2 + $0x184] sm:$0xf]  ;;  %v6439_v39 = vld [vmem:[#allocation2 + $0x190] sm:$0xf0] }
 0x365   :  { %3167 = vmatpush.bf16.msrb.mxu0 %v6490_v13  ;;  %v2563_v18 = vpack.c.bf16 %v2554_v1, %v2553_v8  ;;  %1892 = vmatmul.bf16.gmra.mxu2 %v9360_v34  ;;  %v12751_v13 = vld [vmem:[#allocation70_spill] sm:$0xff] }
 0x366   :  { %2569 = vst [vmem:[#allocation2 + $0x220] sm:$0xff] %v2561_v58  ;;  %2519 = vrot.lane.b32.xlu0 %v8627_v56, %s7494_s19  ;;  %v6458_v56 = vor.u32 %v7212_v23, %v6455_v38 }
 0x367   :  { %2571 = vst [vmem:[#allocation2 + $0x230] sm:$0xff] %v2563_v18  ;;  %v7204_v18 = vld [vmem:[#allocation2 + $0x164] sm:$0xf] }
 0x368   :  { %v2178_v37 = vpop.permute.xlu2 %2177  ;;  %v9893_v26 = vpop.permute.xlu0 %2255 }
 0x369   :  { %3168 = vmatpush.bf16.msrb.mxu0 %v6474_v32  ;;  %v2191_v6 = vsel %vm823_vm11, %v2178_v37, %v9307_v28  ;;  %v2195_v4 = vsel %vm823_vm11, %v9282_v61, %v2178_v37  ;;  %v2262_v8 = vpop.permute.xlu1 %2261  ;;  %v6442_v28 = vor.u32 %v7208_v33, %v6439_v39  ;;  %v6423_v32 = vld [vmem:[#allocation2 + $0x170] sm:$0xf0]  ;;  %v2294_v61 = vsel %vm920_vm9, %v9893_v26, %v9813_v51 }
 0x36a   :  { %v2215_v22 = vmul.f32 %v12750_v46, %v2195_v4  ;;  %v2216_v21 = vmul.f32 %v12751_v13, %v2191_v6  ;;  %v2293_v23 = vsel %vm920_vm9, %v9801_v5, %v2262_v8 }
 0x36c   :  { %v2226_v1 = vpack.c.bf16 %v2216_v21, %v2215_v22  ;;  %v6221_v22 = vld [vmem:[#allocation6 + $0x18] sm:$0xf]  ;;  %v7155_v21 = vld [vmem:[#allocation6 + $0x20] sm:$0xf0] }
 0x36d   :  { %3169 = vmatpush.bf16.msrb.mxu0 %v6458_v56  ;;  %v6517_v58 = vld [vmem:[#allocation2 + $0x220] sm:$0xf]  ;;  %v9914_v49 = vor.u32 %v7155_v21, %v6221_v22 }
 0x36e   :  { %2234 = vst [vmem:[#allocation2 + $0xe8] sm:$0xff] %v2226_v1  ;;  %v7230_v37 = vld [vmem:[#allocation2 + $0x22c] sm:$0xf0] }
 0x36f   :  { %v6518_v4 = vor.u32 %v7230_v37, %v6517_v58  ;;  %12752 = vst [vmem:[#allocation89_spill] sm:$0xff] %v9914_v49 }
 0x370   :  { %v2444_v34 = vpop.permute.xlu2 %2443  ;;  %v9910_v39 = vpop.permute.xlu0 %2269 }
 0x371   :  { %3170 = vmatpush.bf16.msrb.mxu0 %v6442_v28  ;;  %v2448_v38 = vsel %vm1082_vm5, %v9446_v11, %v2444_v34  ;;  %v2460_v6 = vsel %vm1082_vm5, %v2444_v34, %v9429_v3  ;;  %v9912_v1 = vpop.permute.xlu1 %2271  ;;  %v6426_v28 = vor.u32 %v7204_v18, %v6423_v32  ;;  %v2305_v11 = vmul.f32 %v12743_v47, %v2294_v61 }
 0x372   :  { %v2475_v56 = vmul.f32 %v9041_v20, %v2448_v38  ;;  %v2476_v33 = vmul.f32 %v9052_v53, %v2460_v6  ;;  %v2289_v3 = vsel %vm920_vm9, %v2262_v8, %v9910_v39  ;;  %3125 = vmatpush.bf16.msra.mxu2 %v6518_v4  ;;  %v2290_v58 = vsel %vm920_vm9, %v9813_v51, %v9912_v1 }
 0x373   :  { %v2301_v34 = vmul.f32 %v12743_v47, %v2293_v23  ;;  %v2302_v38 = vmul.f32 %v12744_v54, %v2289_v3  ;;  %v2306_v18 = vmul.f32 %v12744_v54, %v2290_v58 }
 0x374   :  { %v2484_v37 = vpack.c.bf16 %v2476_v33, %v2475_v56  ;;  %3084 = vmatmul.bf16.gmra.mxu0 %v9914_v49  ;;  %3156 = vmatmul.bf16.gmra.mxu3 %v9914_v49  ;;  %v7198_v49 = vld [vmem:[#allocation2 + $0x12c] sm:$0xf0] }
 0x375   :  { %3171 = vmatpush.bf16.msrb.mxu0 %v6426_v28  ;;  %v2317_v32 = vpack.c.bf16 %v2302_v38, %v2301_v34  ;;  %v2319_v61 = vpack.c.bf16 %v2306_v18, %v2305_v11 }
 0x376   :  { %2492 = vst [vmem:[#allocation2 + $0x1f8] sm:$0xff] %v2484_v37 }
 0x377   :  { %2325 = vst [vmem:[#allocation2 + $0x140] sm:$0xff] %v2317_v32  ;;  %v6389_v32 = vld [vmem:[#allocation2 + $0x120] sm:$0xf] }
 0x378   :  { %v2438_v8 = vpop.permute.xlu2 %2437  ;;  %2327 = vst [vmem:[#allocation2 + $0x150] sm:$0xff] %v2319_v61  ;;  %v9937_v22 = vpop.permute.xlu0 %2495 }
 0x379   :  { %v2445_v51 = vsel %vm1082_vm5, %v9528_v57, %v2438_v8  ;;  %v2457_v23 = vsel %vm1082_vm5, %v2438_v8, %v9427_v45  ;;  %12753 = vst [vmem:[#allocation90_spill] sm:$0xff] %v9937_v22  ;;  %v2502_v21 = vpop.permute.xlu1 %2501  ;;  %v2534_v57 = vsel %vm1163_vm14, %v9937_v22, %v9854_v14  ;;  %v1698_v61 = vpop.f32.mrf.mxu0  ;;  %v6233_v8 = vld [vmem:[#allocation6 + $0x30] sm:$0xf]  ;;  %v6391_v22 = vld [vmem:[#allocation2 + $0x130] sm:$0xf0] }
 0x37a   :  { %v2463_v6 = vmul.f32 %v9041_v20, %v2445_v51  ;;  %v2464_v4 = vmul.f32 %v9052_v53, %v2457_v23  ;;  %v2533_v45 = vsel %vm1163_vm14, %v9843_v24, %v2502_v21  ;;  %v7158_v51 = vld [vmem:[#allocation6 + $0x38] sm:$0xf0] }
 0x37b   :  { %v9958_v40 = vor.u32 %v7158_v51, %v6233_v8  ;;  %v7194_v51 = vld [vmem:[#allocation2 + $0x10c] sm:$0xf0] }
 0x37c   :  { %v2478_v56 = vpack.c.bf16 %v2464_v4, %v2463_v6  ;;  %v12755_v6 = vld [vmem:[#allocation57_spill] sm:$0xff] }
 0x37e   :  { %2486 = vst [vmem:[#allocation2 + $0x1c8] sm:$0xff] %v2478_v56  ;;  %v6405_v33 = vld [vmem:[#allocation2 + $0x140] sm:$0xf]  ;;  %v7200_v28 = vld [vmem:[#allocation2 + $0x144] sm:$0xf]  ;;  %v12756_v56 = vld [vmem:[#allocation59_spill] sm:$0xff] }
 0x37f   :  { %v7202_v3 = vld [vmem:[#allocation2 + $0x14c] sm:$0xf0]  ;;  %v6407_v58 = vld [vmem:[#allocation2 + $0x150] sm:$0xf0] }
 0x380   :  { %v2100_v11 = vpop.permute.xlu2 %2099  ;;  %v6406_v38 = vor.u32 %v7202_v3, %v6405_v33  ;;  %v6410_v18 = vor.u32 %v7200_v28, %v6407_v58  ;;  %v9952_v23 = vpop.permute.xlu0 %2509 }
 0x381   :  { %v2112_v34 = vsel %vm12709_vm4, %v2100_v11, %v9397_v50  ;;  %v2116_v37 = vsel %vm12754_vm3, %v9302_v43, %v2100_v11  ;;  %v9956_v54 = vpop.permute.xlu1 %2511  ;;  %v7196_v50 = vld [vmem:[#allocation2 + $0x124] sm:$0xf]  ;;  %v2545_v43 = vmul.f32 %v9044_v44, %v2534_v57  ;;  %v2529_v33 = vsel %vm1163_vm14, %v2502_v21, %v9952_v23  ;;  %v6375_v21 = vld [vmem:[#allocation2 + $0x110] sm:$0xf0]  ;;  %vm12788_vm4 = vmmov %vm12770_vm1 }
 0x382   :  { %v2139_v4 = vmul.f32 %v12755_v6, %v2116_v37  ;;  %v2140_v47 = vmul.f32 %v12756_v56, %v2112_v34  ;;  %3100 = vmatpush.bf16.msra.mxu1 %v6406_v38  ;;  %3172 = vmatpush.bf16.msrb.mxu0 %v6410_v18  ;;  %v2530_v28 = vsel %vm1163_vm14, %v9854_v14, %v9956_v54  ;;  %v6373_v37 = vld [vmem:[#allocation2 + $0x100] sm:$0xf]  ;;  %v6519_v14 = vld [vmem:[#allocation2 + $0x230] sm:$0xf0]  ;;  %vm12796_vm3 = vmmov %vm12733_vm6 }
 0x383   :  { %v2541_v11 = vmul.f32 %v9044_v44, %v2533_v45  ;;  %v2542_v3 = vmul.f32 %v9047_v52, %v2529_v33  ;;  %v2546_v34 = vmul.f32 %v9047_v52, %v2530_v28  ;;  %v6390_v57 = vor.u32 %v7198_v49, %v6389_v32  ;;  %v1717_v33 = vpop.f32.mrf.mxu1 }
 0x384   :  { %v2148_v58 = vpack.c.bf16 %v2140_v47, %v2139_v4  ;;  %v6394_v8 = vor.u32 %v7196_v50, %v6391_v22  ;;  %3089 = vmatmul.bf16.gmra.mxu0 %v9958_v40  ;;  %3161 = vmatmul.bf16.gmra.mxu3 %v9958_v40  ;;  %v7228_v47 = vld [vmem:[#allocation2 + $0x224] sm:$0xf]  ;;  %v6374_v49 = vor.u32 %v7194_v51, %v6373_v37  ;;  %v6217_v51 = vld [vmem:[#allocation6 + $0x8] sm:$0xf] }
 0x385   :  { %v2557_v38 = vpack.c.bf16 %v2542_v3, %v2541_v11  ;;  %v2559_v18 = vpack.c.bf16 %v2546_v34, %v2545_v43  ;;  %v6378_v4 = vor.u32 %v7192_v12, %v6375_v21  ;;  %v9979_v50 = vor.u32 %v7151_v7, %v6211_v16  ;;  %v9981_v43 = vpop.f32.mrf.mxu0 }
 0x386   :  { %2156 = vst [vmem:[#allocation2 + $0xb8] sm:$0xff] %v2148_v58  ;;  %3101 = vmatpush.bf16.msra.mxu1 %v6390_v57  ;;  %3173 = vmatpush.bf16.msrb.mxu0 %v6394_v8  ;;  %v6522_v34 = vor.u32 %v7228_v47, %v6519_v14  ;;  %v9985_v37 = vadd.f32 %v1717_v33, %v1698_v61 }
 0x387   :  { %2565 = vst [vmem:[#allocation2 + $0x200] sm:$0xff] %v2557_v38 }
 0x388   :  { %v2094_v45 = vpop.permute.xlu2 %2093  ;;  %2567 = vst [vmem:[#allocation2 + $0x210] sm:$0xff] %v2559_v18  ;;  %v2180_v3 = vpop.permute.xlu0 %2179  ;;  %v7153_v18 = vld [vmem:[#allocation6 + $0x10] sm:$0xf0] }
 0x389   :  { %v2109_v22 = vsel %vm12757_vm12, %v2094_v45, %v9490_v31  ;;  %v2113_v32 = vsel %vm12758_vm2, %v9471_v27, %v2094_v45  ;;  %12759 = vst [vmem:[#allocation57_spill] sm:$0xff] %v9981_v43  ;;  %v2442_v58 = vpop.permute.xlu1 %2441  ;;  %v2192_v31 = vsel %vm823_vm11, %v2180_v3, %v9300_v55  ;;  %v2196_v27 = vsel %vm823_vm11, %v9187_v42, %v2180_v3  ;;  %vm12798_vm12 = vmmov %vm12796_vm3 }
 0x38a   :  { %v2127_v28 = vmul.f32 %v12755_v6, %v2113_v32  ;;  %v2128_v11 = vmul.f32 %v12756_v56, %v2109_v22  ;;  %3102 = vmatpush.bf16.msra.mxu1 %v6374_v49  ;;  %3174 = vmatpush.bf16.msrb.mxu0 %v6378_v4  ;;  %v2447_v7 = vsel %vm1082_vm5, %v9448_v15, %v2442_v58  ;;  %vm12800_vm2 = vmmov %vm12796_vm3 }
 0x38b   :  { %v2219_v12 = vmul.f32 %v12750_v46, %v2196_v27  ;;  %v2220_v61 = vmul.f32 %v12751_v13, %v2192_v31  ;;  %v2459_v57 = vsel %vm1082_vm5, %v2442_v58, %v9327_v36  ;;  %v2471_v55 = vmul.f32 %v9041_v20, %v2447_v7  ;;  %v10010_v33 = vpop.f32.mrf.mxu1 }
 0x38c   :  { %v2142_v16 = vpack.c.bf16 %v2128_v11, %v2127_v28  ;;  %v2472_v42 = vmul.f32 %v9052_v53, %v2459_v57  ;;  %12760 = vst [vmem:[#allocation59_spill] sm:$0xff] %v10010_v33 }
 0x38d   :  { %v2228_v8 = vpack.c.bf16 %v2220_v61, %v2219_v12  ;;  %3103 = vmatmul.bf16.vlgmr.msra.gmra.mxu1 %v9979_v50  ;;  %v1703_v4 = vpop.f32.mrf.mxu0  ;;  %v12761_v12 = vld [vmem:[#allocation60_spill] sm:$0xff] }
 0x38e   :  { %3197 = vmatpush.bf16.msrb.mxu1 %v6522_v34  ;;  %2150 = vst [vmem:[#allocation2 + $0x88] sm:$0xff] %v2142_v16  ;;  %v2482_v15 = vpack.c.bf16 %v2472_v42, %v2471_v55  ;;  %v6501_v21 = vld [vmem:[#allocation2 + $0x200] sm:$0xf]  ;;  %v7224_v38 = vld [vmem:[#allocation2 + $0x204] sm:$0xf]  ;;  %v10014_v34 = vor.u32 %v7153_v18, %v6217_v51 }
 0x38f   :  { %2236 = vst [vmem:[#allocation2 + $0xf8] sm:$0xff] %v2228_v8  ;;  %v7226_v14 = vld [vmem:[#allocation2 + $0x20c] sm:$0xf0]  ;;  %v6503_v45 = vld [vmem:[#allocation2 + $0x210] sm:$0xf0] }
 0x390   :  { %v2360_v47 = vpop.permute.xlu2 %2359  ;;  %2490 = vst [vmem:[#allocation2 + $0x1e8] sm:$0xff] %v2482_v15  ;;  %v6502_v22 = vor.u32 %v7226_v14, %v6501_v21  ;;  %v6506_v32 = vor.u32 %v7224_v38, %v6503_v45  ;;  %v2174_v3 = vpop.permute.xlu0 %2173  ;;  %v6223_v42 = vld [vmem:[#allocation6 + $0x24] sm:$0xf0]  ;;  %v7189_v15 = vld [vmem:[#allocation2 + $0xec] sm:$0xf] }
 0x391   :  { %v2366_v36 = vsel %vm1001_vm7, %v9690_v60, %v2360_v47  ;;  %v2378_v49 = vsel %vm1001_vm7, %v2360_v47, %v9671_v41  ;;  %v2176_v58 = vpop.permute.xlu1 %2175  ;;  %v2189_v60 = vsel %vm823_vm11, %v2174_v3, %v9357_v2  ;;  %v2193_v41 = vsel %vm823_vm11, %v9325_v62, %v2174_v3  ;;  %v6365_v62 = vld [vmem:[#allocation2 + $0xe8] sm:$0xf]  ;;  %v7223_v14 = vld [vmem:[#allocation2 + $0x1f4] sm:$0xf0]  ;;  %v12763_v3 = vld [vmem:[#allocation74_spill] sm:$0xff] }
 0x392   :  { %v2387_v28 = vmul.f32 %v8880_v48, %v2366_v36  ;;  %v2388_v11 = vmul.f32 %v8864_v35, %v2378_v49  ;;  %3126 = vmatpush.bf16.msra.mxu2 %v6502_v22  ;;  %3198 = vmatpush.bf16.msrb.mxu1 %v6506_v32  ;;  %v2190_v31 = vsel %vm823_vm11, %v2176_v58, %v9344_v25  ;;  %v7154_v25 = vld [vmem:[#allocation6 + $0x1c] sm:$0xf] }
 0x393   :  { %v2207_v7 = vmul.f32 %v12750_v46, %v2193_v41  ;;  %v2208_v16 = vmul.f32 %v12751_v13, %v2189_v60  ;;  %v2194_v61 = vsel %vm823_vm11, %v12761_v12, %v2176_v58  ;;  %v2212_v57 = vmul.f32 %v12751_v13, %v2190_v31  ;;  %v12764_v60 = vld [vmem:[#allocation72_spill] sm:$0xff]  ;;  %v12767_v12 = vld [vmem:[#allocation46_spill] sm:$0xff] }
 0x394   :  { %v2400_v27 = vpack.c.bf16 %v2388_v11, %v2387_v28  ;;  %v2211_v2 = vmul.f32 %v12750_v46, %v2194_v61  ;;  %3175 = vmatmul.bf16.vlgmr.msrb.gmra.mxu0 %v9979_v50  ;;  %v10041_v32 = vor.u32 %v7154_v25, %v6223_v42  ;;  %v1736_v11 = vpop.f32.mrf.mxu2 }
 0x395   :  { %v2222_v55 = vpack.c.bf16 %v2208_v16, %v2207_v7  ;;  %6531 = vmatmul.msk.bf16.vlgmr.msra.gmra.mxu2 %vm1682_vm0, %v10014_v34  ;;  %v10043_v28 = vpop.f32.mrf.mxu0  ;;  %v12766_v7 = vld [vmem:[#allocation47_spill] sm:$0xff] }
 0x396   :  { %2408 = vst [vmem:[#allocation2 + $0x198] sm:$0xff] %v2400_v27  ;;  %v2224_v8 = vpack.c.bf16 %v2212_v57, %v2211_v2  ;;  %v7191_v51 = vld [vmem:[#allocation2 + $0xf4] sm:$0xf0]  ;;  %v6367_v21 = vld [vmem:[#allocation2 + $0xf8] sm:$0xf0]  ;;  %v12769_v2 = vld [vmem:[#allocation53_spill] sm:$0xff] }
 0x397   :  { %2230 = vst [vmem:[#allocation2 + $0xc8] sm:$0xff] %v2222_v55  ;;  %v6366_v18 = vor.u32 %v7191_v51, %v6365_v62  ;;  %v6493_v47 = vld [vmem:[#allocation2 + $0x1e8] sm:$0xf]  ;;  %v6370_v45 = vor.u32 %v7189_v15, %v6367_v21  ;;  %v1722_v62 = vpop.f32.mrf.mxu1  ;;  %v6229_v15 = vld [vmem:[#allocation6 + $0x20] sm:$0xf] }
 0x398   :  { %v2282_v38 = vpop.permute.xlu2 %2281  ;;  %2232 = vst [vmem:[#allocation2 + $0xd8] sm:$0xff] %v2224_v8  ;;  %v6494_v22 = vor.u32 %v7223_v14, %v6493_v47  ;;  %v2440_v31 = vpop.permute.xlu0 %2439  ;;  %v10066_v8 = vadd.f32 %v1722_v62, %v1703_v4  ;;  %v7156_v47 = vld [vmem:[#allocation6 + $0x28] sm:$0xf0]  ;;  %v12772_v4 = vld [vmem:[#allocation38_spill] sm:$0xff] }
 0x399   :  { %v2287_v36 = vsel %vm920_vm9, %v9780_v9, %v2282_v38  ;;  %v2299_v49 = vsel %vm920_vm9, %v2282_v38, %v9669_v59  ;;  %12762 = vst [vmem:[#allocation60_spill] sm:$0xff] %v10043_v28  ;;  %3215 = vmatpush.bf16.msrb.mxu2 %v6366_v18  ;;  %3287 = vmatpush.bf16.msra.mxu1 %v6370_v45  ;;  %v2098_v27 = vpop.permute.xlu1 %2097  ;;  %v12777_v62 = vld [vmem:[#allocation50_spill] sm:$0xff] }
 0x39a   :  { %v2311_v58 = vmul.f32 %v12763_v3, %v2287_v36  ;;  %v2312_v41 = vmul.f32 %v12764_v60, %v2299_v49  ;;  %v10048_v9 = vadd.f32 %v1736_v11, %v9985_v37  ;;  %v2446_v59 = vsel %vm1082_vm5, %v9530_v30, %v2440_v31  ;;  %3239 = vmatpush.bf16.msrb.mxu3 %v6494_v22 }
 0x39b   :  { %v2458_v16 = vsel %vm1082_vm5, %v2440_v31, %v12766_v7  ;;  %v2111_v61 = vsel %vm12768_vm10, %v2098_v27, %v12767_v12  ;;  %v2115_v57 = vsel %vm12770_vm1, %v12769_v2, %v2098_v27  ;;  %v2467_v55 = vmul.f32 %v9041_v20, %v2446_v59  ;;  %v12774_v27 = vld [vmem:[#allocation65_spill] sm:$0xff]  ;;  %v12775_v7 = vld [vmem:[#allocation66_spill] sm:$0xff]  ;;  %vm12802_vm10 = vmmov %vm12800_vm2 }
 0x39c   :  { %12765 = vst [vmem:[#allocation91_spill] sm:$0xff] %v10048_v9  ;;  %v2322_v37 = vpack.c.bf16 %v2312_v41, %v2311_v58  ;;  %v2468_v25 = vmul.f32 %v9052_v53, %v2458_v16  ;;  %v2135_v30 = vmul.f32 %v12755_v6, %v2115_v57  ;;  %v2136_v42 = vmul.f32 %v12756_v56, %v2111_v61  ;;  %v10075_v31 = vpop.f32.mrf.mxu2  ;;  %v12776_v57 = vld [vmem:[#allocation34_spill] sm:$0xff]  ;;  %vm12809_vm1 = vmmov %vm12800_vm2 }
 0x39d   :  { %3108 = vmatmul.bf16.gmra.mxu1 %v10041_v32  ;;  %v1774_v41 = vpop.f32.mrf.mxu0  ;;  %12773 = vst [vmem:[#allocation47_spill] sm:$0xff] %v10075_v31  ;;  %v10079_v2 = vor.u32 %v7156_v47, %v6229_v15 }
 0x39e   :  { %2330 = vst [vmem:[#allocation2 + $0x168] sm:$0xff] %v2322_v37  ;;  %v2480_v51 = vpack.c.bf16 %v2468_v25, %v2467_v55  ;;  %v2146_v21 = vpack.c.bf16 %v2136_v42, %v2135_v30  ;;  %v6349_v38 = vld [vmem:[#allocation2 + $0xc8] sm:$0xf]  ;;  %v7185_v18 = vld [vmem:[#allocation2 + $0xcc] sm:$0xf]  ;;  %v12778_v55 = vld [vmem:[#allocation48_spill] sm:$0xff] }
 0x39f   :  { %v7187_v45 = vld [vmem:[#allocation2 + $0xd4] sm:$0xf0]  ;;  %v6351_v36 = vld [vmem:[#allocation2 + $0xd8] sm:$0xf0]  ;;  %v10090_v30 = vpop.f32.mrf.mxu1 }
 0x3a0   :  { %2488 = vst [vmem:[#allocation2 + $0x1d8] sm:$0xff] %v2480_v51  ;;  %v2016_v14 = vpop.permute.xlu2 %2015  ;;  %v6350_v11 = vor.u32 %v7187_v45, %v6349_v38  ;;  %v6354_v58 = vor.u32 %v7185_v18, %v6351_v36  ;;  %v2362_v12 = vpop.permute.xlu0 %2361  ;;  %v7183_v36 = vld [vmem:[#allocation2 + $0xb4] sm:$0xf0] }
 0x3a1   :  { %2154 = vst [vmem:[#allocation2 + $0xa8] sm:$0xff] %v2146_v21  ;;  %v2030_v49 = vsel %vm12771_vm15, %v2016_v14, %v9650_v63  ;;  %v2034_v22 = vsel %vm12733_vm6, %v12772_v4, %v2016_v14  ;;  %v2364_v61 = vpop.permute.xlu1 %2363  ;;  %v2367_v63 = vsel %vm1001_vm7, %v12776_v57, %v2362_v12  ;;  %v2379_v37 = vsel %vm1001_vm7, %v2362_v12, %v12777_v62  ;;  %v12780_v21 = vld [vmem:[#allocation78_spill] sm:$0xff]  ;;  %v6477_v14 = vld [vmem:[#allocation2 + $0x1c8] sm:$0xf]  ;;  %v12781_v57 = vld [vmem:[#allocation80_spill] sm:$0xff] }
 0x3a2   :  { %v2051_v59 = vmul.f32 %v12774_v27, %v2034_v22  ;;  %v2052_v16 = vmul.f32 %v12775_v7, %v2030_v49  ;;  %3216 = vmatpush.bf16.msrb.mxu2 %v6350_v11  ;;  %3288 = vmatpush.bf16.msra.mxu1 %v6354_v58  ;;  %v2368_v25 = vsel %vm1001_vm7, %v12778_v55, %v2364_v61  ;;  %v6335_v49 = vld [vmem:[#allocation2 + $0xb8] sm:$0xf0]  ;;  %v7157_v11 = vld [vmem:[#allocation6 + $0x34] sm:$0xf]  ;;  %v6235_v58 = vld [vmem:[#allocation6 + $0x3c] sm:$0xf0] }
 0x3a3   :  { %12779 = vst [vmem:[#allocation46_spill] sm:$0xff] %v10090_v30  ;;  %v2391_v51 = vmul.f32 %v8880_v48, %v2367_v63  ;;  %v2392_v15 = vmul.f32 %v8864_v35, %v2379_v37  ;;  %v2380_v38 = vsel %vm1001_vm7, %v2364_v61, %v12780_v21  ;;  %v2395_v18 = vmul.f32 %v8880_v48, %v2368_v25  ;;  %v12782_v62 = vld [vmem:[#allocation29_spill] sm:$0xff]  ;;  %v12784_v21 = vld [vmem:[#allocation64_spill] sm:$0xff]  ;;  %vm12811_vm15 = vmmov %vm12809_vm1 }
 0x3a4   :  { %v2064_v42 = vpack.c.bf16 %v2052_v16, %v2051_v59  ;;  %v2396_v47 = vmul.f32 %v8864_v35, %v2380_v38  ;;  %3180 = vmatmul.bf16.gmra.mxu0 %v10041_v32  ;;  %vm12851_vm6 = vmmov %vm12788_vm4 }
 0x3a5   :  { %v2402_v45 = vpack.c.bf16 %v2392_v15, %v2391_v51  ;;  %6532 = vmatmul.msk.bf16.gmra.mxu2 %vm1682_vm0, %v10079_v2  ;;  %v12783_v51 = vld [vmem:[#allocation62_spill] sm:$0xff] }
 0x3a6   :  { %2072 = vst [vmem:[#allocation2 + $0x58] sm:$0xff] %v2064_v42  ;;  %v2404_v4 = vpack.c.bf16 %v2396_v47, %v2395_v18  ;;  %v1755_v42 = vpop.f32.mrf.mxu3 }
 0x3a7   :  { %v7219_v22 = vld [vmem:[#allocation2 + $0x1d4] sm:$0xf0]  ;;  %2410 = vst [vmem:[#allocation2 + $0x1a8] sm:$0xff] %v2402_v45  ;;  %v1775_v45 = vadd.f32 %v1774_v41, %v1755_v42 }
 0x3a8   :  { %v1938_v59 = vpop.permute.xlu2 %1937  ;;  %v6333_v16 = vld [vmem:[#allocation2 + $0xa8] sm:$0xf]  ;;  %v6478_v12 = vor.u32 %v7219_v22, %v6477_v14  ;;  %v7181_v61 = vld [vmem:[#allocation2 + $0xac] sm:$0xf]  ;;  %2412 = vst [vmem:[#allocation2 + $0x1b8] sm:$0xff] %v2404_v4  ;;  %v2096_v18 = vpop.permute.xlu0 %2095  ;;  %v10110_v14 = vor.u32 %v7157_v11, %v6235_v58  ;;  %v12785_v4 = vld [vmem:[#allocation43_spill] sm:$0xff] }
 0x3a9   :  { %v1951_v63 = vsel %vm580_vm8, %v1938_v59, %v12781_v57  ;;  %v1955_v37 = vsel %vm580_vm8, %v12782_v62, %v1938_v59  ;;  %v6334_v55 = vor.u32 %v7183_v36, %v6333_v16  ;;  %v6338_v25 = vor.u32 %v7181_v61, %v6335_v49  ;;  %v2358_v47 = vpop.permute.xlu1 %2357  ;;  %v12787_v57 = vld [vmem:[#allocation37_spill] sm:$0xff]  ;;  %v12789_v49 = vld [vmem:[#allocation76_spill] sm:$0xff]  ;;  %v10121_v16 = vpop.f32.mrf.mxu0  ;;  %v12791_v61 = vld [vmem:[#allocation39_spill] sm:$0xff] }
 0x3aa   :  { %v1975_v15 = vmul.f32 %v12783_v51, %v1955_v37  ;;  %v1976_v38 = vmul.f32 %v12784_v21, %v1951_v63  ;;  %3240 = vmatpush.bf16.msrb.mxu3 %v6478_v12  ;;  %v2110_v22 = vsel %vm12786_vm13, %v2096_v18, %v12785_v4  ;;  %v2114_v36 = vsel %vm12788_vm4, %v12787_v57, %v2096_v18  ;;  %v1793_v12 = vpop.f32.mrf.mxu1  ;;  %v1741_v62 = vpop.f32.mrf.mxu2  ;;  %v6241_v4 = vld [vmem:[#allocation6 + $0x38] sm:$0xf]  ;;  %vm12853_vm13 = vmmov %vm12788_vm4 }
 0x3ab   :  { %3217 = vmatpush.bf16.msrb.mxu2 %v6334_v55  ;;  %3289 = vmatpush.bf16.msra.mxu1 %v6338_v25  ;;  %v2365_v59 = vsel %vm1001_vm7, %v12789_v49, %v2358_v47  ;;  %12790 = vst [vmem:[#allocation53_spill] sm:$0xff] %v10121_v16  ;;  %v2131_v41 = vmul.f32 %v12755_v6, %v2114_v36 }
 0x3ac   :  { %v1986_v11 = vpack.c.bf16 %v1976_v38, %v1975_v15  ;;  %v2132_v58 = vmul.f32 %v12756_v56, %v2110_v22  ;;  %v2377_v63 = vsel %vm1001_vm7, %v2358_v47, %v12791_v61  ;;  %v2383_v37 = vmul.f32 %v8880_v48, %v2365_v59  ;;  %v7159_v22 = vld [vmem:[#allocation6 + $0x40] sm:$0xf0]  ;;  %v12795_v61 = vld [vmem:[#allocation35_spill] sm:$0xff] }
 0x3ad   :  { %v2384_v55 = vmul.f32 %v8864_v35, %v2377_v63  ;;  %v10131_v25 = vadd.f32 %v1741_v62, %v10066_v8  ;;  %v10133_v42 = vadd.f32 %v1793_v12, %v1775_v45  ;;  %3113 = vmatmul.bf16.gmra.mxu1 %v10110_v14 }
 0x3ae   :  { %1994 = vst [vmem:[#allocation2 + $0x28] sm:$0xff] %v1986_v11  ;;  %v2144_v15 = vpack.c.bf16 %v2132_v58, %v2131_v41  ;;  %v6461_v18 = vld [vmem:[#allocation2 + $0x1a8] sm:$0xf]  ;;  %v10142_v49 = vpop.f32.mrf.mxu3  ;;  %v10146_v58 = vor.u32 %v7159_v22, %v6241_v4 }
 0x3af   :  { %12792 = vst [vmem:[#allocation38_spill] sm:$0xff] %v10131_v25  ;;  %v2398_v38 = vpack.c.bf16 %v2384_v55, %v2383_v37  ;;  %v7215_v57 = vld [vmem:[#allocation2 + $0x1b4] sm:$0xf0] }
 0x3b0   :  { %12793 = vst [vmem:[#allocation34_spill] sm:$0xff] %v10133_v42  ;;  %v1936_v47 = vpop.permute.xlu2 %1935  ;;  %v6462_v45 = vor.u32 %v7215_v57, %v6461_v18  ;;  %v2018_v11 = vpop.permute.xlu0 %2017  ;;  %v12801_v55 = vld [vmem:[#allocation75_spill] sm:$0xff] }
 0x3b1   :  { %2152 = vst [vmem:[#allocation2 + $0x98] sm:$0xff] %v2144_v15  ;;  %v1950_v36 = vsel %vm580_vm8, %v1936_v47, %v9824_v19  ;;  %v1954_v8 = vsel %vm580_vm8, %v9729_v29, %v1936_v47  ;;  %v2020_v41 = vpop.permute.xlu1 %2019  ;;  %v2031_v63 = vsel %vm12796_vm3, %v2018_v11, %v12795_v61  ;;  %v12797_v19 = vld [vmem:[#allocation49_spill] sm:$0xff]  ;;  %vm12861_vm3 = vmmov %vm12788_vm4 }
 0x3b2   :  { %2406 = vst [vmem:[#allocation2 + $0x188] sm:$0xff] %v2398_v38  ;;  %v1971_v59 = vmul.f32 %v12783_v51, %v1954_v8  ;;  %v1972_v12 = vmul.f32 %v12784_v21, %v1950_v36  ;;  %v2035_v62 = vsel %vm12798_vm12, %v12797_v19, %v2018_v11  ;;  %3241 = vmatpush.bf16.msrb.mxu3 %v6462_v45  ;;  %v12799_v29 = vld [vmem:[#allocation77_spill] sm:$0xff]  ;;  %v10160_v38 = vpop.f32.mrf.mxu1  ;;  %v10165_v57 = vpop.f32.mrf.mxu2  ;;  %vm12866_vm12 = vmmov %vm12861_vm3 }
 0x3b3   :  { %12794 = vst [vmem:[#allocation50_spill] sm:$0xff] %v10142_v49  ;;  %v2032_v37 = vsel %vm12800_vm2, %v2020_v41, %v12799_v29  ;;  %v2036_v15 = vsel %vm12802_vm10, %v12801_v55, %v2020_v41  ;;  %v2055_v4 = vmul.f32 %v12774_v27, %v2035_v62  ;;  %v2056_v22 = vmul.f32 %v12775_v7, %v2031_v63  ;;  %v1779_v8 = vpop.f32.mrf.mxu0  ;;  %v6317_v11 = vld [vmem:[#allocation2 + $0x88] sm:$0xf]  ;;  %v7177_v41 = vld [vmem:[#allocation2 + $0x8c] sm:$0xf]  ;;  %vm12868_vm2 = vmmov %vm12861_vm3 }
 0x3b4   :  { %12803 = vst [vmem:[#allocation48_spill] sm:$0xff] %v10160_v38  ;;  %v1984_v18 = vpack.c.bf16 %v1972_v12, %v1971_v59  ;;  %v2059_v47 = vmul.f32 %v12774_v27, %v2036_v15  ;;  %v2060_v36 = vmul.f32 %v12775_v7, %v2032_v37  ;;  %3185 = vmatmul.bf16.gmra.mxu0 %v10110_v14  ;;  %v7211_v29 = vld [vmem:[#allocation2 + $0x194] sm:$0xf0]  ;;  %vm12870_vm10 = vmmov %vm12868_vm2 }
 0x3b5   :  { %12804 = vst [vmem:[#allocation78_spill] sm:$0xff] %v10165_v57  ;;  %v2066_v45 = vpack.c.bf16 %v2056_v22, %v2055_v4  ;;  %6533 = vmatmul.msk.bf16.gmra.mxu2 %vm1682_vm0, %v10146_v58  ;;  %v12805_v22 = vld [vmem:[#allocation55_spill] sm:$0xff]  ;;  %v7165_v38 = vld [vmem:[#allocation2 + $0x2c] sm:$0xf] }
 0x3b6   :  { %1992 = vst [vmem:[#allocation2 + $0x18] sm:$0xff] %v1984_v18  ;;  %v2068_v59 = vpack.c.bf16 %v2060_v36, %v2059_v47  ;;  %v1760_v4 = vpop.f32.mrf.mxu3  ;;  %v12806_v36 = vld [vmem:[#allocation54_spill] sm:$0xff] }
 0x3b7   :  { %2074 = vst [vmem:[#allocation2 + $0x68] sm:$0xff] %v2066_v45 }
 0x3b8   :  { %v7179_v12 = vld [vmem:[#allocation2 + $0x94] sm:$0xf0]  ;;  %v6319_v61 = vld [vmem:[#allocation2 + $0x98] sm:$0xf0]  ;;  %v2518_v63 = vpop.permute.xlu2 %2517  ;;  %2076 = vst [vmem:[#allocation2 + $0x78] sm:$0xff] %v2068_v59  ;;  %v2284_v42 = vpop.permute.xlu0 %2283 }
 0x3b9   :  { %v6318_v19 = vor.u32 %v7179_v12, %v6317_v11  ;;  %v6445_v62 = vld [vmem:[#allocation2 + $0x188] sm:$0xf]  ;;  %v6322_v55 = vor.u32 %v7177_v41, %v6319_v61  ;;  %v2525_v37 = vsel %vm1163_vm14, %v9952_v23, %v2518_v63  ;;  %v2537_v15 = vsel %vm1163_vm14, %v2518_v63, %v9843_v24  ;;  %v2014_v11 = vpop.permute.xlu1 %2013  ;;  %v12807_v23 = vld [vmem:[#allocation83_spill] sm:$0xff]  ;;  %v12810_v63 = vld [vmem:[#allocation32_spill] sm:$0xff] }
 0x3ba   :  { %v6446_v18 = vor.u32 %v7211_v29, %v6445_v62  ;;  %v2543_v47 = vmul.f32 %v12805_v22, %v2525_v37  ;;  %v2544_v45 = vmul.f32 %v12806_v36, %v2537_v15  ;;  %v1780_v12 = vadd.f32 %v1779_v8, %v1760_v4  ;;  %v12808_v24 = vld [vmem:[#allocation79_spill] sm:$0xff]  ;;  %v1798_v37 = vpop.f32.mrf.mxu1 }
 0x3bb   :  { %3218 = vmatpush.bf16.msrb.mxu2 %v6318_v19  ;;  %3290 = vmatpush.bf16.msra.mxu1 %v6322_v55  ;;  %v2288_v59 = vsel %vm920_vm9, %v9782_v17, %v2284_v42  ;;  %v2300_v41 = vsel %vm920_vm9, %v2284_v42, %v12807_v23  ;;  %v2029_v61 = vsel %vm12809_vm1, %v2014_v11, %v12808_v24  ;;  %v1812_v55 = vpop.f32.mrf.mxu2  ;;  %vm12873_vm1 = vmmov %vm12868_vm2 }
 0x3bc   :  { %3242 = vmatpush.bf16.msrb.mxu3 %v6446_v18  ;;  %v2033_v19 = vsel %vm12811_vm15, %v12810_v63, %v2014_v11  ;;  %v2558_v62 = vpack.c.bf16 %v2544_v45, %v2543_v47  ;;  %v2315_v8 = vmul.f32 %v12763_v3, %v2288_v59  ;;  %v2316_v29 = vmul.f32 %v12764_v60, %v2300_v41  ;;  %v10199_v45 = vpop.f32.mrf.mxu0 }
 0x3bd   :  { %v2047_v17 = vmul.f32 %v12774_v27, %v2033_v19  ;;  %v2048_v42 = vmul.f32 %v12775_v7, %v2029_v61  ;;  %v10195_v15 = vadd.f32 %v1798_v37, %v1780_v12  ;;  %6534 = vmatmul.msk.bf16.vlgmr.msrb.gmra.mxu1 %vm1682_vm0, %v10014_v34  ;;  %12813 = vst [vmem:[#allocation29_spill] sm:$0xff] %v10199_v45 }
 0x3be   :  { %2566 = vst [vmem:[#allocation2 + $0x208] sm:$0xff] %v2558_v62  ;;  %v2324_v18 = vpack.c.bf16 %v2316_v29, %v2315_v8  ;;  %v6301_v11 = vld [vmem:[#allocation2 + $0x68] sm:$0xf]  ;;  %v7173_v47 = vld [vmem:[#allocation2 + $0x6c] sm:$0xf]  ;;  %v10210_v8 = vpop.f32.mrf.mxu3 }
 0x3bf   :  { %12812 = vst [vmem:[#allocation80_spill] sm:$0xff] %v10195_v15  ;;  %v2062_v4 = vpack.c.bf16 %v2048_v42, %v2047_v17  ;;  %v7175_v59 = vld [vmem:[#allocation2 + $0x74] sm:$0xf0]  ;;  %v6303_v23 = vld [vmem:[#allocation2 + $0x78] sm:$0xf0] }
 0x3c0   :  { %2332 = vst [vmem:[#allocation2 + $0x178] sm:$0xff] %v2324_v18  ;;  %v6302_v41 = vor.u32 %v7175_v59, %v6301_v11  ;;  %v6306_v24 = vor.u32 %v7173_v47, %v6303_v23  ;;  %v2278_v63 = vpop.permute.xlu0 %2277  ;;  %v6287_v59 = vld [vmem:[#allocation2 + $0x58] sm:$0xf0]  ;;  %v6381_v15 = vld [vmem:[#allocation2 + $0x108] sm:$0xf] }
 0x3c1   :  { %2070 = vst [vmem:[#allocation2 + $0x48] sm:$0xff] %v2062_v4  ;;  %v2280_v61 = vpop.permute.xlu1 %2279  ;;  %v2285_v12 = vsel %vm920_vm9, %v9910_v39, %v2278_v63  ;;  %v2297_v19 = vsel %vm920_vm9, %v2278_v63, %v9801_v5  ;;  %v6429_v4 = vld [vmem:[#allocation2 + $0x168] sm:$0xf] }
 0x3c2   :  { %3219 = vmatpush.bf16.msrb.mxu2 %v6302_v41  ;;  %3291 = vmatpush.bf16.msra.mxu1 %v6306_v24  ;;  %v2286_v62 = vsel %vm920_vm9, %v9912_v1, %v2280_v61  ;;  %12814 = vst [vmem:[#allocation43_spill] sm:$0xff] %v10210_v8  ;;  %v2303_v29 = vmul.f32 %v12763_v3, %v2285_v12  ;;  %v7171_v1 = vld [vmem:[#allocation2 + $0x54] sm:$0xf0] }
 0x3c3   :  { %v2304_v17 = vmul.f32 %v12764_v60, %v2297_v19  ;;  %v2298_v39 = vsel %vm920_vm9, %v2280_v61, %v9893_v26  ;;  %v2307_v37 = vmul.f32 %v12763_v3, %v2286_v62  ;;  %v10218_v42 = vpop.f32.mrf.mxu2  ;;  %v12816_v62 = vld [vmem:[#allocation81_spill] sm:$0xff] }
 0x3c4   :  { %12815 = vst [vmem:[#allocation37_spill] sm:$0xff] %v10218_v42  ;;  %v2308_v5 = vmul.f32 %v12764_v60, %v2298_v39  ;;  %v1850_v26 = vpop.f32.mrf.mxu0 }
 0x3c5   :  { %v2318_v18 = vpack.c.bf16 %v2304_v17, %v2303_v29  ;;  %v12817_v17 = vld [vmem:[#allocation33_spill] sm:$0xff] }
 0x3c6   :  { %v2320_v11 = vpack.c.bf16 %v2308_v5, %v2307_v37  ;;  %v1831_v5 = vpop.f32.mrf.mxu3 }
 0x3c7   :  { %v7207_v47 = vld [vmem:[#allocation2 + $0x174] sm:$0xf0]  ;;  %2326 = vst [vmem:[#allocation2 + $0x148] sm:$0xff] %v2318_v18 }
 0x3c8   :  { %v6285_v23 = vld [vmem:[#allocation2 + $0x48] sm:$0xf]  ;;  %v6430_v41 = vor.u32 %v7207_v47, %v6429_v4  ;;  %v7169_v24 = vld [vmem:[#allocation2 + $0x4c] sm:$0xf]  ;;  %2328 = vst [vmem:[#allocation2 + $0x158] sm:$0xff] %v2320_v11  ;;  %v1940_v61 = vpop.permute.xlu0 %1939  ;;  %v12818_v11 = vld [vmem:[#allocation84_spill] sm:$0xff] }
 0x3c9   :  { %v6286_v63 = vor.u32 %v7171_v1, %v6285_v23  ;;  %v6290_v12 = vor.u32 %v7169_v24, %v6287_v59  ;;  %v1934_v19 = vpop.permute.xlu1 %1933  ;;  %v1952_v29 = vsel %vm580_vm8, %v1940_v61, %v12816_v62  ;;  %v1956_v39 = vsel %vm580_vm8, %v12817_v17, %v1940_v61 }
 0x3ca   :  { %3243 = vmatpush.bf16.msrb.mxu3 %v6430_v41  ;;  %v1949_v37 = vsel %vm580_vm8, %v1934_v19, %v9822_v10  ;;  %v1979_v18 = vmul.f32 %v12783_v51, %v1956_v39  ;;  %v1980_v4 = vmul.f32 %v12784_v21, %v1952_v29  ;;  %v1953_v1 = vsel %vm580_vm8, %v12818_v11, %v1934_v19  ;;  %v10239_v10 = vpop.f32.mrf.mxu1  ;;  %v6397_v39 = vld [vmem:[#allocation2 + $0x128] sm:$0xf]  ;;  %v12821_v11 = vld [vmem:[#allocation86_spill] sm:$0xff] }
 0x3cb   :  { %3220 = vmatpush.bf16.msrb.mxu2 %v6286_v63  ;;  %3292 = vmatpush.bf16.msra.mxu1 %v6290_v12  ;;  %v1968_v47 = vmul.f32 %v12784_v21, %v1949_v37  ;;  %v1817_v59 = vpop.f32.mrf.mxu2  ;;  %v1967_v23 = vmul.f32 %v12783_v51, %v1953_v1  ;;  %v1832_v41 = vadd.f32 %v1831_v5, %v1812_v55  ;;  %v7199_v37 = vld [vmem:[#allocation2 + $0x134] sm:$0xf0]  ;;  %v12822_v5 = vld [vmem:[#allocation82_spill] sm:$0xff]  ;;  %v12824_v1 = vld [vmem:[#allocation85_spill] sm:$0xff] }
 0x3cc   :  { %v1988_v24 = vpack.c.bf16 %v1980_v4, %v1979_v18  ;;  %12819 = vst [vmem:[#allocation76_spill] sm:$0xff] %v10239_v10  ;;  %v12823_v4 = vld [vmem:[#allocation87_spill] sm:$0xff] }
 0x3cd   :  { %6535 = vmatmul.msk.bf16.gmra.mxu1 %vm1682_vm0, %v10079_v2  ;;  %v1982_v63 = vpack.c.bf16 %v1968_v47, %v1967_v23  ;;  %v10241_v61 = vadd.f32 %v1850_v26, %v1832_v41  ;;  %v10255_v23 = vpop.f32.mrf.mxu0 }
 0x3ce   :  { %v6413_v12 = vld [vmem:[#allocation2 + $0x148] sm:$0xf]  ;;  %1996 = vst [vmem:[#allocation2 + $0x38] sm:$0xff] %v1988_v24  ;;  %v10257_v41 = vpop.f32.mrf.mxu3 }
 0x3cf   :  { %12820 = vst [vmem:[#allocation39_spill] sm:$0xff] %v10241_v61  ;;  %v7203_v62 = vld [vmem:[#allocation2 + $0x154] sm:$0xf0] }
 0x3d0   :  { %1990 = vst [vmem:[#allocation2 + $0x8] sm:$0xff] %v1982_v63  ;;  %v6414_v19 = vor.u32 %v7203_v62, %v6413_v12  ;;  %v2522_v29 = vpop.permute.xlu0 %2521 }
 0x3d1   :  { %v2524_v17 = vpop.permute.xlu1 %2523  ;;  %v2527_v55 = vsel %vm1163_vm14, %v12821_v11, %v2522_v29  ;;  %v2539_v18 = vsel %vm1163_vm14, %v2522_v29, %v12822_v5  ;;  %12825 = vst [vmem:[#allocation35_spill] sm:$0xff] %v10255_v23  ;;  %v6398_v29 = vor.u32 %v7199_v37, %v6397_v39 }
 0x3d2   :  { %3244 = vmatpush.bf16.msrb.mxu3 %v6414_v19  ;;  %v2528_v26 = vsel %vm1163_vm14, %v12823_v4, %v2524_v17  ;;  %v2540_v47 = vsel %vm1163_vm14, %v2524_v17, %v12824_v1  ;;  %12826 = vst [vmem:[#allocation49_spill] sm:$0xff] %v10257_v41  ;;  %v2551_v24 = vmul.f32 %v12805_v22, %v2527_v55  ;;  %v6269_v4 = vld [vmem:[#allocation2 + $0x28] sm:$0xf]  ;;  %v7195_v17 = vld [vmem:[#allocation2 + $0x114] sm:$0xf0] }
 0x3d3   :  { %v2552_v63 = vmul.f32 %v12806_v36, %v2539_v18  ;;  %v2555_v12 = vmul.f32 %v12805_v22, %v2528_v26  ;;  %v2556_v62 = vmul.f32 %v12806_v36, %v2540_v47  ;;  %v10263_v19 = vpop.f32.mrf.mxu2  ;;  %v1869_v18 = vpop.f32.mrf.mxu1  ;;  %v6382_v26 = vor.u32 %v7195_v17, %v6381_v15  ;;  %v6495_v17 = vld [vmem:[#allocation2 + $0x1f8] sm:$0xf0] }
 0x3d4   :  { %12827 = vst [vmem:[#allocation77_spill] sm:$0xff] %v10263_v19 }
 0x3d5   :  { %v2562_v11 = vpack.c.bf16 %v2552_v63, %v2551_v24  ;;  %v2564_v5 = vpack.c.bf16 %v2556_v62, %v2555_v12  ;;  %v7167_v1 = vld [vmem:[#allocation2 + $0x34] sm:$0xf0]  ;;  %v6271_v10 = vld [vmem:[#allocation2 + $0x38] sm:$0xf0]  ;;  %v12828_v24 = vld [vmem:[#allocation90_spill] sm:$0xff] }
 0x3d6   :  { %3245 = vmatpush.bf16.msrb.mxu3 %v6398_v29  ;;  %v6270_v55 = vor.u32 %v7167_v1, %v6269_v4  ;;  %v6274_v16 = vor.u32 %v7165_v38, %v6271_v10  ;;  %v7221_v12 = vld [vmem:[#allocation2 + $0x1ec] sm:$0xf]  ;;  %v1836_v62 = vpop.f32.mrf.mxu3  ;;  %v7163_v10 = vld [vmem:[#allocation2 + $0x14] sm:$0xf0]  ;;  %v6255_v29 = vld [vmem:[#allocation2 + $0x18] sm:$0xf0]  ;;  %v1855_v1 = vpop.f32.mrf.mxu0 }
 0x3d7   :  { %2570 = vst [vmem:[#allocation2 + $0x228] sm:$0xff] %v2562_v11  ;;  %v6253_v47 = vld [vmem:[#allocation2 + $0x8] sm:$0xf]  ;;  %v7161_v39 = vld [vmem:[#allocation2 + $0xc] sm:$0xf]  ;;  %v1837_v11 = vadd.f32 %v1836_v62, %v1817_v59 }
 0x3d8   :  { %2572 = vst [vmem:[#allocation2 + $0x238] sm:$0xff] %v2564_v5  ;;  %v2520_v49 = vpop.permute.xlu0 %2519  ;;  %3221 = vmatpush.bf16.msrb.mxu2 %v6270_v55  ;;  %3293 = vmatpush.bf16.msra.mxu1 %v6274_v16  ;;  %v6254_v5 = vor.u32 %v7163_v10, %v6253_v47  ;;  %v6258_v4 = vor.u32 %v7161_v39, %v6255_v29  ;;  %v7217_v62 = vld [vmem:[#allocation2 + $0x1cc] sm:$0xf]  ;;  %v6463_v29 = vld [vmem:[#allocation2 + $0x1b8] sm:$0xf0] }
 0x3d9   :  { %v2526_v37 = vsel %vm1163_vm14, %v9956_v54, %v2520_v49  ;;  %v2538_v63 = vsel %vm1163_vm14, %v2520_v49, %v12828_v24  ;;  %v6498_v49 = vor.u32 %v7221_v12, %v6495_v17  ;;  %v7213_v12 = vld [vmem:[#allocation2 + $0x1ac] sm:$0xf] }
 0x3da   :  { %3246 = vmatpush.bf16.msrb.mxu3 %v6382_v26  ;;  %v2547_v38 = vmul.f32 %v12805_v22, %v2526_v37  ;;  %v2548_v15 = vmul.f32 %v12806_v36, %v2538_v63  ;;  %v10276_v26 = vadd.f32 %v1855_v1, %v1837_v11  ;;  %v6479_v63 = vld [vmem:[#allocation2 + $0x1d8] sm:$0xf0]  ;;  %v7209_v17 = vld [vmem:[#allocation2 + $0x18c] sm:$0xf]  ;;  %v12855_v36 = vld [vmem:[#allocation58_spill] sm:$0xff] }
 0x3db   :  { %v1888_v16 = vpop.f32.mrf.mxu2  ;;  %v10279_v10 = vpop.f32.mrf.mxu1 }
 0x3dc   :  { %v1889_v54 = vadd.f32 %v1888_v16, %v1869_v18  ;;  %v2560_v55 = vpack.c.bf16 %v2548_v15, %v2547_v38  ;;  %12829 = vst [vmem:[#allocation75_spill] sm:$0xff] %v10276_v26  ;;  %3222 = vmatpush.bf16.msrb.mxu2 %v6254_v5  ;;  %3294 = vmatpush.bf16.msra.mxu1 %v6258_v4  ;;  %v12830_v38 = vld [vmem:[#allocation88_spill] sm:$0xff]  ;;  %v6509_v4 = vld [vmem:[#allocation2 + $0x208] sm:$0xf] }
 0x3dd   :  { %6536 = vmatmul.msk.bf16.gmra.mxu1 %vm1682_vm0, %v10146_v58  ;;  %3247 = vmatmul.bf16.vlgmr.msrb.gmra.mxu3 %v9979_v50  ;;  %v6482_v15 = vor.u32 %v7217_v62, %v6479_v63  ;;  %12831 = vst [vmem:[#allocation83_spill] sm:$0xff] %v10279_v10  ;;  %v6466_v5 = vor.u32 %v7213_v12, %v6463_v29  ;;  %v7205_v29 = vld [vmem:[#allocation2 + $0x16c] sm:$0xf] }
 0x3de   :  { %v6525_v37 = vld [vmem:[#allocation2 + $0x228] sm:$0xf]  ;;  %v7229_v24 = vld [vmem:[#allocation2 + $0x22c] sm:$0xf]  ;;  %2568 = vst [vmem:[#allocation2 + $0x218] sm:$0xff] %v2560_v55  ;;  %v10281_v16 = vpop.f32.mrf.mxu3 }
 0x3df   :  { %v7231_v59 = vld [vmem:[#allocation2 + $0x234] sm:$0xf0]  ;;  %v6527_v47 = vld [vmem:[#allocation2 + $0x238] sm:$0xf0]  ;;  %3223 = vmatmul.bf16.vlgmr.msrb.gmra.mxu2 %v12830_v38  ;;  %12832 = vst [vmem:[#allocation79_spill] sm:$0xff] %v10281_v16 }
 0x3e0   :  { %3311 = vmatpush.bf16.msra.mxu2 %v6498_v49  ;;  %v6526_v39 = vor.u32 %v7231_v59, %v6525_v37  ;;  %v6530_v18 = vor.u32 %v7229_v24, %v6527_v47  ;;  %v7225_v55 = vld [vmem:[#allocation2 + $0x20c] sm:$0xf]  ;;  %v10285_v37 = vpop.f32.mrf.mxu0  ;;  %v6447_v59 = vld [vmem:[#allocation2 + $0x198] sm:$0xf0] }
 0x3e1   :  { %12834 = vst [vmem:[#allocation81_spill] sm:$0xff] %v10285_v37  ;;  %v6450_v47 = vor.u32 %v7209_v17, %v6447_v59 }
 0x3e2   :  { %3269 = vmatpush.bf16.msra.mxu0 %v6526_v39  ;;  %3341 = vmatpush.bf16.msra.mxu3 %v6530_v18  ;;  %v6431_v39 = vld [vmem:[#allocation2 + $0x178] sm:$0xf0] }
 0x3e3   :  { %v10283_v11 = vpop.f32.mrf.mxu2  ;;  %v1874_v62 = vpop.f32.mrf.mxu1 }
 0x3e4   :  { %3312 = vmatpush.bf16.msra.mxu2 %v6482_v15  ;;  %12833 = vst [vmem:[#allocation32_spill] sm:$0xff] %v10283_v11 }
 0x3e5   :  { %v7227_v1 = vld [vmem:[#allocation2 + $0x214] sm:$0xf0]  ;;  %v6511_v49 = vld [vmem:[#allocation2 + $0x218] sm:$0xf0] }
 0x3e6   :  { %v6510_v24 = vor.u32 %v7227_v1, %v6509_v4  ;;  %v6514_v63 = vor.u32 %v7225_v55, %v6511_v49  ;;  %v1907_v18 = vpop.f32.mrf.mxu3  ;;  %v7201_v4 = vld [vmem:[#allocation2 + $0x14c] sm:$0xf]  ;;  %v6415_v1 = vld [vmem:[#allocation2 + $0x158] sm:$0xf0] }
 0x3e7   :  { %v10287_v12 = vadd.f32 %v1907_v18, %v1889_v54  ;;  %v12836_v55 = vld [vmem:[#allocation89_spill] sm:$0xff]  ;;  %v6418_v49 = vor.u32 %v7201_v4, %v6415_v1  ;;  %v6399_v54 = vld [vmem:[#allocation2 + $0x138] sm:$0xf0] }
 0x3e8   :  { %3313 = vmatpush.bf16.msra.mxu2 %v6466_v5  ;;  %3270 = vmatpush.bf16.msra.mxu0 %v6510_v24  ;;  %v6434_v5 = vor.u32 %v7205_v29, %v6431_v39  ;;  %v3080_v17 = vpop.f32.mrf.mxu0  ;;  %v7197_v24 = vld [vmem:[#allocation2 + $0x12c] sm:$0xf]  ;;  %v6383_v18 = vld [vmem:[#allocation2 + $0x118] sm:$0xf0] }
 0x3e9   :  { %3342 = vmatpush.bf16.msra.mxu3 %v6514_v63  ;;  %12835 = vst [vmem:[#allocation33_spill] sm:$0xff] %v10287_v12  ;;  %v6402_v59 = vor.u32 %v7197_v24, %v6399_v54 }
 0x3eb   :  { %v1893_v15 = vpop.f32.mrf.mxu2  ;;  %6537 = vmatmul.msk.bf16.vlgmr.msra.gmra.mxu0 %vm1682_vm0, %v10014_v34  ;;  %v10302_v29 = vpop.f32.mrf.mxu1 }
 0x3ec   :  { %3314 = vmatpush.bf16.msra.mxu2 %v6450_v47  ;;  %v1894_v9 = vadd.f32 %v1893_v15, %v1874_v62  ;;  %v7193_v47 = vld [vmem:[#allocation2 + $0x10c] sm:$0xf]  ;;  %12839 = vst [vmem:[#allocation82_spill] sm:$0xff] %v10302_v29 }
 0x3ed   :  { %3252 = vmatmul.bf16.gmra.mxu3 %v10041_v32  ;;  %3295 = vmatmul.bf16.vlgmr.msra.gmra.mxu1 %v12830_v38  ;;  %v6386_v62 = vor.u32 %v7193_v47, %v6383_v18 }
 0x3ee   :  { %v10294_v63 = vpop.f32.mrf.mxu3 }
 0x3ef   :  { %3228 = vmatmul.bf16.gmra.mxu2 %v12836_v55  ;;  %12837 = vst [vmem:[#allocation84_spill] sm:$0xff] %v10294_v63 }
 0x3f0   :  { %3315 = vmatpush.bf16.msra.mxu2 %v6434_v5  ;;  %v3082_v39 = vpop.f32.mrf.mxu0 }
 0x3f4   :  { %3316 = vmatpush.bf16.msra.mxu2 %v6418_v49 }
 0x3f6   :  { %v1912_v15 = vpop.f32.mrf.mxu3 }
 0x3f7   :  { %v10296_v38 = vadd.f32 %v1912_v15, %v1894_v9  ;;  %v10310_v9 = vpop.f32.mrf.mxu2 }
 0x3f8   :  { %3317 = vmatpush.bf16.msra.mxu2 %v6402_v59  ;;  %v3085_v5 = vpop.f32.mrf.mxu0  ;;  %12840 = vst [vmem:[#allocation87_spill] sm:$0xff] %v10310_v9 }
 0x3f9   :  { %12838 = vst [vmem:[#allocation86_spill] sm:$0xff] %v10296_v38  ;;  %v12846_v38 = vld [vmem:[#allocation73_spill] sm:$0xff] }
 0x3fb   :  { %6538 = vmatmul.msk.bf16.gmra.mxu0 %vm1682_vm0, %v10079_v2 }
 0x3fc   :  { %3318 = vmatpush.bf16.msra.mxu2 %v6386_v62 }
 0x3fd   :  { %3257 = vmatmul.bf16.gmra.mxu3 %v10110_v14  ;;  %3300 = vmatmul.bf16.gmra.mxu1 %v12836_v55 }
 0x3fe   :  { %v10313_v59 = vpop.f32.mrf.mxu3 }
 0x3ff   :  { %3233 = vmatmul.bf16.gmra.mxu2 %v9958_v40  ;;  %12841 = vst [vmem:[#allocation85_spill] sm:$0xff] %v10313_v59  ;;  %v12847_v59 = vld [vmem:[#allocation71_spill] sm:$0xff] }
 0x400   :  { %v3087_v1 = vpop.f32.mrf.mxu0 }
 0x408   :  { %v3090_v24 = vpop.f32.mrf.mxu0 }
 0x40a   :  { %v3104_v4 = vpop.f32.mrf.mxu1 }
 0x40b   :  { %6539 = vmatmul.msk.bf16.gmra.mxu0 %vm1682_vm0, %v10146_v58 }
 0x40d   :  { %6540 = vmatmul.msk.bf16.vlgmr.msra.gmra.mxu3 %vm1682_vm0, %v10014_v34  ;;  %3305 = vmatmul.bf16.gmra.mxu1 %v9958_v40  ;;  %v3152_v40 = vpop.f32.mrf.mxu3 }
 0x40f   :  { %3319 = vmatmul.bf16.vlgmr.msra.gmra.mxu2 %v9979_v50 }
 0x410   :  { %v3092_v18 = vpop.f32.mrf.mxu0 }
 0x412   :  { %v3106_v55 = vpop.f32.mrf.mxu1 }
 0x415   :  { %v3154_v8 = vpop.f32.mrf.mxu3 }
 0x418   :  { %v3128_v49 = vpop.f32.mrf.mxu2  ;;  %v3176_v45 = vpop.f32.mrf.mxu0 }
 0x419   :  { %v3177_v33 = vadd.f32 %v3176_v45, %v3152_v40 }
 0x41a   :  { %v3109_v54 = vpop.f32.mrf.mxu1 }
 0x41d   :  { %6541 = vmatmul.msk.bf16.gmra.mxu3 %vm1682_vm0, %v10079_v2  ;;  %v3105_v2 = vadd.f32 %v3104_v4, %v3080_v17  ;;  %v3157_v26 = vpop.f32.mrf.mxu3 }
 0x41f   :  { %3324 = vmatmul.bf16.gmra.mxu2 %v10041_v32  ;;  %v10323_v23 = vadd.f32 %v3128_v49, %v3105_v2 }
 0x420   :  { %v3130_v47 = vpop.f32.mrf.mxu2  ;;  %v3178_v61 = vpop.f32.mrf.mxu0 }
 0x421   :  { %v3179_v45 = vadd.f32 %v3178_v61, %v3154_v8 }
 0x422   :  { %v3111_v34 = vpop.f32.mrf.mxu1 }
 0x428   :  { %v3133_v62 = vpop.f32.mrf.mxu2  ;;  %v3181_v17 = vpop.f32.mrf.mxu0 }
 0x429   :  { %v3182_v8 = vadd.f32 %v3181_v17, %v3157_v26 }
 0x42a   :  { %v3114_v15 = vpop.f32.mrf.mxu1 }
 0x42b   :  { %v3115_v31 = vadd.f32 %v3114_v15, %v3090_v24  ;;  %v3107_v24 = vadd.f32 %v3106_v55, %v3082_v39  ;;  %v3110_v39 = vadd.f32 %v3109_v54, %v3085_v5 }
 0x42d   :  { %6542 = vmatmul.msk.bf16.gmra.mxu3 %vm1682_vm0, %v10146_v58  ;;  %v10333_v40 = vadd.f32 %v3130_v47, %v3107_v24  ;;  %v10343_v15 = vadd.f32 %v3133_v62, %v3110_v39 }
 0x42f   :  { %3329 = vmatmul.bf16.gmra.mxu2 %v10110_v14 }
 0x430   :  { %v3135_v50 = vpop.f32.mrf.mxu2  ;;  %v3183_v61 = vpop.f32.mrf.mxu0 }
 0x432   :  { %v3116_v25 = vpop.f32.mrf.mxu1 }
 0x433   :  { %v3117_v58 = vadd.f32 %v3116_v25, %v3092_v18 }
 0x438   :  { %v3138_v57 = vpop.f32.mrf.mxu2  ;;  %v3186_v26 = vpop.f32.mrf.mxu0 }
 0x439   :  { %v10321_v32 = vadd.f32 %v3138_v57, %v3115_v31 }
 0x43a   :  { %v3200_v43 = vpop.f32.mrf.mxu1 }
 0x43b   :  { %v10325_v30 = vadd.f32 %v3200_v43, %v3177_v33  ;;  %4111 = vrot.lane.b32.xlu1 %v10321_v32, %s7493_s1  ;;  %v3159_v43 = vpop.f32.mrf.mxu3  ;;  %v3112_v33 = vadd.f32 %v3111_v34, %v3087_v1 }
 0x43c   :  { %v3184_v2 = vadd.f32 %v3183_v61, %v3159_v43 }
 0x43d   :  { %v3839_v14 = vpack.c.bf16 %v10325_v30, %v10323_v23  ;;  %v10341_v55 = vadd.f32 %v3135_v50, %v3112_v33 }
 0x43f   :  { %3851 = vst [vmem:[#allocation2 + $0x180] sm:$0xff] %v3839_v14 }
 0x440   :  { %v3140_v4 = vpop.f32.mrf.mxu2 }
 0x441   :  { %v10331_v31 = vadd.f32 %v3140_v4, %v3117_v58  ;;  %v3188_v4 = vpop.f32.mrf.mxu0 }
 0x442   :  { %v3202_v57 = vpop.f32.mrf.mxu1 }
 0x443   :  { %v10335_v49 = vadd.f32 %v3202_v57, %v3179_v45  ;;  %4113 = vrot.lane.b32.xlu2 %v10331_v31, %s7493_s1  ;;  %v3162_v34 = vpop.f32.mrf.mxu3 }
 0x444   :  { %v3187_v58 = vadd.f32 %v3186_v26, %v3162_v34 }
 0x445   :  { %v3841_v25 = vpack.c.bf16 %v10335_v49, %v10333_v40 }
 0x447   :  { %3853 = vst [vmem:[#allocation2 + $0x190] sm:$0xff] %v3841_v25 }
 0x44a   :  { %v3205_v18 = vpop.f32.mrf.mxu1 }
 0x44b   :  { %v10345_v47 = vadd.f32 %v3205_v18, %v3182_v8  ;;  %3605 = vrot.lane.b32.xlu2 %v10341_v55, %s7489_s11  ;;  %v3164_v50 = vpop.f32.mrf.mxu3 }
 0x44c   :  { %v3189_v57 = vadd.f32 %v3188_v4, %v3164_v50 }
 0x44d   :  { %v3843_v1 = vpack.c.bf16 %v10345_v47, %v10343_v15 }
 0x44f   :  { %3855 = vst [vmem:[#allocation2 + $0x1a0] sm:$0xff] %v3843_v1 }
 0x452   :  { %v3207_v5 = vpop.f32.mrf.mxu1 }
 0x453   :  { %v10351_v54 = vadd.f32 %v3207_v5, %v3184_v2  ;;  %3865 = vrot.lane.b32.xlu2 %v10333_v40, %s7490_s12 }
 0x455   :  { %v3845_v62 = vpack.c.bf16 %v10351_v54, %v10341_v55 }
 0x457   :  { %3857 = vst [vmem:[#allocation2 + $0x1b0] sm:$0xff] %v3845_v62 }
 0x45a   :  { %v3210_v14 = vpop.f32.mrf.mxu1 }
 0x45b   :  { %v10357_v24 = vadd.f32 %v3210_v14, %v3187_v58 }
 0x45d   :  { %v3847_v17 = vpack.c.bf16 %v10357_v24, %v10321_v32  ;;  %4123 = vrot.lane.b32.xlu0 %v10357_v24, %s7493_s1 }
 0x45f   :  { %3859 = vst [vmem:[#allocation2 + $0x1c0] sm:$0xff] %v3847_v17 }
 0x460   :  { %v3248_v45 = vpop.f32.mrf.mxu3 }
 0x462   :  { %v3212_v43 = vpop.f32.mrf.mxu1  ;;  %v3224_v25 = vpop.f32.mrf.mxu2 }
 0x463   :  { %v10363_v33 = vadd.f32 %v3212_v43, %v3189_v57  ;;  %v3249_v8 = vadd.f32 %v3248_v45, %v3224_v25 }
 0x465   :  { %v3849_v39 = vpack.c.bf16 %v10363_v33, %v10331_v31  ;;  %3615 = vrot.lane.b32.xlu0 %v10345_v47, %s7489_s11  ;;  %4125 = vrot.lane.b32.xlu1 %v10363_v33, %s7493_s1 }
 0x467   :  { %3861 = vst [vmem:[#allocation2 + $0x1d0] sm:$0xff] %v3849_v39 }
 0x468   :  { %v3250_v61 = vpop.f32.mrf.mxu3  ;;  %v3272_v18 = vpop.f32.mrf.mxu0 }
 0x469   :  { %v10371_v1 = vadd.f32 %v3272_v18, %v3249_v8 }
 0x46a   :  { %v3226_v34 = vpop.f32.mrf.mxu2  ;;  %v3296_v57 = vpop.f32.mrf.mxu1 }
 0x46b   :  { %3887 = vrot.lane.b32.xlu2 %v10371_v1, %s7490_s12  ;;  %v3251_v2 = vadd.f32 %v3250_v61, %v3226_v34 }
 0x46d   :  { %3875 = vrot.lane.b32.xlu0 %v10325_v30, %s7490_s12  ;;  %3603 = vrot.lane.b32.xlu1 %v10343_v15, %s7489_s11 }
 0x46e   :  { %v7306_v46 = vld [vmem:[#allocation2 + $0x1cc] sm:$0xf0] }
 0x470   :  { %v3253_v5 = vpop.f32.mrf.mxu3  ;;  %v3274_v26 = vpop.f32.mrf.mxu0 }
 0x471   :  { %v10379_v62 = vadd.f32 %v3274_v26, %v3251_v2 }
 0x472   :  { %v3229_v50 = vpop.f32.mrf.mxu2  ;;  %v3298_v39 = vpop.f32.mrf.mxu1 }
 0x473   :  { %4109 = vrot.lane.b32.xlu2 %v10341_v55, %s7493_s1 }
 0x475   :  { %3889 = vrot.lane.b32.xlu0 %v10379_v62, %s7490_s12  ;;  %3617 = vrot.lane.b32.xlu1 %v10351_v54, %s7489_s11 }
 0x478   :  { %v3255_v58 = vpop.f32.mrf.mxu3  ;;  %v3277_v18 = vpop.f32.mrf.mxu0 }
 0x47a   :  { %v3231_v14 = vpop.f32.mrf.mxu2  ;;  %v3301_v41 = vpop.f32.mrf.mxu1 }
 0x47d   :  { %4119 = vrot.lane.b32.xlu0 %v10345_v47, %s7493_s1  ;;  %3863 = vrot.lane.b32.xlu1 %v10323_v23, %s7490_s12 }
 0x480   :  { %v3258_v17 = vpop.f32.mrf.mxu3 }
 0x482   :  { %v3234_v4 = vpop.f32.mrf.mxu2 }
 0x485   :  { %3877 = vrot.lane.b32.xlu1 %v10335_v49, %s7490_s12 }
 0x488   :  { %v3260_v45 = vpop.f32.mrf.mxu3 }
 0x48a   :  { %v3236_v43 = vpop.f32.mrf.mxu2 }
 0x48d   :  { %4107 = vrot.lane.b32.xlu1 %v10343_v15, %s7493_s1 }
 0x490   :  { %v3344_v25 = vpop.f32.mrf.mxu3 }
 0x492   :  { %v3320_v8 = vpop.f32.mrf.mxu2 }
 0x493   :  { %v3321_v61 = vadd.f32 %v3320_v8, %v3296_v57  ;;  %v3279_v57 = vpop.f32.mrf.mxu0 }
 0x495   :  { %4121 = vrot.lane.b32.xlu1 %v10351_v54, %s7493_s1  ;;  %v10397_v34 = vadd.f32 %v3344_v25, %v3321_v61  ;;  %v3254_v61 = vadd.f32 %v3253_v5, %v3229_v50  ;;  %v3256_v5 = vadd.f32 %v3255_v58, %v3231_v14 }
 0x497   :  { %v3840_v26 = vpack.c.bf16 %v10397_v34, %v10371_v1 }
 0x498   :  { %v3346_v2 = vpop.f32.mrf.mxu3 }
 0x499   :  { %3852 = vst [vmem:[#allocation2 + $0x188] sm:$0xff] %v3840_v26  ;;  %v10409_v26 = vadd.f32 %v3277_v18, %v3254_v61  ;;  %v10419_v18 = vadd.f32 %v3279_v57, %v3256_v5 }
 0x49a   :  { %v3322_v28 = vpop.f32.mrf.mxu2 }
 0x49b   :  { %v3323_v37 = vadd.f32 %v3322_v28, %v3298_v39  ;;  %v3303_v39 = vpop.f32.mrf.mxu1 }
 0x49d   :  { %3599 = vrot.lane.b32.xlu1 %v10323_v23, %s7489_s11  ;;  %v10403_v42 = vadd.f32 %v3346_v2, %v3323_v37  ;;  %v3282_v2 = vpop.f32.mrf.mxu0 }
 0x49f   :  { %v3842_v16 = vpack.c.bf16 %v10403_v42, %v10379_v62 }
 0x4a0   :  { %v3349_v8 = vpop.f32.mrf.mxu3 }
 0x4a1   :  { %3854 = vst [vmem:[#allocation2 + $0x198] sm:$0xff] %v3842_v16 }
 0x4a2   :  { %v3325_v25 = vpop.f32.mrf.mxu2 }
 0x4a3   :  { %v3326_v19 = vadd.f32 %v3325_v25, %v3301_v41  ;;  %v3259_v41 = vadd.f32 %v3258_v17, %v3234_v4  ;;  %v3306_v25 = vpop.f32.mrf.mxu1  ;;  %v3261_v4 = vadd.f32 %v3260_v45, %v3236_v43 }
 0x4a5   :  { %3613 = vrot.lane.b32.xlu1 %v10335_v49, %s7489_s11  ;;  %v10411_v28 = vadd.f32 %v3349_v8, %v3326_v19  ;;  %v10421_v19 = vadd.f32 %v3282_v2, %v3259_v41  ;;  %v3284_v14 = vpop.f32.mrf.mxu0 }
 0x4a7   :  { %v3844_v37 = vpack.c.bf16 %v10411_v28, %v10409_v26  ;;  %3639 = vrot.lane.b32.xlu2 %v10411_v28, %s7489_s11 }
 0x4a8   :  { %v3351_v12 = vpop.f32.mrf.mxu3 }
 0x4a9   :  { %3856 = vst [vmem:[#allocation2 + $0x1a8] sm:$0xff] %v3844_v37 }
 0x4aa   :  { %v3327_v16 = vpop.f32.mrf.mxu2 }
 0x4ab   :  { %v3328_v50 = vadd.f32 %v3327_v16, %v3303_v39  ;;  %v3308_v2 = vpop.f32.mrf.mxu1 }
 0x4ad   :  { %4103 = vrot.lane.b32.xlu1 %v10323_v23, %s7493_s1  ;;  %v10423_v8 = vadd.f32 %v3351_v12, %v3328_v50  ;;  %v10433_v12 = vadd.f32 %v3284_v14, %v3261_v4  ;;  %v10461_v50 = vpop.permute.xlu1 %4111 }
 0x4af   :  { %v3846_v61 = vpack.c.bf16 %v10423_v8, %v10419_v18  ;;  %3641 = vrot.lane.b32.xlu0 %v10423_v8, %s7489_s11  ;;  %4135 = vrot.lane.b32.xlu2 %v10421_v19, %s7493_s1 }
 0x4b0   :  { %v3354_v58 = vpop.f32.mrf.mxu3 }
 0x4b1   :  { %3858 = vst [vmem:[#allocation2 + $0x1b8] sm:$0xff] %v3846_v61 }
 0x4b2   :  { %v3330_v17 = vpop.f32.mrf.mxu2 }
 0x4b3   :  { %v3331_v57 = vadd.f32 %v3330_v17, %v3306_v25  ;;  %v10463_v25 = vpop.permute.xlu2 %4113 }
 0x4b5   :  { %4117 = vrot.lane.b32.xlu1 %v10335_v49, %s7493_s1  ;;  %v10435_v39 = vadd.f32 %v3354_v58, %v3331_v57 }
 0x4b7   :  { %v3848_v37 = vpack.c.bf16 %v10435_v39, %v10421_v19  ;;  %4137 = vrot.lane.b32.xlu0 %v10433_v12, %s7493_s1  ;;  %4131 = vrot.lane.b32.xlu2 %v10409_v26, %s7493_s1 }
 0x4b8   :  { %v3356_v43 = vpop.f32.mrf.mxu3 }
 0x4b9   :  { %3860 = vst [vmem:[#allocation2 + $0x1c8] sm:$0xff] %v3848_v37 }
 0x4ba   :  { %v3332_v45 = vpop.f32.mrf.mxu2 }
 0x4bb   :  { %v3333_v16 = vadd.f32 %v3332_v45, %v3308_v2  ;;  %v10479_v14 = vpop.permute.xlu2 %3605 }
 0x4bd   :  { %3487 = vrot.lane.b32.xlu1 %v10321_v32, %s7486_s23  ;;  %v10445_v5 = vadd.f32 %v3356_v43, %v3333_v16 }
 0x4bf   :  { %v3850_v41 = vpack.c.bf16 %v10445_v5, %v10433_v12  ;;  %4133 = vrot.lane.b32.xlu0 %v10419_v18, %s7493_s1  ;;  %3601 = vrot.lane.b32.xlu2 %v10333_v40, %s7489_s11 }
 0x4c1   :  { %3862 = vst [vmem:[#allocation2 + $0x1d8] sm:$0xff] %v3850_v41 }
 0x4c3   :  { %v10489_v57 = vpop.permute.xlu2 %3865 }
 0x4c4   :  { %12843 = vst [vmem:[#allocation88_spill] sm:$0xff] %v10489_v57 }
 0x4c5   :  { %3501 = vrot.lane.b32.xlu1 %v10363_v33, %s7486_s23 }
 0x4c7   :  { %3611 = vrot.lane.b32.xlu0 %v10325_v30, %s7489_s11  ;;  %3635 = vrot.lane.b32.xlu2 %v10397_v34, %s7489_s11 }
 0x4cb   :  { %v10499_v45 = vpop.permute.xlu2 %3887 }
 0x4cc   :  { %12844 = vst [vmem:[#allocation89_spill] sm:$0xff] %v10499_v45 }
 0x4cd   :  { %3991 = vrot.lane.b32.xlu1 %v10321_v32, %s7491_s13 }
 0x4cf   :  { %3637 = vrot.lane.b32.xlu0 %v10403_v42, %s7489_s11  ;;  %4105 = vrot.lane.b32.xlu2 %v10333_v40, %s7493_s1  ;;  %v10471_v61 = vpop.permute.xlu0 %4123 }
 0x4d5   :  { %4005 = vrot.lane.b32.xlu1 %v10363_v33, %s7491_s13 }
 0x4d7   :  { %v10473_v58 = vpop.permute.xlu1 %4125  ;;  %4115 = vrot.lane.b32.xlu0 %v10325_v30, %s7493_s1  ;;  %4127 = vrot.lane.b32.xlu2 %v10371_v1, %s7493_s1  ;;  %v10483_v4 = vpop.permute.xlu0 %3615 }
 0x4d8   :  { %12842 = vst [vmem:[#allocation90_spill] sm:$0xff] %v10483_v4 }
 0x4dd   :  { %3483 = vrot.lane.b32.xlu1 %v10343_v15, %s7486_s23 }
 0x4df   :  { %v3604_v17 = vpop.permute.xlu1 %3603  ;;  %4129 = vrot.lane.b32.xlu0 %v10379_v62, %s7493_s1  ;;  %3489 = vrot.lane.b32.xlu2 %v10331_v31, %s7486_s23  ;;  %v3876_v2 = vpop.permute.xlu0 %3875 }
 0x4e0   :  { %v3917_v43 = vsel %vm920_vm9, %v3876_v2, %v10499_v45 }
 0x4e1   :  { %v3936_v63 = vmul.f32 %v12846_v38, %v3917_v43 }
 0x4e5   :  { %3497 = vrot.lane.b32.xlu1 %v10351_v54, %s7486_s23 }
 0x4e7   :  { %v10493_v37 = vpop.permute.xlu1 %3617  ;;  %3499 = vrot.lane.b32.xlu0 %v10357_v24, %s7486_s23  ;;  %3523 = vrot.lane.b32.xlu2 %v10435_v39, %s7486_s23  ;;  %v10519_v9 = vpop.permute.xlu0 %3889 }
 0x4e8   :  { %12848 = vst [vmem:[#allocation73_spill] sm:$0xff] %v10519_v9 }
 0x4ed   :  { %3987 = vrot.lane.b32.xlu1 %v10343_v15, %s7491_s13 }
 0x4ef   :  { %v10506_v16 = vpop.permute.xlu1 %3863  ;;  %3525 = vrot.lane.b32.xlu0 %v10445_v5, %s7486_s23  ;;  %3993 = vrot.lane.b32.xlu2 %v10331_v31, %s7491_s13  ;;  %v4120_v7 = vpop.permute.xlu0 %4119 }
 0x4f0   :  { %12845 = vst [vmem:[#allocation92_spill] sm:$0xff] %v10506_v16  ;;  %v3923_v41 = vsel %vm920_vm9, %v10506_v16, %v3876_v2 }
 0x4f1   :  { %v3935_v11 = vmul.f32 %v12847_v59, %v3923_v41 }
 0x4f3   :  { %v3959_v10 = vpack.c.bf16 %v3936_v63, %v3935_v11 }
 0x4f5   :  { %3971 = vst [vmem:[#allocation2 + $0x1e0] sm:$0xff] %v3959_v10  ;;  %4001 = vrot.lane.b32.xlu1 %v10351_v54, %s7491_s13  ;;  %v10533_v10 = vpop.permute.xlu2 %4109 }
 0x4f6   :  { %12849 = vst [vmem:[#allocation71_spill] sm:$0xff] %v10533_v10 }
 0x4f7   :  { %v3878_v29 = vpop.permute.xlu1 %3877  ;;  %4003 = vrot.lane.b32.xlu0 %v10357_v24, %s7491_s13  ;;  %4015 = vrot.lane.b32.xlu2 %v10421_v19, %s7491_s13 }
 0x4f8   :  { %v3918_v2 = vsel %vm920_vm9, %v3878_v29, %v10519_v9  ;;  %v3924_v43 = vsel %vm920_vm9, %v10489_v57, %v3878_v29  ;;  %v3661_v29 = vsel %vm12851_vm6, %v3604_v17, %v10483_v4  ;;  %v6833_v4 = vld [vmem:[#allocation2 + $0x1c0] sm:$0xf]  ;;  %vm12879_vm6 = vmmov %vm12811_vm15 }
 0x4f9   :  { %v3939_v41 = vmul.f32 %v12847_v59, %v3924_v43  ;;  %v3940_v21 = vmul.f32 %v12846_v38, %v3918_v2 }
 0x4fb   :  { %v3961_v11 = vpack.c.bf16 %v3940_v21, %v3939_v41 }
 0x4fc   :  { %v6849_v43 = vld [vmem:[#allocation2 + $0x1e0] sm:$0xf] }
 0x4fd   :  { %3973 = vst [vmem:[#allocation2 + $0x1f0] sm:$0xff] %v3961_v11  ;;  %3479 = vrot.lane.b32.xlu1 %v10323_v23, %s7486_s23  ;;  %v12854_v11 = vld [vmem:[#allocation56_spill] sm:$0xff] }
 0x4fe   :  { %v3680_v51 = vmul.f32 %v12854_v11, %v3661_v29  ;;  %v4167_v29 = vsel %vm1082_vm5, %v10461_v50, %v10471_v61 }
 0x4ff   :  { %v10537_v63 = vpop.permute.xlu1 %4107  ;;  %4017 = vrot.lane.b32.xlu0 %v10433_v12, %s7491_s13  ;;  %3485 = vrot.lane.b32.xlu2 %v10341_v55, %s7486_s23 }
 0x500   :  { %12850 = vst [vmem:[#allocation93_spill] sm:$0xff] %v10537_v63 }
 0x501   :  { %v10546_v2 = vpop.permute.xlu2 %3639 }
 0x502   :  { %12852 = vst [vmem:[#allocation94_spill] sm:$0xff] %v10546_v2  ;;  %v3667_v21 = vsel %vm12853_vm13, %v10546_v2, %v3604_v17  ;;  %v6834_v17 = vor.u32 %v7306_v46, %v6833_v4  ;;  %v7298_v4 = vld [vmem:[#allocation2 + $0x18c] sm:$0xf0]  ;;  %vm12883_vm13 = vmmov %vm12879_vm6 }
 0x503   :  { %v3679_v22 = vmul.f32 %v12855_v36, %v3667_v21  ;;  %v7302_v21 = vld [vmem:[#allocation2 + $0x1ac] sm:$0xf0] }
 0x504   :  { %v7310_v41 = vld [vmem:[#allocation2 + $0x1ec] sm:$0xf0] }
 0x505   :  { %3493 = vrot.lane.b32.xlu1 %v10335_v49, %s7486_s23  ;;  %v6850_v13 = vor.u32 %v7310_v41, %v6849_v43  ;;  %v3699_v57 = vpack.c.bf16 %v3680_v51, %v3679_v22  ;;  %v6817_v51 = vld [vmem:[#allocation2 + $0x1a0] sm:$0xf]  ;;  %v12856_v22 = vld [vmem:[#allocation41_spill] sm:$0xff]  ;;  %v12857_v41 = vld [vmem:[#allocation51_spill] sm:$0xff] }
 0x506   :  { %v6818_v46 = vor.u32 %v7302_v21, %v6817_v51 }
 0x507   :  { %5125 = vmatpush.bf16.msrb.mxu1 %v6850_v13  ;;  %v10555_v9 = vpop.permute.xlu1 %4121  ;;  %3711 = vst [vmem:[#allocation2 + $0xe0] sm:$0xff] %v3699_v57  ;;  %3495 = vrot.lane.b32.xlu0 %v10345_v47, %s7486_s23  ;;  %v4191_v57 = vmul.f32 %v12856_v22, %v4167_v29  ;;  %v4165_v29 = vsel %vm1082_vm5, %v10537_v63, %v4120_v7 }
 0x508   :  { %3519 = vrot.lane.b32.xlu2 %v10411_v28, %s7486_s23 }
 0x509   :  { %v10565_v43 = vpop.permute.xlu2 %4135 }
 0x50a   :  { %v4161_v13 = vsel %vm1082_vm5, %v10471_v61, %v10565_v43 }
 0x50b   :  { %5126 = vmatpush.bf16.msrb.mxu1 %v6834_v17  ;;  %v4192_v2 = vmul.f32 %v12857_v41, %v4161_v13  ;;  %v6801_v17 = vld [vmem:[#allocation2 + $0x180] sm:$0xf] }
 0x50c   :  { %v6802_v61 = vor.u32 %v7298_v4, %v6801_v17  ;;  %v3662_v4 = vsel %vm12788_vm4, %v10479_v14, %v10493_v37  ;;  %vm12886_vm4 = vmmov %vm12879_vm6 }
 0x50d   :  { %3727 = vrot.lane.b32.xlu1 %v10321_v32, %s7488_s10  ;;  %v4207_v35 = vpack.c.bf16 %v4192_v2, %v4191_v57 }
 0x50e   :  { %v6721_v3 = vld [vmem:[#allocation2 + $0xe0] sm:$0xf] }
 0x50f   :  { %5127 = vmatpush.bf16.msrb.mxu1 %v6818_v46  ;;  %v10575_v48 = vpop.permute.xlu1 %3599  ;;  %4219 = vst [vmem:[#allocation2 + $0x2e0] sm:$0xff] %v4207_v35  ;;  %3521 = vrot.lane.b32.xlu0 %v10423_v8, %s7486_s23  ;;  %v4183_v35 = vmul.f32 %v12856_v22, %v4165_v29 }
 0x510   :  { %3989 = vrot.lane.b32.xlu2 %v10341_v55, %s7491_s13 }
 0x511   :  { %v10584_v21 = vpop.permute.xlu2 %4131 }
 0x512   :  { %v4159_v2 = vsel %vm1082_vm5, %v4120_v7, %v10584_v21 }
 0x513   :  { %5128 = vmatpush.bf16.msrb.mxu1 %v6802_v61  ;;  %v4184_v13 = vmul.f32 %v12857_v41, %v4159_v2  ;;  %v3684_v2 = vmul.f32 %v12854_v11, %v3662_v4 }
 0x515   :  { %3741 = vrot.lane.b32.xlu1 %v10363_v33, %s7488_s10  ;;  %v4203_v51 = vpack.c.bf16 %v4184_v13, %v4183_v35 }
 0x517   :  { %v10593_v57 = vpop.permute.xlu1 %3613  ;;  %4215 = vst [vmem:[#allocation2 + $0x2c0] sm:$0xff] %v4203_v51  ;;  %3999 = vrot.lane.b32.xlu0 %v10345_v47, %s7491_s13 }
 0x518   :  { %12858 = vst [vmem:[#allocation41_spill] sm:$0xff] %v10593_v57  ;;  %4011 = vrot.lane.b32.xlu2 %v10409_v26, %s7491_s13 }
 0x519   :  { %v10599_v46 = vpop.permute.xlu2 %3601 }
 0x51d   :  { %3983 = vrot.lane.b32.xlu1 %v10323_v23, %s7491_s13 }
 0x51f   :  { %v10603_v7 = vpop.permute.xlu1 %4103  ;;  %4013 = vrot.lane.b32.xlu0 %v10419_v18, %s7491_s13 }
 0x520   :  { %12859 = vst [vmem:[#allocation51_spill] sm:$0xff] %v10603_v7  ;;  %3481 = vrot.lane.b32.xlu2 %v10333_v40, %s7486_s23 }
 0x521   :  { %v10613_v17 = vpop.permute.xlu0 %3641  ;;  %v10615_v61 = vpop.permute.xlu2 %3635 }
 0x522   :  { %12860 = vst [vmem:[#allocation95_spill] sm:$0xff] %v10615_v61  ;;  %v3668_v29 = vsel %vm12861_vm3, %v10613_v17, %v10479_v14  ;;  %v4168_v14 = vsel %vm1082_vm5, %v10463_v25, %v10473_v58  ;;  %vm12892_vm3 = vmmov %vm12886_vm4 }
 0x523   :  { %v3683_v35 = vmul.f32 %v12855_v36, %v3668_v29 }
 0x525   :  { %3997 = vrot.lane.b32.xlu1 %v10335_v49, %s7491_s13  ;;  %v3701_v13 = vpack.c.bf16 %v3684_v2, %v3683_v35  ;;  %v4195_v35 = vmul.f32 %v12856_v22, %v4168_v14  ;;  %v4166_v14 = vsel %vm1082_vm5, %v10533_v10, %v10555_v9  ;;  %v6977_v10 = vld [vmem:[#allocation2 + $0x2e0] sm:$0xf] }
 0x527   :  { %v10625_v51 = vpop.permute.xlu1 %4117  ;;  %3713 = vst [vmem:[#allocation2 + $0xf0] sm:$0xff] %v3701_v13  ;;  %3491 = vrot.lane.b32.xlu0 %v10325_v30, %s7486_s23 }
 0x528   :  { %3515 = vrot.lane.b32.xlu2 %v10397_v34, %s7486_s23 }
 0x529   :  { %v10635_v4 = vpop.permute.xlu0 %4137  ;;  %v10637_v29 = vpop.permute.xlu2 %4105 }
 0x52a   :  { %12862 = vst [vmem:[#allocation96_spill] sm:$0xff] %v10637_v29  ;;  %v4162_v2 = vsel %vm1082_vm5, %v10473_v58, %v10635_v4 }
 0x52b   :  { %v4196_v13 = vmul.f32 %v12857_v41, %v4162_v2 }
 0x52d   :  { %4231 = vrot.lane.b32.xlu1 %v10321_v32, %s7494_s19  ;;  %v4209_v27 = vpack.c.bf16 %v4196_v13, %v4195_v35  ;;  %v4187_v13 = vmul.f32 %v12856_v22, %v4166_v14 }
 0x52e   :  { %v7278_v16 = vld [vmem:[#allocation2 + $0xec] sm:$0xf0] }
 0x52f   :  { %v10647_v60 = vpop.permute.xlu1 %3487  ;;  %4221 = vst [vmem:[#allocation2 + $0x2f0] sm:$0xff] %v4209_v27  ;;  %3517 = vrot.lane.b32.xlu0 %v10403_v42, %s7486_s23  ;;  %v6722_v58 = vor.u32 %v7278_v16, %v6721_v3 }
 0x530   :  { %3729 = vrot.lane.b32.xlu2 %v10331_v31, %s7488_s10 }
 0x531   :  { %v10657_v2 = vpop.permute.xlu0 %4133  ;;  %5096 = vmatpush.bf16.msrb.mxu0 %v6722_v58  ;;  %v10659_v35 = vpop.permute.xlu2 %4127  ;;  %v3665_v58 = vsel %vm12866_vm12, %v10615_v61, %v10575_v48  ;;  %v6961_v61 = vld [vmem:[#allocation2 + $0x2c0] sm:$0xf]  ;;  %vm12894_vm12 = vmmov %vm12892_vm3 }
 0x532   :  { %12863 = vst [vmem:[#allocation97_spill] sm:$0xff] %v10657_v2  ;;  %v4160_v27 = vsel %vm1082_vm5, %v10555_v9, %v10657_v2 }
 0x533   :  { %12864 = vst [vmem:[#allocation98_spill] sm:$0xff] %v10659_v35  ;;  %v4188_v45 = vmul.f32 %v12857_v41, %v4160_v27 }
 0x535   :  { %4245 = vrot.lane.b32.xlu1 %v10363_v33, %s7494_s19  ;;  %v4205_v3 = vpack.c.bf16 %v4188_v45, %v4187_v13  ;;  %v3671_v13 = vmul.f32 %v12855_v36, %v3665_v58 }
 0x536   :  { %v7342_v63 = vld [vmem:[#allocation2 + $0x2ec] sm:$0xf0] }
 0x537   :  { %v10669_v16 = vpop.permute.xlu1 %3501  ;;  %4217 = vst [vmem:[#allocation2 + $0x2d0] sm:$0xff] %v4205_v3  ;;  %3739 = vrot.lane.b32.xlu0 %v10357_v24, %s7488_s10  ;;  %v6978_v9 = vor.u32 %v7342_v63, %v6977_v10 }
 0x538   :  { %12865 = vst [vmem:[#allocation99_spill] sm:$0xff] %v10669_v16  ;;  %3763 = vrot.lane.b32.xlu2 %v10435_v39, %s7488_s10 }
 0x539   :  { %v10679_v14 = vpop.permute.xlu0 %3611  ;;  %5154 = vmatpush.bf16.msrb.mxu2 %v6978_v9  ;;  %v10681_v45 = vpop.permute.xlu2 %3489  ;;  %v3660_v9 = vsel %vm12870_vm10, %v10599_v46, %v10593_v57 }
 0x53a   :  { %12867 = vst [vmem:[#allocation100_spill] sm:$0xff] %v10679_v14  ;;  %v3659_v27 = vsel %vm12868_vm2, %v10575_v48, %v10679_v14  ;;  %vm12895_vm2 = vmmov %vm12892_vm3 }
 0x53b   :  { %v3672_v3 = vmul.f32 %v12854_v11, %v3659_v27  ;;  %vm12898_vm10 = vmmov %vm12895_vm2 }
 0x53d   :  { %3367 = vrot.lane.b32.xlu1 %v10321_v32, %s7487_s9  ;;  %v3695_v10 = vpack.c.bf16 %v3672_v3, %v3671_v13  ;;  %v3676_v3 = vmul.f32 %v12854_v11, %v3660_v9 }
 0x53e   :  { %v7338_v2 = vld [vmem:[#allocation2 + $0x2cc] sm:$0xf0] }
 0x53f   :  { %v10691_v63 = vpop.permute.xlu1 %3991  ;;  %3707 = vst [vmem:[#allocation2 + $0xc0] sm:$0xff] %v3695_v10  ;;  %3765 = vrot.lane.b32.xlu0 %v10445_v5, %s7488_s10  ;;  %v6962_v48 = vor.u32 %v7338_v2, %v6961_v61 }
 0x540   :  { %12869 = vst [vmem:[#allocation101_spill] sm:$0xff] %v10691_v63  ;;  %3985 = vrot.lane.b32.xlu2 %v10333_v40, %s7491_s13 }
 0x541   :  { %v10701_v58 = vpop.permute.xlu0 %3637  ;;  %v10703_v27 = vpop.permute.xlu2 %3523  ;;  %5155 = vmatpush.bf16.msrb.mxu2 %v6962_v48 }
 0x542   :  { %12871 = vst [vmem:[#allocation102_spill] sm:$0xff] %v10701_v58  ;;  %v3666_v13 = vsel %vm12873_vm1, %v10701_v58, %v10599_v46  ;;  %vm12902_vm1 = vmmov %vm12895_vm2 }
 0x543   :  { %12872 = vst [vmem:[#allocation103_spill] sm:$0xff] %v10703_v27  ;;  %v3675_v10 = vmul.f32 %v12855_v36, %v3666_v13 }
 0x545   :  { %3381 = vrot.lane.b32.xlu1 %v10363_v33, %s7487_s9  ;;  %v3697_v61 = vpack.c.bf16 %v3676_v3, %v3675_v10 }
 0x546   :  { %v6705_v11 = vld [vmem:[#allocation2 + $0xc0] sm:$0xf] }
 0x547   :  { %v10713_v2 = vpop.permute.xlu1 %4005  ;;  %3709 = vst [vmem:[#allocation2 + $0xd0] sm:$0xff] %v3697_v61  ;;  %3995 = vrot.lane.b32.xlu0 %v10325_v30, %s7491_s13 }
 0x548   :  { %4007 = vrot.lane.b32.xlu2 %v10371_v1, %s7491_s13 }
 0x549   :  { %v4116_v48 = vpop.permute.xlu0 %4115  ;;  %v10719_v14 = vpop.permute.xlu2 %3993 }
 0x54a   :  { %12874 = vst [vmem:[#allocation104_spill] sm:$0xff] %v10719_v14  ;;  %v4157_v46 = vsel %vm1082_vm5, %v4116_v48, %v10659_v35  ;;  %v4163_v9 = vsel %vm1082_vm5, %v10603_v7, %v4116_v48 }
 0x54b   :  { %v4175_v13 = vmul.f32 %v12856_v22, %v4163_v9  ;;  %v4176_v3 = vmul.f32 %v12857_v41, %v4157_v46  ;;  %v4164_v46 = vsel %vm1082_vm5, %v10637_v29, %v10625_v51 }
 0x54d   :  { %3723 = vrot.lane.b32.xlu1 %v10343_v15, %s7488_s10  ;;  %v4199_v10 = vpack.c.bf16 %v4176_v3, %v4175_v13 }
 0x54e   :  { %v7274_v36 = vld [vmem:[#allocation2 + $0xcc] sm:$0xf0] }
 0x54f   :  { %v10731_v61 = vpop.permute.xlu1 %3483  ;;  %4211 = vst [vmem:[#allocation2 + $0x2a0] sm:$0xff] %v4199_v10  ;;  %4009 = vrot.lane.b32.xlu0 %v10379_v62, %s7491_s13  ;;  %v6706_v48 = vor.u32 %v7274_v36, %v6705_v11  ;;  %v4179_v10 = vmul.f32 %v12856_v22, %v4164_v46  ;;  %v3549_v22 = vsel %vm12811_vm15, %v10703_v27, %v10647_v60  ;;  %vm12904_vm15 = vmmov %vm12902_vm1 }
 0x550   :  { %4233 = vrot.lane.b32.xlu2 %v10331_v31, %s7494_s19 }
 0x551   :  { %v10741_v9 = vpop.permute.xlu0 %4129  ;;  %v10743_v13 = vpop.permute.xlu2 %4015  ;;  %5097 = vmatpush.bf16.msrb.mxu0 %v6706_v48  ;;  %v12880_v48 = vld [vmem:[#allocation45_spill] sm:$0xff] }
 0x552   :  { %12875 = vst [vmem:[#allocation105_spill] sm:$0xff] %v10741_v9  ;;  %v4158_v3 = vsel %vm1082_vm5, %v10625_v51, %v10741_v9  ;;  %v3567_v46 = vmul.f32 %v12880_v48, %v3549_v22  ;;  %v3544_v22 = vsel %vm12883_vm13, %v10681_v45, %v10669_v16  ;;  %vm12907_vm13 = vmmov %vm12902_vm1 }
 0x553   :  { %12876 = vst [vmem:[#allocation106_spill] sm:$0xff] %v10743_v13  ;;  %v4180_v7 = vmul.f32 %v12857_v41, %v4158_v3  ;;  %v12881_v3 = vld [vmem:[#allocation44_spill] sm:$0xff] }
 0x555   :  { %3737 = vrot.lane.b32.xlu1 %v10351_v54, %s7488_s10  ;;  %v4201_v36 = vpack.c.bf16 %v4180_v7, %v4179_v10 }
 0x556   :  { %v6945_v9 = vld [vmem:[#allocation2 + $0x2a0] sm:$0xf] }
 0x557   :  { %v10753_v11 = vpop.permute.xlu1 %3497  ;;  %4213 = vst [vmem:[#allocation2 + $0x2b0] sm:$0xff] %v4201_v36  ;;  %4243 = vrot.lane.b32.xlu0 %v10357_v24, %s7494_s19 }
 0x558   :  { %12877 = vst [vmem:[#allocation107_spill] sm:$0xff] %v10753_v11  ;;  %4255 = vrot.lane.b32.xlu2 %v10421_v19, %s7494_s19 }
 0x559   :  { %v10763_v51 = vpop.permute.xlu0 %3499  ;;  %v10765_v41 = vpop.permute.xlu2 %3485 }
 0x55a   :  { %12878 = vst [vmem:[#allocation108_spill] sm:$0xff] %v10763_v51  ;;  %v3543_v7 = vsel %vm12879_vm6, %v10647_v60, %v10763_v51  ;;  %vm12906_vm6 = vmmov %vm12902_vm1 }
 0x55b   :  { %v3568_v10 = vmul.f32 %v12881_v3, %v3543_v7 }
 0x55d   :  { %3871 = vrot.lane.b32.xlu1 %v10321_v32, %s7490_s12  ;;  %v3583_v36 = vpack.c.bf16 %v3568_v10, %v3567_v46 }
 0x55e   :  { %v7334_v35 = vld [vmem:[#allocation2 + $0x2ac] sm:$0xf0] }
 0x55f   :  { %v10775_v29 = vpop.permute.xlu1 %3987  ;;  %3595 = vst [vmem:[#allocation2 + $0xa0] sm:$0xff] %v3583_v36  ;;  %4257 = vrot.lane.b32.xlu0 %v10433_v12, %s7494_s19  ;;  %v6946_v60 = vor.u32 %v7334_v35, %v6945_v9  ;;  %v3572_v36 = vmul.f32 %v12881_v3, %v3544_v22  ;;  %v12888_v22 = vld [vmem:[#allocation42_spill] sm:$0xff] }
 0x560   :  { %12882 = vst [vmem:[#allocation45_spill] sm:$0xff] %v10775_v29  ;;  %3369 = vrot.lane.b32.xlu2 %v10331_v31, %s7487_s9 }
 0x561   :  { %v10785_v7 = vpop.permute.xlu0 %3525  ;;  %5156 = vmatpush.bf16.msrb.mxu2 %v6946_v60 }
 0x562   :  { %12884 = vst [vmem:[#allocation44_spill] sm:$0xff] %v10785_v7  ;;  %v10787_v46 = vpop.permute.xlu2 %3519  ;;  %v3550_v10 = vsel %vm12886_vm4, %v10785_v7, %v10681_v45  ;;  %vm12940_vm4 = vcmp.lt.s32.totalorder %v7784_v0, 15 }
 0x563   :  { %12885 = vst [vmem:[#allocation109_spill] sm:$0xff] %v10787_v46  ;;  %v3571_v51 = vmul.f32 %v12880_v48, %v3550_v10 }
 0x565   :  { %3885 = vrot.lane.b32.xlu1 %v10363_v33, %s7490_s12  ;;  %v3585_v35 = vpack.c.bf16 %v3572_v36, %v3571_v51  ;;  %v12889_v36 = vld [vmem:[#allocation40_spill] sm:$0xff] }
 0x566   :  { %v6689_v57 = vld [vmem:[#allocation2 + $0xa0] sm:$0xf] }
 0x567   :  { %v10797_v9 = vpop.permute.xlu1 %4001  ;;  %3597 = vst [vmem:[#allocation2 + $0xb0] sm:$0xff] %v3585_v35  ;;  %3379 = vrot.lane.b32.xlu0 %v10357_v24, %s7487_s9 }
 0x568   :  { %3403 = vrot.lane.b32.xlu2 %v10435_v39, %s7487_s9 }
 0x569   :  { %v4004_v60 = vpop.permute.xlu0 %4003 }
 0x56a   :  { %v10803_v16 = vpop.permute.xlu2 %3989  ;;  %v4041_v45 = vsel %vm1001_vm7, %v4004_v60, %v10743_v13  ;;  %v4047_v51 = vsel %vm1001_vm7, %v10691_v63, %v4004_v60 }
 0x56b   :  { %12887 = vst [vmem:[#allocation110_spill] sm:$0xff] %v10803_v16  ;;  %v4071_v10 = vmul.f32 %v12888_v22, %v4047_v51  ;;  %v4072_v35 = vmul.f32 %v12889_v36, %v4041_v45  ;;  %v4048_v45 = vsel %vm1001_vm7, %v10719_v14, %v10713_v2 }
 0x56d   :  { %4227 = vrot.lane.b32.xlu1 %v10343_v15, %s7494_s19  ;;  %v4087_v7 = vpack.c.bf16 %v4072_v35, %v4071_v10  ;;  %v4075_v35 = vmul.f32 %v12888_v22, %v4048_v45 }
 0x56e   :  { %v7270_v58 = vld [vmem:[#allocation2 + $0xac] sm:$0xf0] }
 0x56f   :  { %v10815_v27 = vpop.permute.xlu1 %3479  ;;  %4099 = vst [vmem:[#allocation2 + $0x280] sm:$0xff] %v4087_v7  ;;  %3405 = vrot.lane.b32.xlu0 %v10445_v5, %s7487_s9  ;;  %v6690_v60 = vor.u32 %v7270_v58, %v6689_v57 }
 0x570   :  { %3725 = vrot.lane.b32.xlu2 %v10341_v55, %s7488_s10 }
 0x571   :  { %v10825_v51 = vpop.permute.xlu0 %4017  ;;  %5098 = vmatpush.bf16.msrb.mxu0 %v6690_v60 }
 0x572   :  { %12890 = vst [vmem:[#allocation42_spill] sm:$0xff] %v10825_v51  ;;  %v10827_v10 = vpop.permute.xlu2 %4011  ;;  %v4042_v7 = vsel %vm1001_vm7, %v10713_v2, %v10825_v51  ;;  %v3547_v2 = vsel %vm12892_vm3, %v10787_v46, %v10731_v61  ;;  %vm12941_vm3 = vmmov %vm12940_vm4 }
 0x573   :  { %v4076_v63 = vmul.f32 %v12889_v36, %v4042_v7  ;;  %v3559_v7 = vmul.f32 %v12880_v48, %v3547_v2  ;;  %v3542_v2 = vsel %vm12895_vm2, %v10765_v41, %v10753_v11  ;;  %vm12949_vm2 = vmmov %vm12941_vm3 }
 0x575   :  { %4241 = vrot.lane.b32.xlu1 %v10351_v54, %s7494_s19  ;;  %v4089_v57 = vpack.c.bf16 %v4076_v63, %v4075_v35 }
 0x576   :  { %v6929_v46 = vld [vmem:[#allocation2 + $0x280] sm:$0xf] }
 0x577   :  { %v10837_v58 = vpop.permute.xlu1 %3493  ;;  %4101 = vst [vmem:[#allocation2 + $0x290] sm:$0xff] %v4089_v57  ;;  %3735 = vrot.lane.b32.xlu0 %v10345_v47, %s7488_s10 }
 0x578   :  { %12891 = vst [vmem:[#allocation40_spill] sm:$0xff] %v10837_v58  ;;  %3759 = vrot.lane.b32.xlu2 %v10411_v28, %s7488_s10 }
 0x579   :  { %v10847_v60 = vpop.permute.xlu0 %3495 }
 0x57a   :  { %12893 = vst [vmem:[#allocation111_spill] sm:$0xff] %v10847_v60  ;;  %v10849_v45 = vpop.permute.xlu2 %3481  ;;  %v3541_v63 = vsel %vm12894_vm12, %v10731_v61, %v10847_v60  ;;  %vm5083_vm12 = vcmask 392192  }
 0x57b   :  { %v3560_v35 = vmul.f32 %v12881_v3, %v3541_v63 }
 0x57d   :  { %3363 = vrot.lane.b32.xlu1 %v10343_v15, %s7487_s9  ;;  %v3579_v57 = vpack.c.bf16 %v3560_v35, %v3559_v7 }
 0x57e   :  { %v7330_v14 = vld [vmem:[#allocation2 + $0x28c] sm:$0xf0] }
 0x57f   :  { %v10859_v13 = vpop.permute.xlu1 %3727  ;;  %3591 = vst [vmem:[#allocation2 + $0x80] sm:$0xff] %v3579_v57  ;;  %3761 = vrot.lane.b32.xlu0 %v10423_v8, %s7488_s10  ;;  %v6930_v61 = vor.u32 %v7330_v14, %v6929_v46  ;;  %v3564_v57 = vmul.f32 %v12881_v3, %v3542_v2 }
 0x580   :  { %3873 = vrot.lane.b32.xlu2 %v10331_v31, %s7490_s12 }
 0x581   :  { %v10869_v63 = vpop.permute.xlu0 %3521  ;;  %5157 = vmatpush.bf16.msrb.mxu2 %v6930_v61 }
 0x582   :  { %12896 = vst [vmem:[#allocation112_spill] sm:$0xff] %v10869_v63  ;;  %v10871_v7 = vpop.permute.xlu2 %3515  ;;  %v3548_v35 = vsel %vm12898_vm10, %v10869_v63, %v10765_v41  ;;  %vm12951_vm10 = vmmov %vm12949_vm2 }
 0x583   :  { %12897 = vst [vmem:[#allocation113_spill] sm:$0xff] %v10871_v7  ;;  %v3563_v60 = vmul.f32 %v12880_v48, %v3548_v35 }
 0x585   :  { %3377 = vrot.lane.b32.xlu1 %v10351_v54, %s7487_s9  ;;  %v3581_v14 = vpack.c.bf16 %v3564_v57, %v3563_v60 }
 0x586   :  { %v6673_v63 = vld [vmem:[#allocation2 + $0x80] sm:$0xf] }
 0x587   :  { %v10881_v46 = vpop.permute.xlu1 %3741  ;;  %3593 = vst [vmem:[#allocation2 + $0x90] sm:$0xff] %v3581_v14  ;;  %3883 = vrot.lane.b32.xlu0 %v10357_v24, %s7490_s12 }
 0x588   :  { %12899 = vst [vmem:[#allocation114_spill] sm:$0xff] %v10881_v46  ;;  %3895 = vrot.lane.b32.xlu2 %v10421_v19, %s7490_s12 }
 0x589   :  { %v4000_v61 = vpop.permute.xlu0 %3999 }
 0x58a   :  { %v10887_v11 = vpop.permute.xlu2 %3729  ;;  %v4039_v41 = vsel %vm1001_vm7, %v4000_v61, %v10827_v10  ;;  %v4045_v60 = vsel %vm1001_vm7, %v10775_v29, %v4000_v61 }
 0x58b   :  { %v4063_v2 = vmul.f32 %v12888_v22, %v4045_v60  ;;  %v4064_v35 = vmul.f32 %v12889_v36, %v4039_v41  ;;  %v4046_v41 = vsel %vm1001_vm7, %v10803_v16, %v10797_v9 }
 0x58d   :  { %3719 = vrot.lane.b32.xlu1 %v10323_v23, %s7488_s10  ;;  %v4083_v57 = vpack.c.bf16 %v4064_v35, %v4063_v2 }
 0x58e   :  { %v7266_v51 = vld [vmem:[#allocation2 + $0x8c] sm:$0xf0] }
 0x58f   :  { %v10899_v14 = vpop.permute.xlu1 %3983  ;;  %4095 = vst [vmem:[#allocation2 + $0x260] sm:$0xff] %v4083_v57  ;;  %3897 = vrot.lane.b32.xlu0 %v10433_v12, %s7490_s12  ;;  %v6674_v61 = vor.u32 %v7266_v51, %v6673_v63  ;;  %v4067_v57 = vmul.f32 %v12888_v22, %v4046_v41 }
 0x590   :  { %4229 = vrot.lane.b32.xlu2 %v10341_v55, %s7494_s19 }
 0x591   :  { %v10909_v60 = vpop.permute.xlu0 %4013  ;;  %5099 = vmatpush.bf16.msrb.mxu0 %v6674_v61 }
 0x592   :  { %12900 = vst [vmem:[#allocation115_spill] sm:$0xff] %v10909_v60  ;;  %v10911_v2 = vpop.permute.xlu2 %3763  ;;  %v4040_v35 = vsel %vm1001_vm7, %v10797_v9, %v10909_v60  ;;  %v3545_v9 = vsel %vm12902_vm1, %v10871_v7, %v10815_v27  ;;  %vm12952_vm1 = vmmov %vm12949_vm2 }
 0x593   :  { %12901 = vst [vmem:[#allocation116_spill] sm:$0xff] %v10911_v2  ;;  %v4068_v29 = vmul.f32 %v12889_v36, %v4040_v35  ;;  %v3551_v35 = vmul.f32 %v12880_v48, %v3545_v9  ;;  %v3540_v9 = vsel %vm12906_vm6, %v10849_v45, %v10837_v58 }
 0x595   :  { %3733 = vrot.lane.b32.xlu1 %v10335_v49, %s7488_s10  ;;  %v4085_v51 = vpack.c.bf16 %v4068_v29, %v4067_v57 }
 0x596   :  { %v6913_v7 = vld [vmem:[#allocation2 + $0x260] sm:$0xf] }
 0x597   :  { %v10921_v63 = vpop.permute.xlu1 %3997  ;;  %4097 = vst [vmem:[#allocation2 + $0x270] sm:$0xff] %v4085_v51  ;;  %4239 = vrot.lane.b32.xlu0 %v10345_v47, %s7494_s19 }
 0x598   :  { %4251 = vrot.lane.b32.xlu2 %v10409_v26, %s7494_s19 }
 0x599   :  { %v10931_v61 = vpop.permute.xlu0 %3491 }
 0x59a   :  { %12903 = vst [vmem:[#allocation117_spill] sm:$0xff] %v10931_v61  ;;  %v10933_v41 = vpop.permute.xlu2 %3985  ;;  %v3539_v29 = vsel %vm12904_vm15, %v10815_v27, %v10931_v61  ;;  %vm12954_vm15 = vmmov %vm12952_vm1 }
 0x59b   :  { %v3552_v57 = vmul.f32 %v12881_v3, %v3539_v29 }
 0x59d   :  { %3867 = vrot.lane.b32.xlu1 %v10343_v15, %s7490_s12  ;;  %v3575_v51 = vpack.c.bf16 %v3552_v57, %v3551_v35  ;;  %v3556_v57 = vmul.f32 %v12881_v3, %v3540_v9  ;;  %v3789_v3 = vsel %vm823_vm11, %v10911_v2, %v10859_v13 }
 0x59e   :  { %v7326_v60 = vld [vmem:[#allocation2 + $0x26c] sm:$0xf0] }
 0x59f   :  { %v10943_v16 = vpop.permute.xlu1 %4231  ;;  %3587 = vst [vmem:[#allocation2 + $0x60] sm:$0xff] %v3575_v51  ;;  %4253 = vrot.lane.b32.xlu0 %v10419_v18, %s7494_s19  ;;  %v6914_v27 = vor.u32 %v7326_v60, %v6913_v7 }
 0x5a0   :  { %12905 = vst [vmem:[#allocation118_spill] sm:$0xff] %v10943_v16  ;;  %3365 = vrot.lane.b32.xlu2 %v10341_v55, %s7487_s9 }
 0x5a1   :  { %v10953_v29 = vpop.permute.xlu0 %3517  ;;  %5158 = vmatpush.bf16.msrb.mxu2 %v6914_v27  ;;  %v12909_v27 = vld [vmem:[#allocation69_spill] sm:$0xff] }
 0x5a2   :  { %v10955_v15 = vpop.permute.xlu2 %4007  ;;  %v3546_v35 = vsel %vm12907_vm13, %v10953_v29, %v10849_v45  ;;  %v3807_v9 = vmul.f32 %v12909_v27, %v3789_v3  ;;  %v3784_v3 = vsel %vm823_vm11, %v10887_v11, %v10881_v46  ;;  %vm12961_vm13 = vmmov %vm12906_vm6 }
 0x5a3   :  { %v3555_v51 = vmul.f32 %v12880_v48, %v3546_v35  ;;  %v12910_v35 = vld [vmem:[#allocation67_spill] sm:$0xff] }
 0x5a5   :  { %3881 = vrot.lane.b32.xlu1 %v10351_v54, %s7490_s12  ;;  %v3577_v7 = vpack.c.bf16 %v3556_v57, %v3555_v51 }
 0x5a6   :  { %v6657_v61 = vld [vmem:[#allocation2 + $0x60] sm:$0xf] }
 0x5a7   :  { %v10965_v60 = vpop.permute.xlu1 %4245  ;;  %3589 = vst [vmem:[#allocation2 + $0x70] sm:$0xff] %v3577_v7  ;;  %3375 = vrot.lane.b32.xlu0 %v10345_v47, %s7487_s9 }
 0x5a8   :  { %3399 = vrot.lane.b32.xlu2 %v10411_v28, %s7487_s9 }
 0x5a9   :  { %v10975_v45 = vpop.permute.xlu0 %3739 }
 0x5aa   :  { %12908 = vst [vmem:[#allocation119_spill] sm:$0xff] %v10975_v45  ;;  %v10977_v48 = vpop.permute.xlu2 %4233  ;;  %v3783_v54 = vsel %vm823_vm11, %v10859_v13, %v10975_v45 }
 0x5ab   :  { %v3808_v57 = vmul.f32 %v12910_v35, %v3783_v54 }
 0x5ad   :  { %4223 = vrot.lane.b32.xlu1 %v10323_v23, %s7494_s19  ;;  %v3823_v51 = vpack.c.bf16 %v3808_v57, %v3807_v9 }
 0x5ae   :  { %v7262_v2 = vld [vmem:[#allocation2 + $0x6c] sm:$0xf0] }
 0x5af   :  { %v10987_v7 = vpop.permute.xlu1 %3367  ;;  %3835 = vst [vmem:[#allocation2 + $0x160] sm:$0xff] %v3823_v51  ;;  %3401 = vrot.lane.b32.xlu0 %v10423_v8, %s7487_s9  ;;  %v6658_v13 = vor.u32 %v7262_v2, %v6657_v61  ;;  %v3812_v51 = vmul.f32 %v12910_v35, %v3784_v3 }
 0x5b0   :  { %3721 = vrot.lane.b32.xlu2 %v10333_v40, %s7488_s10 }
 0x5b1   :  { %v10997_v54 = vpop.permute.xlu0 %3765  ;;  %5100 = vmatpush.bf16.msrb.mxu0 %v6658_v13 }
 0x5b2   :  { %12911 = vst [vmem:[#allocation69_spill] sm:$0xff] %v10997_v54  ;;  %v10999_v9 = vpop.permute.xlu2 %4255  ;;  %v3790_v57 = vsel %vm823_vm11, %v10997_v54, %v10887_v11 }
 0x5b3   :  { %12912 = vst [vmem:[#allocation67_spill] sm:$0xff] %v10999_v9  ;;  %v3811_v45 = vmul.f32 %v12909_v27, %v3790_v57 }
 0x5b5   :  { %4237 = vrot.lane.b32.xlu1 %v10335_v49, %s7494_s19  ;;  %v3825_v2 = vpack.c.bf16 %v3812_v51, %v3811_v45 }
 0x5b6   :  { %v6785_v54 = vld [vmem:[#allocation2 + $0x160] sm:$0xf] }
 0x5b7   :  { %v11009_v61 = vpop.permute.xlu1 %3381  ;;  %3837 = vst [vmem:[#allocation2 + $0x170] sm:$0xff] %v3825_v2  ;;  %3731 = vrot.lane.b32.xlu0 %v10325_v30, %s7488_s10 }
 0x5b8   :  { %12913 = vst [vmem:[#allocation120_spill] sm:$0xff] %v11009_v61  ;;  %3755 = vrot.lane.b32.xlu2 %v10397_v34, %s7488_s10 }
 0x5b9   :  { %v3996_v13 = vpop.permute.xlu0 %3995 }
 0x5ba   :  { %v11015_v46 = vpop.permute.xlu2 %3369  ;;  %v4037_v11 = vsel %vm1001_vm7, %v3996_v13, %v10955_v15  ;;  %v4043_v45 = vsel %vm1001_vm7, %v10899_v14, %v3996_v13 }
 0x5bb   :  { %v4055_v3 = vmul.f32 %v12888_v22, %v4043_v45  ;;  %v4056_v57 = vmul.f32 %v12889_v36, %v4037_v11  ;;  %v4044_v11 = vsel %vm1001_vm7, %v10933_v41, %v10921_v63 }
 0x5bd   :  { %3359 = vrot.lane.b32.xlu1 %v10323_v23, %s7487_s9  ;;  %v4079_v51 = vpack.c.bf16 %v4056_v57, %v4055_v3  ;;  %v4059_v57 = vmul.f32 %v12888_v22, %v4044_v11 }
 0x5be   :  { %v7294_v58 = vld [vmem:[#allocation2 + $0x16c] sm:$0xf0] }
 0x5bf   :  { %v11027_v2 = vpop.permute.xlu1 %3723  ;;  %4091 = vst [vmem:[#allocation2 + $0x240] sm:$0xff] %v4079_v51  ;;  %3757 = vrot.lane.b32.xlu0 %v10403_v42, %s7488_s10  ;;  %v6786_v13 = vor.u32 %v7294_v58, %v6785_v54 }
 0x5c0   :  { %3869 = vrot.lane.b32.xlu2 %v10341_v55, %s7490_s12 }
 0x5c1   :  { %v11037_v45 = vpop.permute.xlu0 %4009  ;;  %5129 = vmatpush.bf16.msrb.mxu1 %v6786_v13 }
 0x5c2   :  { %v11039_v23 = vpop.permute.xlu2 %3403  ;;  %v4038_v3 = vsel %vm1001_vm7, %v10921_v63, %v11037_v45 }
 0x5c3   :  { %v4060_v55 = vmul.f32 %v12889_v36, %v4038_v3 }
 0x5c5   :  { %3373 = vrot.lane.b32.xlu1 %v10335_v49, %s7487_s9  ;;  %v4081_v58 = vpack.c.bf16 %v4060_v55, %v4059_v57 }
 0x5c6   :  { %v6897_v3 = vld [vmem:[#allocation2 + $0x240] sm:$0xf] }
 0x5c7   :  { %v11049_v54 = vpop.permute.xlu1 %3737  ;;  %4093 = vst [vmem:[#allocation2 + $0x250] sm:$0xff] %v4081_v58  ;;  %3879 = vrot.lane.b32.xlu0 %v10345_v47, %s7490_s12  ;;  %v4288_v58 = vsel %vm1163_vm14, %v10977_v48, %v10965_v60 }
 0x5c8   :  { %12914 = vst [vmem:[#allocation121_spill] sm:$0xff] %v11049_v54  ;;  %3891 = vrot.lane.b32.xlu2 %v10409_v26, %s7490_s12 }
 0x5c9   :  { %v4244_v51 = vpop.permute.xlu0 %4243 }
 0x5ca   :  { %v11055_v13 = vpop.permute.xlu2 %3725  ;;  %v4281_v22 = vsel %vm1163_vm14, %v4244_v51, %v10999_v9  ;;  %v4287_v49 = vsel %vm1163_vm14, %v10943_v16, %v4244_v51 }
 0x5cb   :  { %v4311_v36 = vmul.f32 %v9044_v44, %v4287_v49  ;;  %v4312_v63 = vmul.f32 %v9047_v52, %v4281_v22  ;;  %v4315_v49 = vmul.f32 %v9044_v44, %v4288_v58 }
 0x5cd   :  { %3607 = vrot.lane.b32.xlu1 %v10321_v32, %s7489_s11  ;;  %v4327_v47 = vpack.c.bf16 %v4312_v63, %v4311_v36 }
 0x5ce   :  { %v7322_v57 = vld [vmem:[#allocation2 + $0x24c] sm:$0xf0] }
 0x5cf   :  { %v11067_v11 = vpop.permute.xlu1 %3871  ;;  %4339 = vst [vmem:[#allocation2 + $0x340] sm:$0xff] %v4327_v47  ;;  %3893 = vrot.lane.b32.xlu0 %v10419_v18, %s7490_s12  ;;  %v6898_v55 = vor.u32 %v7322_v57, %v6897_v3 }
 0x5d0   :  { %12915 = vst [vmem:[#allocation122_spill] sm:$0xff] %v11067_v11  ;;  %4225 = vrot.lane.b32.xlu2 %v10333_v40, %s7494_s19 }
 0x5d1   :  { %v11077_v51 = vpop.permute.xlu0 %4257  ;;  %5159 = vmatpush.bf16.msrb.mxu2 %v6898_v55  ;;  %v12917_v55 = vld [vmem:[#allocation63_spill] sm:$0xff] }
 0x5d2   :  { %v11079_v32 = vpop.permute.xlu2 %3759  ;;  %v4282_v22 = vsel %vm1163_vm14, %v10965_v60, %v11077_v51  ;;  %v3429_v60 = vsel %vm580_vm8, %v11039_v23, %v10987_v7 }
 0x5d3   :  { %v4316_v36 = vmul.f32 %v9047_v52, %v4282_v22  ;;  %v3447_v58 = vmul.f32 %v12917_v55, %v3429_v60  ;;  %v12918_v22 = vld [vmem:[#allocation61_spill] sm:$0xff]  ;;  %v3424_v60 = vsel %vm580_vm8, %v11015_v46, %v11009_v61 }
 0x5d5   :  { %3621 = vrot.lane.b32.xlu1 %v10363_v33, %s7489_s11  ;;  %v4329_v63 = vpack.c.bf16 %v4316_v36, %v4315_v49 }
 0x5d6   :  { %v7025_v16 = vld [vmem:[#allocation2 + $0x340] sm:$0xf] }
 0x5d7   :  { %v11089_v47 = vpop.permute.xlu1 %3885  ;;  %4341 = vst [vmem:[#allocation2 + $0x350] sm:$0xff] %v4329_v63  ;;  %4235 = vrot.lane.b32.xlu0 %v10325_v30, %s7494_s19 }
 0x5d8   :  { %4247 = vrot.lane.b32.xlu2 %v10371_v1, %s7494_s19 }
 0x5d9   :  { %v11099_v3 = vpop.permute.xlu0 %3379 }
 0x5da   :  { %v11101_v57 = vpop.permute.xlu2 %3873  ;;  %v3423_v33 = vsel %vm580_vm8, %v10987_v7, %v11099_v3 }
 0x5db   :  { %12916 = vst [vmem:[#allocation123_spill] sm:$0xff] %v11101_v57  ;;  %v3448_v49 = vmul.f32 %v12918_v22, %v3423_v33 }
 0x5dd   :  { %4147 = vrot.lane.b32.xlu1 %v10435_v39, %s7493_s1  ;;  %v3463_v36 = vpack.c.bf16 %v3448_v49, %v3447_v58 }
 0x5de   :  { %v7354_v9 = vld [vmem:[#allocation2 + $0x34c] sm:$0xf0] }
 0x5df   :  { %v11111_v63 = vpop.permute.xlu1 %4227  ;;  %3475 = vst [vmem:[#allocation2 + $0x40] sm:$0xff] %v3463_v36  ;;  %4249 = vrot.lane.b32.xlu0 %v10379_v62, %s7494_s19  ;;  %v7026_v7 = vor.u32 %v7354_v9, %v7025_v16  ;;  %v3452_v36 = vmul.f32 %v12918_v22, %v3424_v60 }
 0x5e0   :  { %12919 = vst [vmem:[#allocation63_spill] sm:$0xff] %v11111_v63  ;;  %3361 = vrot.lane.b32.xlu2 %v10333_v40, %s7487_s9 }
 0x5e1   :  { %v11121_v33 = vpop.permute.xlu0 %3405  ;;  %5188 = vmatpush.bf16.msrb.mxu3 %v7026_v7 }
 0x5e2   :  { %12920 = vst [vmem:[#allocation61_spill] sm:$0xff] %v11121_v33  ;;  %v11123_v58 = vpop.permute.xlu2 %3895  ;;  %v3430_v49 = vsel %vm580_vm8, %v11121_v33, %v11015_v46  ;;  %v3787_v46 = vsel %vm823_vm11, %v11079_v32, %v11027_v2 }
 0x5e3   :  { %12921 = vst [vmem:[#allocation124_spill] sm:$0xff] %v11123_v58  ;;  %v3451_v40 = vmul.f32 %v12917_v55, %v3430_v49 }
 0x5e5   :  { %3629 = vrot.lane.b32.xlu1 %v10419_v18, %s7489_s11  ;;  %v3465_v16 = vpack.c.bf16 %v3452_v36, %v3451_v40  ;;  %v3799_v36 = vmul.f32 %v12909_v27, %v3787_v46  ;;  %v3782_v46 = vsel %vm823_vm11, %v11055_v13, %v11049_v54 }
 0x5e6   :  { %v6641_v61 = vld [vmem:[#allocation2 + $0x40] sm:$0xf] }
 0x5e7   :  { %v11133_v9 = vpop.permute.xlu1 %4241  ;;  %3477 = vst [vmem:[#allocation2 + $0x50] sm:$0xff] %v3465_v16  ;;  %3371 = vrot.lane.b32.xlu0 %v10325_v30, %s7487_s9 }
 0x5e8   :  { %3395 = vrot.lane.b32.xlu2 %v10397_v34, %s7487_s9 }
 0x5e9   :  { %v11143_v7 = vpop.permute.xlu0 %3735 }
 0x5ea   :  { %v11145_v60 = vpop.permute.xlu2 %4229  ;;  %v3781_v49 = vsel %vm823_vm11, %v11027_v2, %v11143_v7 }
 0x5eb   :  { %12922 = vst [vmem:[#allocation125_spill] sm:$0xff] %v11145_v60  ;;  %v3800_v30 = vmul.f32 %v12910_v35, %v3781_v49 }
 0x5ed   :  { %4143 = vrot.lane.b32.xlu1 %v10411_v28, %s7493_s1  ;;  %v3819_v40 = vpack.c.bf16 %v3800_v30, %v3799_v36 }
 0x5ee   :  { %v7258_v33 = vld [vmem:[#allocation2 + $0x4c] sm:$0xf0] }
 0x5ef   :  { %v11155_v16 = vpop.permute.xlu1 %3363  ;;  %3831 = vst [vmem:[#allocation2 + $0x140] sm:$0xff] %v3819_v40  ;;  %3397 = vrot.lane.b32.xlu0 %v10403_v42, %s7487_s9  ;;  %v6642_v2 = vor.u32 %v7258_v33, %v6641_v61  ;;  %v3804_v40 = vmul.f32 %v12910_v35, %v3782_v46 }
 0x5f0   :  { %3609 = vrot.lane.b32.xlu2 %v10331_v31, %s7489_s11 }
 0x5f1   :  { %v11165_v49 = vpop.permute.xlu0 %3761  ;;  %5101 = vmatpush.bf16.msrb.mxu0 %v6642_v2 }
 0x5f2   :  { %12923 = vst [vmem:[#allocation126_spill] sm:$0xff] %v11165_v49  ;;  %v11167_v36 = vpop.permute.xlu2 %4251  ;;  %v3788_v30 = vsel %vm823_vm11, %v11165_v49, %v11055_v13 }
 0x5f3   :  { %12924 = vst [vmem:[#allocation127_spill] sm:$0xff] %v11167_v36  ;;  %v3803_v31 = vmul.f32 %v12909_v27, %v3788_v30 }
 0x5f5   :  { %3625 = vrot.lane.b32.xlu1 %v10379_v62, %s7489_s11  ;;  %v3821_v61 = vpack.c.bf16 %v3804_v40, %v3803_v31 }
 0x5f7   :  { %v11177_v33 = vpop.permute.xlu1 %3377  ;;  %3833 = vst [vmem:[#allocation2 + $0x150] sm:$0xff] %v3821_v61  ;;  %3619 = vrot.lane.b32.xlu0 %v10357_v24, %s7489_s11  ;;  %v6769_v61 = vld [vmem:[#allocation2 + $0x140] sm:$0xf] }
 0x5f8   :  { %12925 = vst [vmem:[#allocation128_spill] sm:$0xff] %v11177_v33  ;;  %3643 = vrot.lane.b32.xlu2 %v10435_v39, %s7489_s11 }
 0x5f9   :  { %v3884_v2 = vpop.permute.xlu0 %3883 }
 0x5fa   :  { %v11183_v54 = vpop.permute.xlu2 %3365  ;;  %v3921_v13 = vsel %vm920_vm9, %v3884_v2, %v11123_v58  ;;  %v3927_v46 = vsel %vm920_vm9, %v11067_v11, %v3884_v2 }
 0x5fb   :  { %v3951_v30 = vmul.f32 %v12847_v59, %v3927_v46  ;;  %v3952_v40 = vmul.f32 %v12846_v38, %v3921_v13  ;;  %v3928_v13 = vsel %vm920_vm9, %v11101_v57, %v11089_v47 }
 0x5fd   :  { %3511 = vrot.lane.b32.xlu1 %v10421_v19, %s7486_s23  ;;  %v3967_v24 = vpack.c.bf16 %v3952_v40, %v3951_v30 }
 0x5fe   :  { %v7290_v49 = vld [vmem:[#allocation2 + $0x14c] sm:$0xf0] }
 0x5ff   :  { %v11195_v31 = vpop.permute.xlu1 %3719  ;;  %3979 = vst [vmem:[#allocation2 + $0x220] sm:$0xff] %v3967_v24  ;;  %3645 = vrot.lane.b32.xlu0 %v10445_v5, %s7489_s11  ;;  %v6770_v2 = vor.u32 %v7290_v49, %v6769_v61  ;;  %v3955_v24 = vmul.f32 %v12847_v59, %v3928_v13 }
 0x600   :  { %4149 = vrot.lane.b32.xlu2 %v10445_v5, %s7493_s1 }
 0x601   :  { %v11205_v46 = vpop.permute.xlu0 %3897  ;;  %5130 = vmatpush.bf16.msrb.mxu1 %v6770_v2 }
 0x602   :  { %12926 = vst [vmem:[#allocation129_spill] sm:$0xff] %v11205_v46  ;;  %v11207_v30 = vpop.permute.xlu2 %3399  ;;  %v3922_v40 = vsel %vm920_vm9, %v11089_v47, %v11205_v46 }
 0x603   :  { %v3956_v11 = vmul.f32 %v12846_v38, %v3922_v40 }
 0x605   :  { %4029 = vrot.lane.b32.xlu1 %v10445_v5, %s7491_s13  ;;  %v3969_v49 = vpack.c.bf16 %v3956_v11, %v3955_v24 }
 0x606   :  { %v6881_v57 = vld [vmem:[#allocation2 + $0x220] sm:$0xf] }
 0x607   :  { %v11217_v61 = vpop.permute.xlu1 %3733  ;;  %3981 = vst [vmem:[#allocation2 + $0x230] sm:$0xff] %v3969_v49  ;;  %3627 = vrot.lane.b32.xlu0 %v10409_v26, %s7489_s11 }
 0x608   :  { %12927 = vst [vmem:[#allocation130_spill] sm:$0xff] %v11217_v61  ;;  %3899 = vrot.lane.b32.xlu2 %v10397_v34, %s7490_s12 }
 0x609   :  { %v4240_v2 = vpop.permute.xlu0 %4239 }
 0x60a   :  { %v11223_v58 = vpop.permute.xlu2 %3721  ;;  %v4279_v47 = vsel %vm1163_vm14, %v4240_v2, %v11167_v36  ;;  %v4285_v11 = vsel %vm1163_vm14, %v11111_v63, %v4240_v2 }
 0x60b   :  { %v4303_v13 = vmul.f32 %v9044_v44, %v4285_v11  ;;  %v4304_v40 = vmul.f32 %v9047_v52, %v4279_v47  ;;  %v4286_v47 = vsel %vm1163_vm14, %v11145_v60, %v11133_v9 }
 0x60d   :  { %4023 = vrot.lane.b32.xlu1 %v10411_v28, %s7491_s13  ;;  %v4323_v24 = vpack.c.bf16 %v4304_v40, %v4303_v13 }
 0x60e   :  { %v7318_v46 = vld [vmem:[#allocation2 + $0x22c] sm:$0xf0] }
 0x60f   :  { %v11235_v49 = vpop.permute.xlu1 %3867  ;;  %4335 = vst [vmem:[#allocation2 + $0x320] sm:$0xff] %v4323_v24  ;;  %3901 = vrot.lane.b32.xlu0 %v10403_v42, %s7490_s12  ;;  %v6882_v2 = vor.u32 %v7318_v46, %v6881_v57  ;;  %v4307_v24 = vmul.f32 %v9044_v44, %v4286_v47 }
 0x610   :  { %12928 = vst [vmem:[#allocation131_spill] sm:$0xff] %v11235_v49  ;;  %4145 = vrot.lane.b32.xlu2 %v10423_v8, %s7493_s1 }
 0x611   :  { %v11245_v11 = vpop.permute.xlu0 %4253  ;;  %5160 = vmatpush.bf16.msrb.mxu2 %v6882_v2 }
 0x612   :  { %12929 = vst [vmem:[#allocation132_spill] sm:$0xff] %v11245_v11  ;;  %v11247_v13 = vpop.permute.xlu2 %3755  ;;  %v4280_v40 = vsel %vm1163_vm14, %v11133_v9, %v11245_v11  ;;  %v3427_v9 = vsel %vm580_vm8, %v11207_v30, %v11155_v16 }
 0x613   :  { %12930 = vst [vmem:[#allocation133_spill] sm:$0xff] %v11247_v13  ;;  %v4308_v63 = vmul.f32 %v9047_v52, %v4280_v40  ;;  %v3439_v40 = vmul.f32 %v12917_v55, %v3427_v9  ;;  %v3422_v9 = vsel %vm580_vm8, %v11183_v54, %v11177_v33 }
 0x615   :  { %3505 = vrot.lane.b32.xlu1 %v10379_v62, %s7486_s23  ;;  %v4325_v57 = vpack.c.bf16 %v4308_v63, %v4307_v24 }
 0x616   :  { %v7009_v11 = vld [vmem:[#allocation2 + $0x320] sm:$0xf] }
 0x617   :  { %v11257_v46 = vpop.permute.xlu1 %3881  ;;  %4337 = vst [vmem:[#allocation2 + $0x330] sm:$0xff] %v4325_v57  ;;  %3623 = vrot.lane.b32.xlu0 %v10371_v1, %s7489_s11 }
 0x618   :  { %4139 = vrot.lane.b32.xlu2 %v10397_v34, %s7493_s1 }
 0x619   :  { %v11267_v2 = vpop.permute.xlu0 %3375 }
 0x61a   :  { %12931 = vst [vmem:[#allocation134_spill] sm:$0xff] %v11267_v2  ;;  %v11269_v47 = vpop.permute.xlu2 %3869  ;;  %v3421_v63 = vsel %vm580_vm8, %v11155_v16, %v11267_v2 }
 0x61b   :  { %12932 = vst [vmem:[#allocation135_spill] sm:$0xff] %v11269_v47  ;;  %v3440_v24 = vmul.f32 %v12918_v22, %v3421_v63 }
 0x61d   :  { %4019 = vrot.lane.b32.xlu1 %v10397_v34, %s7491_s13  ;;  %v3459_v57 = vpack.c.bf16 %v3440_v24, %v3439_v40 }
 0x61e   :  { %v7350_v36 = vld [vmem:[#allocation2 + $0x32c] sm:$0xf0] }
 0x61f   :  { %v11279_v60 = vpop.permute.xlu1 %4223  ;;  %3471 = vst [vmem:[#allocation2 + $0x20] sm:$0xff] %v3459_v57  ;;  %4141 = vrot.lane.b32.xlu0 %v10403_v42, %s7493_s1  ;;  %v7010_v16 = vor.u32 %v7350_v36, %v7009_v11  ;;  %v3444_v57 = vmul.f32 %v12918_v22, %v3422_v9  ;;  %s5793_s1 = sshll.u32 %s12205_s8, 4  ;;  %s5794_s1 = int_to_ptr.hbm [resolvable:$true] %s5793_s1 }
 0x620   :  { %3513 = vrot.lane.b32.xlu2 %v10433_v12, %s7486_s23 }
 0x621   :  { %v11289_v63 = vpop.permute.xlu0 %3401  ;;  %5189 = vmatpush.bf16.msrb.mxu3 %v7010_v16 }
 0x622   :  { %12933 = vst [vmem:[#allocation136_spill] sm:$0xff] %v11289_v63  ;;  %v11291_v40 = vpop.permute.xlu2 %3891  ;;  %v3428_v24 = vsel %vm580_vm8, %v11289_v63, %v11183_v54  ;;  %v3785_v54 = vsel %vm823_vm11, %v11247_v13, %v11195_v31 }
 0x623   :  { %12934 = vst [vmem:[#allocation137_spill] sm:$0xff] %v11291_v40  ;;  %v3443_v2 = vmul.f32 %v12917_v55, %v3428_v24  ;;  %v3791_v24 = vmul.f32 %v12909_v27, %v3785_v54  ;;  %v3780_v54 = vsel %vm823_vm11, %v11223_v58, %v11217_v61 }
 0x625   :  { %4269 = vrot.lane.b32.xlu1 %v10445_v5, %s7494_s19  ;;  %v3461_v36 = vpack.c.bf16 %v3444_v57, %v3443_v2 }
 0x626   :  { %v6625_v13 = vld [vmem:[#allocation2 + $0x20] sm:$0xf] }
 0x627   :  { %v11301_v11 = vpop.permute.xlu1 %4237  ;;  %3473 = vst [vmem:[#allocation2 + $0x30] sm:$0xff] %v3461_v36  ;;  %4027 = vrot.lane.b32.xlu0 %v10435_v39, %s7491_s13 }
 0x628   :  { %3507 = vrot.lane.b32.xlu2 %v10409_v26, %s7486_s23 }
 0x629   :  { %v11311_v16 = vpop.permute.xlu0 %3731 }
 0x62a   :  { %12935 = vst [vmem:[#allocation138_spill] sm:$0xff] %v11311_v16  ;;  %v11313_v9 = vpop.permute.xlu2 %4225  ;;  %v3779_v2 = vsel %vm823_vm11, %v11195_v31, %v11311_v16 }
 0x62b   :  { %v3792_v57 = vmul.f32 %v12910_v35, %v3779_v2 }
 0x62d   :  { %3747 = vrot.lane.b32.xlu1 %v10409_v26, %s7488_s10  ;;  %v3815_v36 = vpack.c.bf16 %v3792_v57, %v3791_v24 }
 0x62e   :  { %v7254_v63 = vld [vmem:[#allocation2 + $0x2c] sm:$0xf0] }
 0x62f   :  { %v11323_v33 = vpop.permute.xlu1 %3359  ;;  %3827 = vst [vmem:[#allocation2 + $0x120] sm:$0xff] %v3815_v36  ;;  %3509 = vrot.lane.b32.xlu0 %v10419_v18, %s7486_s23  ;;  %v6626_v31 = vor.u32 %v7254_v63, %v6625_v13  ;;  %v3796_v36 = vmul.f32 %v12910_v35, %v3780_v54 }
 0x630   :  { %4025 = vrot.lane.b32.xlu2 %v10423_v8, %s7491_s13 }
 0x631   :  { %v11333_v2 = vpop.permute.xlu0 %3757  ;;  %5102 = vmatpush.bf16.msrb.mxu0 %v6626_v31 }
 0x632   :  { %v11335_v24 = vpop.permute.xlu2 %4247  ;;  %v3786_v57 = vsel %vm823_vm11, %v11333_v2, %v11223_v58 }
 0x633   :  { %v3795_v16 = vmul.f32 %v12909_v27, %v3786_v57 }
 0x635   :  { %3909 = vrot.lane.b32.xlu1 %v10445_v5, %s7490_s12  ;;  %v3817_v13 = vpack.c.bf16 %v3796_v36, %v3795_v16 }
 0x636   :  { %v6753_v57 = vld [vmem:[#allocation2 + $0x120] sm:$0xf] }
 0x637   :  { %v11345_v63 = vpop.permute.xlu1 %3373  ;;  %3829 = vst [vmem:[#allocation2 + $0x130] sm:$0xff] %v3817_v13  ;;  %3503 = vrot.lane.b32.xlu0 %v10371_v1, %s7486_s23 }
 0x638   :  { %3751 = vrot.lane.b32.xlu2 %v10421_v19, %s7488_s10 }
 0x639   :  { %v3880_v31 = vpop.permute.xlu0 %3879 }
 0x63a   :  { %v11351_v61 = vpop.permute.xlu2 %3361  ;;  %v3919_v27 = vsel %vm920_vm9, %v3880_v31, %v11291_v40  ;;  %v3925_v5 = vsel %vm920_vm9, %v11235_v49, %v3880_v31  ;;  %v3926_v31 = vsel %vm920_vm9, %v11269_v47, %v11257_v46  ;;  %v6553_v49 = vld [vmem:[#allocation8 + $0x8] sm:$0xf]  ;;  %v6963_v40 = vld [vmem:[#allocation2 + $0x2d0] sm:$0xf0] }
 0x63b   :  { %v3943_v35 = vmul.f32 %v12847_v59, %v3925_v5  ;;  %v3944_v58 = vmul.f32 %v12846_v38, %v3919_v27 }
 0x63d   :  { %3387 = vrot.lane.b32.xlu1 %v10409_v26, %s7487_s9  ;;  %v3963_v16 = vpack.c.bf16 %v3944_v58, %v3943_v35  ;;  %v3947_v35 = vmul.f32 %v12847_v59, %v3926_v31 }
 0x63e   :  { %v7286_v36 = vld [vmem:[#allocation2 + $0x12c] sm:$0xf0] }
 0x63f   :  { %v11363_v54 = vpop.permute.xlu1 %3607  ;;  %3975 = vst [vmem:[#allocation2 + $0x200] sm:$0xff] %v3963_v16  ;;  %3753 = vrot.lane.b32.xlu0 %v10433_v12, %s7488_s10  ;;  %v6754_v13 = vor.u32 %v7286_v36, %v6753_v57 }
 0x640   :  { %4021 = vrot.lane.b32.xlu2 %v10403_v42, %s7491_s13 }
 0x641   :  { %v11373_v27 = vpop.permute.xlu0 %3893  ;;  %5131 = vmatpush.bf16.msrb.mxu1 %v6754_v13 }
 0x642   :  { %12936 = vst [vmem:[#allocation139_spill] sm:$0xff] %v11373_v27  ;;  %v11375_v26 = vpop.permute.xlu2 %3395  ;;  %v3920_v5 = vsel %vm920_vm9, %v11257_v46, %v11373_v27 }
 0x643   :  { %12937 = vst [vmem:[#allocation140_spill] sm:$0xff] %v11375_v26  ;;  %v3948_v58 = vmul.f32 %v12846_v38, %v3920_v5 }
 0x645   :  { %3745 = vrot.lane.b32.xlu1 %v10379_v62, %s7488_s10  ;;  %v3965_v16 = vpack.c.bf16 %v3948_v58, %v3947_v35  ;;  %v6979_v58 = vld [vmem:[#allocation2 + $0x2f0] sm:$0xf0] }
 0x646   :  { %v6865_v27 = vld [vmem:[#allocation2 + $0x200] sm:$0xf] }
 0x647   :  { %v11385_v57 = vpop.permute.xlu1 %3621  ;;  %3977 = vst [vmem:[#allocation2 + $0x210] sm:$0xff] %v3965_v16  ;;  %4267 = vrot.lane.b32.xlu0 %v10435_v39, %s7494_s19 }
 0x648   :  { %12938 = vst [vmem:[#allocation141_spill] sm:$0xff] %v11385_v57  ;;  %3391 = vrot.lane.b32.xlu2 %v10421_v19, %s7487_s9 }
 0x649   :  { %v4236_v36 = vpop.permute.xlu0 %4235 }
 0x64a   :  { %v11391_v13 = vpop.permute.xlu2 %3609  ;;  %v4277_v38 = vsel %vm1163_vm14, %v4236_v36, %v11335_v24  ;;  %v4283_v59 = vsel %vm1163_vm14, %v11279_v60, %v4236_v36 }
 0x64b   :  { %v4295_v46 = vmul.f32 %v9044_v44, %v4283_v59  ;;  %v4296_v31 = vmul.f32 %v9047_v52, %v4277_v38 }
 0x64d   :  { %4259 = vrot.lane.b32.xlu1 %v10397_v34, %s7494_s19  ;;  %v4319_v5 = vpack.c.bf16 %v4296_v31, %v4295_v46  ;;  %v7235_v46 = vld [vmem:[#allocation8 + $0x14] sm:$0xf0] }
 0x64e   :  { %v7314_v36 = vld [vmem:[#allocation2 + $0x20c] sm:$0xf0] }
 0x64f   :  { %v4148_v35 = vpop.permute.xlu1 %4147  ;;  %4331 = vst [vmem:[#allocation2 + $0x300] sm:$0xff] %v4319_v5  ;;  %3393 = vrot.lane.b32.xlu0 %v10433_v12, %s7487_s9  ;;  %v6866_v34 = vor.u32 %v7314_v36, %v6865_v27  ;;  %v11419_v5 = vor.u32 %v7235_v46, %v6553_v49  ;;  %v7336_v49 = vld [vmem:[#allocation2 + $0x2c4] sm:$0xf] }
 0x650   :  { %v4155_v16 = vsel %vm1082_vm5, %v10565_v43, %v4148_v35  ;;  %v4173_v47 = vsel %vm1082_vm5, %v4148_v35, %v10461_v50  ;;  %3749 = vrot.lane.b32.xlu2 %v10419_v18, %s7488_s10  ;;  %v7340_v43 = vld [vmem:[#allocation2 + $0x2e4] sm:$0xf]  ;;  %v4284_v50 = vsel %vm1163_vm14, %v11313_v9, %v11301_v11 }
 0x651   :  { %v4193_v38 = vmul.f32 %v9041_v20, %v4155_v16  ;;  %v4194_v59 = vmul.f32 %v9052_v53, %v4173_v47  ;;  %v6982_v31 = vor.u32 %v7340_v43, %v6979_v58  ;;  %v11421_v16 = vpop.permute.xlu0 %4249  ;;  %5161 = vmatpush.bf16.msrb.mxu2 %v6866_v34  ;;  %v4299_v36 = vmul.f32 %v9044_v44, %v4284_v50  ;;  %v6947_v43 = vld [vmem:[#allocation2 + $0x2b0] sm:$0xf0] }
 0x652   :  { %v11423_v47 = vpop.permute.xlu2 %3643  ;;  %v4278_v27 = vsel %vm1163_vm14, %v11301_v11, %v11421_v16 }
 0x653   :  { %v4208_v35 = vpack.c.bf16 %v4194_v59, %v4193_v38  ;;  %12939 = vst [vmem:[#allocation142_spill] sm:$0xff] %v11423_v47  ;;  %v4300_v58 = vmul.f32 %v9047_v52, %v4278_v27  ;;  %v6966_v38 = vor.u32 %v7336_v49, %v6963_v40  ;;  %v7332_v40 = vld [vmem:[#allocation2 + $0x2a4] sm:$0xf] }
 0x654   :  { %5162 = vmatmul.bf16.vlgmr.msrb.gmra.mxu2 %v11419_v5  ;;  %v6950_v46 = vor.u32 %v7332_v40, %v6947_v43  ;;  %v6915_v43 = vld [vmem:[#allocation2 + $0x270] sm:$0xf0] }
 0x655   :  { %5270 = vmatpush.bf16.msra.mxu2 %v6982_v31  ;;  %4220 = vst [vmem:[#allocation2 + $0x2e8] sm:$0xff] %v4208_v35  ;;  %3385 = vrot.lane.b32.xlu1 %v10379_v62, %s7487_s9  ;;  %v4321_v59 = vpack.c.bf16 %v4300_v58, %v4299_v36  ;;  %v6931_v35 = vld [vmem:[#allocation2 + $0x290] sm:$0xf0] }
 0x656   :  { %v6555_v40 = vld [vmem:[#allocation8 + $0x18] sm:$0xf0] }
 0x657   :  { %v3630_v34 = vpop.permute.xlu1 %3629  ;;  %4333 = vst [vmem:[#allocation2 + $0x310] sm:$0xff] %v4321_v59  ;;  %3907 = vrot.lane.b32.xlu0 %v10435_v39, %s7490_s12 }
 0x658   :  { %v3650_v11 = vsel %vm12940_vm4, %v3630_v34, %v10613_v17  ;;  %v3656_v44 = vsel %vm12941_vm3, %v10493_v37, %v3630_v34  ;;  %4263 = vrot.lane.b32.xlu2 %v10411_v28, %s7494_s19  ;;  %v3425_v17 = vsel %vm580_vm8, %v11375_v26, %v11323_v33  ;;  %v7328_v34 = vld [vmem:[#allocation2 + $0x284] sm:$0xf]  ;;  %v7234_v26 = vld [vmem:[#allocation8 + $0xc] sm:$0xf0]  ;;  %vm12964_vm4 = vmmov %vm12952_vm1 }
 0x659   :  { %5271 = vmatpush.bf16.msra.mxu2 %v6966_v38  ;;  %v3685_v52 = vmul.f32 %v12755_v6, %v3656_v44  ;;  %v3686_v62 = vmul.f32 %v12756_v56, %v3650_v11  ;;  %v11450_v50 = vpop.permute.xlu0 %3371  ;;  %v3431_v58 = vmul.f32 %v12917_v55, %v3425_v17  ;;  %v12943_v17 = vld [vmem:[#allocation93_spill] sm:$0xff]  ;;  %vm12966_vm3 = vmmov %vm12952_vm1 }
 0x65a   :  { %12942 = vst [vmem:[#allocation143_spill] sm:$0xff] %v11450_v50  ;;  %v4150_v31 = vpop.permute.xlu2 %4149  ;;  %v3419_v39 = vsel %vm580_vm8, %v11323_v33, %v11450_v50  ;;  %v6934_v33 = vor.u32 %v7328_v34, %v6931_v35 }
 0x65b   :  { %v3702_v37 = vpack.c.bf16 %v3686_v62, %v3685_v52  ;;  %v4156_v27 = vsel %vm1082_vm5, %v10635_v4, %v4150_v31  ;;  %v4174_v36 = vsel %vm1082_vm5, %v4150_v31, %v10463_v25  ;;  %v3432_v49 = vmul.f32 %v12918_v22, %v3419_v39  ;;  %v7027_v52 = vld [vmem:[#allocation2 + $0x350] sm:$0xf0]  ;;  %v7233_v62 = vld [vmem:[#allocation8 + $0xc] sm:$0xf] }
 0x65c   :  { %v4197_v38 = vmul.f32 %v9041_v20, %v4156_v27  ;;  %v4198_v59 = vmul.f32 %v9052_v53, %v4174_v36  ;;  %v7352_v36 = vld [vmem:[#allocation2 + $0x344] sm:$0xf] }
 0x65d   :  { %5272 = vmatpush.bf16.msra.mxu2 %v6950_v46  ;;  %3714 = vst [vmem:[#allocation2 + $0xf8] sm:$0xff] %v3702_v37  ;;  %v3455_v11 = vpack.c.bf16 %v3432_v49, %v3431_v58  ;;  %v6993_v37 = vld [vmem:[#allocation2 + $0x300] sm:$0xf]  ;;  %v3420_v58 = vsel %vm580_vm8, %v11351_v61, %v11345_v63 }
 0x65e   :  { %v4210_v44 = vpack.c.bf16 %v4198_v59, %v4197_v38  ;;  %v7346_v31 = vld [vmem:[#allocation2 + $0x30c] sm:$0xf0]  ;;  %v7030_v38 = vor.u32 %v7352_v36, %v7027_v52  ;;  %v11482_v59 = vor.u32 %v7233_v62, %v6555_v40  ;;  %v3436_v62 = vmul.f32 %v12918_v22, %v3420_v58  ;;  %v6569_v36 = vld [vmem:[#allocation8 + $0x28] sm:$0xf]  ;;  %v6883_v22 = vld [vmem:[#allocation2 + $0x230] sm:$0xf0] }
 0x65f   :  { %v4144_v4 = vpop.permute.xlu1 %4143  ;;  %3467 = vst [vmem:[#allocation2] sm:$0xff] %v3455_v11  ;;  %4265 = vrot.lane.b32.xlu0 %v10423_v8, %s7494_s19  ;;  %v6994_v27 = vor.u32 %v7346_v31, %v6993_v37  ;;  %v12947_v31 = vld [vmem:[#allocation72_spill] sm:$0xff]  ;;  %v6995_v58 = vld [vmem:[#allocation2 + $0x310] sm:$0xf0] }
 0x660   :  { %v4153_v25 = vsel %vm1082_vm5, %v10584_v21, %v4144_v4  ;;  %v4171_v46 = vsel %vm1082_vm5, %v4144_v4, %v12943_v17  ;;  %3389 = vrot.lane.b32.xlu2 %v10419_v18, %s7487_s9  ;;  %v7324_v21 = vld [vmem:[#allocation2 + $0x264] sm:$0xf]  ;;  %4222 = vst [vmem:[#allocation2 + $0x2f8] sm:$0xff] %v4210_v44  ;;  %v6899_v4 = vld [vmem:[#allocation2 + $0x250] sm:$0xf0]  ;;  %v12944_v17 = vld [vmem:[#allocation89_spill] sm:$0xff] }
 0x661   :  { %5273 = vmatpush.bf16.msra.mxu2 %v6934_v33  ;;  %v4185_v35 = vmul.f32 %v9041_v20, %v4153_v25  ;;  %v4186_v39 = vmul.f32 %v9052_v53, %v4171_v46  ;;  %v6918_v49 = vor.u32 %v7324_v21, %v6915_v43  ;;  %v11484_v33 = vpop.permute.xlu0 %3397  ;;  %5190 = vmatpush.bf16.msrb.mxu3 %v6994_v27  ;;  %v7011_v18 = vld [vmem:[#allocation2 + $0x330] sm:$0xf0]  ;;  %v12945_v44 = vld [vmem:[#allocation92_spill] sm:$0xff] }
 0x662   :  { %v3900_v11 = vpop.permute.xlu2 %3899  ;;  %v3426_v25 = vsel %vm580_vm8, %v11484_v33, %v11351_v61  ;;  %v12946_v46 = vld [vmem:[#allocation74_spill] sm:$0xff]  ;;  %v7320_v61 = vld [vmem:[#allocation2 + $0x244] sm:$0xf] }
 0x663   :  { %v4204_v34 = vpack.c.bf16 %v4186_v39, %v4185_v35  ;;  %v3911_v43 = vsel %vm920_vm9, %v12944_v17, %v3900_v11  ;;  %v3929_v52 = vsel %vm920_vm9, %v3900_v11, %v12945_v44  ;;  %v3435_v40 = vmul.f32 %v12917_v55, %v3426_v25  ;;  %v7348_v39 = vld [vmem:[#allocation2 + $0x324] sm:$0xf]  ;;  %v7239_v11 = vld [vmem:[#allocation8 + $0x34] sm:$0xf0] }
 0x664   :  { %v3937_v37 = vmul.f32 %v12946_v46, %v3911_v43  ;;  %v3938_v35 = vmul.f32 %v12947_v31, %v3929_v52  ;;  %v6902_v27 = vor.u32 %v7320_v61, %v6899_v4  ;;  %v7014_v21 = vor.u32 %v7348_v39, %v7011_v18  ;;  %7039 = vmatmul.msk.bf16.vlgmr.msrb.gmra.mxu3 %vm5083_vm12, %v11482_v59  ;;  %v12948_v55 = vld [vmem:[#allocation102_spill] sm:$0xff]  ;;  %v12950_v43 = vld [vmem:[#allocation41_spill] sm:$0xff]  ;;  %v7316_v52 = vld [vmem:[#allocation2 + $0x224] sm:$0xf] }
 0x665   :  { %5274 = vmatpush.bf16.msra.mxu2 %v6918_v49  ;;  %5304 = vmatpush.bf16.msra.mxu3 %v7030_v38  ;;  %4216 = vst [vmem:[#allocation2 + $0x2c8] sm:$0xff] %v4204_v34  ;;  %v3457_v49 = vpack.c.bf16 %v3436_v62, %v3435_v40  ;;  %v11502_v34 = vor.u32 %v7239_v11, %v6569_v36  ;;  %v7344_v62 = vld [vmem:[#allocation2 + $0x304] sm:$0xf]  ;;  %v12955_v36 = vld [vmem:[#allocation97_spill] sm:$0xff] }
 0x666   :  { %v3960_v38 = vpack.c.bf16 %v3938_v35, %v3937_v37  ;;  %v3669_v40 = vsel %vm12952_vm1, %v11423_v47, %v11363_v54  ;;  %v6886_v37 = vor.u32 %v7316_v52, %v6883_v22  ;;  %v6998_v35 = vor.u32 %v7344_v62, %v6995_v58  ;;  %v12957_v22 = vld [vmem:[#allocation58_spill] sm:$0xff]  ;;  %v7276_v52 = vld [vmem:[#allocation2 + $0xe4] sm:$0xf]  ;;  %v12982_v47 = vld [vmem:[#allocation73_spill] sm:$0xff] }
 0x667   :  { %v3626_v17 = vpop.permute.xlu1 %3625  ;;  %3469 = vst [vmem:[#allocation2 + $0x10] sm:$0xff] %v3457_v49  ;;  %3743 = vrot.lane.b32.xlu0 %v10371_v1, %s7488_s10  ;;  %5167 = vmatmul.bf16.gmra.mxu2 %v11502_v34  ;;  %v12956_v49 = vld [vmem:[#allocation71_spill] sm:$0xff]  ;;  %v3687_v58 = vmul.f32 %v12957_v22, %v3669_v40  ;;  %v7237_v62 = vld [vmem:[#allocation8 + $0x2c] sm:$0xf] }
 0x668   :  { %v3648_v25 = vsel %vm12949_vm2, %v3626_v17, %v12948_v55  ;;  %v3654_v4 = vsel %vm12951_vm10, %v12950_v43, %v3626_v17  ;;  %3903 = vrot.lane.b32.xlu2 %v10411_v28, %s7490_s12  ;;  %3972 = vst [vmem:[#allocation2 + $0x1e8] sm:$0xff] %v3960_v38  ;;  %v6723_v17 = vld [vmem:[#allocation2 + $0xf0] sm:$0xf0]  ;;  %v12958_v55 = vld [vmem:[#allocation56_spill] sm:$0xff]  ;;  %v12959_v40 = vld [vmem:[#allocation103_spill] sm:$0xff] }
 0x669   :  { %5275 = vmatpush.bf16.msra.mxu2 %v6902_v27  ;;  %5305 = vmatpush.bf16.msra.mxu3 %v7014_v21  ;;  %v3677_v18 = vmul.f32 %v12755_v6, %v3654_v4  ;;  %v3678_v44 = vmul.f32 %v12756_v56, %v3648_v25  ;;  %v11521_v39 = vpop.permute.xlu0 %3619  ;;  %v6867_v21 = vld [vmem:[#allocation2 + $0x210] sm:$0xf0]  ;;  %v7312_v4 = vld [vmem:[#allocation2 + $0x204] sm:$0xf]  ;;  %vm12974_vm2 = vmmov %vm12952_vm1 }
 0x66a   :  { %12953 = vst [vmem:[#allocation93_spill] sm:$0xff] %v11521_v39  ;;  %v4146_v27 = vpop.permute.xlu2 %4145  ;;  %v3663_v28 = vsel %vm12954_vm15, %v11363_v54, %v11521_v39  ;;  %v6726_v39 = vor.u32 %v7276_v52, %v6723_v17  ;;  %vm12976_vm10 = vmmov %vm12952_vm1 }
 0x66b   :  { %v3698_v61 = vpack.c.bf16 %v3678_v44, %v3677_v18  ;;  %v4154_v11 = vsel %vm1082_vm5, %v12955_v36, %v4146_v27  ;;  %v4172_v38 = vsel %vm1082_vm5, %v4146_v27, %v12956_v49  ;;  %v3688_v25 = vmul.f32 %v12958_v55, %v3663_v28  ;;  %v7343_v18 = vld [vmem:[#allocation2 + $0x2f4] sm:$0xf0]  ;;  %v6571_v36 = vld [vmem:[#allocation8 + $0x38] sm:$0xf0]  ;;  %v12960_v28 = vld [vmem:[#allocation108_spill] sm:$0xff] }
 0x66c   :  { %v4189_v43 = vmul.f32 %v9041_v20, %v4154_v11  ;;  %v4190_v54 = vmul.f32 %v9052_v53, %v4172_v38  ;;  %v6870_v44 = vor.u32 %v7312_v4, %v6867_v21  ;;  %v6545_v49 = vld [vmem:[#allocation8] sm:$0xf]  ;;  %v6609_v21 = vld [vmem:[#allocation2] sm:$0xf]  ;;  %v11553_v17 = vor.u32 %v7237_v62, %v6571_v36  ;;  %vm12978_vm1 = vmmov %vm12906_vm6 }
 0x66d   :  { %5276 = vmatpush.bf16.msra.mxu2 %v6886_v37  ;;  %5306 = vmatpush.bf16.msra.mxu3 %v6998_v35  ;;  %3710 = vst [vmem:[#allocation2 + $0xd8] sm:$0xff] %v3698_v61  ;;  %v3703_v50 = vpack.c.bf16 %v3688_v25, %v3687_v58  ;;  %v6985_v35 = vld [vmem:[#allocation2 + $0x2e8] sm:$0xf]  ;;  %vm12980_vm15 = vmmov %vm12978_vm1 }
 0x66e   :  { %v4206_v27 = vpack.c.bf16 %v4190_v54, %v4189_v43  ;;  %v6986_v38 = vor.u32 %v7343_v18, %v6985_v35  ;;  %v7250_v4 = vld [vmem:[#allocation2 + $0xc] sm:$0xf0]  ;;  %v12962_v58 = vld [vmem:[#allocation65_spill] sm:$0xff]  ;;  %v3664_v18 = vsel %vm12964_vm4, %v11391_v13, %v11385_v57  ;;  %vm12988_vm4 = vmmov %vm12978_vm1 }
 0x66f   :  { %v3512_v37 = vpop.permute.xlu1 %3511  ;;  %3715 = vst [vmem:[#allocation2 + $0x100] sm:$0xff] %v3703_v50  ;;  %v12963_v43 = vld [vmem:[#allocation66_spill] sm:$0xff]  ;;  %3905 = vrot.lane.b32.xlu0 %v10423_v8, %s7490_s12  ;;  %v11555_v50 = vor.u32 %v7234_v26, %v6545_v49  ;;  %v3692_v62 = vmul.f32 %v12958_v55, %v3664_v18 }
 0x670   :  { %v3531_v61 = vsel %vm12906_vm6, %v3512_v37, %v12959_v40  ;;  %v3537_v11 = vsel %vm12961_vm13, %v12960_v28, %v3512_v37  ;;  %4261 = vrot.lane.b32.xlu2 %v10403_v42, %s7494_s19  ;;  %v6610_v40 = vor.u32 %v7250_v4, %v6609_v21  ;;  %4218 = vst [vmem:[#allocation2 + $0x2d8] sm:$0xff] %v4206_v27  ;;  %v6707_v8 = vld [vmem:[#allocation2 + $0xd0] sm:$0xf0]  ;;  %v7243_v21 = vld [vmem:[#allocation8 + $0x54] sm:$0xf0]  ;;  %vm12985_vm6 = vmmov %vm12978_vm1 }
 0x671   :  { %5277 = vmatpush.bf16.msra.mxu2 %v6870_v44  ;;  %v3569_v25 = vmul.f32 %v12962_v58, %v3537_v11  ;;  %v3570_v54 = vmul.f32 %v12963_v43, %v3531_v61  ;;  %v11557_v52 = vpop.permute.xlu0 %3645  ;;  %v12967_v35 = vld [vmem:[#allocation98_spill] sm:$0xff]  ;;  %v12968_v61 = vld [vmem:[#allocation51_spill] sm:$0xff]  ;;  %v7272_v11 = vld [vmem:[#allocation2 + $0xc4] sm:$0xf] }
 0x672   :  { %12965 = vst [vmem:[#allocation89_spill] sm:$0xff] %v11557_v52  ;;  %v4140_v37 = vpop.permute.xlu2 %4139  ;;  %5103 = vmatpush.bf16.msrb.mxu0 %v6610_v40  ;;  %v3670_v42 = vsel %vm12966_vm3, %v11557_v52, %v11391_v13  ;;  %v6710_v13 = vor.u32 %v7272_v11, %v6707_v8  ;;  %v12970_v40 = vld [vmem:[#allocation104_spill] sm:$0xff]  ;;  %vm12987_vm13 = vmmov %vm12978_vm1 }
 0x673   :  { %v3584_v44 = vpack.c.bf16 %v3570_v54, %v3569_v25  ;;  %v4151_v27 = vsel %vm1082_vm5, %v12967_v35, %v4140_v37  ;;  %v4169_v26 = vsel %vm1082_vm5, %v4140_v37, %v12968_v61  ;;  %v3691_v36 = vmul.f32 %v12957_v22, %v3670_v42  ;;  %v12969_v54 = vld [vmem:[#allocation42_spill] sm:$0xff]  ;;  %v12971_v37 = vld [vmem:[#allocation36_spill] sm:$0xff]  ;;  %vm12990_vm3 = vmmov %vm12978_vm1 }
 0x674   :  { %v4177_v49 = vmul.f32 %v9041_v20, %v4151_v27  ;;  %v4178_v28 = vmul.f32 %v9052_v53, %v4169_v26  ;;  %7040 = vmatmul.msk.bf16.gmra.mxu3 %vm5083_vm12, %v11553_v17  ;;  %v12972_v42 = vld [vmem:[#allocation52_spill] sm:$0xff]  ;;  %v6969_v27 = vld [vmem:[#allocation2 + $0x2c8] sm:$0xf] }
 0x675   :  { %5386 = vmatpush.bf16.msrb.mxu2 %v6986_v38  ;;  %3596 = vst [vmem:[#allocation2 + $0xa8] sm:$0xff] %v3584_v44  ;;  %5104 = vmatmul.bf16.vlgmr.msrb.gmra.mxu0 %v11555_v50  ;;  %v6585_v38 = vld [vmem:[#allocation8 + $0x48] sm:$0xf]  ;;  %v3705_v4 = vpack.c.bf16 %v3692_v62, %v3691_v36  ;;  %v6691_v44 = vld [vmem:[#allocation2 + $0xb0] sm:$0xf0] }
 0x676   :  { %5212 = vmatpush.bf16.msra.mxu0 %v6726_v39  ;;  %v4200_v39 = vpack.c.bf16 %v4178_v28, %v4177_v49  ;;  %v11576_v55 = vor.u32 %v7243_v21, %v6585_v38  ;;  %v7268_v62 = vld [vmem:[#allocation2 + $0xa4] sm:$0xf]  ;;  %v12975_v21 = vld [vmem:[#allocation90_spill] sm:$0xff] }
 0x677   :  { %v4030_v25 = vpop.permute.xlu1 %4029  ;;  %3717 = vst [vmem:[#allocation2 + $0x110] sm:$0xff] %v3705_v4  ;;  %3383 = vrot.lane.b32.xlu0 %v10371_v1, %s7487_s9  ;;  %v7339_v61 = vld [vmem:[#allocation2 + $0x2d4] sm:$0xf0]  ;;  %v6694_v11 = vor.u32 %v7268_v62, %v6691_v44  ;;  %v7264_v44 = vld [vmem:[#allocation2 + $0x84] sm:$0xf] }
 0x678   :  { %v4036_v22 = vsel %vm1001_vm7, %v12969_v54, %v4030_v25  ;;  %v4054_v18 = vsel %vm1001_vm7, %v4030_v25, %v12970_v40  ;;  %3631 = vrot.lane.b32.xlu2 %v10421_v19, %s7489_s11  ;;  %4212 = vst [vmem:[#allocation2 + $0x2a8] sm:$0xff] %v4200_v39  ;;  %v6970_v26 = vor.u32 %v7339_v61, %v6969_v27  ;;  %v12977_v19 = vld [vmem:[#allocation44_spill] sm:$0xff]  ;;  %v12979_v39 = vld [vmem:[#allocation99_spill] sm:$0xff]  ;;  %v6659_v27 = vld [vmem:[#allocation2 + $0x70] sm:$0xf0] }
 0x679   :  { %v4077_v8 = vmul.f32 %v12971_v37, %v4036_v22  ;;  %v4078_v35 = vmul.f32 %v12972_v42, %v4054_v18  ;;  %5172 = vmatmul.bf16.gmra.mxu2 %v11576_v55  ;;  %v3628_v49 = vpop.permute.xlu0 %3627  ;;  %v7232_v61 = vld [vmem:[#allocation8 + $0x4] sm:$0xf]  ;;  %v6547_v62 = vld [vmem:[#allocation8 + $0x10] sm:$0xf0] }
 0x67a   :  { %5213 = vmatpush.bf16.msra.mxu0 %v6710_v13  ;;  %v3514_v28 = vpop.permute.xlu2 %3513  ;;  %v12973_v13 = vld [vmem:[#allocation94_spill] sm:$0xff]  ;;  %v3655_v1 = vsel %vm12976_vm10, %v12975_v21, %v3628_v49  ;;  %5387 = vmatpush.bf16.msrb.mxu2 %v6970_v26  ;;  %v7241_v26 = vld [vmem:[#allocation8 + $0x4c] sm:$0xf]  ;;  %v6561_v21 = vld [vmem:[#allocation8 + $0x20] sm:$0xf]  ;;  %v11617_v52 = vor.u32 %v7232_v61, %v6547_v62 }
 0x67b   :  { %v4090_v36 = vpack.c.bf16 %v4078_v35, %v4077_v8  ;;  %v3649_v38 = vsel %vm12974_vm2, %v3628_v49, %v12973_v13  ;;  %v3532_v4 = vsel %vm12978_vm1, %v3514_v28, %v12977_v19  ;;  %v3538_v25 = vsel %vm12980_vm15, %v12979_v39, %v3514_v28  ;;  %v6675_v8 = vld [vmem:[#allocation2 + $0x90] sm:$0xf0]  ;;  %v6737_v39 = vld [vmem:[#allocation2 + $0x100] sm:$0xf]  ;;  %v12984_v61 = vld [vmem:[#allocation109_spill] sm:$0xff] }
 0x67c   :  { %v3681_v54 = vmul.f32 %v12755_v6, %v3655_v1  ;;  %v3682_v22 = vmul.f32 %v12756_v56, %v3649_v38  ;;  %v3573_v40 = vmul.f32 %v12962_v58, %v3538_v25  ;;  %v3574_v18 = vmul.f32 %v12963_v43, %v3532_v4  ;;  %v6851_v35 = vld [vmem:[#allocation2 + $0x1f0] sm:$0xf0]  ;;  %v12981_v1 = vld [vmem:[#allocation45_spill] sm:$0xff]  ;;  %vm12993_vm10 = vmmov %vm12974_vm2 }
 0x67d   :  { %4102 = vst [vmem:[#allocation2 + $0x298] sm:$0xff] %v4090_v36  ;;  %v6587_v36 = vld [vmem:[#allocation8 + $0x58] sm:$0xf0]  ;;  %v6678_v4 = vor.u32 %v7264_v44, %v6675_v8  ;;  %v7238_v25 = vld [vmem:[#allocation8 + $0x2c] sm:$0xf0]  ;;  %vm13016_vm15 = vmmov %vm12978_vm1 }
 0x67e   :  { %5214 = vmatpush.bf16.msra.mxu0 %v6694_v11  ;;  %v3700_v49 = vpack.c.bf16 %v3682_v22, %v3681_v54  ;;  %v3586_v13 = vpack.c.bf16 %v3574_v18, %v3573_v40  ;;  %v7282_v11 = vld [vmem:[#allocation2 + $0x10c] sm:$0xf0]  ;;  %v7308_v18 = vld [vmem:[#allocation2 + $0x1e4] sm:$0xf] }
 0x67f   :  { %v4024_v28 = vpop.permute.xlu1 %4023  ;;  %3633 = vrot.lane.b32.xlu0 %v10433_v12, %s7489_s11  ;;  %v6738_v40 = vor.u32 %v7282_v11, %v6737_v39  ;;  %v6854_v57 = vor.u32 %v7308_v18, %v6851_v35  ;;  %v6643_v39 = vld [vmem:[#allocation2 + $0x50] sm:$0xf0]  ;;  %v7304_v11 = vld [vmem:[#allocation2 + $0x1c4] sm:$0xf] }
 0x680   :  { %v4033_v38 = vsel %vm1001_vm7, %v10827_v10, %v4024_v28  ;;  %v4051_v19 = vsel %vm1001_vm7, %v4024_v28, %v12981_v1  ;;  %3712 = vst [vmem:[#allocation2 + $0xe8] sm:$0xff] %v3700_v49  ;;  %v7260_v10 = vld [vmem:[#allocation2 + $0x64] sm:$0xf]  ;;  %v6835_v1 = vld [vmem:[#allocation2 + $0x1d0] sm:$0xf0] }
 0x681   :  { %v4065_v54 = vmul.f32 %v12971_v37, %v4033_v38  ;;  %v4066_v22 = vmul.f32 %v12972_v42, %v4051_v19  ;;  %3598 = vst [vmem:[#allocation2 + $0xb8] sm:$0xff] %v3586_v13  ;;  %v3902_v8 = vpop.permute.xlu0 %3901  ;;  %5132 = vmatpush.bf16.msrb.mxu1 %v6738_v40  ;;  %v6662_v49 = vor.u32 %v7260_v10, %v6659_v27  ;;  %v12983_v13 = vld [vmem:[#allocation88_spill] sm:$0xff] }
 0x682   :  { %5215 = vmatpush.bf16.msra.mxu0 %v6678_v4  ;;  %v3508_v28 = vpop.permute.xlu2 %3507  ;;  %v11619_v38 = vor.u32 %v7241_v26, %v6587_v36  ;;  %v11621_v19 = vor.u32 %v7238_v25, %v6561_v21  ;;  %v3912_v12 = vsel %vm920_vm9, %v12982_v47, %v3902_v8  ;;  %v3930_v35 = vsel %vm920_vm9, %v3902_v8, %v12983_v13  ;;  %v12986_v4 = vld [vmem:[#allocation111_spill] sm:$0xff]  ;;  %v7256_v10 = vld [vmem:[#allocation2 + $0x44] sm:$0xf]  ;;  %v6627_v13 = vld [vmem:[#allocation2 + $0x30] sm:$0xf0] }
 0x683   :  { %v4084_v44 = vpack.c.bf16 %v4066_v22, %v4065_v54  ;;  %v3529_v62 = vsel %vm12985_vm6, %v3508_v28, %v12984_v61  ;;  %v3535_v27 = vsel %vm12987_vm13, %v12986_v4, %v3508_v28  ;;  %v3941_v26 = vmul.f32 %v12946_v46, %v3912_v12  ;;  %v6601_v54 = vld [vmem:[#allocation8 + $0x68] sm:$0xf]  ;;  %v7247_v22 = vld [vmem:[#allocation8 + $0x74] sm:$0xf0]  ;;  %v7252_v4 = vld [vmem:[#allocation2 + $0x24] sm:$0xf] }
 0x684   :  { %v3942_v36 = vmul.f32 %v12947_v31, %v3930_v35  ;;  %v3561_v47 = vmul.f32 %v12962_v58, %v3535_v27  ;;  %v3562_v21 = vmul.f32 %v12963_v43, %v3529_v62  ;;  %5133 = vmatmul.bf16.vlgmr.msrb.gmra.mxu1 %v11617_v52  ;;  %v6838_v25 = vor.u32 %v7304_v11, %v6835_v1  ;;  %v7300_v62 = vld [vmem:[#allocation2 + $0x1a4] sm:$0xf]  ;;  %vm13038_vm6 = vmmov %vm12974_vm2 }
 0x685   :  { %5241 = vmatpush.bf16.msra.mxu1 %v6854_v57  ;;  %4096 = vst [vmem:[#allocation2 + $0x268] sm:$0xff] %v4084_v44  ;;  %7041 = vmatmul.msk.bf16.gmra.mxu3 %vm5083_vm12, %v11619_v38  ;;  %v6819_v44 = vld [vmem:[#allocation2 + $0x1b0] sm:$0xf0]  ;;  %v11643_v8 = vor.u32 %v7247_v22, %v6601_v54  ;;  %v6646_v12 = vor.u32 %v7256_v10, %v6643_v39  ;;  %v12991_v39 = vld [vmem:[#allocation95_spill] sm:$0xff]  ;;  %v7296_v10 = vld [vmem:[#allocation2 + $0x184] sm:$0xf] }
 0x686   :  { %5216 = vmatpush.bf16.msra.mxu0 %v6662_v49  ;;  %v3962_v40 = vpack.c.bf16 %v3942_v36, %v3941_v26  ;;  %v3580_v18 = vpack.c.bf16 %v3562_v21, %v3561_v47  ;;  %v12989_v49 = vld [vmem:[#allocation40_spill] sm:$0xff]  ;;  %v6822_v27 = vor.u32 %v7300_v62, %v6819_v44  ;;  %v6630_v47 = vor.u32 %v7252_v4, %v6627_v13  ;;  %v6803_v21 = vld [vmem:[#allocation2 + $0x190] sm:$0xf0]  ;;  %v12994_v22 = vld [vmem:[#allocation115_spill] sm:$0xff] }
 0x687   :  { %v3506_v57 = vpop.permute.xlu1 %3505  ;;  %5109 = vmatmul.bf16.gmra.mxu0 %v11621_v19  ;;  %v6787_v13 = vld [vmem:[#allocation2 + $0x170] sm:$0xf0]  ;;  %v6729_v62 = vld [vmem:[#allocation2 + $0xe8] sm:$0xf]  ;;  %v7279_v4 = vld [vmem:[#allocation2 + $0xf4] sm:$0xf0] }
 0x688   :  { %v3528_v28 = vsel %vm12988_vm4, %v3506_v57, %v10953_v29  ;;  %v3534_v1 = vsel %vm12990_vm3, %v12989_v49, %v3506_v57  ;;  %3974 = vst [vmem:[#allocation2 + $0x1f8] sm:$0xff] %v3962_v40  ;;  %vm13040_vm13 = vmmov %vm12974_vm2 }
 0x689   :  { %5242 = vmatpush.bf16.msra.mxu1 %v6838_v25  ;;  %v3557_v35 = vmul.f32 %v12962_v58, %v3534_v1  ;;  %v3558_v61 = vmul.f32 %v12963_v43, %v3528_v28  ;;  %3592 = vst [vmem:[#allocation2 + $0x88] sm:$0xff] %v3580_v18  ;;  %5177 = vmatmul.bf16.gmra.mxu2 %v11643_v8  ;;  %v3624_v26 = vpop.permute.xlu0 %3623  ;;  %v12992_v25 = vld [vmem:[#allocation100_spill] sm:$0xff]  ;;  %v12995_v18 = vld [vmem:[#allocation110_spill] sm:$0xff] }
 0x68a   :  { %5217 = vmatpush.bf16.msra.mxu0 %v6646_v12  ;;  %v4026_v36 = vpop.permute.xlu2 %4025  ;;  %v3647_v11 = vsel %vm12974_vm2, %v3624_v26, %v12991_v39  ;;  %v3653_v54 = vsel %vm12993_vm10, %v12992_v25, %v3624_v26  ;;  %v6611_v12 = vld [vmem:[#allocation2 + $0x10] sm:$0xf0]  ;;  %v7236_v39 = vld [vmem:[#allocation8 + $0x24] sm:$0xf]  ;;  %v7245_v25 = vld [vmem:[#allocation8 + $0x6c] sm:$0xf] }
 0x68b   :  { %v3578_v29 = vpack.c.bf16 %v3558_v61, %v3557_v35  ;;  %v4034_v40 = vsel %vm1001_vm7, %v12994_v22, %v4026_v36  ;;  %v4052_v57 = vsel %vm1001_vm7, %v4026_v36, %v12995_v18  ;;  %v3673_v44 = vmul.f32 %v12755_v6, %v3653_v54  ;;  %v7248_v35 = vld [vmem:[#allocation2 + $0x4] sm:$0xf] }
 0x68c   :  { %v3674_v28 = vmul.f32 %v12756_v56, %v3647_v11  ;;  %v4069_v49 = vmul.f32 %v12971_v37, %v4034_v40  ;;  %v4070_v1 = vmul.f32 %v12972_v42, %v4052_v57  ;;  %v6806_v61 = vor.u32 %v7296_v10, %v6803_v21  ;;  %v6577_v21 = vld [vmem:[#allocation8 + $0x40] sm:$0xf]  ;;  %v7242_v40 = vld [vmem:[#allocation8 + $0x4c] sm:$0xf0] }
 0x68d   :  { %5243 = vmatpush.bf16.msra.mxu1 %v6822_v27  ;;  %3590 = vst [vmem:[#allocation2 + $0x78] sm:$0xff] %v3578_v29  ;;  %v6563_v29 = vld [vmem:[#allocation8 + $0x30] sm:$0xf0]  ;;  %v6614_v22 = vor.u32 %v7248_v35, %v6611_v12  ;;  %v6730_v10 = vor.u32 %v7279_v4, %v6729_v62  ;;  %v6771_v12 = vld [vmem:[#allocation2 + $0x150] sm:$0xf0]  ;;  %v12997_v62 = vld [vmem:[#allocation96_spill] sm:$0xff] }
 0x68e   :  { %5218 = vmatpush.bf16.msra.mxu0 %v6630_v47  ;;  %v3696_v26 = vpack.c.bf16 %v3674_v28, %v3673_v44  ;;  %v4086_v36 = vpack.c.bf16 %v4070_v1, %v4069_v49  ;;  %v6603_v47 = vld [vmem:[#allocation8 + $0x78] sm:$0xf0]  ;;  %v7292_v44 = vld [vmem:[#allocation2 + $0x164] sm:$0xf] }
 0x68f   :  { %v4020_v27 = vpop.permute.xlu1 %4019  ;;  %v6790_v28 = vor.u32 %v7292_v44, %v6787_v13  ;;  %v11680_v35 = vor.u32 %v7245_v25, %v6603_v47  ;;  %v12998_v13 = vld [vmem:[#allocation116_spill] sm:$0xff]  ;;  %v13001_v47 = vld [vmem:[#allocation70_spill] sm:$0xff] }
 0x690   :  { %v4031_v11 = vsel %vm1001_vm7, %v10955_v15, %v4020_v27  ;;  %v4049_v54 = vsel %vm1001_vm7, %v4020_v27, %v10899_v14  ;;  %3708 = vst [vmem:[#allocation2 + $0xc8] sm:$0xff] %v3696_v26  ;;  %v11678_v15 = vor.u32 %v7236_v39, %v6563_v29  ;;  %v12996_v26 = vld [vmem:[#allocation105_spill] sm:$0xff]  ;;  %v12999_v39 = vld [vmem:[#allocation119_spill] sm:$0xff] }
 0x691   :  { %5244 = vmatpush.bf16.msra.mxu1 %v6806_v61  ;;  %v4057_v18 = vmul.f32 %v12971_v37, %v4031_v11  ;;  %v4058_v57 = vmul.f32 %v12972_v42, %v4049_v54  ;;  %4098 = vst [vmem:[#allocation2 + $0x278] sm:$0xff] %v4086_v36  ;;  %v4142_v14 = vpop.permute.xlu0 %4141  ;;  %v11682_v61 = vor.u32 %v7242_v40, %v6577_v21  ;;  %v13000_v54 = vld [vmem:[#allocation68_spill] sm:$0xff] }
 0x692   :  { %5219 = vmatpush.bf16.msra.mxu0 %v6614_v22  ;;  %v3752_v1 = vpop.permute.xlu2 %3751  ;;  %v4152_v27 = vsel %vm1082_vm5, %v12996_v26, %v4142_v14  ;;  %v4170_v4 = vsel %vm1082_vm5, %v4142_v14, %v12997_v62  ;;  %v7288_v40 = vld [vmem:[#allocation2 + $0x144] sm:$0xf]  ;;  %v7275_v14 = vld [vmem:[#allocation2 + $0xd4] sm:$0xf0]  ;;  %vm13009_vm5 = vmmov %vm12978_vm1 }
 0x693   :  { %v4080_v49 = vpack.c.bf16 %v4058_v57, %v4057_v18  ;;  %v3771_v36 = vsel %vm823_vm11, %v3752_v1, %v12998_v13  ;;  %v3777_v29 = vsel %vm823_vm11, %v12999_v39, %v3752_v1  ;;  %v4181_v25 = vmul.f32 %v9041_v20, %v4152_v27  ;;  %v7271_v1 = vld [vmem:[#allocation2 + $0xb4] sm:$0xf0]  ;;  %v13003_v27 = vld [vmem:[#allocation54_spill] sm:$0xff]  ;;  %v7284_v13 = vld [vmem:[#allocation2 + $0x124] sm:$0xf] }
 0x694   :  { %v4182_v11 = vmul.f32 %v9052_v53, %v4170_v4  ;;  %v3809_v22 = vmul.f32 %v13000_v54, %v3777_v29  ;;  %v3810_v21 = vmul.f32 %v13001_v47, %v3771_v36  ;;  %5138 = vmatmul.bf16.gmra.mxu1 %v11678_v15  ;;  %v6774_v18 = vor.u32 %v7288_v40, %v6771_v12  ;;  %v13002_v12 = vld [vmem:[#allocation55_spill] sm:$0xff]  ;;  %v6697_v39 = vld [vmem:[#allocation2 + $0xa8] sm:$0xf] }
 0x695   :  { %5245 = vmatpush.bf16.msra.mxu1 %v6790_v28  ;;  %4092 = vst [vmem:[#allocation2 + $0x248] sm:$0xff] %v4080_v49  ;;  %7042 = vmatmul.msk.bf16.gmra.mxu3 %vm5083_vm12, %v11680_v35  ;;  %v6755_v28 = vld [vmem:[#allocation2 + $0x130] sm:$0xf0]  ;;  %v13005_v40 = vld [vmem:[#allocation101_spill] sm:$0xff] }
 0x696   :  { %5328 = vmatpush.bf16.msrb.mxu0 %v6730_v10  ;;  %v4202_v57 = vpack.c.bf16 %v4182_v11, %v4181_v25  ;;  %v3824_v10 = vpack.c.bf16 %v3810_v21, %v3809_v22  ;;  %v6758_v36 = vor.u32 %v7284_v13, %v6755_v28  ;;  %v6739_v11 = vld [vmem:[#allocation2 + $0x110] sm:$0xf0] }
 0x697   :  { %v4270_v44 = vpop.permute.xlu1 %4269  ;;  %5114 = vmatmul.bf16.gmra.mxu0 %v11682_v61  ;;  %v6713_v49 = vld [vmem:[#allocation2 + $0xc8] sm:$0xf]  ;;  %v13004_v22 = vld [vmem:[#allocation106_spill] sm:$0xff] }
 0x698   :  { %v4276_v20 = vsel %vm1163_vm14, %v11077_v51, %v4270_v44  ;;  %v4294_v53 = vsel %vm1163_vm14, %v4270_v44, %v10977_v48  ;;  %4214 = vst [vmem:[#allocation2 + $0x2b8] sm:$0xff] %v4202_v57  ;;  %v6714_v4 = vor.u32 %v7275_v14, %v6713_v49  ;;  %v6698_v48 = vor.u32 %v7271_v1, %v6697_v39  ;;  %v7311_v44 = vld [vmem:[#allocation2 + $0x1f4] sm:$0xf0]  ;;  %v7280_v14 = vld [vmem:[#allocation2 + $0x104] sm:$0xf] }
 0x699   :  { %5246 = vmatpush.bf16.msra.mxu1 %v6774_v18  ;;  %v4317_v26 = vmul.f32 %v13002_v12, %v4276_v20  ;;  %v4318_v62 = vmul.f32 %v13003_v27, %v4294_v53  ;;  %3836 = vst [vmem:[#allocation2 + $0x168] sm:$0xff] %v3824_v10  ;;  %5278 = vmatmul.bf16.vlgmr.msra.gmra.mxu2 %v11419_v5  ;;  %v4028_v29 = vpop.permute.xlu0 %4027  ;;  %v7240_v39 = vld [vmem:[#allocation8 + $0x44] sm:$0xf] }
 0x69a   :  { %v4022_v25 = vpop.permute.xlu2 %4021  ;;  %5329 = vmatpush.bf16.msrb.mxu0 %v6714_v4  ;;  %v4035_v21 = vsel %vm1001_vm7, %v13004_v22, %v4028_v29  ;;  %v4053_v18 = vsel %vm1001_vm7, %v4028_v29, %v13005_v40  ;;  %v6742_v1 = vor.u32 %v7280_v14, %v6739_v11  ;;  %v7246_v11 = vld [vmem:[#allocation8 + $0x6c] sm:$0xf0] }
 0x69b   :  { %v4330_v51 = vpack.c.bf16 %v4318_v62, %v4317_v26  ;;  %v4032_v57 = vsel %vm1001_vm7, %v11037_v45, %v4022_v25  ;;  %v4050_v10 = vsel %vm1001_vm7, %v4022_v25, %v10933_v41  ;;  %v4073_v28 = vmul.f32 %v12971_v37, %v4035_v21  ;;  %v6857_v26 = vld [vmem:[#allocation2 + $0x1e8] sm:$0xf]  ;;  %v7307_v62 = vld [vmem:[#allocation2 + $0x1d4] sm:$0xf0]  ;;  %vm13007_vm7 = vmmov %vm12978_vm1 }
 0x69c   :  { %v4074_v20 = vmul.f32 %v12972_v42, %v4053_v18  ;;  %v4061_v53 = vmul.f32 %v12971_v37, %v4032_v57  ;;  %v4062_v49 = vmul.f32 %v12972_v42, %v4050_v10  ;;  %v6858_v41 = vor.u32 %v7311_v44, %v6857_v26  ;;  %v6593_v25 = vld [vmem:[#allocation8 + $0x60] sm:$0xf]  ;;  %v6841_v40 = vld [vmem:[#allocation2 + $0x1c8] sm:$0xf] }
 0x69d   :  { %5247 = vmatpush.bf16.msra.mxu1 %v6758_v36  ;;  %4342 = vst [vmem:[#allocation2 + $0x358] sm:$0xff] %v4330_v51  ;;  %v6953_v36 = vld [vmem:[#allocation2 + $0x2a8] sm:$0xf]  ;;  %v6579_v51 = vld [vmem:[#allocation8 + $0x50] sm:$0xf0]  ;;  %v6842_v10 = vor.u32 %v7307_v62, %v6841_v40 }
 0x69e   :  { %v4088_v45 = vpack.c.bf16 %v4074_v20, %v4073_v28  ;;  %v4082_v4 = vpack.c.bf16 %v4062_v49, %v4061_v53  ;;  %5330 = vmatpush.bf16.msrb.mxu0 %v6698_v48  ;;  %v11737_v44 = vor.u32 %v7240_v39, %v6579_v51  ;;  %v13006_v28 = vld [vmem:[#allocation112_spill] sm:$0xff]  ;;  %v13008_v53 = vld [vmem:[#allocation107_spill] sm:$0xff] }
 0x69f   :  { %v3748_v13 = vpop.permute.xlu1 %3747  ;;  %v7335_v42 = vld [vmem:[#allocation2 + $0x2b4] sm:$0xf0] }
 0x6a0   :  { %v3769_v29 = vsel %vm823_vm11, %v3748_v13, %v11079_v32  ;;  %v3775_v37 = vsel %vm823_vm11, %v11143_v7, %v3748_v13  ;;  %4100 = vst [vmem:[#allocation2 + $0x288] sm:$0xff] %v4088_v45  ;;  %v6954_v21 = vor.u32 %v7335_v42, %v6953_v36  ;;  %v11739_v7 = vor.u32 %v7246_v11, %v6593_v25  ;;  %v13010_v45 = vld [vmem:[#allocation62_spill] sm:$0xff]  ;;  %v13011_v13 = vld [vmem:[#allocation64_spill] sm:$0xff]  ;;  %v7303_v36 = vld [vmem:[#allocation2 + $0x1b4] sm:$0xf0] }
 0x6a1   :  { %5248 = vmatpush.bf16.msra.mxu1 %v6742_v1  ;;  %v3801_v48 = vmul.f32 %v13000_v54, %v3775_v37  ;;  %v3802_v22 = vmul.f32 %v13001_v47, %v3769_v29  ;;  %4094 = vst [vmem:[#allocation2 + $0x258] sm:$0xff] %v4082_v4  ;;  %v3510_v57 = vpop.permute.xlu0 %3509  ;;  %v6825_v29 = vld [vmem:[#allocation2 + $0x1a8] sm:$0xf]  ;;  %v13013_v25 = vld [vmem:[#allocation123_spill] sm:$0xff] }
 0x6a2   :  { %v3392_v32 = vpop.permute.xlu2 %3391  ;;  %5388 = vmatpush.bf16.msrb.mxu2 %v6954_v21  ;;  %v3530_v20 = vsel %vm13007_vm7, %v3510_v57, %v13006_v28  ;;  %v3536_v49 = vsel %vm13009_vm5, %v13008_v53, %v3510_v57  ;;  %v13012_v37 = vld [vmem:[#allocation129_spill] sm:$0xff]  ;;  %v7331_v21 = vld [vmem:[#allocation2 + $0x294] sm:$0xf0] }
 0x6a3   :  { %v3820_v18 = vpack.c.bf16 %v3802_v22, %v3801_v48  ;;  %v3411_v14 = vsel %vm580_vm8, %v3392_v32, %v11039_v23  ;;  %v3417_v1 = vsel %vm580_vm8, %v11099_v3, %v3392_v32  ;;  %v3565_v26 = vmul.f32 %v12962_v58, %v3536_v49  ;;  %v7299_v3 = vld [vmem:[#allocation2 + $0x194] sm:$0xf0]  ;;  %v6921_v28 = vld [vmem:[#allocation2 + $0x268] sm:$0xf] }
 0x6a4   :  { %v3566_v62 = vmul.f32 %v12963_v43, %v3530_v20  ;;  %v3449_v4 = vmul.f32 %v13010_v45, %v3417_v1  ;;  %5143 = vmatmul.bf16.gmra.mxu1 %v11737_v44  ;;  %v6826_v48 = vor.u32 %v7303_v36, %v6825_v29  ;;  %v7327_v40 = vld [vmem:[#allocation2 + $0x274] sm:$0xf0]  ;;  %v13017_v36 = vld [vmem:[#allocation126_spill] sm:$0xff] }
 0x6a5   :  { %5357 = vmatpush.bf16.msrb.mxu1 %v6858_v41  ;;  %3832 = vst [vmem:[#allocation2 + $0x148] sm:$0xff] %v3820_v18  ;;  %v3450_v41 = vmul.f32 %v13011_v13, %v3411_v14  ;;  %7043 = vmatmul.msk.bf16.vlgmr.msra.gmra.mxu3 %vm5083_vm12, %v11482_v59  ;;  %v6922_v1 = vor.u32 %v7327_v40, %v6921_v28  ;;  %v7244_v40 = vld [vmem:[#allocation8 + $0x64] sm:$0xf] }
 0x6a6   :  { %v3582_v39 = vpack.c.bf16 %v3566_v62, %v3565_v26  ;;  %v13014_v26 = vld [vmem:[#allocation113_spill] sm:$0xff] }
 0x6a7   :  { %v3464_v51 = vpack.c.bf16 %v3450_v41, %v3449_v4  ;;  %v3910_v23 = vpop.permute.xlu1 %3909  ;;  %v6937_v22 = vld [vmem:[#allocation2 + $0x288] sm:$0xf]  ;;  %5119 = vmatmul.bf16.gmra.mxu0 %v11739_v7 }
 0x6a8   :  { %v3916_v42 = vsel %vm920_vm9, %v13012_v37, %v3910_v23  ;;  %v3934_v11 = vsel %vm920_vm9, %v3910_v23, %v13013_v25  ;;  %3594 = vst [vmem:[#allocation2 + $0x98] sm:$0xff] %v3582_v39  ;;  %v6938_v32 = vor.u32 %v7331_v21, %v6937_v22  ;;  %v13015_v4 = vld [vmem:[#allocation117_spill] sm:$0xff]  ;;  %v7323_v25 = vld [vmem:[#allocation2 + $0x254] sm:$0xf0] }
 0x6a9   :  { %5358 = vmatpush.bf16.msrb.mxu1 %v6842_v10  ;;  %v3957_v18 = vmul.f32 %v12946_v46, %v3916_v42  ;;  %v3958_v57 = vmul.f32 %v12947_v31, %v3934_v11  ;;  %3476 = vst [vmem:[#allocation2 + $0x48] sm:$0xff] %v3464_v51  ;;  %v6809_v10 = vld [vmem:[#allocation2 + $0x188] sm:$0xf]  ;;  %5283 = vmatmul.bf16.gmra.mxu2 %v11502_v34  ;;  %v3504_v53 = vpop.permute.xlu0 %3503 }
 0x6aa   :  { %v3750_v49 = vpop.permute.xlu2 %3749  ;;  %5389 = vmatpush.bf16.msrb.mxu2 %v6938_v32  ;;  %v6810_v14 = vor.u32 %v7299_v3, %v6809_v10  ;;  %v3527_v62 = vsel %vm12978_vm1, %v3504_v53, %v13014_v26  ;;  %v3533_v41 = vsel %vm13016_vm15, %v13015_v4, %v3504_v53  ;;  %v13018_v51 = vld [vmem:[#allocation121_spill] sm:$0xff] }
 0x6ab   :  { %v3970_v20 = vpack.c.bf16 %v3958_v57, %v3957_v18  ;;  %v3770_v39 = vsel %vm823_vm11, %v3750_v49, %v13017_v36  ;;  %v3776_v23 = vsel %vm823_vm11, %v13018_v51, %v3750_v49  ;;  %v3553_v29 = vmul.f32 %v12962_v58, %v3533_v41  ;;  %v6681_v21 = vld [vmem:[#allocation2 + $0x88] sm:$0xf]  ;;  %v13019_v57 = vld [vmem:[#allocation134_spill] sm:$0xff]  ;;  %v6595_v10 = vld [vmem:[#allocation8 + $0x70] sm:$0xf0] }
 0x6ac   :  { %v3554_v3 = vmul.f32 %v12963_v43, %v3527_v62  ;;  %v3805_v37 = vmul.f32 %v13000_v54, %v3776_v23  ;;  %v3806_v42 = vmul.f32 %v13001_v47, %v3770_v39  ;;  %v6905_v32 = vld [vmem:[#allocation2 + $0x248] sm:$0xf]  ;;  %v13021_v41 = vld [vmem:[#allocation114_spill] sm:$0xff]  ;;  %v13022_v39 = vld [vmem:[#allocation127_spill] sm:$0xff] }
 0x6ad   :  { %5359 = vmatpush.bf16.msrb.mxu1 %v6826_v48  ;;  %3982 = vst [vmem:[#allocation2 + $0x238] sm:$0xff] %v3970_v20  ;;  %v6906_v49 = vor.u32 %v7323_v25, %v6905_v32  ;;  %v13020_v62 = vld [vmem:[#allocation69_spill] sm:$0xff]  ;;  %v13023_v23 = vld [vmem:[#allocation63_spill] sm:$0xff] }
 0x6ae   :  { %v3576_v11 = vpack.c.bf16 %v3554_v3, %v3553_v29  ;;  %v3822_v48 = vpack.c.bf16 %v3806_v42, %v3805_v37  ;;  %5390 = vmatpush.bf16.msrb.mxu2 %v6922_v1 }
 0x6af   :  { %v3388_v22 = vpop.permute.xlu1 %3387  ;;  %v7267_v43 = vld [vmem:[#allocation2 + $0x94] sm:$0xf0] }
 0x6b0   :  { %v3409_v18 = vsel %vm580_vm8, %v3388_v22, %v11207_v30  ;;  %v3415_v58 = vsel %vm580_vm8, %v13019_v57, %v3388_v22  ;;  %3588 = vst [vmem:[#allocation2 + $0x68] sm:$0xff] %v3576_v11  ;;  %v6682_v53 = vor.u32 %v7267_v43, %v6681_v21  ;;  %v11794_v30 = vor.u32 %v7244_v40, %v6595_v10  ;;  %v13024_v40 = vld [vmem:[#allocation130_spill] sm:$0xff] }
 0x6b1   :  { %5360 = vmatpush.bf16.msrb.mxu1 %v6810_v14  ;;  %v3441_v28 = vmul.f32 %v13010_v45, %v3415_v58  ;;  %v3442_v20 = vmul.f32 %v13011_v13, %v3409_v18  ;;  %3834 = vst [vmem:[#allocation2 + $0x158] sm:$0xff] %v3822_v48  ;;  %v3754_v1 = vpop.permute.xlu0 %3753  ;;  %v7263_v58 = vld [vmem:[#allocation2 + $0x74] sm:$0xf0] }
 0x6b2   :  { %v4264_v26 = vpop.permute.xlu2 %4263  ;;  %5331 = vmatpush.bf16.msrb.mxu0 %v6682_v53  ;;  %5391 = vmatpush.bf16.msrb.mxu2 %v6906_v49  ;;  %v3772_v4 = vsel %vm823_vm11, %v3754_v1, %v13020_v62  ;;  %v3778_v36 = vsel %vm823_vm11, %v13021_v41, %v3754_v1  ;;  %v13025_v53 = vld [vmem:[#allocation67_spill] sm:$0xff] }
 0x6b3   :  { %v3460_v14 = vpack.c.bf16 %v3442_v20, %v3441_v28  ;;  %v4273_v51 = vsel %vm1163_vm14, %v13022_v39, %v4264_v26  ;;  %v4291_v29 = vsel %vm1163_vm14, %v4264_v26, %v13023_v23  ;;  %v3813_v3 = vmul.f32 %v13000_v54, %v3778_v36  ;;  %v13027_v26 = vld [vmem:[#allocation136_spill] sm:$0xff] }
 0x6b4   :  { %v3814_v37 = vmul.f32 %v13001_v47, %v3772_v4  ;;  %v4305_v42 = vmul.f32 %v13002_v12, %v4273_v51  ;;  %v4306_v25 = vmul.f32 %v13003_v27, %v4291_v29  ;;  %5148 = vmatmul.bf16.gmra.mxu1 %v11794_v30  ;;  %v13028_v4 = vld [vmem:[#allocation128_spill] sm:$0xff] }
 0x6b5   :  { %3472 = vst [vmem:[#allocation2 + $0x28] sm:$0xff] %v3460_v14  ;;  %7044 = vmatmul.msk.bf16.gmra.mxu3 %vm5083_vm12, %v11553_v17  ;;  %v13026_v14 = vld [vmem:[#allocation118_spill] sm:$0xff] }
 0x6b6   :  { %v3826_v11 = vpack.c.bf16 %v3814_v37, %v3813_v3  ;;  %v4324_v48 = vpack.c.bf16 %v4306_v25, %v4305_v42 }
 0x6b7   :  { %v3746_v22 = vpop.permute.xlu1 %3745  ;;  %v6665_v57 = vld [vmem:[#allocation2 + $0x68] sm:$0xf]  ;;  %5220 = vmatmul.bf16.vlgmr.msra.gmra.mxu0 %v11555_v50 }
 0x6b8   :  { %v3768_v21 = vsel %vm823_vm11, %v3746_v22, %v11333_v2  ;;  %v3774_v18 = vsel %vm823_vm11, %v13024_v40, %v3746_v22  ;;  %3838 = vst [vmem:[#allocation2 + $0x178] sm:$0xff] %v3826_v11  ;;  %v6666_v10 = vor.u32 %v7263_v58, %v6665_v57  ;;  %v6793_v11 = vld [vmem:[#allocation2 + $0x168] sm:$0xf] }
 0x6b9   :  { %v3797_v43 = vmul.f32 %v13000_v54, %v3774_v18  ;;  %v3798_v32 = vmul.f32 %v13001_v47, %v3768_v21  ;;  %4336 = vst [vmem:[#allocation2 + $0x328] sm:$0xff] %v4324_v48  ;;  %5288 = vmatmul.bf16.gmra.mxu2 %v11576_v55  ;;  %v4268_v20 = vpop.permute.xlu0 %4267 }
 0x6ba   :  { %v3390_v2 = vpop.permute.xlu2 %3389  ;;  %5332 = vmatpush.bf16.msrb.mxu0 %v6666_v10  ;;  %v4275_v49 = vsel %vm1163_vm14, %v13025_v53, %v4268_v20  ;;  %v4293_v1 = vsel %vm1163_vm14, %v4268_v20, %v13026_v14  ;;  %v13030_v10 = vld [vmem:[#allocation120_spill] sm:$0xff] }
 0x6bb   :  { %v3818_v28 = vpack.c.bf16 %v3798_v32, %v3797_v43  ;;  %v3410_v62 = vsel %vm580_vm8, %v3390_v2, %v13027_v26  ;;  %v3416_v41 = vsel %vm580_vm8, %v13028_v4, %v3390_v2  ;;  %v4313_v36 = vmul.f32 %v13002_v12, %v4275_v49  ;;  %v7291_v43 = vld [vmem:[#allocation2 + $0x154] sm:$0xf0]  ;;  %v13029_v32 = vld [vmem:[#allocation61_spill] sm:$0xff] }
 0x6bc   :  { %v4314_v39 = vmul.f32 %v13003_v27, %v4293_v1  ;;  %v3445_v51 = vmul.f32 %v13010_v45, %v3416_v41  ;;  %v3446_v23 = vmul.f32 %v13011_v13, %v3410_v62  ;;  %v13032_v2 = vld [vmem:[#allocation131_spill] sm:$0xff]  ;;  %v6777_v62 = vld [vmem:[#allocation2 + $0x148] sm:$0xf] }
 0x6bd   :  { %3830 = vst [vmem:[#allocation2 + $0x138] sm:$0xff] %v3818_v28  ;;  %v13031_v28 = vld [vmem:[#allocation137_spill] sm:$0xff]  ;;  %v6778_v4 = vor.u32 %v7291_v43, %v6777_v62 }
 0x6be   :  { %v4328_v29 = vpack.c.bf16 %v4314_v39, %v4313_v36  ;;  %v3462_v3 = vpack.c.bf16 %v3446_v23, %v3445_v51  ;;  %v13036_v62 = vld [vmem:[#allocation125_spill] sm:$0xff] }
 0x6bf   :  { %v4260_v37 = vpop.permute.xlu1 %4259  ;;  %v7295_v48 = vld [vmem:[#allocation2 + $0x174] sm:$0xf0] }
 0x6c0   :  { %v4271_v42 = vsel %vm1163_vm14, %v11335_v24, %v4260_v37  ;;  %v4289_v25 = vsel %vm1163_vm14, %v4260_v37, %v11279_v60  ;;  %4340 = vst [vmem:[#allocation2 + $0x348] sm:$0xff] %v4328_v29  ;;  %v6794_v40 = vor.u32 %v7295_v48, %v6793_v11 }
 0x6c1   :  { %v4297_v22 = vmul.f32 %v13002_v12, %v4271_v42  ;;  %v4298_v21 = vmul.f32 %v13003_v27, %v4289_v25  ;;  %3474 = vst [vmem:[#allocation2 + $0x38] sm:$0xff] %v3462_v3  ;;  %v3394_v57 = vpop.permute.xlu0 %3393  ;;  %v7355_v3 = vld [vmem:[#allocation2 + $0x354] sm:$0xf0] }
 0x6c2   :  { %v3904_v58 = vpop.permute.xlu2 %3903  ;;  %5361 = vmatpush.bf16.msrb.mxu1 %v6794_v40  ;;  %v3412_v24 = vsel %vm580_vm8, %v3394_v57, %v13029_v32  ;;  %v3418_v60 = vsel %vm580_vm8, %v13030_v10, %v3394_v57 }
 0x6c3   :  { %v4320_v18 = vpack.c.bf16 %v4298_v21, %v4297_v22  ;;  %v3913_v20 = vsel %vm920_vm9, %v13031_v28, %v3904_v58  ;;  %v3931_v53 = vsel %vm920_vm9, %v3904_v58, %v13032_v2  ;;  %v3453_v49 = vmul.f32 %v13010_v45, %v3418_v60  ;;  %v13033_v22 = vld [vmem:[#allocation124_spill] sm:$0xff]  ;;  %v13034_v21 = vld [vmem:[#allocation122_spill] sm:$0xff]  ;;  %v6649_v28 = vld [vmem:[#allocation2 + $0x48] sm:$0xf] }
 0x6c4   :  { %v3454_v14 = vmul.f32 %v13011_v13, %v3412_v24  ;;  %v3945_v1 = vmul.f32 %v12946_v46, %v3913_v20  ;;  %v3946_v26 = vmul.f32 %v12947_v31, %v3931_v53  ;;  %5249 = vmatmul.bf16.vlgmr.msra.gmra.mxu1 %v11617_v52  ;;  %v6633_v53 = vld [vmem:[#allocation2 + $0x28] sm:$0xf] }
 0x6c5   :  { %4332 = vst [vmem:[#allocation2 + $0x308] sm:$0xff] %v4320_v18  ;;  %7045 = vmatmul.msk.bf16.gmra.mxu3 %vm5083_vm12, %v11619_v38 }
 0x6c6   :  { %v3466_v41 = vpack.c.bf16 %v3454_v14, %v3453_v49  ;;  %v3964_v36 = vpack.c.bf16 %v3946_v26, %v3945_v1  ;;  %5362 = vmatpush.bf16.msrb.mxu1 %v6778_v4  ;;  %v13035_v1 = vld [vmem:[#allocation132_spill] sm:$0xff] }
 0x6c7   :  { %v3386_v39 = vpop.permute.xlu1 %3385  ;;  %v7033_v29 = vld [vmem:[#allocation2 + $0x348] sm:$0xf]  ;;  %5225 = vmatmul.bf16.gmra.mxu0 %v11621_v19 }
 0x6c8   :  { %v3408_v51 = vsel %vm580_vm8, %v3386_v39, %v11484_v33  ;;  %v3414_v23 = vsel %vm580_vm8, %v11345_v63, %v3386_v39  ;;  %3478 = vst [vmem:[#allocation2 + $0x58] sm:$0xff] %v3466_v41  ;;  %v7034_v25 = vor.u32 %v7355_v3, %v7033_v29  ;;  %v7255_v2 = vld [vmem:[#allocation2 + $0x34] sm:$0xf0]  ;;  %v13037_v41 = vld [vmem:[#allocation142_spill] sm:$0xff]  ;;  %v13039_v39 = vld [vmem:[#allocation93_spill] sm:$0xff] }
 0x6c9   :  { %v3437_v37 = vmul.f32 %v13010_v45, %v3414_v23  ;;  %v3438_v42 = vmul.f32 %v13011_v13, %v3408_v51  ;;  %3976 = vst [vmem:[#allocation2 + $0x208] sm:$0xff] %v3964_v36  ;;  %5293 = vmatmul.bf16.gmra.mxu2 %v11643_v8  ;;  %v3908_v33 = vpop.permute.xlu0 %3907  ;;  %v6634_v14 = vor.u32 %v7255_v2, %v6633_v53 }
 0x6ca   :  { %v4262_v48 = vpop.permute.xlu2 %4261  ;;  %5420 = vmatpush.bf16.msrb.mxu3 %v7034_v25  ;;  %v3915_v63 = vsel %vm920_vm9, %v13033_v22, %v3908_v33  ;;  %v3933_v40 = vsel %vm920_vm9, %v3908_v33, %v13034_v21  ;;  %v7319_v33 = vld [vmem:[#allocation2 + $0x234] sm:$0xf0] }
 0x6cb   :  { %v3458_v11 = vpack.c.bf16 %v3438_v42, %v3437_v37  ;;  %v4272_v18 = vsel %vm1163_vm14, %v11421_v16, %v4262_v48  ;;  %v4290_v57 = vsel %vm1163_vm14, %v4262_v48, %v11313_v9  ;;  %v3953_v58 = vmul.f32 %v12946_v46, %v3915_v63  ;;  %v13041_v48 = vld [vmem:[#allocation133_spill] sm:$0xff]  ;;  %v13042_v63 = vld [vmem:[#allocation138_spill] sm:$0xff] }
 0x6cc   :  { %v3954_v43 = vmul.f32 %v12947_v31, %v3933_v40  ;;  %v4301_v32 = vmul.f32 %v13002_v12, %v4272_v18  ;;  %v4302_v24 = vmul.f32 %v13003_v27, %v4290_v57 }
 0x6cd   :  { %3470 = vst [vmem:[#allocation2 + $0x18] sm:$0xff] %v3458_v11 }
 0x6ce   :  { %v3968_v10 = vpack.c.bf16 %v3954_v43, %v3953_v58  ;;  %v4322_v60 = vpack.c.bf16 %v4302_v24, %v4301_v32  ;;  %v7017_v43 = vld [vmem:[#allocation2 + $0x328] sm:$0xf] }
 0x6cf   :  { %v7259_v20 = vld [vmem:[#allocation2 + $0x54] sm:$0xf0] }
 0x6d0   :  { %3980 = vst [vmem:[#allocation2 + $0x228] sm:$0xff] %v3968_v10  ;;  %v6650_v16 = vor.u32 %v7259_v20, %v6649_v28  ;;  %v7353_v28 = vld [vmem:[#allocation2 + $0x34c] sm:$0xf]  ;;  %v13043_v20 = vld [vmem:[#allocation139_spill] sm:$0xff] }
 0x6d1   :  { %4334 = vst [vmem:[#allocation2 + $0x318] sm:$0xff] %v4322_v60  ;;  %v4266_v49 = vpop.permute.xlu0 %4265 }
 0x6d2   :  { %v3632_v9 = vpop.permute.xlu2 %3631  ;;  %5333 = vmatpush.bf16.msrb.mxu0 %v6650_v16  ;;  %v4274_v26 = vsel %vm1163_vm14, %v13035_v1, %v4266_v49  ;;  %v4292_v4 = vsel %vm1163_vm14, %v4266_v49, %v13036_v62  ;;  %v13044_v16 = vld [vmem:[#allocation135_spill] sm:$0xff]  ;;  %vm5776_vm14 = vcmask 1043456  }
 0x6d3   :  { %v3651_v36 = vsel %vm13038_vm6, %v3632_v9, %v13037_v41  ;;  %v3657_v51 = vsel %vm13040_vm13, %v13039_v39, %v3632_v9  ;;  %v4309_v23 = vmul.f32 %v13002_v12, %v4274_v26  ;;  %v4310_v29 = vmul.f32 %v13003_v27, %v4292_v4  ;;  %v13045_v26 = vld [vmem:[#allocation82_spill] sm:$0xff]  ;;  %v13046_v62 = vld [vmem:[#allocation87_spill] sm:$0xff] }
 0x6d4   :  { %v3689_v3 = vmul.f32 %v12755_v6, %v3657_v51  ;;  %v3690_v37 = vmul.f32 %v12756_v56, %v3651_v36  ;;  %5254 = vmatmul.bf16.gmra.mxu1 %v11678_v15  ;;  %v1896_v4 = vadd.f32 %v13046_v62, %v13045_v26  ;;  %v13055_v62 = vld [vmem:[#allocation89_spill] sm:$0xff] }
 0x6d5   :  { %v4326_v42 = vpack.c.bf16 %v4310_v29, %v4309_v23  ;;  %7046 = vmatmul.msk.bf16.gmra.mxu3 %vm5083_vm12, %v11680_v35  ;;  %v7287_v23 = vld [vmem:[#allocation2 + $0x134] sm:$0xf0] }
 0x6d6   :  { %v3704_v25 = vpack.c.bf16 %v3690_v37, %v3689_v3  ;;  %5334 = vmatpush.bf16.msrb.mxu0 %v6634_v14  ;;  %v7035_v14 = vld [vmem:[#allocation2 + $0x358] sm:$0xf0] }
 0x6d7   :  { %v6889_v11 = vld [vmem:[#allocation2 + $0x228] sm:$0xf]  ;;  %5230 = vmatmul.bf16.gmra.mxu0 %v11682_v61  ;;  %4338 = vst [vmem:[#allocation2 + $0x338] sm:$0xff] %v4326_v42  ;;  %v11922_v58 = vpop.f32.mrf.mxu2  ;;  %v7038_v1 = vor.u32 %v7353_v28, %v7035_v14  ;;  %v13047_v37 = vld [vmem:[#allocation83_spill] sm:$0xff]  ;;  %v13048_v42 = vld [vmem:[#allocation32_spill] sm:$0xff] }
 0x6d8   :  { %v6890_v12 = vor.u32 %v7319_v33, %v6889_v11  ;;  %3716 = vst [vmem:[#allocation2 + $0x108] sm:$0xff] %v3704_v25  ;;  %v7347_v10 = vld [vmem:[#allocation2 + $0x314] sm:$0xf0]  ;;  %v1891_v25 = vadd.f32 %v13048_v42, %v13047_v37  ;;  %v13049_v11 = vld [vmem:[#allocation85_spill] sm:$0xff]  ;;  %v6955_v42 = vld [vmem:[#allocation2 + $0x2b8] sm:$0xf0] }
 0x6d9   :  { %v3744_v27 = vpop.permute.xlu0 %3743  ;;  %v1915_v33 = vadd.f32 %v13049_v11, %v1896_v4  ;;  %v7277_v37 = vld [vmem:[#allocation2 + $0xec] sm:$0xf]  ;;  %v7251_v11 = vld [vmem:[#allocation2 + $0x14] sm:$0xf0] }
 0x6da   :  { %5392 = vmatpush.bf16.msrb.mxu2 %v6890_v12  ;;  %v3767_v22 = vsel %vm823_vm11, %v3744_v27, %v13041_v48  ;;  %v3773_v21 = vsel %vm823_vm11, %v13042_v63, %v3744_v27  ;;  %v7003_v27 = vld [vmem:[#allocation2 + $0x318] sm:$0xf0]  ;;  %v13050_v48 = vld [vmem:[#allocation140_spill] sm:$0xff]  ;;  %vm13058_vm11 = vmmov %vm12974_vm2 }
 0x6db   :  { %v3793_v40 = vmul.f32 %v13000_v54, %v3773_v21  ;;  %v3794_v18 = vmul.f32 %v13001_v47, %v3767_v22  ;;  %v7001_v47 = vld [vmem:[#allocation2 + $0x308] sm:$0xf]  ;;  %v13051_v63 = vld [vmem:[#allocation143_spill] sm:$0xff] }
 0x6dc   :  { %v7002_v9 = vor.u32 %v7347_v10, %v7001_v47  ;;  %v13053_v10 = vld [vmem:[#allocation86_spill] sm:$0xff] }
 0x6dd   :  { %v3816_v57 = vpack.c.bf16 %v3794_v18, %v3793_v40 }
 0x6de   :  { %v7351_v32 = vld [vmem:[#allocation2 + $0x334] sm:$0xf0]  ;;  %v7019_v36 = vld [vmem:[#allocation2 + $0x338] sm:$0xf0] }
 0x6df   :  { %3828 = vst [vmem:[#allocation2 + $0x128] sm:$0xff] %v3816_v57  ;;  %v7018_v24 = vor.u32 %v7351_v32, %v7017_v43  ;;  %v11935_v39 = vpop.f32.mrf.mxu2  ;;  %v7345_v57 = vld [vmem:[#allocation2 + $0x30c] sm:$0xf]  ;;  %v13052_v32 = vld [vmem:[#allocation84_spill] sm:$0xff] }
 0x6e0   :  { %v7006_v43 = vor.u32 %v7345_v57, %v7003_v27 }
 0x6e1   :  { %v3906_v60 = vpop.permute.xlu0 %3905  ;;  %5421 = vmatpush.bf16.msrb.mxu3 %v7018_v24  ;;  %v1910_v24 = vadd.f32 %v13052_v32, %v1891_v25  ;;  %v6699_v32 = vld [vmem:[#allocation2 + $0xb8] sm:$0xf0] }
 0x6e2   :  { %v3914_v2 = vsel %vm920_vm9, %v13043_v20, %v3906_v60  ;;  %v3932_v54 = vsel %vm920_vm9, %v3906_v60, %v13044_v16  ;;  %v5577_v60 = vpack.c.bf16 %v1915_v33, %v13053_v10  ;;  %v6987_v20 = vld [vmem:[#allocation2 + $0x2f8] sm:$0xf0]  ;;  %v6873_v16 = vld [vmem:[#allocation2 + $0x208] sm:$0xf]  ;;  %vm5705_vm9 = vcmask 523264  }
 0x6e3   :  { %v3949_v53 = vmul.f32 %v12946_v46, %v3914_v2  ;;  %v3950_v49 = vmul.f32 %v12947_v31, %v3932_v54  ;;  %v7349_v31 = vld [vmem:[#allocation2 + $0x32c] sm:$0xf]  ;;  %v6745_v10 = vld [vmem:[#allocation2 + $0x108] sm:$0xf] }
 0x6e4   :  { %5259 = vmatmul.bf16.gmra.mxu1 %v11737_v44  ;;  %v7022_v3 = vor.u32 %v7349_v31, %v7019_v36 }
 0x6e5   :  { %v3966_v41 = vpack.c.bf16 %v3950_v49, %v3949_v53  ;;  %5422 = vmatpush.bf16.msrb.mxu3 %v7002_v9  ;;  %v7341_v53 = vld [vmem:[#allocation2 + $0x2ec] sm:$0xf] }
 0x6e6   :  { %v6761_v51 = vld [vmem:[#allocation2 + $0x128] sm:$0xf] }
 0x6e7   :  { %5235 = vmatmul.bf16.gmra.mxu0 %v11739_v7  ;;  %3978 = vst [vmem:[#allocation2 + $0x218] sm:$0xff] %v3966_v41  ;;  %v6762_v46 = vor.u32 %v7287_v23, %v6761_v51  ;;  %v11938_v29 = vpop.f32.mrf.mxu3  ;;  %v13054_v49 = vld [vmem:[#allocation33_spill] sm:$0xff] }
 0x6e8   :  { %7047 = vmatmul.msk.bf16.vlgmr.msrb.gmra.mxu3 %vm5083_vm12, %v11482_v59  ;;  %v5573_v9 = vpack.c.bf16 %v1910_v24, %v13054_v49  ;;  %v13057_v41 = vld [vmem:[#allocation141_spill] sm:$0xff]  ;;  %v6859_v24 = vld [vmem:[#allocation2 + $0x1f8] sm:$0xf0] }
 0x6e9   :  { %5536 = vmatpush.bf16.msra.mxu3 %v7038_v1  ;;  %v3384_v12 = vpop.permute.xlu0 %3383  ;;  %5363 = vmatpush.bf16.msrb.mxu1 %v6762_v46  ;;  %v6971_v1 = vld [vmem:[#allocation2 + $0x2d8] sm:$0xf0]  ;;  %v7337_v46 = vld [vmem:[#allocation2 + $0x2cc] sm:$0xf] }
 0x6ea   :  { %v3407_v22 = vsel %vm580_vm8, %v3384_v12, %v13050_v48  ;;  %v3413_v21 = vsel %vm580_vm8, %v13051_v63, %v3384_v12  ;;  %v11955_v2 = vpop.f32.mrf.mxu2  ;;  %vm13056_vm8 = vmmov %vm12974_vm2  ;;  %v6974_v31 = vor.u32 %v7337_v46, %v6971_v1  ;;  %v7333_v12 = vld [vmem:[#allocation2 + $0x2ac] sm:$0xf] }
 0x6eb   :  { %v3433_v40 = vmul.f32 %v13010_v45, %v3413_v21  ;;  %v3434_v18 = vmul.f32 %v13011_v13, %v3407_v22  ;;  %v6990_v13 = vor.u32 %v7341_v53, %v6987_v20  ;;  %v6958_v48 = vor.u32 %v7333_v12, %v6955_v42  ;;  %v7273_v22 = vld [vmem:[#allocation2 + $0xcc] sm:$0xf] }
 0x6ec   :  { %v7329_v63 = vld [vmem:[#allocation2 + $0x28c] sm:$0xf] }
 0x6ed   :  { %5537 = vmatpush.bf16.msra.mxu3 %v7022_v3  ;;  %v3456_v28 = vpack.c.bf16 %v3434_v18, %v3433_v40  ;;  %v6715_v40 = vld [vmem:[#allocation2 + $0xd8] sm:$0xf0]  ;;  %v7305_v46 = vld [vmem:[#allocation2 + $0x1cc] sm:$0xf] }
 0x6ee   :  { %v7315_v54 = vld [vmem:[#allocation2 + $0x214] sm:$0xf0]  ;;  %v6939_v18 = vld [vmem:[#allocation2 + $0x298] sm:$0xf0]  ;;  %v6718_v57 = vor.u32 %v7273_v22, %v6715_v40  ;;  %v7321_v42 = vld [vmem:[#allocation2 + $0x24c] sm:$0xf] }
 0x6ef   :  { %3468 = vst [vmem:[#allocation2 + $0x8] sm:$0xff] %v3456_v28  ;;  %v6874_v47 = vor.u32 %v7315_v54, %v6873_v16  ;;  %v11957_v45 = vpop.f32.mrf.mxu3  ;;  %v6923_v28 = vld [vmem:[#allocation2 + $0x278] sm:$0xf0]  ;;  %v7269_v16 = vld [vmem:[#allocation2 + $0xac] sm:$0xf] }
 0x6f0   :  { %v7309_v54 = vld [vmem:[#allocation2 + $0x1ec] sm:$0xf] }
 0x6f1   :  { %5538 = vmatpush.bf16.msra.mxu3 %v7006_v43  ;;  %v3634_v14 = vpop.permute.xlu0 %3633  ;;  %5393 = vmatpush.bf16.msrb.mxu2 %v6874_v47  ;;  %v6942_v43 = vor.u32 %v7329_v63, %v6939_v18  ;;  %v6862_v49 = vor.u32 %v7309_v54, %v6859_v24  ;;  %v7301_v22 = vld [vmem:[#allocation2 + $0x1ac] sm:$0xf]  ;;  %v6891_v18 = vld [vmem:[#allocation2 + $0x238] sm:$0xf0] }
 0x6f2   :  { %v5105_v26 = vpop.f32.mrf.mxu0  ;;  %v3652_v4 = vsel %vm13056_vm8, %v3634_v14, %v13055_v62  ;;  %v3658_v36 = vsel %vm13058_vm11, %v13057_v41, %v3634_v14  ;;  %v11970_v25 = vpop.f32.mrf.mxu2  ;;  %v6683_v62 = vld [vmem:[#allocation2 + $0x98] sm:$0xf0] }
 0x6f3   :  { %v3693_v51 = vmul.f32 %v12755_v6, %v3658_v36  ;;  %v3694_v23 = vmul.f32 %v12756_v56, %v3652_v4  ;;  %v6731_v6 = vld [vmem:[#allocation2 + $0xf8] sm:$0xf0] }
 0x6f4   :  { %5394 = vmatmul.bf16.vlgmr.msrb.gmra.mxu2 %v11419_v5  ;;  %5264 = vmatmul.bf16.gmra.mxu1 %v11794_v30  ;;  %v6734_v27 = vor.u32 %v7277_v37, %v6731_v6  ;;  %v6843_v4 = vld [vmem:[#allocation2 + $0x1d8] sm:$0xf0] }
 0x6f5   :  { %5626 = vmatpush.bf16.msrb.mxu3 %v5577_v60  ;;  %5502 = vmatpush.bf16.msra.mxu2 %v6990_v13  ;;  %v3706_v3 = vpack.c.bf16 %v3694_v23, %v3693_v51  ;;  %v6702_v13 = vor.u32 %v7269_v16, %v6699_v32  ;;  %v6907_v36 = vld [vmem:[#allocation2 + $0x258] sm:$0xf0]  ;;  %v7265_v23 = vld [vmem:[#allocation2 + $0x8c] sm:$0xf]  ;;  %v6846_v37 = vor.u32 %v7305_v46, %v6843_v4  ;;  %v13065_v46 = vld [vmem:[#allocation46_spill] sm:$0xff] }
 0x6f6   :  { %v6617_v0 = vld [vmem:[#allocation2 + $0x8] sm:$0xf]  ;;  %v13060_v6 = vld [vmem:[#allocation79_spill] sm:$0xff] }
 0x6f7   :  { %3718 = vst [vmem:[#allocation2 + $0x118] sm:$0xff] %v3706_v3  ;;  %v6618_v33 = vor.u32 %v7251_v11, %v6617_v0  ;;  %v11972_v56 = vpop.f32.mrf.mxu3  ;;  %v6686_v3 = vor.u32 %v7265_v23, %v6683_v62  ;;  %v6910_v0 = vor.u32 %v7321_v42, %v6907_v36  ;;  %v7261_v11 = vld [vmem:[#allocation2 + $0x6c] sm:$0xf]  ;;  %v6651_v24 = vld [vmem:[#allocation2 + $0x58] sm:$0xf0]  ;;  %v13064_v23 = vld [vmem:[#allocation60_spill] sm:$0xff] }
 0x6f8   :  { %7048 = vmatmul.msk.bf16.gmra.mxu3 %vm5083_vm12, %v11553_v17  ;;  %v13063_v16 = vld [vmem:[#allocation81_spill] sm:$0xff]  ;;  %v13066_v42 = vld [vmem:[#allocation35_spill] sm:$0xff] }
 0x6f9   :  { %5627 = vmatpush.bf16.msrb.mxu3 %v5573_v9  ;;  %5503 = vmatpush.bf16.msra.mxu2 %v6974_v31  ;;  %v7325_v9 = vld [vmem:[#allocation2 + $0x26c] sm:$0xf] }
 0x6fa   :  { %5335 = vmatpush.bf16.msrb.mxu0 %v6618_v33  ;;  %v11976_v21 = vpop.f32.mrf.mxu0  ;;  %v6926_v1 = vor.u32 %v7325_v9, %v6923_v28  ;;  %v13059_v33 = vld [vmem:[#allocation77_spill] sm:$0xff] }
 0x6fb   :  { %v1839_v12 = vadd.f32 %v13060_v6, %v13059_v33  ;;  %v13062_v28 = vld [vmem:[#allocation49_spill] sm:$0xff] }
 0x6fc   :  { %v11981_v53 = vpop.f32.mrf.mxu2  ;;  %v7313_v36 = vld [vmem:[#allocation2 + $0x20c] sm:$0xf] }
 0x6fd   :  { %5504 = vmatpush.bf16.msra.mxu2 %v6958_v48  ;;  %5336 = vmatmul.bf16.vlgmr.msrb.gmra.mxu0 %v11555_v50  ;;  %v7317_v48 = vld [vmem:[#allocation2 + $0x22c] sm:$0xf]  ;;  %v1858_v54 = vadd.f32 %v13063_v16, %v1839_v12 }
 0x6fe   :  { %5444 = vmatpush.bf16.msra.mxu0 %v6734_v27  ;;  %v7283_v60 = vld [vmem:[#allocation2 + $0x114] sm:$0xf0]  ;;  %v6894_v32 = vor.u32 %v7317_v48, %v6891_v18  ;;  %v7293_v6 = vld [vmem:[#allocation2 + $0x16c] sm:$0xf] }
 0x6ff   :  { %v6746_v20 = vor.u32 %v7283_v60, %v6745_v10  ;;  %v11979_v47 = vpop.f32.mrf.mxu3  ;;  %v6811_v10 = vld [vmem:[#allocation2 + $0x198] sm:$0xf0]  ;;  %v13061_v60 = vld [vmem:[#allocation37_spill] sm:$0xff] }
 0x701   :  { %5505 = vmatpush.bf16.msra.mxu2 %v6942_v43  ;;  %v5134_v14 = vpop.f32.mrf.mxu1  ;;  %5364 = vmatpush.bf16.msrb.mxu1 %v6746_v20  ;;  %v1834_v20 = vadd.f32 %v13062_v28, %v13061_v60  ;;  %v13071_v28 = vld [vmem:[#allocation39_spill] sm:$0xff] }
 0x702   :  { %5445 = vmatpush.bf16.msra.mxu0 %v6718_v57  ;;  %v5135_v41 = vadd.f32 %v5134_v14, %v5105_v26  ;;  %v6827_v26 = vld [vmem:[#allocation2 + $0x1b8] sm:$0xf0]  ;;  %v7257_v14 = vld [vmem:[#allocation2 + $0x4c] sm:$0xf] }
 0x703   :  { %v6830_v40 = vor.u32 %v7301_v22, %v6827_v26  ;;  %v6654_v4 = vor.u32 %v7257_v14, %v6651_v24  ;;  %v7249_v24 = vld [vmem:[#allocation2 + $0xc] sm:$0xf] }
 0x704   :  { %v11983_v51 = vpop.f32.mrf.mxu0  ;;  %v5164_v31 = vadd.f32 %v11922_v58, %v5135_v41  ;;  %5399 = vmatmul.bf16.gmra.mxu2 %v11502_v34  ;;  %5365 = vmatmul.bf16.vlgmr.msrb.gmra.mxu1 %v11617_v52  ;;  %v6667_v58 = vld [vmem:[#allocation2 + $0x78] sm:$0xf0] }
 0x705   :  { %5473 = vmatpush.bf16.msra.mxu1 %v6862_v49  ;;  %5506 = vmatpush.bf16.msra.mxu2 %v6926_v1  ;;  %v6670_v63 = vor.u32 %v7261_v11, %v6667_v58  ;;  %v6875_v49 = vld [vmem:[#allocation2 + $0x218] sm:$0xf0]  ;;  %v7297_v1 = vld [vmem:[#allocation2 + $0x18c] sm:$0xf] }
 0x706   :  { %5446 = vmatpush.bf16.msra.mxu0 %v6702_v13  ;;  %v11991_v27 = vadd.f32 %v11938_v29, %v5164_v31  ;;  %v11997_v29 = vpop.f32.mrf.mxu2  ;;  %v6814_v41 = vor.u32 %v7297_v1, %v6811_v10  ;;  %v1725_v31 = vadd.f32 %v13065_v46, %v13064_v23  ;;  %v13067_v11 = vld [vmem:[#allocation75_spill] sm:$0xff] }
 0x707   :  { %v5576_v26 = vpack.c.bf16 %v1858_v54, %v13067_v11  ;;  %v6779_v10 = vld [vmem:[#allocation2 + $0x158] sm:$0xf0] }
 0x708   :  { %7049 = vmatmul.msk.bf16.gmra.mxu3 %vm5083_vm12, %v11619_v38  ;;  %v11995_v57 = vpop.f32.mrf.mxu3  ;;  %v6619_v54 = vld [vmem:[#allocation2 + $0x18] sm:$0xf0] }
 0x709   :  { %5474 = vmatpush.bf16.msra.mxu1 %v6846_v37  ;;  %5507 = vmatpush.bf16.msra.mxu2 %v6910_v0  ;;  %v5136_v43 = vpop.f32.mrf.mxu1  ;;  %v6635_v37 = vld [vmem:[#allocation2 + $0x38] sm:$0xf0]  ;;  %v1853_v0 = vadd.f32 %v13066_v42, %v1834_v20  ;;  %v6622_v1 = vor.u32 %v7249_v24, %v6619_v54  ;;  %v13080_v24 = vld [vmem:[#allocation48_spill] sm:$0xff] }
 0x70a   :  { %5447 = vmatpush.bf16.msra.mxu0 %v6686_v3  ;;  %v5137_v13 = vadd.f32 %v5136_v43, %v11976_v21  ;;  %v6878_v3 = vor.u32 %v7313_v36, %v6875_v49  ;;  %v6795_v21 = vld [vmem:[#allocation2 + $0x178] sm:$0xf0]  ;;  %v13070_v43 = vld [vmem:[#allocation78_spill] sm:$0xff] }
 0x70b   :  { %v6798_v58 = vor.u32 %v7293_v6, %v6795_v21  ;;  %v5572_v20 = vpack.c.bf16 %v1853_v0, %v13071_v28  ;;  %v13073_v36 = vld [vmem:[#allocation38_spill] sm:$0xff]  ;;  %v13074_v46 = vld [vmem:[#allocation43_spill] sm:$0xff] }
 0x70c   :  { %v5112_v9 = vpop.f32.mrf.mxu0  ;;  %v5166_v62 = vadd.f32 %v11935_v39, %v5137_v13  ;;  %v7253_v39 = vld [vmem:[#allocation2 + $0x2c] sm:$0xf]  ;;  %v13076_v0 = vld [vmem:[#allocation91_spill] sm:$0xff] }
 0x70d   :  { %5475 = vmatpush.bf16.msra.mxu1 %v6830_v40  ;;  %5508 = vmatpush.bf16.msra.mxu2 %v6894_v32  ;;  %v6638_v48 = vor.u32 %v7253_v39, %v6635_v37  ;;  %v13069_v40 = vld [vmem:[#allocation59_spill] sm:$0xff]  ;;  %v1744_v32 = vadd.f32 %v13070_v43, %v1725_v31  ;;  %v7289_v13 = vld [vmem:[#allocation2 + $0x14c] sm:$0xf] }
 0x70e   :  { %5448 = vmatpush.bf16.msra.mxu0 %v6670_v63  ;;  %v12010_v33 = vadd.f32 %v11957_v45, %v5166_v62  ;;  %v13068_v63 = vld [vmem:[#allocation57_spill] sm:$0xff]  ;;  %v12021_v49 = vpop.f32.mrf.mxu2  ;;  %v6782_v62 = vor.u32 %v7289_v13, %v6779_v10 }
 0x70f   :  { %5341 = vmatmul.bf16.gmra.mxu0 %v11621_v19  ;;  %v1720_v18 = vadd.f32 %v13069_v40, %v13068_v63  ;;  %v5574_v23 = vpack.c.bf16 %v1744_v32, %v13073_v36  ;;  %v13078_v39 = vld [vmem:[#allocation53_spill] sm:$0xff]  ;;  %v6747_v40 = vld [vmem:[#allocation2 + $0x118] sm:$0xf0] }
 0x710   :  { %v5689_v12 = vpack.c.bf16 %v12010_v33, %v11991_v27  ;;  %v12014_v22 = vpop.f32.mrf.mxu3  ;;  %v7281_v43 = vld [vmem:[#allocation2 + $0x10c] sm:$0xf]  ;;  %v13084_v36 = vld [vmem:[#allocation31_spill] sm:$0xff] }
 0x711   :  { %5476 = vmatpush.bf16.msra.mxu1 %v6814_v41  ;;  %5509 = vmatpush.bf16.msra.mxu2 %v6878_v3  ;;  %v5139_v45 = vpop.f32.mrf.mxu1  ;;  %v7285_v3 = vld [vmem:[#allocation2 + $0x12c] sm:$0xf] }
 0x712   :  { %5449 = vmatpush.bf16.msra.mxu0 %v6654_v4  ;;  %v5140_v60 = vadd.f32 %v5139_v45, %v11983_v51  ;;  %v13072_v4 = vld [vmem:[#allocation47_spill] sm:$0xff]  ;;  %v13075_v51 = vld [vmem:[#allocation29_spill] sm:$0xff]  ;;  %v6750_v45 = vor.u32 %v7281_v43, %v6747_v40  ;;  %v13088_v40 = vld [vmem:[#allocation30_spill] sm:$0xff] }
 0x713   :  { %v1739_v41 = vadd.f32 %v13072_v4, %v1720_v18  ;;  %v1782_v31 = vadd.f32 %v13075_v51, %v13074_v46  ;;  %v13090_v43 = vld [vmem:[#allocation23_spill] sm:$0xff] }
 0x714   :  { %v5115_v16 = vpop.f32.mrf.mxu0  ;;  %v5169_v14 = vadd.f32 %v11955_v2, %v5140_v60  ;;  %5370 = vmatmul.bf16.gmra.mxu1 %v11678_v15  ;;  %5404 = vmatmul.bf16.gmra.mxu2 %v11576_v55  ;;  %v6763_v2 = vld [vmem:[#allocation2 + $0x138] sm:$0xf0]  ;;  %v13081_v60 = vld [vmem:[#allocation80_spill] sm:$0xff] }
 0x715   :  { %5613 = vmatpush.bf16.msrb.mxu2 %v5576_v26  ;;  %5477 = vmatpush.bf16.msra.mxu1 %v6798_v58  ;;  %v6766_v21 = vor.u32 %v7285_v3, %v6763_v2  ;;  %v5570_v11 = vpack.c.bf16 %v1739_v41, %v13076_v0  ;;  %v13077_v26 = vld [vmem:[#allocation50_spill] sm:$0xff]  ;;  %v13085_v3 = vld [vmem:[#allocation20_spill] sm:$0xff] }
 0x716   :  { %5450 = vmatpush.bf16.msra.mxu0 %v6638_v48  ;;  %v12031_v37 = vadd.f32 %v11972_v56, %v5169_v14  ;;  %v1777_v6 = vadd.f32 %v13078_v39, %v13077_v26  ;;  %v13079_v48 = vld [vmem:[#allocation76_spill] sm:$0xff]  ;;  %v13082_v14 = vld [vmem:[#allocation34_spill] sm:$0xff] }
 0x717   :  { %v1801_v58 = vadd.f32 %v13079_v48, %v1782_v31  ;;  %v13086_v2 = vld [vmem:[#allocation24_spill] sm:$0xff] }
 0x718   :  { %7050 = vmatmul.msk.bf16.gmra.mxu3 %vm5083_vm12, %v11680_v35  ;;  %v5207_v42 = vpop.f32.mrf.mxu3  ;;  %v1796_v10 = vadd.f32 %v13080_v24, %v1777_v6 }
 0x719   :  { %5614 = vmatpush.bf16.msrb.mxu2 %v5572_v20  ;;  %5478 = vmatpush.bf16.msra.mxu1 %v6782_v62  ;;  %v5141_v63 = vpop.f32.mrf.mxu1  ;;  %v5575_v28 = vpack.c.bf16 %v1801_v58, %v13081_v60  ;;  %v5180_v20 = vpop.f32.mrf.mxu2  ;;  %v13092_v60 = vld [vmem:[#allocation25_spill] sm:$0xff] }
 0x71a   :  { %5451 = vmatpush.bf16.msra.mxu0 %v6622_v1  ;;  %v5142_v56 = vadd.f32 %v5141_v63, %v5112_v9  ;;  %v5571_v1 = vpack.c.bf16 %v1796_v10, %v13082_v14  ;;  %v13087_v63 = vld [vmem:[#allocation27_spill] sm:$0xff]  ;;  %v13091_v10 = vld [vmem:[#allocation21_spill] sm:$0xff] }
 0x71c   :  { %v5117_v18 = vpop.f32.mrf.mxu0  ;;  %v5171_v32 = vadd.f32 %v11970_v25, %v5142_v56  ;;  %v5567_v56 = vpack.c.bf16 %v13088_v40, %v13087_v63 }
 0x71d   :  { %5479 = vmatpush.bf16.msra.mxu1 %v6766_v21 }
 0x71e   :  { %5587 = vmatpush.bf16.msrb.mxu0 %v5574_v23  ;;  %v12044_v54 = vadd.f32 %v11979_v47, %v5171_v32  ;;  %v13083_v47 = vld [vmem:[#allocation28_spill] sm:$0xff] }
 0x71f   :  { %5346 = vmatmul.bf16.gmra.mxu0 %v11682_v61  ;;  %v5568_v23 = vpack.c.bf16 %v13084_v36, %v13083_v47 }
 0x720   :  { %v5693_v9 = vpack.c.bf16 %v12044_v54, %v12031_v37  ;;  %v5209_v13 = vpop.f32.mrf.mxu3 }
 0x721   :  { %5480 = vmatpush.bf16.msra.mxu1 %v6750_v45  ;;  %v5144_v25 = vpop.f32.mrf.mxu1  ;;  %v5279_v51 = vpop.f32.mrf.mxu2 }
 0x722   :  { %5588 = vmatpush.bf16.msrb.mxu0 %v5570_v11  ;;  %v5145_v62 = vadd.f32 %v5144_v25, %v5115_v16  ;;  %v13094_v25 = vld [vmem:[#allocation17_spill] sm:$0xff] }
 0x724   :  { %v5120_v4 = vpop.f32.mrf.mxu0  ;;  %v5174_v41 = vadd.f32 %v11981_v53, %v5145_v62  ;;  %5375 = vmatmul.bf16.gmra.mxu1 %v11737_v44  ;;  %5409 = vmatmul.bf16.gmra.mxu2 %v11643_v8  ;;  %v5564_v53 = vpack.c.bf16 %v13086_v2, %v13085_v3  ;;  %v13096_v3 = vld [vmem:[#allocation26_spill] sm:$0xff] }
 0x725   :  { %5600 = vmatpush.bf16.msrb.mxu1 %v5575_v28 }
 0x726   :  { %v12055_v46 = vadd.f32 %v11995_v57, %v5174_v41 }
 0x728   :  { %7051 = vmatmul.msk.bf16.vlgmr.msra.gmra.mxu3 %vm5083_vm12, %v11482_v59  ;;  %v5308_v31 = vpop.f32.mrf.mxu3 }
 0x729   :  { %5601 = vmatpush.bf16.msrb.mxu1 %v5571_v1  ;;  %5681 = vmatpush.bf16.msra.mxu3 %v5568_v23  ;;  %v5146_v16 = vpop.f32.mrf.mxu1  ;;  %v5281_v39 = vpop.f32.mrf.mxu2 }
 0x72a   :  { %v5147_v21 = vadd.f32 %v5146_v16, %v5117_v18  ;;  %v13095_v16 = vld [vmem:[#allocation22_spill] sm:$0xff] }
 0x72c   :  { %v5122_v0 = vpop.f32.mrf.mxu0  ;;  %v5176_v11 = vadd.f32 %v11997_v29, %v5147_v21  ;;  %v13098_v21 = vld [vmem:[#allocation18_spill] sm:$0xff] }
 0x72d   :  { %5682 = vmatpush.bf16.msra.mxu3 %v5564_v53  ;;  %v13097_v53 = vld [vmem:[#allocation16_spill] sm:$0xff] }
 0x72e   :  { %v12064_v57 = vadd.f32 %v12014_v22, %v5176_v11  ;;  %v13089_v22 = vld [vmem:[#allocation19_spill] sm:$0xff] }
 0x72f   :  { %5351 = vmatmul.bf16.gmra.mxu0 %v11739_v7  ;;  %v5563_v32 = vpack.c.bf16 %v13090_v43, %v13089_v22 }
 0x730   :  { %v5310_v26 = vpop.f32.mrf.mxu3  ;;  %v5697_v59 = vpack.c.bf16 %v12064_v57, %v12055_v46 }
 0x731   :  { %v5149_v6 = vpop.f32.mrf.mxu1  ;;  %v12083_v1 = vpop.f32.mrf.mxu2 }
 0x732   :  { %v5150_v48 = vadd.f32 %v5149_v6, %v5120_v4 }
 0x734   :  { %v5221_v58 = vpop.f32.mrf.mxu0  ;;  %v5179_v18 = vadd.f32 %v12021_v49, %v5150_v48  ;;  %5380 = vmatmul.bf16.gmra.mxu1 %v11794_v30  ;;  %5510 = vmatmul.bf16.vlgmr.msra.gmra.mxu2 %v11419_v5  ;;  %v5565_v49 = vpack.c.bf16 %v13092_v60, %v13091_v10 }
 0x735   :  { %5668 = vmatpush.bf16.msra.mxu2 %v5567_v56 }
 0x736   :  { %v12073_v29 = vadd.f32 %v5207_v42, %v5179_v18  ;;  %v13093_v42 = vld [vmem:[#allocation15_spill] sm:$0xff] }
 0x737   :  { %v5561_v62 = vpack.c.bf16 %v13094_v25, %v13093_v42 }
 0x738   :  { %7052 = vmatmul.msk.bf16.gmra.mxu3 %vm5083_vm12, %v11553_v17  ;;  %v12079_v45 = vpop.f32.mrf.mxu3 }
 0x739   :  { %5669 = vmatpush.bf16.msra.mxu2 %v5563_v32  ;;  %v5151_v24 = vpop.f32.mrf.mxu1 }
 0x73a   :  { %v5152_v28 = vadd.f32 %v5151_v24, %v5122_v0  ;;  %v5562_v0 = vpack.c.bf16 %v13098_v21, %v13097_v53 }
 0x73c   :  { %v5223_v14 = vpop.f32.mrf.mxu0  ;;  %v5181_v5 = vadd.f32 %v5180_v20, %v5152_v28 }
 0x73e   :  { %v12088_v4 = vadd.f32 %v5209_v13, %v5181_v5  ;;  %v12100_v13 = vpop.f32.mrf.mxu2 }
 0x73f   :  { %5452 = vmatmul.bf16.vlgmr.msra.gmra.mxu0 %v11555_v50  ;;  %v5566_v50 = vpack.c.bf16 %v13096_v3, %v13095_v16 }
 0x740   :  { %5642 = vmatpush.bf16.msra.mxu0 %v5565_v49  ;;  %v12090_v17 = vpop.f32.mrf.mxu3  ;;  %v5701_v41 = vpack.c.bf16 %v12088_v4, %v12073_v29 }
 0x741   :  { %v5250_v47 = vpop.f32.mrf.mxu1 }
 0x742   :  { %v5251_v36 = vadd.f32 %v5250_v47, %v5221_v58 }
 0x744   :  { %5643 = vmatpush.bf16.msra.mxu0 %v5561_v62  ;;  %v12094_v23 = vpop.f32.mrf.mxu0  ;;  %v5280_v20 = vadd.f32 %v5279_v51, %v5251_v36  ;;  %5481 = vmatmul.bf16.vlgmr.msra.gmra.mxu1 %v11617_v52 }
 0x745   :  { %5515 = vmatmul.bf16.gmra.mxu2 %v11502_v34  ;;  %5655 = vmatpush.bf16.msra.mxu1 %v5566_v50 }
 0x746   :  { %v12102_v2 = vadd.f32 %v5308_v31, %v5280_v20  ;;  %v5289_v58 = vpop.f32.mrf.mxu2 }
 0x748   :  { %7053 = vmatmul.msk.bf16.gmra.mxu3 %vm5083_vm12, %v11619_v38  ;;  %v12108_v11 = vpop.f32.mrf.mxu3 }
 0x749   :  { %5656 = vmatpush.bf16.msra.mxu1 %v5562_v0  ;;  %v5252_v6 = vpop.f32.mrf.mxu1 }
 0x74a   :  { %v5253_v51 = vadd.f32 %v5252_v6, %v5223_v14 }
 0x74c   :  { %v5228_v48 = vpop.f32.mrf.mxu0  ;;  %v5282_v34 = vadd.f32 %v5281_v39, %v5253_v51 }
 0x74e   :  { %v12111_v52 = vadd.f32 %v5310_v26, %v5282_v34  ;;  %v5291_v38 = vpop.f32.mrf.mxu2 }
 0x74f   :  { %5457 = vmatmul.bf16.gmra.mxu0 %v11621_v19 }
 0x750   :  { %v5320_v31 = vpop.f32.mrf.mxu3  ;;  %v5690_v63 = vpack.c.bf16 %v12111_v52, %v12102_v2 }
 0x751   :  { %v5255_v40 = vpop.f32.mrf.mxu1 }
 0x752   :  { %v5256_v16 = vadd.f32 %v5255_v40, %v12094_v23 }
 0x754   :  { %v5231_v56 = vpop.f32.mrf.mxu0  ;;  %5486 = vmatmul.bf16.gmra.mxu1 %v11678_v15  ;;  %v5285_v46 = vadd.f32 %v12083_v1, %v5256_v16 }
 0x755   :  { %5520 = vmatmul.bf16.gmra.mxu2 %v11576_v55  ;;  %v5569_v55 = vld [vmem:[%s12203_s6] sm:$0x3] }
 0x756   :  { %v5294_v22 = vpop.f32.mrf.mxu2 }
 0x758   :  { %7054 = vmatmul.msk.bf16.gmra.mxu3 %vm5083_vm12, %v11680_v35  ;;  %v5323_v18 = vpop.f32.mrf.mxu3 }
 0x759   :  { %v5257_v19 = vpop.f32.mrf.mxu1 }
 0x75a   :  { %v5258_v4 = vadd.f32 %v5257_v19, %v5228_v48 }
 0x75c   :  { %v5233_v39 = vpop.f32.mrf.mxu0 }
 0x75e   :  { %v5296_v32 = vpop.f32.mrf.mxu2 }
 0x75f   :  { %5462 = vmatmul.bf16.gmra.mxu0 %v11682_v61 }
 0x760   :  { %v5325_v26 = vpop.f32.mrf.mxu3 }
 0x761   :  { %v5260_v29 = vpop.f32.mrf.mxu1 }
 0x764   :  { %5491 = vmatmul.bf16.gmra.mxu1 %v11737_v44  ;;  %v5236_v43 = vpop.f32.mrf.mxu0 }
 0x765   :  { %5525 = vmatmul.bf16.gmra.mxu2 %v11643_v8 }
 0x768   :  { %7058 = vmatmul.msk.bf16.vlgmr.msrb.gmra.mxu3 %vm1682_vm0, %v5569_v55 }
 0x769   :  { %v5262_v15 = vpop.f32.mrf.mxu1 }
 0x76a   :  { %v5263_v5 = vadd.f32 %v5262_v15, %v5233_v39 }
 0x76b   :  { %v5424_v35 = vpop.f32.mrf.mxu3 }
 0x76c   :  { %v5238_v61 = vpop.f32.mrf.mxu0  ;;  %v5292_v47 = vadd.f32 %v5291_v38, %v5263_v5 }
 0x76e   :  { %v5321_v0 = vadd.f32 %v5320_v31, %v5292_v47 }
 0x76f   :  { %5467 = vmatmul.bf16.gmra.mxu0 %v11739_v7  ;;  %v5261_v7 = vadd.f32 %v5260_v29, %v5231_v56 }
 0x771   :  { %v5265_v24 = vpop.f32.mrf.mxu1  ;;  %v5290_v3 = vadd.f32 %v5289_v58, %v5261_v7  ;;  %v5314_v58 = vadd.f32 %v12079_v45, %v5285_v46 }
 0x772   :  { %v5266_v60 = vadd.f32 %v5265_v24, %v5236_v43 }
 0x773   :  { %v5426_v10 = vpop.f32.mrf.mxu3  ;;  %v5319_v57 = vadd.f32 %v12108_v11, %v5290_v3 }
 0x774   :  { %5496 = vmatmul.bf16.gmra.mxu1 %v11794_v30  ;;  %v5295_v25 = vadd.f32 %v5294_v22, %v5266_v60 }
 0x775   :  { %7057 = vmatmul.msk.bf16.vlgmr.msrb.gmra.mxu2 %vm1682_vm0, %v5569_v55 }
 0x776   :  { %v5324_v50 = vadd.f32 %v5323_v18, %v5295_v25 }
 0x777   :  { %v5395_v8 = vpop.f32.mrf.mxu2 }
 0x779   :  { %v5267_v49 = vpop.f32.mrf.mxu1 }
 0x77a   :  { %v5337_v44 = vpop.f32.mrf.mxu0  ;;  %v5268_v28 = vadd.f32 %v5267_v49, %v5238_v61 }
 0x77b   :  { %v12129_v14 = vpop.f32.mrf.mxu3 }
 0x77c   :  { %v5297_v42 = vadd.f32 %v5296_v32, %v5268_v28 }
 0x77e   :  { %v5326_v30 = vadd.f32 %v5325_v26, %v5297_v42 }
 0x77f   :  { %7055 = vmatmul.msk.bf16.vlgmr.msrb.gmra.mxu0 %vm1682_vm0, %v5569_v55  ;;  %v5397_v62 = vpop.f32.mrf.mxu2 }
 0x780   :  { %5713 = vmatpush.bf16.msrb.mxu0 %v5701_v41  ;;  %v5287_v41 = vadd.f32 %v12100_v13, %v5258_v4  ;;  %v5702_v6 = vpack.c.bf16 %v5326_v30, %v5324_v50  ;;  %v5698_v13 = vpack.c.bf16 %v5321_v0, %v5319_v57 }
 0x781   :  { %v5366_v20 = vpop.f32.mrf.mxu1 }
 0x782   :  { %v5339_v36 = vpop.f32.mrf.mxu0  ;;  %v5367_v53 = vadd.f32 %v5366_v20, %v5337_v44  ;;  %v5316_v48 = vadd.f32 %v12090_v17, %v5287_v41 }
 0x783   :  { %v12136_v21 = vpop.f32.mrf.mxu3 }
 0x784   :  { %5714 = vmatpush.bf16.msrb.mxu0 %v5697_v59  ;;  %v5396_v51 = vadd.f32 %v5395_v8, %v5367_v53  ;;  %7056 = vmatmul.msk.bf16.vlgmr.msrb.gmra.mxu1 %vm1682_vm0, %v5569_v55  ;;  %v5694_v1 = vpack.c.bf16 %v5316_v48, %v5314_v58  ;;  %v5560_v48 = vld [vmem:[%s12202_s5] sm:$0x3] }
 0x785   :  { %5726 = vmatpush.bf16.msrb.mxu1 %v5702_v6  ;;  %7061 = vmatmul.msk.bf16.vlgmr.msra.gmra.mxu2 %vm1682_vm0, %v5560_v48 }
 0x786   :  { %v12145_v59 = vadd.f32 %v5424_v35, %v5396_v51  ;;  %7062 = vmatmul.msk.bf16.vlgmr.msra.gmra.mxu3 %vm1682_vm0, %v5560_v48 }
 0x787   :  { %v5400_v23 = vpop.f32.mrf.mxu2 }
 0x788   :  { %5715 = vmatpush.bf16.msrb.mxu0 %v5693_v9 }
 0x789   :  { %5727 = vmatpush.bf16.msrb.mxu1 %v5698_v13  ;;  %v5368_v37 = vpop.f32.mrf.mxu1 }
 0x78a   :  { %v5369_v54 = vadd.f32 %v5368_v37, %v5339_v36 }
 0x78b   :  { %v5434_v9 = vpop.f32.mrf.mxu3 }
 0x78c   :  { %5716 = vmatpush.bf16.msrb.mxu0 %v5689_v12  ;;  %v5342_v34 = vpop.f32.mrf.mxu0  ;;  %v5398_v11 = vadd.f32 %v5397_v62, %v5369_v54 }
 0x78d   :  { %5728 = vmatpush.bf16.msrb.mxu1 %v5694_v1 }
 0x78e   :  { %v12152_v31 = vadd.f32 %v5426_v10, %v5398_v11 }
 0x78f   :  { %v5402_v40 = vpop.f32.mrf.mxu2  ;;  %7059 = vmatmul.msk.bf16.vlgmr.msra.gmra.mxu0 %vm1682_vm0, %v5560_v48 }
 0x790   :  { %v5691_v17 = vpack.c.bf16 %v12152_v31, %v12145_v59 }
 0x791   :  { %5729 = vmatpush.bf16.msrb.mxu1 %v5690_v63  ;;  %v5371_v27 = vpop.f32.mrf.mxu1 }
 0x792   :  { %v5372_v25 = vadd.f32 %v5371_v27, %v5342_v34 }
 0x793   :  { %v5436_v33 = vpop.f32.mrf.mxu3 }
 0x794   :  { %v5344_v56 = vpop.f32.mrf.mxu0  ;;  %v5401_v53 = vadd.f32 %v5400_v23, %v5372_v25  ;;  %7060 = vmatmul.msk.bf16.vlgmr.msra.gmra.mxu1 %vm1682_vm0, %v5560_v48 }
 0x796   :  { %v5430_v13 = vadd.f32 %v12129_v14, %v5401_v53 }
 0x797   :  { %v5405_v12 = vpop.f32.mrf.mxu2 }
 0x799   :  { %v5373_v38 = vpop.f32.mrf.mxu1 }
 0x79a   :  { %v5374_v5 = vadd.f32 %v5373_v38, %v5344_v56 }
 0x79b   :  { %v5439_v18 = vpop.f32.mrf.mxu3 }
 0x79c   :  { %v5347_v45 = vpop.f32.mrf.mxu0  ;;  %v5403_v36 = vadd.f32 %v5402_v40, %v5374_v5 }
 0x79e   :  { %v5432_v51 = vadd.f32 %v12136_v21, %v5403_v36 }
 0x79f   :  { %v5407_v19 = vpop.f32.mrf.mxu2 }
 0x7a0   :  { %v5695_v58 = vpack.c.bf16 %v5432_v51, %v5430_v13 }
 0x7a1   :  { %v5376_v26 = vpop.f32.mrf.mxu1 }
 0x7a2   :  { %v5377_v44 = vadd.f32 %v5376_v26, %v5347_v45 }
 0x7a3   :  { %v5441_v29 = vpop.f32.mrf.mxu3 }
 0x7a4   :  { %v5349_v39 = vpop.f32.mrf.mxu0  ;;  %v5406_v62 = vadd.f32 %v5405_v12, %v5377_v44  ;;  %v5688_v12 = vld [vmem:[%s12204_s7] sm:$0x3]  ;;  %s7495_s7 = smov [#allocation9]  }
 0x7a5   :  { %7064 = vmatmul.msk.bf16.vlgmr.msrb.gmra.mxu1 %vm5705_vm9, %v5688_v12  ;;  %7063 = vmatmul.msk.bf16.vlgmr.msrb.gmra.mxu0 %vm5705_vm9, %v5688_v12  ;;  %s5791_s11 = sshll.u32 %s7495_s7, 4  ;;  %s5792_s11 = int_to_ptr.vmem [resolvable:$true] %s5791_s11 }
 0x7a6   :  { %v5435_v41 = vadd.f32 %v5434_v9, %v5406_v62 }
 0x7a7   :  { %v5410_v22 = vpop.f32.mrf.mxu2 }
 0x7a9   :  { %v5378_v55 = vpop.f32.mrf.mxu1 }
 0x7aa   :  { %v5379_v63 = vadd.f32 %v5378_v55, %v5349_v39 }
 0x7ab   :  { %v5540_v15 = vpop.f32.mrf.mxu3 }
 0x7ac   :  { %v5352_v43 = vpop.f32.mrf.mxu0  ;;  %v5408_v42 = vadd.f32 %v5407_v19, %v5379_v63 }
 0x7ae   :  { %v5437_v16 = vadd.f32 %v5436_v33, %v5408_v42 }
 0x7af   :  { %v5412_v35 = vpop.f32.mrf.mxu2 }
 0x7b0   :  { %v5699_v46 = vpack.c.bf16 %v5437_v16, %v5435_v41 }
 0x7b1   :  { %v5381_v61 = vpop.f32.mrf.mxu1 }
 0x7b2   :  { %v5382_v2 = vadd.f32 %v5381_v61, %v5352_v43 }
 0x7b3   :  { %v5542_v24 = vpop.f32.mrf.mxu3 }
 0x7b4   :  { %v5354_v32 = vpop.f32.mrf.mxu0  ;;  %v5411_v60 = vadd.f32 %v5410_v22, %v5382_v2 }
 0x7b6   :  { %v5440_v4 = vadd.f32 %v5439_v18, %v5411_v60 }
 0x7b7   :  { %v5511_v52 = vpop.f32.mrf.mxu2 }
 0x7b9   :  { %v5383_v8 = vpop.f32.mrf.mxu1 }
 0x7ba   :  { %v5384_v49 = vadd.f32 %v5383_v8, %v5354_v32 }
 0x7bb   :  { %v12159_v28 = vpop.f32.mrf.mxu3 }
 0x7bc   :  { %v5453_v10 = vpop.f32.mrf.mxu0  ;;  %v5413_v7 = vadd.f32 %v5412_v35, %v5384_v49 }
 0x7be   :  { %v5442_v47 = vadd.f32 %v5441_v29, %v5413_v7 }
 0x7bf   :  { %v5513_v30 = vpop.f32.mrf.mxu2 }
 0x7c0   :  { %v5703_v3 = vpack.c.bf16 %v5442_v47, %v5440_v4 }
 0x7c1   :  { %v5482_v20 = vpop.f32.mrf.mxu1 }
 0x7c2   :  { %v5483_v0 = vadd.f32 %v5482_v20, %v5453_v10  ;;  %5739 = vmatpush.bf16.msrb.mxu2 %v5703_v3 }
 0x7c3   :  { %v12161_v6 = vpop.f32.mrf.mxu3 }
 0x7c4   :  { %v5455_v50 = vpop.f32.mrf.mxu0  ;;  %v5512_v57 = vadd.f32 %v5511_v52, %v5483_v0 }
 0x7c6   :  { %v12168_v34 = vadd.f32 %v5540_v15, %v5512_v57  ;;  %5740 = vmatpush.bf16.msrb.mxu2 %v5699_v46 }
 0x7c8   :  { %v5516_v23 = vpop.f32.mrf.mxu2 }
 0x7c9   :  { %v5484_v37 = vpop.f32.mrf.mxu1 }
 0x7ca   :  { %v5485_v54 = vadd.f32 %v5484_v37, %v5455_v50  ;;  %5741 = vmatpush.bf16.msrb.mxu2 %v5695_v58 }
 0x7cb   :  { %v5550_v9 = vpop.f32.mrf.mxu3 }
 0x7cc   :  { %v5458_v21 = vpop.f32.mrf.mxu0  ;;  %v5514_v1 = vadd.f32 %v5513_v30, %v5485_v54 }
 0x7ce   :  { %v5543_v14 = vadd.f32 %v5542_v24, %v5514_v1  ;;  %5742 = vmatpush.bf16.msrb.mxu2 %v5691_v17 }
 0x7d0   :  { %v5518_v11 = vpop.f32.mrf.mxu2  ;;  %v5692_v40 = vpack.c.bf16 %v5543_v14, %v12168_v34 }
 0x7d1   :  { %v5487_v27 = vpop.f32.mrf.mxu1  ;;  %7065 = vmatmul.msk.bf16.vlgmr.msrb.gmra.mxu2 %vm5705_vm9, %v5688_v12 }
 0x7d2   :  { %v5488_v42 = vadd.f32 %v5487_v27, %v5458_v21 }
 0x7d3   :  { %v5552_v33 = vpop.f32.mrf.mxu3 }
 0x7d4   :  { %v5460_v56 = vpop.f32.mrf.mxu0  ;;  %v5517_v50 = vadd.f32 %v5516_v23, %v5488_v42 }
 0x7d6   :  { %v5546_v0 = vadd.f32 %v12159_v28, %v5517_v50 }
 0x7d8   :  { %v5521_v45 = vpop.f32.mrf.mxu2 }
 0x7d9   :  { %v5489_v31 = vpop.f32.mrf.mxu1 }
 0x7da   :  { %v5490_v60 = vadd.f32 %v5489_v31, %v5460_v56 }
 0x7db   :  { %v5555_v38 = vpop.f32.mrf.mxu3 }
 0x7dc   :  { %v5463_v59 = vpop.f32.mrf.mxu0  ;;  %v5519_v47 = vadd.f32 %v5518_v11, %v5490_v60  ;;  %v13099_v11 = vld [vmem:[#allocation14_spill] sm:$0xff] }
 0x7de   :  { %v5548_v53 = vadd.f32 %v12161_v6, %v5519_v47 }
 0x7e0   :  { %v5523_v17 = vpop.f32.mrf.mxu2  ;;  %v5696_v51 = vpack.c.bf16 %v5548_v53, %v5546_v0 }
 0x7e1   :  { %v5492_v19 = vpop.f32.mrf.mxu1 }
 0x7e2   :  { %v5493_v10 = vadd.f32 %v5492_v19, %v5463_v59 }
 0x7e3   :  { %v5557_v22 = vpop.f32.mrf.mxu3 }
 0x7e4   :  { %v5465_v18 = vpop.f32.mrf.mxu0  ;;  %v5522_v7 = vadd.f32 %v5521_v45, %v5493_v10 }
 0x7e6   :  { %v5551_v20 = vadd.f32 %v5550_v9, %v5522_v7 }
 0x7e8   :  { %v5526_v39 = vpop.f32.mrf.mxu2 }
 0x7e9   :  { %v5494_v29 = vpop.f32.mrf.mxu1 }
 0x7ea   :  { %v5495_v24 = vadd.f32 %v5494_v29, %v5465_v18 }
 0x7eb   :  { %v5629_v35 = vpop.f32.mrf.mxu3 }
 0x7ec   :  { %v5468_v26 = vpop.f32.mrf.mxu0  ;;  %v5524_v49 = vadd.f32 %v5523_v17, %v5495_v24 }
 0x7ee   :  { %v5553_v30 = vadd.f32 %v5552_v33, %v5524_v49 }
 0x7f0   :  { %v5528_v43 = vpop.f32.mrf.mxu2  ;;  %v5700_v41 = vpack.c.bf16 %v5553_v30, %v5551_v20 }
 0x7f1   :  { %v5497_v15 = vpop.f32.mrf.mxu1 }
 0x7f2   :  { %v5498_v32 = vadd.f32 %v5497_v15, %v5468_v26  ;;  %v7375_v15 = vld.sshfl [vmem:[#allocation1 + $0x8] sm:$0xff pattern:$0x75316420] }
 0x7f3   :  { %v5631_v63 = vpop.f32.mrf.mxu3 }
 0x7f4   :  { %v5470_v55 = vpop.f32.mrf.mxu0  ;;  %v5527_v8 = vadd.f32 %v5526_v39, %v5498_v32 }
 0x7f6   :  { %v5556_v25 = vadd.f32 %v5555_v38, %v5527_v8 }
 0x7f8   :  { %v5616_v61 = vpop.f32.mrf.mxu2 }
 0x7f9   :  { %v5499_v52 = vpop.f32.mrf.mxu1 }
 0x7fa   :  { %v5500_v44 = vadd.f32 %v5499_v52, %v5470_v55 }
 0x7fc   :  { %v5590_v2 = vpop.f32.mrf.mxu0  ;;  %v5529_v5 = vadd.f32 %v5528_v43, %v5500_v44  ;;  %v7374_v43 = vld.sshfl [vmem:[#allocation1] sm:$0xff pattern:$0x75316420] }
 0x7fe   :  { %v5558_v62 = vadd.f32 %v5557_v22, %v5529_v5 }
 0x800   :  { %v5618_v4 = vpop.f32.mrf.mxu2  ;;  %v5704_v36 = vpack.c.bf16 %v5558_v62, %v5556_v25 }
 0x801   :  { %v5603_v3 = vpop.f32.mrf.mxu1 }
 0x802   :  { %5752 = vmatpush.bf16.msrb.mxu3 %v5704_v36 }
 0x804   :  { %v5592_v16 = vpop.f32.mrf.mxu0 }
 0x806   :  { %5753 = vmatpush.bf16.msrb.mxu3 %v5700_v41 }
 0x808   :  { %v5671_v13 = vpop.f32.mrf.mxu2 }
 0x809   :  { %v5605_v46 = vpop.f32.mrf.mxu1  ;;  %v5684_v58 = vpop.f32.mrf.mxu3  ;;  %v5672_v19 = vadd.f32 %v5671_v13, %v5616_v61 }
 0x80a   :  { %5754 = vmatpush.bf16.msrb.mxu3 %v5696_v51  ;;  %v5685_v39 = vadd.f32 %v5684_v58, %v5629_v35 }
 0x80c   :  { %v5645_v48 = vpop.f32.mrf.mxu0 }
 0x80d   :  { %v5646_v37 = vadd.f32 %v5645_v48, %v5590_v2 }
 0x80e   :  { %5755 = vmatpush.bf16.msrb.mxu3 %v5692_v40  ;;  %v13100_v40 = vld [vmem:[#allocation13_spill] sm:$0xff] }
 0x810   :  { %v5673_v54 = vpop.f32.mrf.mxu2 }
 0x811   :  { %7066 = vmatmul.msk.bf16.vlgmr.msrb.gmra.mxu3 %vm5705_vm9, %v5688_v12  ;;  %v5658_v57 = vpop.f32.mrf.mxu1  ;;  %v5686_v9 = vpop.f32.mrf.mxu3 }
 0x812   :  { %v5659_v21 = vadd.f32 %v5658_v57, %v5603_v3 }
 0x814   :  { %v5647_v23 = vpop.f32.mrf.mxu0 }
 0x819   :  { %v5660_v34 = vpop.f32.mrf.mxu1 }
 0x822   :  { %v5731_v6 = vpop.f32.mrf.mxu1  ;;  %v5718_v28 = vpop.f32.mrf.mxu0 }
 0x823   :  { %v5762_v1 = vadd.f32 %v5731_v6, %v5659_v21  ;;  %v5761_v14 = vadd.f32 %v5718_v28, %v5646_v37 }
 0x825   :  { %v5766_v56 = vadd.f32 %v5762_v1, %v13099_v11  ;;  %v5765_v33 = vadd.f32 %v5761_v14, %v13100_v40 }
 0x827   :  { %v5770_v27 = vmax.f32 %v5766_v56, 0.0  ;;  %v5769_v31 = vmax.f32 %v5765_v33, 0.0 }
 0x829   :  { %v5775_v59 = vrot.slane %v5770_v27, 4 }
 0x82a   :  { %v5733_v45 = vpop.f32.mrf.mxu1  ;;  %v5720_v17 = vpop.f32.mrf.mxu0 }
 0x82b   :  { %v5777_v38 = vsel %vm5776_vm14, %v5769_v31, %v5775_v59 }
 0x82c   :  { %5779 = vst [vmem:[#allocation9] sm:$0xff] %v5777_v38 }
 0x854   :  { %v5744_v12 = vpop.f32.mrf.mxu2 }
 0x855   :  { %v5763_v26 = vadd.f32 %v5744_v12, %v5672_v19 }
 0x857   :  { %v5767_v55 = vadd.f32 %v7374_v43, %v5763_v26 }
 0x859   :  { %v5771_v2 = vmax.f32 %v5767_v55, 0.0 }
 0x85c   :  { %v5746_v18 = vpop.f32.mrf.mxu2 }
 0x894   :  { %v5757_v29 = vpop.f32.mrf.mxu3 }
 0x895   :  { %v5764_v22 = vadd.f32 %v5757_v29, %v5685_v39 }
 0x897   :  { %v5768_v32 = vadd.f32 %v7375_v15, %v5764_v22 }
 0x899   :  { %v5772_v24 = vmax.f32 %v5768_v32, 0.0 }
 0x89b   :  { %v5782_v52 = vrot.slane %v5772_v24, 4 }
 0x89c   :  { %v5759_v63 = vpop.f32.mrf.mxu3 }
 0x89d   :  { %v5783_v35 = vsel %vm5776_vm14, %v5771_v2, %v5782_v52 }
 0x89e   :  { %5786 = vst [vmem:[#allocation9 + $0x8] sm:$0xff] %v5783_v35 }
 0x89f   :  { %5799 = dma.vmem_to_hbm [thread:$0]  %s5792_s11, 256, %s5794_s1, [#allocation5], %s7482_s17, %s7482_s17, %s7483_s18  }
 0x8a0   :  { %7476 = dma.done.wait [#allocation5], 256  }
 0x8a1   :  { %7477 = vsyncadd [#allocation5], 4294967040 }
 0x8a2   :  { %5804 = vsyncpa [#allocation4], 1 }
 0x8a3   :  { %5805 = vsyncpa [#allocation7], 1 }
 0x8a4   :  { %5806 = vsyncpa [#allocation5], 1 }

</bundles_post_ra>
